<compile_context>
chip_gen: v5e
topology: v5e:2x2
jax: 0.10.0
libtpu: 0.0.40
codegen_flags: <defaults>
</compile_context>

<pallas_src>
import jax
import jax.numpy as jnp
from jax.experimental import pallas as pl
from jax.experimental.pallas import tpu as pltpu


# --------------------------- in-kernel helpers (pure jnp) ---------------------------
def _pad1_hw(x):
    """Zero-pad H (axis 1) and W (axis 2) of an NHWC value by 1 on each side."""
    n, h, w, c = x.shape
    zw = jnp.zeros((n, h, 1, c), x.dtype)
    x = jnp.concatenate([zw, x, zw], axis=2)            # pad W (sublane axis)
    zh = jnp.zeros((n, 1, w + 2, c), x.dtype)
    return jnp.concatenate([zh, x, zh], axis=1)         # pad H (leading axis)


def _im2col3x3(xp, h, w):
    """(N, H+2, W+2, C) -> (N*H*W, 9*C). Column order (ky, kx, c)."""
    n = xp.shape[0]
    c = xp.shape[3]
    taps = [xp[:, ky:ky + h, kx:kx + w, :] for ky in range(3) for kx in range(3)]
    cols = jnp.concatenate(taps, axis=-1)               # (N, H, W, 9*C): lane concat
    return cols.reshape(n * h * w, 9 * c)               # minor (lane) dim preserved


def _maxpool2x2(x):
    """(N, H, W, C) -> (N, H//2, W//2, C), 2x2 window, stride 2."""
    n, h, w, c = x.shape
    ho, wo = h // 2, w // 2
    xw = x.reshape(n, h, wo, 2, c)                                  # split W
    pw = jnp.maximum(xw[:, :, :, 0, :], xw[:, :, :, 1, :])          # pool along W
    xh = pw.reshape(n, ho, 2, wo, c)                                # split H
    return jnp.maximum(xh[:, :, 0, :, :], xh[:, :, 1, :, :])        # pool along H


# ----------------------------------- fused kernel -----------------------------------
def vgg_fused_kernel(x_ref, w1_ref, b1_ref, w2_ref, b2_ref, wfc_ref, bfc_ref, o_ref):
    # x_ref:  (N, H, W, Cin)           NHWC input, whole batch
    # w1_ref: (9*Cin, C1)  b1_ref: (1, C1)     im2col conv1 weights / bias
    # w2_ref: (9*C1, C2)   b2_ref: (1, C2)     im2col conv2 weights / bias
    # wfc_ref:(C2, classes) bfc_ref:(1, classes)
    # o_ref:  (N, classes)
    n, h0, w0, _ = x_ref.shape
    c1 = w1_ref.shape[1]
    c2 = w2_ref.shape[1]
    h1, w1 = h0 // 2, w0 // 2
    h2, w2 = h1 // 2, w1 // 2

    # ---- stage 1: conv3x3(pad=1) + bias + ReLU + maxpool2 (all in VMEM) ----
    cols1 = _im2col3x3(_pad1_hw(x_ref[...]), h0, w0)            # (N*H*W, 9*Cin)
    a1 = jnp.dot(cols1, w1_ref[...], preferred_element_type=jnp.float32)
    a1 = jnp.maximum(a1 + b1_ref[...], 0.0).reshape(n, h0, w0, c1)
    p1 = _maxpool2x2(a1)                                        # (N, H/2, W/2, C1)

    # ---- stage 2: conv3x3(pad=1) + bias + ReLU + maxpool2 ----
    cols2 = _im2col3x3(_pad1_hw(p1), h1, w1)                    # (N*H1*W1, 9*C1)
    a2 = jnp.dot(cols2, w2_ref[...], preferred_element_type=jnp.float32)
    a2 = jnp.maximum(a2 + b2_ref[...], 0.0).reshape(n, h1, w1, c2)
    p2 = _maxpool2x2(a2)                                        # (N, H/4, W/4, C2)

    # ---- head: AvgPool2d(kernel=W) + flatten + Linear ----
    pooled = jnp.mean(p2.reshape(n, h2 * w2, c2), axis=1)       # (N, C2)
    o_ref[...] = jnp.dot(pooled, wfc_ref[...],
                         preferred_element_type=jnp.float32) + bfc_ref[...]


# ------------------------------------- wrapper --------------------------------------
def _vgg_forward_impl(x_nchw, params):
    n, cin, h, w = x_nchw.shape
    c1 = params["w1"].shape[0]
    c2 = params["w2"].shape[0]
    classes = params["w_fc"].shape[0]

    # One-time layout glue on tiny tensors: NCHW->NHWC input; conv weights to
    # im2col layout (rows ordered (ky, kx, c_in)); biases / fc weight as rows.
    x_nhwc = jnp.transpose(x_nchw, (0, 2, 3, 1))
    w1m = jnp.transpose(params["w1"], (2, 3, 1, 0)).reshape(9 * cin, c1)
    w2m = jnp.transpose(params["w2"], (2, 3, 1, 0)).reshape(9 * c1, c2)
    b1 = params["b1"].reshape(1, c1)
    b2 = params["b2"].reshape(1, c2)
    wfc = jnp.transpose(params["w_fc"])                  # (C2, classes)
    bfc = params["b_fc"].reshape(1, classes)

    return pl.pallas_call(
        vgg_fused_kernel,
        out_shape=jax.ShapeDtypeStruct((n, classes), jnp.float32),
        # No grid: single invocation over the whole batch; every operand gets a
        # whole-array VMEM block (total footprint is a few tens of KB).
        in_specs=[pl.BlockSpec(memory_space=pltpu.MemorySpace.VMEM)] * 7,
        out_specs=pl.BlockSpec(memory_space=pltpu.MemorySpace.VMEM),
    )(x_nhwc, w1m, b1, w2m, b2, wfc, bfc)


vgg_forward = jax.jit(_vgg_forward_impl)


# ----------------------------- params (PyTorch-style init) --------------------------
def init_vgg_params(key, cin=4, c1=8, c2=16, classes=10):
    k1, k2, k3 = jax.random.split(key, 3)
    # Conv2d: kaiming_normal_(mode='fan_out', relu) -> std = sqrt(2 / (Cout*3*3))
    w1 = jax.random.normal(k1, (c1, cin, 3, 3), jnp.float32) * jnp.sqrt(2.0 / (c1 * 9))
    b1 = jnp.zeros((c1,), jnp.float32)
    w2 = jax.random.normal(k2, (c2, c1, 3, 3), jnp.float32) * jnp.sqrt(2.0 / (c2 * 9))
    b2 = jnp.zeros((c2,), jnp.float32)
    # Linear: normal_(0, 0.01), bias 0
    w_fc = jax.random.normal(k3, (classes, c2), jnp.float32) * 0.01
    b_fc = jnp.zeros((classes,), jnp.float32)
    return dict(w1=w1, b1=b1, w2=w2, b2=b2, w_fc=w_fc, b_fc=b_fc)


# ------------------------------ pure-JAX reference check ----------------------------
def _reference_forward(x_nchw, params):
    hi = jax.lax.Precision.HIGHEST

    def conv3x3_relu(x, wt, b):
        n, ci, h, ww = x.shape
        xp = jnp.pad(x, ((0, 0), (0, 0), (1, 1), (1, 1)))
        acc = jnp.zeros((n, wt.shape[0], h, ww), jnp.float32)
        for ky in range(3):
            for kx in range(3):
                acc = acc + jnp.einsum("nihw,oi->nohw",
                                       xp[:, :, ky:ky + h, kx:kx + ww],
                                       wt[:, :, ky, kx], precision=hi)
        return jax.nn.relu(acc + b[None, :, None, None])

    def maxpool2(x):
        n, c, h, ww = x.shape
        return jnp.max(x.reshape(n, c, h // 2, 2, ww // 2, 2), axis=(3, 5))

    y = maxpool2(conv3x3_relu(x_nchw, params["w1"], params["b1"]))
    y = maxpool2(conv3x3_relu(y, params["w2"], params["b2"]))
    pooled = jnp.mean(y, axis=(2, 3))                     # AvgPool2d(kernel=W)+flatten
    return jnp.dot(pooled, params["w_fc"].T, precision=hi) + params["b_fc"][None, :]


# --------------------------------------- main ---------------------------------------
if __name__ == "__main__":
    key = jax.random.PRNGKey(0)
    kp, kx = jax.random.split(key)
    params = init_vgg_params(kp)
    x = jax.random.normal(kx, (2, 4, 16, 16), jnp.float32)   # NCHW, like PyTorch input

    out = jax.block_until_ready(vgg_forward(x, params))
    assert out.shape == (2, 10), out.shape
    assert bool(jnp.all(jnp.isfinite(out)))

    ref = jax.block_until_ready(_reference_forward(x, params))
    err = float(jnp.max(jnp.abs(out - ref)))
    assert jnp.allclose(out, ref, atol=2e-3, rtol=2e-2), f"max abs err {err}"

    print("KERNEL_OK")
</pallas_src>

<mosaic_0001>
module attributes {stable_mosaic.version = 11 : i64} {
  func.func @vgg_fused_kernel(%arg0: memref<2x16x16x4xf32, #tpu.memory_space<vmem>>, %arg1: memref<36x8xf32, #tpu.memory_space<vmem>>, %arg2: memref<1x8xf32, #tpu.memory_space<vmem>>, %arg3: memref<72x16xf32, #tpu.memory_space<vmem>>, %arg4: memref<1x16xf32, #tpu.memory_space<vmem>>, %arg5: memref<16x10xf32, #tpu.memory_space<vmem>>, %arg6: memref<1x10xf32, #tpu.memory_space<vmem>>, %arg7: memref<2x10xf32, #tpu.memory_space<vmem>>) attributes {dimension_semantics = [], scalar_prefetch = 0 : i64, scratch_operands = 0 : i64, tpu.core_type = #tpu.core_type<tc>} {
    %c0 = arith.constant 0 : index
    %c0_0 = arith.constant 0 : index
    %c0_1 = arith.constant 0 : index
    %c0_2 = arith.constant 0 : index
    %0 = vector.load %arg0[%c0, %c0_0, %c0_1, %c0_2] : memref<2x16x16x4xf32, #tpu.memory_space<vmem>>, vector<2x16x16x4xf32>
    %cst = arith.constant 0.000000e+00 : f32
    %1 = vector.broadcast %cst : f32 to vector<2x16x1x4xf32>
    %2 = tpu.concatenate %1, %0, %1 in 2 : vector<2x16x1x4xf32>, vector<2x16x16x4xf32>, vector<2x16x1x4xf32> -> vector<2x16x18x4xf32>
    %cst_3 = arith.constant 0.000000e+00 : f32
    %3 = vector.broadcast %cst_3 : f32 to vector<2x1x18x4xf32>
    %4 = tpu.concatenate %3, %2, %3 in 1 : vector<2x1x18x4xf32>, vector<2x16x18x4xf32>, vector<2x1x18x4xf32> -> vector<2x18x18x4xf32>
    %5 = vector.extract_strided_slice %4 {offsets = [0, 0, 0, 0], sizes = [2, 16, 16, 4], strides = [1, 1, 1, 1]} : vector<2x18x18x4xf32> to vector<2x16x16x4xf32>
    %6 = vector.extract_strided_slice %4 {offsets = [0, 0, 1, 0], sizes = [2, 16, 16, 4], strides = [1, 1, 1, 1]} : vector<2x18x18x4xf32> to vector<2x16x16x4xf32>
    %7 = vector.extract_strided_slice %4 {offsets = [0, 0, 2, 0], sizes = [2, 16, 16, 4], strides = [1, 1, 1, 1]} : vector<2x18x18x4xf32> to vector<2x16x16x4xf32>
    %8 = vector.extract_strided_slice %4 {offsets = [0, 1, 0, 0], sizes = [2, 16, 16, 4], strides = [1, 1, 1, 1]} : vector<2x18x18x4xf32> to vector<2x16x16x4xf32>
    %9 = vector.extract_strided_slice %4 {offsets = [0, 1, 1, 0], sizes = [2, 16, 16, 4], strides = [1, 1, 1, 1]} : vector<2x18x18x4xf32> to vector<2x16x16x4xf32>
    %10 = vector.extract_strided_slice %4 {offsets = [0, 1, 2, 0], sizes = [2, 16, 16, 4], strides = [1, 1, 1, 1]} : vector<2x18x18x4xf32> to vector<2x16x16x4xf32>
    %11 = vector.extract_strided_slice %4 {offsets = [0, 2, 0, 0], sizes = [2, 16, 16, 4], strides = [1, 1, 1, 1]} : vector<2x18x18x4xf32> to vector<2x16x16x4xf32>
    %12 = vector.extract_strided_slice %4 {offsets = [0, 2, 1, 0], sizes = [2, 16, 16, 4], strides = [1, 1, 1, 1]} : vector<2x18x18x4xf32> to vector<2x16x16x4xf32>
    %13 = vector.extract_strided_slice %4 {offsets = [0, 2, 2, 0], sizes = [2, 16, 16, 4], strides = [1, 1, 1, 1]} : vector<2x18x18x4xf32> to vector<2x16x16x4xf32>
    %14 = tpu.concatenate %5, %6, %7, %8, %9, %10, %11, %12, %13 in 3 : vector<2x16x16x4xf32>, vector<2x16x16x4xf32>, vector<2x16x16x4xf32>, vector<2x16x16x4xf32>, vector<2x16x16x4xf32>, vector<2x16x16x4xf32>, vector<2x16x16x4xf32>, vector<2x16x16x4xf32>, vector<2x16x16x4xf32> -> vector<2x16x16x36xf32>
    %15 = vector.shape_cast %14 : vector<2x16x16x36xf32> to vector<512x36xf32>
    %c0_4 = arith.constant 0 : index
    %c0_5 = arith.constant 0 : index
    %16 = vector.load %arg1[%c0_4, %c0_5] : memref<36x8xf32, #tpu.memory_space<vmem>>, vector<36x8xf32>
    %cst_6 = arith.constant dense<0.000000e+00> : vector<512x8xf32>
    %17 = tpu.matmul %15, %16, %cst_6 {dimension_numbers = #tpu.dot_dimension_numbers<[1], [0], [0], [1], [0, 0, 1, 1], [], []>} : vector<512x36xf32>, vector<36x8xf32>, vector<512x8xf32> -> vector<512x8xf32>
    %c0_7 = arith.constant 0 : index
    %c0_8 = arith.constant 0 : index
    %18 = vector.load %arg2[%c0_7, %c0_8] : memref<1x8xf32, #tpu.memory_space<vmem>>, vector<1x8xf32>
    %19 = vector.broadcast %18 : vector<1x8xf32> to vector<512x8xf32>
    %20 = arith.addf %17, %19 : vector<512x8xf32>
    %cst_9 = arith.constant 0.000000e+00 : f32
    %21 = vector.broadcast %cst_9 : f32 to vector<512x8xf32>
    %22 = arith.maximumf %20, %21 : vector<512x8xf32>
    %23 = vector.shape_cast %22 : vector<512x8xf32> to vector<2x16x16x8xf32>
    %24 = vector.shape_cast %23 : vector<2x16x16x8xf32> to vector<2x16x8x2x8xf32>
    %25 = vector.extract_strided_slice %24 {offsets = [0, 0, 0, 0, 0], sizes = [2, 16, 8, 1, 8], strides = [1, 1, 1, 1, 1]} : vector<2x16x8x2x8xf32> to vector<2x16x8x1x8xf32>
    %26 = vector.shape_cast %25 : vector<2x16x8x1x8xf32> to vector<2x16x8x8xf32>
    %27 = vector.extract_strided_slice %24 {offsets = [0, 0, 0, 1, 0], sizes = [2, 16, 8, 1, 8], strides = [1, 1, 1, 1, 1]} : vector<2x16x8x2x8xf32> to vector<2x16x8x1x8xf32>
    %28 = vector.shape_cast %27 : vector<2x16x8x1x8xf32> to vector<2x16x8x8xf32>
    %29 = arith.maximumf %26, %28 : vector<2x16x8x8xf32>
    %30 = vector.shape_cast %29 : vector<2x16x8x8xf32> to vector<2x8x2x8x8xf32>
    %31 = vector.extract_strided_slice %30 {offsets = [0, 0, 0, 0, 0], sizes = [2, 8, 1, 8, 8], strides = [1, 1, 1, 1, 1]} : vector<2x8x2x8x8xf32> to vector<2x8x1x8x8xf32>
    %32 = vector.shape_cast %31 : vector<2x8x1x8x8xf32> to vector<2x8x8x8xf32>
    %33 = vector.extract_strided_slice %30 {offsets = [0, 0, 1, 0, 0], sizes = [2, 8, 1, 8, 8], strides = [1, 1, 1, 1, 1]} : vector<2x8x2x8x8xf32> to vector<2x8x1x8x8xf32>
    %34 = vector.shape_cast %33 : vector<2x8x1x8x8xf32> to vector<2x8x8x8xf32>
    %35 = arith.maximumf %32, %34 : vector<2x8x8x8xf32>
    %cst_10 = arith.constant 0.000000e+00 : f32
    %36 = vector.broadcast %cst_10 : f32 to vector<2x8x1x8xf32>
    %37 = tpu.concatenate %36, %35, %36 in 2 : vector<2x8x1x8xf32>, vector<2x8x8x8xf32>, vector<2x8x1x8xf32> -> vector<2x8x10x8xf32>
    %cst_11 = arith.constant 0.000000e+00 : f32
    %38 = vector.broadcast %cst_11 : f32 to vector<2x1x10x8xf32>
    %39 = tpu.concatenate %38, %37, %38 in 1 : vector<2x1x10x8xf32>, vector<2x8x10x8xf32>, vector<2x1x10x8xf32> -> vector<2x10x10x8xf32>
    %40 = vector.extract_strided_slice %39 {offsets = [0, 0, 0, 0], sizes = [2, 8, 8, 8], strides = [1, 1, 1, 1]} : vector<2x10x10x8xf32> to vector<2x8x8x8xf32>
    %41 = vector.extract_strided_slice %39 {offsets = [0, 0, 1, 0], sizes = [2, 8, 8, 8], strides = [1, 1, 1, 1]} : vector<2x10x10x8xf32> to vector<2x8x8x8xf32>
    %42 = vector.extract_strided_slice %39 {offsets = [0, 0, 2, 0], sizes = [2, 8, 8, 8], strides = [1, 1, 1, 1]} : vector<2x10x10x8xf32> to vector<2x8x8x8xf32>
    %43 = vector.extract_strided_slice %39 {offsets = [0, 1, 0, 0], sizes = [2, 8, 8, 8], strides = [1, 1, 1, 1]} : vector<2x10x10x8xf32> to vector<2x8x8x8xf32>
    %44 = vector.extract_strided_slice %39 {offsets = [0, 1, 1, 0], sizes = [2, 8, 8, 8], strides = [1, 1, 1, 1]} : vector<2x10x10x8xf32> to vector<2x8x8x8xf32>
    %45 = vector.extract_strided_slice %39 {offsets = [0, 1, 2, 0], sizes = [2, 8, 8, 8], strides = [1, 1, 1, 1]} : vector<2x10x10x8xf32> to vector<2x8x8x8xf32>
    %46 = vector.extract_strided_slice %39 {offsets = [0, 2, 0, 0], sizes = [2, 8, 8, 8], strides = [1, 1, 1, 1]} : vector<2x10x10x8xf32> to vector<2x8x8x8xf32>
    %47 = vector.extract_strided_slice %39 {offsets = [0, 2, 1, 0], sizes = [2, 8, 8, 8], strides = [1, 1, 1, 1]} : vector<2x10x10x8xf32> to vector<2x8x8x8xf32>
    %48 = vector.extract_strided_slice %39 {offsets = [0, 2, 2, 0], sizes = [2, 8, 8, 8], strides = [1, 1, 1, 1]} : vector<2x10x10x8xf32> to vector<2x8x8x8xf32>
    %49 = tpu.concatenate %40, %41, %42, %43, %44, %45, %46, %47, %48 in 3 : vector<2x8x8x8xf32>, vector<2x8x8x8xf32>, vector<2x8x8x8xf32>, vector<2x8x8x8xf32>, vector<2x8x8x8xf32>, vector<2x8x8x8xf32>, vector<2x8x8x8xf32>, vector<2x8x8x8xf32>, vector<2x8x8x8xf32> -> vector<2x8x8x72xf32>
    %50 = vector.shape_cast %49 : vector<2x8x8x72xf32> to vector<128x72xf32>
    %c0_12 = arith.constant 0 : index
    %c0_13 = arith.constant 0 : index
    %51 = vector.load %arg3[%c0_12, %c0_13] : memref<72x16xf32, #tpu.memory_space<vmem>>, vector<72x16xf32>
    %cst_14 = arith.constant dense<0.000000e+00> : vector<128x16xf32>
    %52 = tpu.matmul %50, %51, %cst_14 {dimension_numbers = #tpu.dot_dimension_numbers<[1], [0], [0], [1], [0, 0, 1, 1], [], []>} : vector<128x72xf32>, vector<72x16xf32>, vector<128x16xf32> -> vector<128x16xf32>
    %c0_15 = arith.constant 0 : index
    %c0_16 = arith.constant 0 : index
    %53 = vector.load %arg4[%c0_15, %c0_16] : memref<1x16xf32, #tpu.memory_space<vmem>>, vector<1x16xf32>
    %54 = vector.broadcast %53 : vector<1x16xf32> to vector<128x16xf32>
    %55 = arith.addf %52, %54 : vector<128x16xf32>
    %cst_17 = arith.constant 0.000000e+00 : f32
    %56 = vector.broadcast %cst_17 : f32 to vector<128x16xf32>
    %57 = arith.maximumf %55, %56 : vector<128x16xf32>
    %58 = vector.shape_cast %57 : vector<128x16xf32> to vector<2x8x8x16xf32>
    %59 = vector.shape_cast %58 : vector<2x8x8x16xf32> to vector<2x8x4x2x16xf32>
    %60 = vector.extract_strided_slice %59 {offsets = [0, 0, 0, 0, 0], sizes = [2, 8, 4, 1, 16], strides = [1, 1, 1, 1, 1]} : vector<2x8x4x2x16xf32> to vector<2x8x4x1x16xf32>
    %61 = vector.shape_cast %60 : vector<2x8x4x1x16xf32> to vector<2x8x4x16xf32>
    %62 = vector.extract_strided_slice %59 {offsets = [0, 0, 0, 1, 0], sizes = [2, 8, 4, 1, 16], strides = [1, 1, 1, 1, 1]} : vector<2x8x4x2x16xf32> to vector<2x8x4x1x16xf32>
    %63 = vector.shape_cast %62 : vector<2x8x4x1x16xf32> to vector<2x8x4x16xf32>
    %64 = arith.maximumf %61, %63 : vector<2x8x4x16xf32>
    %65 = vector.shape_cast %64 : vector<2x8x4x16xf32> to vector<2x4x2x4x16xf32>
    %66 = vector.extract_strided_slice %65 {offsets = [0, 0, 0, 0, 0], sizes = [2, 4, 1, 4, 16], strides = [1, 1, 1, 1, 1]} : vector<2x4x2x4x16xf32> to vector<2x4x1x4x16xf32>
    %67 = vector.shape_cast %66 : vector<2x4x1x4x16xf32> to vector<2x4x4x16xf32>
    %68 = vector.extract_strided_slice %65 {offsets = [0, 0, 1, 0, 0], sizes = [2, 4, 1, 4, 16], strides = [1, 1, 1, 1, 1]} : vector<2x4x2x4x16xf32> to vector<2x4x1x4x16xf32>
    %69 = vector.shape_cast %68 : vector<2x4x1x4x16xf32> to vector<2x4x4x16xf32>
    %70 = arith.maximumf %67, %69 : vector<2x4x4x16xf32>
    %71 = vector.shape_cast %70 : vector<2x4x4x16xf32> to vector<2x16x16xf32>
    %cst_18 = arith.constant dense<0.000000e+00> : vector<2x16xf32>
    %72 = vector.multi_reduction <add>, %71, %cst_18 [1] : vector<2x16x16xf32> to vector<2x16xf32>
    %cst_19 = arith.constant 1.600000e+01 : f32
    %73 = vector.broadcast %cst_19 : f32 to vector<2x16xf32>
    %74 = arith.divf %72, %73 : vector<2x16xf32>
    %c0_20 = arith.constant 0 : index
    %c0_21 = arith.constant 0 : index
    %75 = vector.load %arg5[%c0_20, %c0_21] : memref<16x10xf32, #tpu.memory_space<vmem>>, vector<16x10xf32>
    %cst_22 = arith.constant dense<0.000000e+00> : vector<2x10xf32>
    %76 = tpu.matmul %74, %75, %cst_22 {dimension_numbers = #tpu.dot_dimension_numbers<[1], [0], [0], [1], [0, 0, 1, 1], [], []>} : vector<2x16xf32>, vector<16x10xf32>, vector<2x10xf32> -> vector<2x10xf32>
    %c0_23 = arith.constant 0 : index
    %c0_24 = arith.constant 0 : index
    %77 = vector.load %arg6[%c0_23, %c0_24] : memref<1x10xf32, #tpu.memory_space<vmem>>, vector<1x10xf32>
    %78 = vector.broadcast %77 : vector<1x10xf32> to vector<2x10xf32>
    %79 = arith.addf %76, %78 : vector<2x10xf32>
    %c0_25 = arith.constant 0 : index
    %c0_26 = arith.constant 0 : index
    %80 = vector.load %arg7[%c0_25, %c0_26] : memref<2x10xf32, #tpu.memory_space<vmem>>, vector<2x10xf32>
    tpu.vector_store %arg7[%c0_25, %c0_26], %79 {strides = array<i32>} : memref<2x10xf32, #tpu.memory_space<vmem>>, vector<2x10xf32>,
    return
  }
}

</mosaic_0001>

<bundles_post_ra>
// kernel: _vgg_forward_impl.1
= control target key start
LH: loop header
LB: loop body
LE: loop exit
PB: predicated region body
PF: predicated region fallthrough
CT: control target
= control target key end

     0   :  { %vm13459_vm0 = vcmask 1040384   ;;  %v13107_v2 = vmov 0.0   ;;  %vm13458_vm1 = vcmask 1046528   ;;  %s7119_s13 = smov 4   ;;  %s13099_s0 = inlined_call_operand.vmem [shape: f32[2,16,16,4], index: 0, kind: input, shape index: {}]   ;;  %s13100_s1 = inlined_call_operand.vmem [shape: f32[36,8], index: 1, kind: input, shape index: {}]   ;;  %s13101_s2 = inlined_call_operand.vmem [shape: f32[1,8], index: 2, kind: input, shape index: {}]   ;;  %s13102_s3 = inlined_call_operand.vmem [shape: f32[72,16], index: 3, kind: input, shape index: {}]   ;;  %s13103_s4 = inlined_call_operand.vmem [shape: f32[1,16], index: 4, kind: input, shape index: {}]   ;;  %s13104_s5 = inlined_call_operand.vmem [shape: f32[16,10], index: 5, kind: input, shape index: {}]   ;;  %s13105_s6 = inlined_call_operand.vmem [shape: f32[1,10], index: 6, kind: input, shape index: {}]   ;;  %s13106_s7 = inlined_call_operand.hbm [shape: f32[2,10], index: 7, kind: output, shape index: {}]  }
   0x1   :  { %v29_v0 = vld [vmem:[%s13099_s0 + $0x10] sm:$0xff]  ;;  %v30_v1 = vld [vmem:[%s13099_s0 + $0x18] sm:$0xff]  ;;  %v7180_v3 = vrot.slane %v13107_v2, 1  ;;  %v27_v6 = vld [vmem:[%s13099_s0] sm:$0xff] }
   0x2   :  { %v159_v4 = vrot.slane %v29_v0, 7  ;;  %v160_v5 = vrot.slane %v30_v1, 7  ;;  %v28_v7 = vld [vmem:[%s13099_s0 + $0x8] sm:$0xff]  ;;  %v31_v8 = vld [vmem:[%s13099_s0 + $0x20] sm:$0xff]  ;;  %v156_v9 = vrot.slane %v27_v6, 7  ;;  %v33_v28 = vld [vmem:[%s13099_s0 + $0x30] sm:$0xff] }
   0x3   :  { %13474 = vst [vmem:[#allocation5_spill] sm:$0xff] %v7180_v3  ;;  %v157_v10 = vrot.slane %v28_v7, 7  ;;  %v32_v11 = vld [vmem:[%s13099_s0 + $0x28] sm:$0xff]  ;;  %v162_v12 = vrot.slane %v31_v8, 7  ;;  %624 = vrot.lane.b32.xlu0 %v7180_v3, %s7119_s13  ;;  %v34_v29 = vld [vmem:[%s13099_s0 + $0x38] sm:$0xff]  ;;  %v165_v36 = vrot.slane %v33_v28, 7 }
   0x4   :  { %v7197_v13 = vsel %vm13459_vm0, %v159_v4, %v160_v5  ;;  %v7200_v14 = vsel %vm13459_vm0, %v160_v5, 0.0  ;;  %v163_v15 = vrot.slane %v32_v11, 7  ;;  %v7203_v16 = vsel %vm13459_vm0, 0.0, %v159_v4  ;;  %v35_v38 = vld [vmem:[%s13099_s0 + $0x40] sm:$0xff] }
   0x5   :  { %v480_v17 = vrot.slane %v7197_v13, 1  ;;  %v482_v18 = vrot.slane %v7200_v14, 1  ;;  %v7208_v19 = vsel %vm13459_vm0, %v156_v9, %v157_v10  ;;  %v7211_v20 = vsel %vm13459_vm0, %v157_v10, 0.0 }
   0x6   :  { %13475 = vst [vmem:[#allocation6_spill] sm:$0xff] %v7208_v19  ;;  %v475_v21 = vrot.slane %v7208_v19, 1  ;;  %v477_v22 = vrot.slane %v7211_v20, 1  ;;  %v7216_v23 = vsel %vm13459_vm0, 0.0, %v156_v9  ;;  %v7219_v24 = vsel %vm13459_vm0, %v162_v12, %v163_v15 }
   0x7   :  { %13476 = vst [vmem:[#allocation7_spill] sm:$0xff] %v7216_v23  ;;  %v7222_v25 = vsel %vm13458_vm1, %v480_v17, %v482_v18  ;;  %v474_v26 = vrot.slane %v7216_v23, 1  ;;  %v7226_v27 = vsel %vm13459_vm0, 0.0, %v162_v12  ;;  %v485_v33 = vrot.slane %v7219_v24, 1 }
   0x8   :  { %13477 = vst [vmem:[#allocation8_spill] sm:$0xff] %v7222_v25  ;;  %632 = vrot.lane.b32.xlu2 %v7222_v25, %s7119_s13  ;;  %v7237_v30 = vsel %vm13458_vm1, %v475_v21, %v477_v22  ;;  %v484_v32 = vrot.slane %v7226_v27, 1  ;;  %v479_v34 = vrot.slane %v7203_v16, 1  ;;  %v7248_v35 = vsel %vm13459_vm0, %v163_v15, 0.0 }
   0x9   :  { %13478 = vst [vmem:[#allocation9_spill] sm:$0xff] %v7237_v30  ;;  %628 = vrot.lane.b32.xlu1 %v7237_v30, %s7119_s13  ;;  %v7242_v31 = vsel %vm13458_vm1, %v474_v26, %v475_v21  ;;  %v166_v37 = vrot.slane %v34_v29, 7 }
   0xa   :  { %13479 = vst [vmem:[#allocation10_spill] sm:$0xff] %v7242_v31 }
   0xb   :  { %12 = vsyncpa [#allocation3], 0  ;;  %v36_v39 = vld [vmem:[%s13099_s0 + $0x48] sm:$0xff]  ;;  %626 = vrot.lane.b32.xlu0 %v7242_v31, %s7119_s13  ;;  %v7259_v40 = vsel %vm13458_vm1, %v484_v32, %v485_v33  ;;  %v7262_v41 = vsel %vm13458_vm1, %v479_v34, %v480_v17  ;;  %v487_v42 = vrot.slane %v7248_v35, 1  ;;  %v168_v43 = vrot.slane %v35_v38, 7  ;;  %v37_v48 = vld [vmem:[%s13099_s0 + $0x50] sm:$0xff] }
   0xc   :  { %13480 = vst [vmem:[#allocation11_spill] sm:$0xff] %v7259_v40  ;;  %v7266_v44 = vsel %vm13459_vm0, %v165_v36, %v166_v37  ;;  %v7269_v45 = vsel %vm13459_vm0, %v166_v37, 0.0  ;;  %v7272_v46 = vsel %vm13459_vm0, 0.0, %v165_v36  ;;  %v169_v47 = vrot.slane %v36_v39, 7  ;;  %v38_v49 = vld [vmem:[%s13099_s0 + $0x58] sm:$0xff]  ;;  %v39_v1 = vld [vmem:[%s13099_s0 + $0x60] sm:$0xff] }
   0xd   :  { %13481 = vst [vmem:[#allocation12_spill] sm:$0xff] %v7262_v41  ;;  %v7285_v50 = vsel %vm13458_vm1, %v485_v33, %v487_v42  ;;  %v490_v51 = vrot.slane %v7266_v44, 1  ;;  %v492_v52 = vrot.slane %v7269_v45, 1  ;;  %v489_v53 = vrot.slane %v7272_v46, 1  ;;  %v40_v4 = vld [vmem:[%s13099_s0 + $0x68] sm:$0xff]  ;;  %v41_v12 = vld [vmem:[%s13099_s0 + $0x70] sm:$0xff] }
   0xe   :  { %13482 = vst [vmem:[#allocation13_spill] sm:$0xff] %v7285_v50  ;;  %v7291_v54 = vsel %vm13459_vm0, %v168_v43, %v169_v47  ;;  %v7294_v55 = vsel %vm13459_vm0, 0.0, %v168_v43  ;;  %v171_v56 = vrot.slane %v37_v48, 7  ;;  %v172_v57 = vrot.slane %v38_v49, 7  ;;  %v42_v15 = vld [vmem:[%s13099_s0 + $0x78] sm:$0xff]  ;;  %v43_v26 = vld [vmem:[%s13099_s0 + $0x80] sm:$0xff] }
   0xf   :  { %v7299_v58 = vsel %vm13458_vm1, %v490_v51, %v492_v52  ;;  %v494_v59 = vrot.slane %v7294_v55, 1  ;;  %v495_v60 = vrot.slane %v7291_v54, 1  ;;  %v7304_v61 = vsel %vm13458_vm1, %v489_v53, %v490_v51  ;;  %v44_v34 = vld [vmem:[%s13099_s0 + $0x88] sm:$0xff]  ;;  %s7120_s11 = smov 8   ;;  %s7123_s21 = smov 20  }
  0x10   :  { %634 = vrot.lane.b32.xlu2 %v7259_v40, %s7119_s13  ;;  %13483 = vst [vmem:[#allocation14_spill] sm:$0xff] %v7299_v58  ;;  %v7307_v62 = vsel %vm13459_vm0, %v171_v56, %v172_v57  ;;  %v7310_v63 = vsel %vm13459_vm0, 0.0, %v171_v56  ;;  %v7313_v0 = vsel %vm13459_vm0, %v169_v47, 0.0  ;;  %v7331_v8 = vsel %vm13459_vm0, %v172_v57, 0.0  ;;  %v52_v3 = vld [vmem:[%s13099_s0 + $0xc8] sm:$0xff]  ;;  %s7124_s22 = smov 24  }
  0x11   :  { %630 = vrot.lane.b32.xlu1 %v7262_v41, %s7119_s13  ;;  %13484 = vst [vmem:[#allocation15_spill] sm:$0xff] %v7304_v61  ;;  %v7326_v5 = vsel %vm13458_vm1, %v494_v59, %v495_v60  ;;  %v499_v6 = vrot.slane %v7310_v63, 1  ;;  %v500_v7 = vrot.slane %v7307_v62, 1  ;;  %v497_v9 = vrot.slane %v7313_v0, 1  ;;  %v45_v59 = vld [vmem:[%s13099_s0 + $0x90] sm:$0xff]  ;;  %s7125_s23 = smov 32  }
  0x12   :  { %13485 = vst [vmem:[#allocation16_spill] sm:$0xff] %v7307_v62  ;;  %v174_v10 = vrot.slane %v39_v1, 7  ;;  %v175_v11 = vrot.slane %v40_v4, 7  ;;  %v502_v17 = vrot.slane %v7331_v8, 1  ;;  %v177_v21 = vrot.slane %v41_v12, 7  ;;  %s7126_s24 = smov 28  }
  0x13   :  { %636 = vrot.lane.b32.xlu0 %v7285_v50, %s7119_s13  ;;  %13486 = vst [vmem:[#allocation17_spill] sm:$0xff] %v7310_v63  ;;  %v7344_v18 = vsel %vm13458_vm1, %v499_v6, %v500_v7  ;;  %v178_v22 = vrot.slane %v42_v15, 7  ;;  %v7350_v28 = vsel %vm13458_vm1, %v495_v60, %v497_v9  ;;  %v180_v37 = vrot.slane %v43_v26, 7  ;;  %v46_v60 = vld [vmem:[%s13099_s0 + $0x98] sm:$0xff]  ;;  %v47_v15 = vld [vmem:[%s13099_s0 + $0xa0] sm:$0xff]  ;;  %s7127_s14 = smov 40  }
  0x14   :  { %13487 = vst [vmem:[#allocation18_spill] sm:$0xff] %v7326_v5  ;;  %v7353_v29 = vsel %vm13459_vm0, %v174_v10, %v175_v11  ;;  %v7356_v32 = vsel %vm13459_vm0, %v175_v11, 0.0  ;;  %v7359_v33 = vsel %vm13459_vm0, 0.0, %v174_v10  ;;  %v7367_v36 = vsel %vm13458_vm1, %v500_v7, %v502_v17  ;;  %v48_v17 = vld [vmem:[%s13099_s0 + $0xa8] sm:$0xff]  ;;  %s7128_s15 = smov 56   ;;  %s7129_s16 = smov 48  }
  0x15   :  { %13488 = vst [vmem:[#allocation19_spill] sm:$0xff] %v7344_v18  ;;  %v505_v38 = vrot.slane %v7353_v29, 1  ;;  %v507_v39 = vrot.slane %v7356_v32, 1  ;;  %v7374_v42 = vsel %vm13459_vm0, %v177_v21, %v178_v22  ;;  %v7377_v43 = vsel %vm13459_vm0, 0.0, %v177_v21  ;;  %s7130_s17 = smov 64   ;;  %s6642_s29 = sshll.u32 %s13106_s7, 4  ;;  %s6643_s29 = int_to_ptr.hbm [resolvable:$true] %s6642_s29 }
  0x16   :  { %13489 = vst [vmem:[#allocation20_spill] sm:$0xff] %v7350_v28  ;;  %v504_v47 = vrot.slane %v7359_v33, 1  ;;  %v181_v48 = vrot.slane %v44_v34, 7  ;;  %v509_v49 = vrot.slane %v7377_v43, 1  ;;  %v510_v51 = vrot.slane %v7374_v42, 1 }
  0x17   :  { %13490 = vst [vmem:[#allocation21_spill] sm:$0xff] %v7353_v29  ;;  %v7385_v52 = vsel %vm13458_vm1, %v505_v38, %v507_v39  ;;  %v7388_v53 = vsel %vm13459_vm0, 0.0, %v180_v37  ;;  %v7403_v1 = vsel %vm13459_vm0, %v178_v22, 0.0  ;;  %v183_v10 = vrot.slane %v45_v59, 7 }
  0x18   :  { %640 = vrot.lane.b32.xlu2 %v7299_v58, %s7119_s13  ;;  %13491 = vst [vmem:[#allocation22_spill] sm:$0xff] %v7359_v33  ;;  %v7391_v56 = vsel %vm13458_vm1, %v504_v47, %v505_v38  ;;  %v7394_v57 = vsel %vm13459_vm0, %v180_v37, %v181_v48  ;;  %v7408_v4 = vsel %vm13458_vm1, %v509_v49, %v510_v51  ;;  %v514_v6 = vrot.slane %v7388_v53, 1  ;;  %v49_v47 = vld [vmem:[%s13099_s0 + $0xb0] sm:$0xff]  ;;  %v50_v49 = vld [vmem:[%s13099_s0 + $0xb8] sm:$0xff] }
  0x19   :  { %638 = vrot.lane.b32.xlu1 %v7304_v61, %s7119_s13  ;;  %13492 = vst [vmem:[#allocation23_spill] sm:$0xff] %v7367_v36  ;;  %v515_v7 = vrot.slane %v7394_v57, 1  ;;  %v7415_v9 = vsel %vm13459_vm0, %v181_v48, 0.0  ;;  %v184_v11 = vrot.slane %v46_v60, 7  ;;  %v512_v12 = vrot.slane %v7403_v1, 1 }
  0x1a   :  { %13493 = vst [vmem:[#allocation24_spill] sm:$0xff] %v7374_v42  ;;  %v517_v21 = vrot.slane %v7415_v9, 1  ;;  %v186_v34 = vrot.slane %v47_v15, 7  ;;  %v187_v37 = vrot.slane %v48_v17, 7  ;;  %v7443_v48 = vsel %vm13459_vm0, 0.0, %v183_v10 }
  0x1b   :  { %642 = vrot.lane.b32.xlu0 %v7326_v5, %s7119_s13  ;;  %13494 = vst [vmem:[#allocation25_spill] sm:$0xff] %v7377_v43  ;;  %v7428_v22 = vsel %vm13458_vm1, %v514_v6, %v515_v7  ;;  %v7431_v26 = vsel %vm13459_vm0, %v183_v10, %v184_v11  ;;  %v7434_v38 = vsel %vm13458_vm1, %v510_v51, %v512_v12  ;;  %v7437_v39 = vsel %vm13459_vm0, %v184_v11, 0.0 }
  0x1c   :  { %13495 = vst [vmem:[#allocation26_spill] sm:$0xff] %v7385_v52  ;;  %v7451_v51 = vsel %vm13458_vm1, %v515_v7, %v517_v21  ;;  %v520_v59 = vrot.slane %v7431_v26, 1  ;;  %v522_v60 = vrot.slane %v7437_v39, 1  ;;  %v7458_v6 = vsel %vm13459_vm0, %v186_v34, %v187_v37 }
  0x1d   :  { %13496 = vst [vmem:[#allocation27_spill] sm:$0xff] %v7388_v53  ;;  %v7461_v10 = vsel %vm13459_vm0, 0.0, %v186_v34  ;;  %v189_v11 = vrot.slane %v49_v47, 7  ;;  %v519_v12 = vrot.slane %v7443_v48, 1  ;;  %v190_v15 = vrot.slane %v50_v49, 7  ;;  %v51_v49 = vld [vmem:[%s13099_s0 + $0xc0] sm:$0xff] }
  0x1e   :  { %13497 = vst [vmem:[#allocation28_spill] sm:$0xff] %v7391_v56  ;;  %v524_v7 = vrot.slane %v7461_v10, 1  ;;  %v525_v17 = vrot.slane %v7458_v6, 1  ;;  %v7469_v21 = vsel %vm13458_vm1, %v520_v59, %v522_v60  ;;  %v7487_v60 = vsel %vm13459_vm0, %v187_v37, 0.0 }
  0x1f   :  { %13498 = vst [vmem:[#allocation29_spill] sm:$0xff] %v7394_v57  ;;  %v7472_v2 = vsel %vm13459_vm0, 0.0, %v189_v11  ;;  %v7475_v34 = vsel %vm13458_vm1, %v519_v12, %v520_v59  ;;  %v7478_v47 = vsel %vm13459_vm0, %v189_v11, %v190_v15  ;;  %v527_v37 = vrot.slane %v7487_v60, 1 }
  0x20   :  { %646 = vrot.lane.b32.xlu2 %v7344_v18, %s7119_s13  ;;  %13499 = vst [vmem:[#allocation30_spill] sm:$0xff] %v7408_v4  ;;  %v7492_v59 = vsel %vm13458_vm1, %v524_v7, %v525_v17  ;;  %v529_v11 = vrot.slane %v7472_v2, 1  ;;  %v530_v12 = vrot.slane %v7478_v47, 1  ;;  %v54_v7 = vld [vmem:[%s13099_s0 + $0xd8] sm:$0xff]  ;;  %vm13457_vm2 = vcmask 1045504  }
  0x21   :  { %644 = vrot.lane.b32.xlu1 %v7350_v28, %s7119_s13  ;;  %13500 = vst [vmem:[#allocation31_spill] sm:$0xff] %v7428_v22  ;;  %vm3008_vm3 = vcmask 1043456   ;;  %vm13454_vm4 = vcmask 31744   ;;  %vm2416_vm5 = vcmask 97280   ;;  %vm13453_vm6 = vcmask 64512  }
  0x22   :  { %13501 = vst [vmem:[#allocation32_spill] sm:$0xff] %v7431_v26  ;;  %vm2481_vm7 = vcmask 130048   ;;  %vm2611_vm8 = vcmask 195584   ;;  %vm2546_vm9 = vcmask 162816   ;;  %vm2676_vm10 = vcmask 228352  }
  0x23   :  { %648 = vrot.lane.b32.xlu0 %v7367_v36, %s7119_s13  ;;  %13502 = vst [vmem:[#allocation33_spill] sm:$0xff] %v7434_v38  ;;  %vm2741_vm11 = vcmask 261120   ;;  %vm2815_vm12 = vcmask 293888   ;;  %vm5141_vm13 = vcmask 1042434   ;;  %vm5143_vm14 = vcmask 1043459  }
  0x24   :  { %13503 = vst [vmem:[#allocation34_spill] sm:$0xff] %v7443_v48  ;;  %vm13456_vm15 = vcmask 1044484  }
  0x25   :  { %13504 = vst [vmem:[#allocation35_spill] sm:$0xff] %v7451_v51 }
  0x26   :  { %13505 = vst [vmem:[#allocation36_spill] sm:$0xff] %v7461_v10 }
  0x27   :  { %13506 = vst [vmem:[#allocation37_spill] sm:$0xff] %v7469_v21 }
  0x28   :  { %652 = vrot.lane.b32.xlu2 %v7385_v52, %s7119_s13  ;;  %13507 = vst [vmem:[#allocation38_spill] sm:$0xff] %v7475_v34  ;;  %v196_v52 = vrot.slane %v54_v7, 7 }
  0x29   :  { %650 = vrot.lane.b32.xlu1 %v7391_v56, %s7119_s13  ;;  %13508 = vst [vmem:[#allocation39_spill] sm:$0xff] %v7492_v59 }
  0x2b   :  { %654 = vrot.lane.b32.xlu0 %v7408_v4, %s7119_s13  ;;  %v7518_v4 = vsel %vm13458_vm1, %v525_v17, %v527_v37 }
  0x2c   :  { %13510 = vst [vmem:[#allocation41_spill] sm:$0xff] %v7518_v4 }
  0x30   :  { %658 = vrot.lane.b32.xlu2 %v7428_v22, %s7119_s13  ;;  %v7499_v22 = vsel %vm13459_vm0, %v190_v15, 0.0  ;;  %v7512_v15 = vsel %vm13458_vm1, %v529_v11, %v530_v12  ;;  %v56_v11 = vld [vmem:[%s13099_s0 + $0xe8] sm:$0xff] }
  0x31   :  { %656 = vrot.lane.b32.xlu1 %v7434_v38, %s7119_s13  ;;  %v193_v38 = vrot.slane %v52_v3, 7  ;;  %13509 = vst [vmem:[#allocation40_spill] sm:$0xff] %v7512_v15 }
  0x33   :  { %660 = vrot.lane.b32.xlu0 %v7451_v51, %s7119_s13  ;;  %v192_v51 = vrot.slane %v51_v49, 7  ;;  %v7521_v56 = vsel %vm13459_vm0, %v193_v38, 0.0 }
  0x35   :  { %v7515_v3 = vsel %vm13459_vm0, %v192_v51, %v193_v38  ;;  %v7527_v18 = vsel %vm13459_vm0, 0.0, %v192_v51 }
  0x36   :  { %v535_v38 = vrot.slane %v7515_v3, 1  ;;  %v534_v36 = vrot.slane %v7527_v18, 1 }
  0x38   :  { %664 = vrot.lane.b32.xlu2 %v7469_v21, %s7119_s13  ;;  %v53_v21 = vld [vmem:[%s13099_s0 + $0xd0] sm:$0xff] }
  0x39   :  { %662 = vrot.lane.b32.xlu1 %v7475_v34, %s7119_s13  ;;  %v532_v34 = vrot.slane %v7499_v22, 1  ;;  %v195_v49 = vrot.slane %v53_v21, 7  ;;  %v537_v21 = vrot.slane %v7521_v56, 1 }
  0x3b   :  { %666 = vrot.lane.b32.xlu0 %v7492_v59, %s7119_s13  ;;  %v55_v59 = vld [vmem:[%s13099_s0 + $0xe0] sm:$0xff]  ;;  %v7535_v17 = vsel %vm13458_vm1, %v530_v12, %v532_v34  ;;  %v7542_v51 = vsel %vm13459_vm0, %v195_v49, %v196_v52  ;;  %v7545_v37 = vsel %vm13459_vm0, 0.0, %v195_v49  ;;  %v7559_v49 = vsel %vm13458_vm1, %v534_v36, %v535_v38 }
  0x3c   :  { %13511 = vst [vmem:[#allocation42_spill] sm:$0xff] %v7535_v17  ;;  %v198_v7 = vrot.slane %v55_v59, 7  ;;  %v539_v34 = vrot.slane %v7545_v37, 1  ;;  %v540_v12 = vrot.slane %v7542_v51, 1 }
  0x3d   :  { %13514 = vst [vmem:[#allocation45_spill] sm:$0xff] %v7559_v49 }
  0x3e   :  { %v7556_v28 = vsel %vm13459_vm0, 0.0, %v198_v7  ;;  %v7576_v36 = vsel %vm13458_vm1, %v539_v34, %v540_v12  ;;  %v62_v34 = vld [vmem:[%s13099_s0 + $0x118] sm:$0xff] }
  0x3f   :  { %13513 = vst [vmem:[#allocation44_spill] sm:$0xff] %v7556_v28  ;;  %v208_v40 = vrot.slane %v62_v34, 7 }
  0x40   :  { %670 = vrot.lane.b32.xlu2 %v7512_v15, %s7119_s13  ;;  %v199_v15 = vrot.slane %v56_v11, 7  ;;  %v59_v11 = vld [vmem:[%s13099_s0 + $0x100] sm:$0xff]  ;;  %13516 = vst [vmem:[#allocation47_spill] sm:$0xff] %v7576_v36 }
  0x41   :  { %668 = vrot.lane.b32.xlu1 %v7518_v4, %s7119_s13  ;;  %v7553_v4 = vsel %vm13458_vm1, %v535_v38, %v537_v21  ;;  %v7571_v21 = vsel %vm13459_vm0, %v196_v52, 0.0  ;;  %v544_v38 = vrot.slane %v7556_v28, 1  ;;  %v204_v5 = vrot.slane %v59_v11, 7 }
  0x42   :  { %13512 = vst [vmem:[#allocation43_spill] sm:$0xff] %v7553_v4  ;;  %v7562_v59 = vsel %vm13459_vm0, %v198_v7, %v199_v15  ;;  %v7583_v58 = vsel %vm13459_vm0, %v199_v15, 0.0  ;;  %v542_v52 = vrot.slane %v7571_v21, 1 }
  0x43   :  { %672 = vrot.lane.b32.xlu0 %v7535_v17, %s7119_s13  ;;  %13515 = vst [vmem:[#allocation46_spill] sm:$0xff] %v7562_v59  ;;  %v60_v17 = vld [vmem:[%s13099_s0 + $0x108] sm:$0xff]  ;;  %v545_v7 = vrot.slane %v7562_v59, 1  ;;  %v7611_v30 = vsel %vm13459_vm0, 0.0, %v204_v5 }
  0x44   :  { %13517 = vst [vmem:[#allocation48_spill] sm:$0xff] %v7583_v58  ;;  %v205_v61 = vrot.slane %v60_v17, 7  ;;  %v7602_v50 = vsel %vm13458_vm1, %v540_v12, %v542_v52  ;;  %v549_v41 = vrot.slane %v7611_v30, 1 }
  0x45   :  { %v7596_v15 = vsel %vm13458_vm1, %v544_v38, %v545_v7  ;;  %13520 = vst [vmem:[#allocation51_spill] sm:$0xff] %v7602_v50  ;;  %v64_v38 = vld [vmem:[%s13099_s0 + $0x128] sm:$0xff] }
  0x46   :  { %13518 = vst [vmem:[#allocation49_spill] sm:$0xff] %v7596_v15  ;;  %v7599_v17 = vsel %vm13459_vm0, %v204_v5, %v205_v61  ;;  %v7605_v25 = vsel %vm13459_vm0, %v205_v61, 0.0 }
  0x47   :  { %13519 = vst [vmem:[#allocation50_spill] sm:$0xff] %v7599_v17  ;;  %v550_v61 = vrot.slane %v7599_v17, 1  ;;  %v552_v12 = vrot.slane %v7605_v25, 1 }
  0x48   :  { %676 = vrot.lane.b32.xlu2 %v7553_v4, %s7119_s13  ;;  %v61_v4 = vld [vmem:[%s13099_s0 + $0x110] sm:$0xff]  ;;  %13521 = vst [vmem:[#allocation52_spill] sm:$0xff] %v7605_v25 }
  0x49   :  { %674 = vrot.lane.b32.xlu1 %v7559_v49, %s7119_s13  ;;  %v547_v49 = vrot.slane %v7583_v58, 1  ;;  %v207_v11 = vrot.slane %v61_v4, 7  ;;  %13522 = vst [vmem:[#allocation53_spill] sm:$0xff] %v7611_v30 }
  0x4b   :  { %678 = vrot.lane.b32.xlu0 %v7576_v36, %s7119_s13  ;;  %v63_v36 = vld [vmem:[%s13099_s0 + $0x120] sm:$0xff]  ;;  %v7619_v4 = vsel %vm13458_vm1, %v545_v7, %v547_v49  ;;  %v7626_v5 = vsel %vm13459_vm0, %v207_v11, %v208_v40  ;;  %v7629_v52 = vsel %vm13459_vm0, 0.0, %v207_v11  ;;  %v7643_v11 = vsel %vm13458_vm1, %v549_v41, %v550_v61 }
  0x4c   :  { %13523 = vst [vmem:[#allocation54_spill] sm:$0xff] %v7619_v4  ;;  %v210_v34 = vrot.slane %v63_v36, 7  ;;  %v554_v49 = vrot.slane %v7629_v52, 1  ;;  %v555_v7 = vrot.slane %v7626_v5, 1 }
  0x4d   :  { %13524 = vst [vmem:[#allocation55_spill] sm:$0xff] %v7626_v5 }
  0x4e   :  { %13525 = vst [vmem:[#allocation56_spill] sm:$0xff] %v7629_v52  ;;  %v7640_v31 = vsel %vm13459_vm0, 0.0, %v210_v34  ;;  %v7660_v41 = vsel %vm13458_vm1, %v554_v49, %v555_v7  ;;  %v68_v49 = vld [vmem:[%s13099_s0 + $0x148] sm:$0xff] }
  0x4f   :  { %13527 = vst [vmem:[#allocation58_spill] sm:$0xff] %v7640_v31 }
  0x50   :  { %682 = vrot.lane.b32.xlu2 %v7596_v15, %s7119_s13  ;;  %v211_v15 = vrot.slane %v64_v38, 7  ;;  %13528 = vst [vmem:[#allocation59_spill] sm:$0xff] %v7643_v11  ;;  %v65_v38 = vld [vmem:[%s13099_s0 + $0x130] sm:$0xff] }
  0x51   :  { %680 = vrot.lane.b32.xlu1 %v7602_v50, %s7119_s13  ;;  %v7637_v50 = vsel %vm13458_vm1, %v550_v61, %v552_v12  ;;  %v7655_v12 = vsel %vm13459_vm0, %v208_v40, 0.0  ;;  %13531 = vst [vmem:[#allocation62_spill] sm:$0xff] %v7660_v41  ;;  %v559_v61 = vrot.slane %v7640_v31, 1  ;;  %v213_v5 = vrot.slane %v65_v38, 7 }
  0x52   :  { %13526 = vst [vmem:[#allocation57_spill] sm:$0xff] %v7637_v50  ;;  %v7646_v36 = vsel %vm13459_vm0, %v210_v34, %v211_v15  ;;  %v7667_v52 = vsel %vm13459_vm0, %v211_v15, 0.0  ;;  %v557_v40 = vrot.slane %v7655_v12, 1 }
  0x53   :  { %684 = vrot.lane.b32.xlu0 %v7619_v4, %s7119_s13  ;;  %13529 = vst [vmem:[#allocation60_spill] sm:$0xff] %v7646_v36  ;;  %v66_v4 = vld [vmem:[%s13099_s0 + $0x138] sm:$0xff]  ;;  %v560_v34 = vrot.slane %v7646_v36, 1  ;;  %v217_v36 = vrot.slane %v68_v49, 7 }
  0x54   :  { %13530 = vst [vmem:[#allocation61_spill] sm:$0xff] %v7655_v12  ;;  %v214_v25 = vrot.slane %v66_v4, 7  ;;  %v7686_v31 = vsel %vm13458_vm1, %v555_v7, %v557_v40 }
  0x55   :  { %13532 = vst [vmem:[#allocation63_spill] sm:$0xff] %v7667_v52  ;;  %v7680_v15 = vsel %vm13458_vm1, %v559_v61, %v560_v34  ;;  %v70_v61 = vld [vmem:[%s13099_s0 + $0x158] sm:$0xff] }
  0x56   :  { %13533 = vst [vmem:[#allocation64_spill] sm:$0xff] %v7680_v15  ;;  %v7683_v4 = vsel %vm13459_vm0, %v213_v5, %v214_v25  ;;  %v7689_v12 = vsel %vm13459_vm0, %v214_v25, 0.0 }
  0x57   :  { %13534 = vst [vmem:[#allocation65_spill] sm:$0xff] %v7683_v4  ;;  %v565_v25 = vrot.slane %v7683_v4, 1  ;;  %v567_v7 = vrot.slane %v7689_v12, 1 }
  0x58   :  { %688 = vrot.lane.b32.xlu2 %v7637_v50, %s7119_s13  ;;  %v67_v50 = vld [vmem:[%s13099_s0 + $0x140] sm:$0xff]  ;;  %13535 = vst [vmem:[#allocation66_spill] sm:$0xff] %v7686_v31 }
  0x59   :  { %686 = vrot.lane.b32.xlu1 %v7643_v11, %s7119_s13  ;;  %v562_v11 = vrot.slane %v7667_v52, 1  ;;  %v216_v38 = vrot.slane %v67_v50, 7  ;;  %13536 = vst [vmem:[#allocation67_spill] sm:$0xff] %v7689_v12  ;;  %v7695_v52 = vsel %vm13459_vm0, 0.0, %v213_v5  ;;  %v7723_v12 = vsel %vm13458_vm1, %v565_v25, %v567_v7 }
  0x5a   :  { %13537 = vst [vmem:[#allocation68_spill] sm:$0xff] %v7695_v52  ;;  %v7741_v7 = vsel %vm13459_vm0, %v217_v36, 0.0 }
  0x5b   :  { %690 = vrot.lane.b32.xlu0 %v7660_v41, %s7119_s13  ;;  %v69_v41 = vld [vmem:[%s13099_s0 + $0x150] sm:$0xff]  ;;  %v7703_v50 = vsel %vm13458_vm1, %v560_v34, %v562_v11  ;;  %v7710_v5 = vsel %vm13459_vm0, %v216_v38, %v217_v36  ;;  %v7713_v40 = vsel %vm13459_vm0, 0.0, %v216_v38  ;;  %v220_v11 = vrot.slane %v70_v61, 7  ;;  %13542 = vst [vmem:[#allocation73_spill] sm:$0xff] %v7723_v12  ;;  %v71_v61 = vld [vmem:[%s13099_s0 + $0x160] sm:$0xff] }
  0x5c   :  { %13538 = vst [vmem:[#allocation69_spill] sm:$0xff] %v7703_v50  ;;  %v219_v49 = vrot.slane %v69_v41, 7  ;;  %v569_v34 = vrot.slane %v7713_v40, 1 }
  0x5d   :  { %13539 = vst [vmem:[#allocation70_spill] sm:$0xff] %v7710_v5 }
  0x5e   :  { %13540 = vst [vmem:[#allocation71_spill] sm:$0xff] %v7713_v40  ;;  %v7726_v4 = vsel %vm13459_vm0, 0.0, %v219_v49  ;;  %v7732_v38 = vsel %vm13459_vm0, %v219_v49, %v220_v11  ;;  %v222_v40 = vrot.slane %v71_v61, 7 }
  0x5f   :  { %13543 = vst [vmem:[#allocation74_spill] sm:$0xff] %v7726_v4  ;;  %v575_v49 = vrot.slane %v7732_v38, 1 }
  0x60   :  { %694 = vrot.lane.b32.xlu2 %v7680_v15, %s7119_s13  ;;  %v564_v15 = vrot.slane %v7695_v52, 1  ;;  %13545 = vst [vmem:[#allocation76_spill] sm:$0xff] %v7732_v38  ;;  %v572_v52 = vrot.slane %v7741_v7, 1 }
  0x61   :  { %692 = vrot.lane.b32.xlu1 %v7686_v31, %s7119_s13  ;;  %v570_v31 = vrot.slane %v7710_v5, 1  ;;  %13546 = vst [vmem:[#allocation77_spill] sm:$0xff] %v7741_v7 }
  0x62   :  { %v7715_v58 = vpop.permute.xlu2 %632  ;;  %v7729_v41 = vsel %vm13458_vm1, %v564_v15, %v565_v25  ;;  %v574_v25 = vrot.slane %v7726_v4, 1 }
  0x63   :  { %13541 = vst [vmem:[#allocation72_spill] sm:$0xff] %v7715_v58  ;;  %696 = vrot.lane.b32.xlu0 %v7703_v50, %s7119_s13  ;;  %v72_v58 = vld [vmem:[%s13099_s0 + $0x168] sm:$0xff]  ;;  %v7746_v15 = vsel %vm13458_vm1, %v569_v34, %v570_v31  ;;  %v7753_v50 = vsel %vm13459_vm0, %v220_v11, 0.0  ;;  %v73_v34 = vld [vmem:[%s13099_s0 + $0x170] sm:$0xff]  ;;  %v7774_v38 = vsel %vm13458_vm1, %v570_v31, %v572_v52 }
  0x64   :  { %13544 = vst [vmem:[#allocation75_spill] sm:$0xff] %v7729_v41  ;;  %v223_v5 = vrot.slane %v72_v58, 7  ;;  %v577_v11 = vrot.slane %v7753_v50, 1  ;;  %v7768_v61 = vsel %vm13458_vm1, %v574_v25, %v575_v49  ;;  %v76_v25 = vld [vmem:[%s13099_s0 + $0x188] sm:$0xff] }
  0x65   :  { %13547 = vst [vmem:[#allocation78_spill] sm:$0xff] %v7746_v15 }
  0x66   :  { %13548 = vst [vmem:[#allocation79_spill] sm:$0xff] %v7753_v50  ;;  %v7771_v58 = vsel %vm13459_vm0, %v222_v40, %v223_v5  ;;  %v7777_v4 = vsel %vm13459_vm0, %v223_v5, 0.0  ;;  %v7783_v50 = vsel %vm13459_vm0, 0.0, %v222_v40  ;;  %v7791_v31 = vsel %vm13458_vm1, %v575_v49, %v577_v11 }
  0x67   :  { %13550 = vst [vmem:[#allocation81_spill] sm:$0xff] %v7768_v61  ;;  %v580_v52 = vrot.slane %v7771_v58, 1  ;;  %v229_v49 = vrot.slane %v76_v25, 7 }
  0x68   :  { %700 = vrot.lane.b32.xlu2 %v7723_v12, %s7119_s13  ;;  %v74_v12 = vld [vmem:[%s13099_s0 + $0x178] sm:$0xff]  ;;  %13551 = vst [vmem:[#allocation82_spill] sm:$0xff] %v7771_v58 }
  0x69   :  { %698 = vrot.lane.b32.xlu1 %v7729_v41, %s7119_s13  ;;  %v226_v41 = vrot.slane %v74_v12, 7  ;;  %13552 = vst [vmem:[#allocation83_spill] sm:$0xff] %v7774_v38  ;;  %v582_v12 = vrot.slane %v7777_v4, 1 }
  0x6a   :  { %v7755_v36 = vpop.permute.xlu2 %634  ;;  %13553 = vst [vmem:[#allocation84_spill] sm:$0xff] %v7777_v4 }
  0x6b   :  { %13549 = vst [vmem:[#allocation80_spill] sm:$0xff] %v7755_v36  ;;  %702 = vrot.lane.b32.xlu0 %v7746_v15, %s7119_s13  ;;  %v225_v36 = vrot.slane %v73_v34, 7  ;;  %v75_v15 = vld [vmem:[%s13099_s0 + $0x180] sm:$0xff]  ;;  %v7811_v4 = vsel %vm13458_vm1, %v580_v52, %v582_v12  ;;  %v78_v12 = vld [vmem:[%s13099_s0 + $0x198] sm:$0xff] }
  0x6c   :  { %13554 = vst [vmem:[#allocation85_spill] sm:$0xff] %v7783_v50  ;;  %v228_v34 = vrot.slane %v75_v15, 7 }
  0x6d   :  { %13555 = vst [vmem:[#allocation86_spill] sm:$0xff] %v7791_v31  ;;  %v7798_v5 = vsel %vm13459_vm0, %v225_v36, %v226_v41  ;;  %v7801_v40 = vsel %vm13459_vm0, 0.0, %v225_v36 }
  0x6e   :  { %13556 = vst [vmem:[#allocation87_spill] sm:$0xff] %v7798_v5  ;;  %v584_v11 = vrot.slane %v7801_v40, 1  ;;  %v7814_v58 = vsel %vm13459_vm0, 0.0, %v228_v34  ;;  %v7822_v25 = vsel %vm13459_vm0, %v228_v34, %v229_v49 }
  0x6f   :  { %13557 = vst [vmem:[#allocation88_spill] sm:$0xff] %v7801_v40  ;;  %v590_v34 = vrot.slane %v7822_v25, 1 }
  0x70   :  { %706 = vrot.lane.b32.xlu2 %v7768_v61, %s7119_s13  ;;  %v579_v61 = vrot.slane %v7783_v50, 1  ;;  %13559 = vst [vmem:[#allocation90_spill] sm:$0xff] %v7811_v4 }
  0x71   :  { %704 = vrot.lane.b32.xlu1 %v7774_v38, %s7119_s13  ;;  %v585_v38 = vrot.slane %v7798_v5, 1  ;;  %13560 = vst [vmem:[#allocation91_spill] sm:$0xff] %v7814_v58  ;;  %v232_v5 = vrot.slane %v78_v12, 7 }
  0x72   :  { %v7803_v7 = vpop.permute.xlu2 %640  ;;  %v7819_v15 = vsel %vm13458_vm1, %v579_v61, %v580_v52  ;;  %13563 = vst [vmem:[#allocation94_spill] sm:$0xff] %v7822_v25  ;;  %v589_v52 = vrot.slane %v7814_v58, 1 }
  0x73   :  { %13558 = vst [vmem:[#allocation89_spill] sm:$0xff] %v7803_v7  ;;  %708 = vrot.lane.b32.xlu0 %v7791_v31, %s7119_s13  ;;  %v77_v7 = vld [vmem:[%s13099_s0 + $0x190] sm:$0xff]  ;;  %v7831_v31 = vsel %vm13459_vm0, %v226_v41, 0.0  ;;  %v7836_v61 = vsel %vm13458_vm1, %v584_v11, %v585_v38  ;;  %v79_v11 = vld [vmem:[%s13099_s0 + $0x1a0] sm:$0xff] }
  0x74   :  { %13562 = vst [vmem:[#allocation93_spill] sm:$0xff] %v7819_v15  ;;  %v231_v40 = vrot.slane %v77_v7, 7  ;;  %v587_v50 = vrot.slane %v7831_v31, 1 }
  0x75   :  { %v7816_v36 = vpop.permute.xlu0 %624  ;;  %13564 = vst [vmem:[#allocation95_spill] sm:$0xff] %v7831_v31 }
  0x76   :  { %13561 = vst [vmem:[#allocation92_spill] sm:$0xff] %v7816_v36  ;;  %v7843_v36 = vsel %vm13459_vm0, %v229_v49, 0.0  ;;  %v7860_v49 = vsel %vm13458_vm1, %v589_v52, %v590_v34  ;;  %v7863_v12 = vsel %vm13459_vm0, %v231_v40, %v232_v5  ;;  %v7868_v31 = vsel %vm13458_vm1, %v585_v38, %v587_v50 }
  0x77   :  { %13565 = vst [vmem:[#allocation96_spill] sm:$0xff] %v7836_v61  ;;  %v592_v7 = vrot.slane %v7843_v36, 1  ;;  %v7877_v52 = vsel %vm13459_vm0, 0.0, %v231_v40  ;;  %v595_v50 = vrot.slane %v7863_v12, 1 }
  0x78   :  { %712 = vrot.lane.b32.xlu2 %v7811_v4, %s7119_s13  ;;  %13566 = vst [vmem:[#allocation97_spill] sm:$0xff] %v7843_v36  ;;  %v80_v4 = vld [vmem:[%s13099_s0 + $0x1a8] sm:$0xff] }
  0x79   :  { %710 = vrot.lane.b32.xlu1 %v7819_v15, %s7119_s13  ;;  %13569 = vst [vmem:[#allocation100_spill] sm:$0xff] %v7860_v49  ;;  %v235_v25 = vrot.slane %v80_v4, 7  ;;  %v7885_v4 = vsel %vm13458_vm1, %v590_v34, %v592_v7 }
  0x7a   :  { %v7845_v41 = vpop.permute.xlu2 %646  ;;  %13570 = vst [vmem:[#allocation101_spill] sm:$0xff] %v7863_v12 }
  0x7b   :  { %13567 = vst [vmem:[#allocation98_spill] sm:$0xff] %v7845_v41  ;;  %v7854_v15 = vpop.permute.xlu1 %628  ;;  %714 = vrot.lane.b32.xlu0 %v7836_v61, %s7119_s13  ;;  %v234_v41 = vrot.slane %v79_v11, 7  ;;  %v81_v61 = vld [vmem:[%s13099_s0 + $0x1b0] sm:$0xff]  ;;  %v82_v11 = vld [vmem:[%s13099_s0 + $0x1b8] sm:$0xff] }
  0x7c   :  { %13568 = vst [vmem:[#allocation99_spill] sm:$0xff] %v7854_v15  ;;  %v7871_v15 = vsel %vm13459_vm0, %v232_v5, 0.0  ;;  %v238_v34 = vrot.slane %v82_v11, 7 }
  0x7d   :  { %v7865_v58 = vpop.permute.xlu0 %626  ;;  %13572 = vst [vmem:[#allocation103_spill] sm:$0xff] %v7868_v31  ;;  %v597_v38 = vrot.slane %v7871_v15, 1  ;;  %v7892_v5 = vsel %vm13459_vm0, %v234_v41, %v235_v25  ;;  %v7895_v40 = vsel %vm13459_vm0, 0.0, %v234_v41 }
  0x7e   :  { %13571 = vst [vmem:[#allocation102_spill] sm:$0xff] %v7865_v58  ;;  %v237_v58 = vrot.slane %v81_v61, 7 }
  0x7f   :  { %13573 = vst [vmem:[#allocation104_spill] sm:$0xff] %v7871_v15  ;;  %v600_v15 = vrot.slane %v7892_v5, 1  ;;  %v7907_v12 = vsel %vm13458_vm1, %v595_v50, %v597_v38  ;;  %v84_v38 = vld [vmem:[%s13099_s0 + $0x1c8] sm:$0xff] }
  0x80   :  { %13574 = vst [vmem:[#allocation105_spill] sm:$0xff] %v7877_v52  ;;  %718 = vrot.lane.b32.xlu2 %v7860_v49, %s7119_s13  ;;  %v594_v49 = vrot.slane %v7877_v52, 1  ;;  %v7910_v41 = vsel %vm13459_vm0, 0.0, %v237_v58  ;;  %v7918_v11 = vsel %vm13459_vm0, %v237_v58, %v238_v34  ;;  %v7942_v52 = vsel %vm13459_vm0, %v238_v34, 0.0 }
  0x81   :  { %13575 = vst [vmem:[#allocation106_spill] sm:$0xff] %v7885_v4  ;;  %716 = vrot.lane.b32.xlu1 %v7868_v31, %s7119_s13  ;;  %v599_v31 = vrot.slane %v7895_v40, 1  ;;  %v604_v58 = vrot.slane %v7910_v41, 1  ;;  %v607_v34 = vrot.slane %v7942_v52, 1 }
  0x82   :  { %13576 = vst [vmem:[#allocation107_spill] sm:$0xff] %v7892_v5  ;;  %v7897_v36 = vpop.permute.xlu2 %652 }
  0x83   :  { %13577 = vst [vmem:[#allocation108_spill] sm:$0xff] %v7895_v40  ;;  %v7900_v7 = vpop.permute.xlu1 %630  ;;  %720 = vrot.lane.b32.xlu0 %v7885_v4, %s7119_s13  ;;  %v83_v4 = vld [vmem:[%s13099_s0 + $0x1c0] sm:$0xff]  ;;  %v241_v40 = vrot.slane %v84_v38, 7 }
  0x84   :  { %13578 = vst [vmem:[#allocation109_spill] sm:$0xff] %v7897_v36  ;;  %v7915_v36 = vsel %vm13458_vm1, %v594_v49, %v595_v50  ;;  %v7932_v49 = vsel %vm13458_vm1, %v599_v31, %v600_v15  ;;  %v85_v31 = vld [vmem:[%s13099_s0 + $0x1d0] sm:$0xff] }
  0x85   :  { %13579 = vst [vmem:[#allocation110_spill] sm:$0xff] %v7900_v7  ;;  %v7912_v61 = vpop.permute.xlu0 %636  ;;  %v7921_v7 = vsel %vm13459_vm0, %v235_v25, 0.0  ;;  %v605_v25 = vrot.slane %v7918_v11, 1 }
  0x86   :  { %13580 = vst [vmem:[#allocation111_spill] sm:$0xff] %v7907_v12  ;;  %v602_v50 = vrot.slane %v7921_v7, 1 }
  0x87   :  { %13581 = vst [vmem:[#allocation112_spill] sm:$0xff] %v7910_v41 }
  0x88   :  { %13582 = vst [vmem:[#allocation113_spill] sm:$0xff] %v7912_v61  ;;  %724 = vrot.lane.b32.xlu2 %v7907_v12, %s7119_s13  ;;  %v240_v61 = vrot.slane %v83_v4, 7  ;;  %v7955_v4 = vsel %vm13458_vm1, %v604_v58, %v605_v25  ;;  %v7958_v38 = vsel %vm13458_vm1, %v600_v15, %v602_v50  ;;  %v87_v15 = vld [vmem:[%s13099_s0 + $0x1e0] sm:$0xff]  ;;  %v88_v58 = vld [vmem:[%s13099_s0 + $0x1e8] sm:$0xff] }
  0x89   :  { %13583 = vst [vmem:[#allocation114_spill] sm:$0xff] %v7915_v36  ;;  %722 = vrot.lane.b32.xlu1 %v7915_v36, %s7119_s13  ;;  %v86_v36 = vld [vmem:[%s13099_s0 + $0x1d8] sm:$0xff]  ;;  %v247_v17 = vrot.slane %v88_v58, 7 }
  0x8a   :  { %13584 = vst [vmem:[#allocation115_spill] sm:$0xff] %v7918_v11  ;;  %v7939_v5 = vpop.permute.xlu2 %658  ;;  %v7967_v11 = vsel %vm13459_vm0, %v241_v40, 0.0  ;;  %v7970_v41 = vsel %vm13459_vm0, 0.0, %v240_v61 }
  0x8b   :  { %13585 = vst [vmem:[#allocation116_spill] sm:$0xff] %v7921_v7  ;;  %v7944_v12 = vpop.permute.xlu1 %638  ;;  %726 = vrot.lane.b32.xlu0 %v7932_v49, %s7119_s13  ;;  %v244_v7 = vrot.slane %v86_v36, 7  ;;  %v612_v36 = vrot.slane %v7967_v11, 1  ;;  %v609_v50 = vrot.slane %v7970_v41, 1 }
  0x8c   :  { %13586 = vst [vmem:[#allocation117_spill] sm:$0xff] %v7932_v49  ;;  %v243_v49 = vrot.slane %v85_v31, 7 }
  0x8d   :  { %13587 = vst [vmem:[#allocation118_spill] sm:$0xff] %v7939_v5  ;;  %v7962_v5 = vsel %vm13459_vm0, %v240_v61, %v241_v40  ;;  %v7983_v40 = vsel %vm13458_vm1, %v605_v25, %v607_v34  ;;  %v8017_v58 = vsel %vm13459_vm0, %v244_v7, 0.0 }
  0x8e   :  { %13588 = vst [vmem:[#allocation119_spill] sm:$0xff] %v7942_v52  ;;  %v610_v61 = vrot.slane %v7962_v5, 1  ;;  %v7994_v52 = vsel %vm13459_vm0, 0.0, %v243_v49 }
  0x8f   :  { %13589 = vst [vmem:[#allocation120_spill] sm:$0xff] %v7944_v12  ;;  %v7964_v12 = vpop.permute.xlu0 %642  ;;  %v614_v34 = vrot.slane %v7994_v52, 1 }
  0x90   :  { %13590 = vst [vmem:[#allocation121_spill] sm:$0xff] %v7955_v4  ;;  %730 = vrot.lane.b32.xlu2 %v7955_v4, %s7119_s13  ;;  %v246_v4 = vrot.slane %v87_v15, 7  ;;  %v8001_v25 = vsel %vm13458_vm1, %v610_v61, %v612_v36 }
  0x91   :  { %13591 = vst [vmem:[#allocation122_spill] sm:$0xff] %v7958_v38  ;;  %728 = vrot.lane.b32.xlu1 %v7958_v38, %s7119_s13 }
  0x92   :  { %13592 = vst [vmem:[#allocation123_spill] sm:$0xff] %v7962_v5  ;;  %v7988_v31 = vpop.permute.xlu2 %664  ;;  %v8008_v5 = vsel %vm13458_vm1, %v609_v50, %v610_v61  ;;  %v8014_v15 = vsel %vm13459_vm0, 0.0, %v246_v4 }
  0x93   :  { %13593 = vst [vmem:[#allocation124_spill] sm:$0xff] %v7964_v12  ;;  %v7991_v12 = vsel %vm13459_vm0, %v243_v49, %v244_v7  ;;  %v7996_v38 = vpop.permute.xlu1 %644  ;;  %732 = vrot.lane.b32.xlu0 %v7983_v40, %s7119_s13  ;;  %v8011_v49 = vsel %vm13459_vm0, %v246_v4, %v247_v17  ;;  %v619_v61 = vrot.slane %v8014_v15, 1  ;;  %v617_v4 = vrot.slane %v8017_v58, 1 }
  0x94   :  { %13594 = vst [vmem:[#allocation125_spill] sm:$0xff] %v7967_v11  ;;  %v620_v50 = vrot.slane %v8011_v49, 1  ;;  %v8032_v7 = vsel %vm13459_vm0, %v247_v17, 0.0 }
  0x95   :  { %13595 = vst [vmem:[#allocation126_spill] sm:$0xff] %v7970_v41 }
  0x96   :  { %13596 = vst [vmem:[#allocation127_spill] sm:$0xff] %v7983_v40 }
  0x97   :  { %13597 = vst [vmem:[#allocation128_spill] sm:$0xff] %v7988_v31  ;;  %v615_v31 = vrot.slane %v7991_v12, 1  ;;  %v8005_v11 = vpop.permute.xlu0 %648 }
  0x98   :  { %13598 = vst [vmem:[#allocation129_spill] sm:$0xff] %v7991_v12  ;;  %736 = vrot.lane.b32.xlu2 %v8001_v25, %s7119_s13 }
  0x99   :  { %13599 = vst [vmem:[#allocation130_spill] sm:$0xff] %v7994_v52  ;;  %734 = vrot.lane.b32.xlu1 %v8008_v5, %s7119_s13  ;;  %v8024_v36 = vsel %vm13458_vm1, %v614_v34, %v615_v31  ;;  %v622_v34 = vrot.slane %v8032_v7, 1 }
  0x9a   :  { %13600 = vst [vmem:[#allocation131_spill] sm:$0xff] %v7996_v38 }
  0x9b   :  { %13601 = vst [vmem:[#allocation132_spill] sm:$0xff] %v8001_v25  ;;  %v8034_v38 = vpop.permute.xlu1 %650  ;;  %738 = vrot.lane.b32.xlu0 %v8024_v36, %s7119_s13  ;;  %v8039_v25 = vsel %vm13458_vm1, %v619_v61, %v620_v50  ;;  %v8052_v17 = vsel %vm13458_vm1, %v620_v50, %v622_v34  ;;  %v811_v61 = vrot.slane %v7208_v19, 2  ;;  %v813_v50 = vrot.slane %v7211_v20, 2 }
  0x9c   :  { %13602 = vst [vmem:[#allocation133_spill] sm:$0xff] %v8005_v11  ;;  %v8028_v11 = vpop.permute.xlu2 %670  ;;  %v815_v20 = vrot.slane %v7203_v16, 2 }
  0x9d   :  { %13603 = vst [vmem:[#allocation134_spill] sm:$0xff] %v8008_v5  ;;  %v8045_v5 = vsel %vm13458_vm1, %v615_v31, %v617_v4  ;;  %v13616_v4 = vmov 0.0  }
  0x9e   :  { %13604 = vst [vmem:[#allocation135_spill] sm:$0xff] %v8011_v49 }
  0x9f   :  { %13605 = vst [vmem:[#allocation136_spill] sm:$0xff] %v8014_v15  ;;  %v8042_v40 = vpop.permute.xlu0 %654 }
  0xa0   :  { %13606 = vst [vmem:[#allocation137_spill] sm:$0xff] %v8024_v36  ;;  %742 = vrot.lane.b32.xlu2 %v8039_v25, %s7119_s13  ;;  %v13718_v36 = vld [vmem:[#allocation79_spill] sm:$0xff] }
  0xa1   :  { %13607 = vst [vmem:[#allocation138_spill] sm:$0xff] %v8028_v11  ;;  %740 = vrot.lane.b32.xlu1 %v8045_v5, %s7119_s13 }
  0xa2   :  { %13608 = vst [vmem:[#allocation139_spill] sm:$0xff] %v8034_v38  ;;  %v810_v38 = vrot.slane %v7216_v23, 2 }
  0xa3   :  { %13609 = vst [vmem:[#allocation140_spill] sm:$0xff] %v8039_v25  ;;  %744 = vrot.lane.b32.xlu0 %v8052_v17, %s7119_s13  ;;  %v8066_v25 = vrot.slane %v13616_v4, 2  ;;  %s7121_s13 = smov 12  }
  0xa4   :  { %13610 = vst [vmem:[#allocation141_spill] sm:$0xff] %v8042_v40  ;;  %v8056_v11 = vpop.permute.xlu2 %676  ;;  %v8058_v40 = vpop.permute.xlu1 %656  ;;  %v8063_v31 = vsel %vm13457_vm2, %v810_v38, %v811_v61  ;;  %v816_v38 = vrot.slane %v7197_v13, 2 }
  0xa5   :  { %13611 = vst [vmem:[#allocation142_spill] sm:$0xff] %v8045_v5 }
  0xa6   :  { %13612 = vst [vmem:[#allocation143_spill] sm:$0xff] %v8052_v17 }
  0xa7   :  { %13613 = vst [vmem:[#allocation144_spill] sm:$0xff] %v8056_v11  ;;  %v8069_v34 = vpop.permute.xlu0 %660  ;;  %v818_v11 = vrot.slane %v7200_v14, 2  ;;  %v8095_v14 = vsel %vm13457_vm2, %v815_v20, %v816_v38  ;;  %v828_v20 = vrot.slane %v7269_v45, 2  ;;  %v830_v45 = vrot.slane %v7294_v55, 2 }
  0xa8   :  { %13614 = vst [vmem:[#allocation145_spill] sm:$0xff] %v8058_v40  ;;  %962 = vrot.lane.b32.xlu2 %v8063_v31, %s7120_s11  ;;  %v8076_v40 = vsel %vm13457_vm2, %v811_v61, %v813_v50  ;;  %v821_v61 = vrot.slane %v7219_v24, 2 }
  0xa9   :  { %13615 = vst [vmem:[#allocation146_spill] sm:$0xff] %v8063_v31  ;;  %960 = vrot.lane.b32.xlu1 %v8066_v25, %s7120_s11 }
  0xaa   :  { %13617 = vst [vmem:[#allocation147_spill] sm:$0xff] %v8066_v25  ;;  %v820_v25 = vrot.slane %v7226_v27, 2 }
  0xab   :  { %13618 = vst [vmem:[#allocation148_spill] sm:$0xff] %v8069_v34  ;;  %964 = vrot.lane.b32.xlu0 %v8076_v40, %s7120_s11  ;;  %v8088_v34 = vsel %vm13457_vm2, %v816_v38, %v818_v11  ;;  %v825_v11 = vrot.slane %v7272_v46, 2 }
  0xac   :  { %13619 = vst [vmem:[#allocation149_spill] sm:$0xff] %v8076_v40  ;;  %v8080_v4 = vpop.permute.xlu2 %682  ;;  %v8083_v17 = vpop.permute.xlu1 %662 }
  0xad   :  { %13620 = vst [vmem:[#allocation150_spill] sm:$0xff] %v8080_v4  ;;  %v826_v4 = vrot.slane %v7266_v44, 2 }
  0xae   :  { %13621 = vst [vmem:[#allocation151_spill] sm:$0xff] %v8083_v17  ;;  %v8102_v17 = vsel %vm13457_vm2, %v820_v25, %v821_v61 }
  0xaf   :  { %13622 = vst [vmem:[#allocation152_spill] sm:$0xff] %v8088_v34  ;;  %v8092_v50 = vpop.permute.xlu0 %666  ;;  %v8114_v38 = vsel %vm13457_vm2, %v825_v11, %v826_v4  ;;  %v833_v11 = vrot.slane %v7313_v0, 2 }
  0xb0   :  { %13623 = vst [vmem:[#allocation153_spill] sm:$0xff] %v8092_v50  ;;  %968 = vrot.lane.b32.xlu2 %v8088_v34, %s7120_s11  ;;  %v823_v50 = vrot.slane %v7248_v35, 2  ;;  %v8127_v35 = vsel %vm13457_vm2, %v826_v4, %v828_v20  ;;  %v836_v4 = vrot.slane %v7307_v62, 2 }
  0xb1   :  { %13624 = vst [vmem:[#allocation154_spill] sm:$0xff] %v8095_v14  ;;  %966 = vrot.lane.b32.xlu1 %v8095_v14, %s7120_s11 }
  0xb2   :  { %13625 = vst [vmem:[#allocation155_spill] sm:$0xff] %v8102_v17  ;;  %v8120_v34 = vsel %vm13457_vm2, %v821_v61, %v823_v50  ;;  %v835_v50 = vrot.slane %v7310_v63, 2 }
  0xb3   :  { %970 = vrot.lane.b32.xlu0 %v8102_v17, %s7120_s11  ;;  %13628 = vst [vmem:[#allocation158_spill] sm:$0xff] %v8114_v38 }
  0xb4   :  { %v8106_v31 = vpop.permute.xlu2 %688  ;;  %v8109_v40 = vpop.permute.xlu1 %668  ;;  %13630 = vst [vmem:[#allocation160_spill] sm:$0xff] %v8120_v34 }
  0xb5   :  { %13626 = vst [vmem:[#allocation156_spill] sm:$0xff] %v8106_v31  ;;  %v831_v31 = vrot.slane %v7291_v54, 2 }
  0xb6   :  { %13627 = vst [vmem:[#allocation157_spill] sm:$0xff] %v8109_v40 }
  0xb7   :  { %v8117_v25 = vpop.permute.xlu0 %672  ;;  %13631 = vst [vmem:[#allocation161_spill] sm:$0xff] %v8127_v35  ;;  %v8139_v61 = vsel %vm13457_vm2, %v831_v31, %v833_v11  ;;  %v8146_v0 = vsel %vm13457_vm2, %v830_v45, %v831_v31  ;;  %v840_v11 = vrot.slane %v7359_v33, 2  ;;  %v843_v45 = vrot.slane %v7356_v32, 2 }
  0xb8   :  { %13629 = vst [vmem:[#allocation159_spill] sm:$0xff] %v8117_v25  ;;  %974 = vrot.lane.b32.xlu2 %v8114_v38, %s7120_s11  ;;  %v845_v32 = vrot.slane %v7377_v43, 2 }
  0xb9   :  { %972 = vrot.lane.b32.xlu1 %v8120_v34, %s7120_s11  ;;  %13634 = vst [vmem:[#allocation164_spill] sm:$0xff] %v8139_v61 }
  0xba   :  { %13636 = vst [vmem:[#allocation166_spill] sm:$0xff] %v8146_v0 }
  0xbb   :  { %976 = vrot.lane.b32.xlu0 %v8127_v35, %s7120_s11 }
  0xbc   :  { %v8131_v40 = vpop.permute.xlu2 %694  ;;  %v8134_v25 = vpop.permute.xlu1 %674 }
  0xbd   :  { %13632 = vst [vmem:[#allocation162_spill] sm:$0xff] %v8131_v40  ;;  %v8153_v40 = vsel %vm13457_vm2, %v835_v50, %v836_v4 }
  0xbe   :  { %13633 = vst [vmem:[#allocation163_spill] sm:$0xff] %v8134_v25  ;;  %v841_v25 = vrot.slane %v7353_v29, 2 }
  0xbf   :  { %v8143_v20 = vpop.permute.xlu0 %678  ;;  %13637 = vst [vmem:[#allocation167_spill] sm:$0xff] %v8153_v40 }
  0xc0   :  { %13635 = vst [vmem:[#allocation165_spill] sm:$0xff] %v8143_v20  ;;  %980 = vrot.lane.b32.xlu2 %v8139_v61, %s7120_s11  ;;  %v838_v20 = vrot.slane %v7331_v8, 2  ;;  %v8165_v31 = vsel %vm13457_vm2, %v840_v11, %v841_v25  ;;  %v8178_v8 = vsel %vm13457_vm2, %v841_v25, %v843_v45  ;;  %v848_v11 = vrot.slane %v7403_v1, 2 }
  0xc1   :  { %978 = vrot.lane.b32.xlu1 %v8146_v0, %s7120_s11  ;;  %13640 = vst [vmem:[#allocation170_spill] sm:$0xff] %v8165_v31  ;;  %v851_v25 = vrot.slane %v7394_v57, 2 }
  0xc2   :  { %v8171_v61 = vsel %vm13457_vm2, %v836_v4, %v838_v20  ;;  %13643 = vst [vmem:[#allocation173_spill] sm:$0xff] %v8178_v8  ;;  %v850_v20 = vrot.slane %v7388_v53, 2 }
  0xc3   :  { %982 = vrot.lane.b32.xlu0 %v8153_v40, %s7120_s11  ;;  %13642 = vst [vmem:[#allocation172_spill] sm:$0xff] %v8171_v61 }
  0xc4   :  { %v8157_v38 = vpop.permute.xlu2 %700  ;;  %v8160_v35 = vpop.permute.xlu1 %680 }
  0xc5   :  { %13638 = vst [vmem:[#allocation168_spill] sm:$0xff] %v8157_v38  ;;  %v846_v38 = vrot.slane %v7374_v42, 2 }
  0xc6   :  { %13639 = vst [vmem:[#allocation169_spill] sm:$0xff] %v8160_v35 }
  0xc7   :  { %v8168_v50 = vpop.permute.xlu0 %684  ;;  %v8190_v4 = vsel %vm13457_vm2, %v846_v38, %v848_v11  ;;  %v8197_v1 = vsel %vm13457_vm2, %v845_v32, %v846_v38  ;;  %v855_v11 = vrot.slane %v7443_v48, 2  ;;  %v858_v32 = vrot.slane %v7437_v39, 2 }
  0xc8   :  { %13641 = vst [vmem:[#allocation171_spill] sm:$0xff] %v8168_v50  ;;  %986 = vrot.lane.b32.xlu2 %v8165_v31, %s7120_s11  ;;  %v860_v39 = vrot.slane %v7461_v10, 2 }
  0xc9   :  { %984 = vrot.lane.b32.xlu1 %v8171_v61, %s7120_s11  ;;  %13646 = vst [vmem:[#allocation176_spill] sm:$0xff] %v8190_v4  ;;  %v13697_v61 = vld [vmem:[#allocation63_spill] sm:$0xff] }
  0xca   :  { %13648 = vst [vmem:[#allocation178_spill] sm:$0xff] %v8197_v1 }
  0xcb   :  { %988 = vrot.lane.b32.xlu0 %v8178_v8, %s7120_s11 }
  0xcc   :  { %v8182_v35 = vpop.permute.xlu2 %706  ;;  %v8185_v50 = vpop.permute.xlu1 %686 }
  0xcd   :  { %13644 = vst [vmem:[#allocation174_spill] sm:$0xff] %v8182_v35  ;;  %v856_v35 = vrot.slane %v7431_v26, 2 }
  0xce   :  { %13645 = vst [vmem:[#allocation175_spill] sm:$0xff] %v8185_v50  ;;  %v8204_v50 = vsel %vm13457_vm2, %v850_v20, %v851_v25 }
  0xcf   :  { %v8194_v45 = vpop.permute.xlu0 %690  ;;  %13649 = vst [vmem:[#allocation179_spill] sm:$0xff] %v8204_v50  ;;  %v8216_v38 = vsel %vm13457_vm2, %v855_v11, %v856_v35  ;;  %v863_v11 = vrot.slane %v7487_v60, 2 }
  0xd0   :  { %13647 = vst [vmem:[#allocation177_spill] sm:$0xff] %v8194_v45  ;;  %992 = vrot.lane.b32.xlu2 %v8190_v4, %s7120_s11  ;;  %v853_v45 = vrot.slane %v7415_v9, 2  ;;  %v8229_v9 = vsel %vm13457_vm2, %v856_v35, %v858_v32  ;;  %v866_v35 = vrot.slane %v7478_v47, 2 }
  0xd1   :  { %990 = vrot.lane.b32.xlu1 %v8197_v1, %s7120_s11  ;;  %13652 = vst [vmem:[#allocation182_spill] sm:$0xff] %v8216_v38 }
  0xd2   :  { %v8222_v4 = vsel %vm13457_vm2, %v851_v25, %v853_v45  ;;  %13655 = vst [vmem:[#allocation185_spill] sm:$0xff] %v8229_v9  ;;  %v865_v45 = vrot.slane %v7472_v2, 2 }
  0xd3   :  { %994 = vrot.lane.b32.xlu0 %v8204_v50, %s7120_s11  ;;  %13654 = vst [vmem:[#allocation184_spill] sm:$0xff] %v8222_v4 }
  0xd4   :  { %v8208_v31 = vpop.permute.xlu2 %712  ;;  %v8211_v8 = vpop.permute.xlu1 %692 }
  0xd5   :  { %13650 = vst [vmem:[#allocation180_spill] sm:$0xff] %v8208_v31 }
  0xd6   :  { %13651 = vst [vmem:[#allocation181_spill] sm:$0xff] %v8211_v8  ;;  %v861_v8 = vrot.slane %v7458_v6, 2 }
  0xd7   :  { %v8219_v20 = vpop.permute.xlu0 %696 }
  0xd8   :  { %13653 = vst [vmem:[#allocation183_spill] sm:$0xff] %v8219_v20  ;;  %998 = vrot.lane.b32.xlu2 %v8216_v38, %s7120_s11  ;;  %v8241_v25 = vsel %vm13457_vm2, %v861_v8, %v863_v11  ;;  %v8248_v60 = vsel %vm13457_vm2, %v860_v39, %v861_v8  ;;  %v870_v11 = vrot.slane %v7527_v18, 2  ;;  %v873_v39 = vrot.slane %v7521_v56, 2 }
  0xd9   :  { %996 = vrot.lane.b32.xlu1 %v8222_v4, %s7120_s11  ;;  %13658 = vst [vmem:[#allocation188_spill] sm:$0xff] %v8241_v25  ;;  %v875_v56 = vrot.slane %v7545_v37, 2 }
  0xda   :  { %13660 = vst [vmem:[#allocation190_spill] sm:$0xff] %v8248_v60 }
  0xdb   :  { %1000 = vrot.lane.b32.xlu0 %v8229_v9, %s7120_s11 }
  0xdc   :  { %v8233_v31 = vpop.permute.xlu2 %718  ;;  %v8236_v20 = vpop.permute.xlu1 %698 }
  0xdd   :  { %13656 = vst [vmem:[#allocation186_spill] sm:$0xff] %v8233_v31  ;;  %v871_v31 = vrot.slane %v7515_v3, 2 }
  0xde   :  { %13657 = vst [vmem:[#allocation187_spill] sm:$0xff] %v8236_v20  ;;  %v8255_v20 = vsel %vm13457_vm2, %v865_v45, %v866_v35 }
  0xdf   :  { %v8245_v32 = vpop.permute.xlu0 %702  ;;  %13661 = vst [vmem:[#allocation191_spill] sm:$0xff] %v8255_v20  ;;  %v8267_v8 = vsel %vm13457_vm2, %v870_v11, %v871_v31  ;;  %v878_v11 = vrot.slane %v7571_v21, 2 }
  0xe0   :  { %13659 = vst [vmem:[#allocation189_spill] sm:$0xff] %v8245_v32  ;;  %1004 = vrot.lane.b32.xlu2 %v8241_v25, %s7120_s11  ;;  %v868_v32 = vrot.slane %v7499_v22, 2  ;;  %v8280_v22 = vsel %vm13457_vm2, %v871_v31, %v873_v39  ;;  %v881_v31 = vrot.slane %v7562_v59, 2 }
  0xe1   :  { %1002 = vrot.lane.b32.xlu1 %v8248_v60, %s7120_s11  ;;  %13664 = vst [vmem:[#allocation194_spill] sm:$0xff] %v8267_v8 }
  0xe2   :  { %v8273_v25 = vsel %vm13457_vm2, %v866_v35, %v868_v32  ;;  %13667 = vst [vmem:[#allocation197_spill] sm:$0xff] %v8280_v22  ;;  %v880_v32 = vrot.slane %v7556_v28, 2 }
  0xe3   :  { %1006 = vrot.lane.b32.xlu0 %v8255_v20, %s7120_s11  ;;  %13666 = vst [vmem:[#allocation196_spill] sm:$0xff] %v8273_v25 }
  0xe4   :  { %v8259_v38 = vpop.permute.xlu2 %724  ;;  %v8262_v9 = vpop.permute.xlu1 %704 }
  0xe5   :  { %13662 = vst [vmem:[#allocation192_spill] sm:$0xff] %v8259_v38  ;;  %v876_v38 = vrot.slane %v7542_v51, 2 }
  0xe6   :  { %13663 = vst [vmem:[#allocation193_spill] sm:$0xff] %v8262_v9 }
  0xe7   :  { %v8270_v45 = vpop.permute.xlu0 %708  ;;  %v8292_v35 = vsel %vm13457_vm2, %v876_v38, %v878_v11  ;;  %v8299_v21 = vsel %vm13457_vm2, %v875_v56, %v876_v38  ;;  %v885_v11 = vrot.slane %v7611_v30, 2  ;;  %v13679_v56 = vld [vmem:[#allocation52_spill] sm:$0xff] }
  0xe8   :  { %13665 = vst [vmem:[#allocation195_spill] sm:$0xff] %v8270_v45  ;;  %1010 = vrot.lane.b32.xlu2 %v8267_v8, %s7120_s11 }
  0xe9   :  { %1008 = vrot.lane.b32.xlu1 %v8273_v25, %s7120_s11  ;;  %13670 = vst [vmem:[#allocation200_spill] sm:$0xff] %v8292_v35  ;;  %v13676_v25 = vld [vmem:[#allocation48_spill] sm:$0xff] }
  0xea   :  { %13672 = vst [vmem:[#allocation202_spill] sm:$0xff] %v8299_v21 }
  0xeb   :  { %1012 = vrot.lane.b32.xlu0 %v8280_v22, %s7120_s11 }
  0xec   :  { %v8284_v9 = vpop.permute.xlu2 %730  ;;  %v8287_v45 = vpop.permute.xlu1 %710 }
  0xed   :  { %13668 = vst [vmem:[#allocation198_spill] sm:$0xff] %v8284_v9  ;;  %v8306_v9 = vsel %vm13457_vm2, %v880_v32, %v881_v31 }
  0xee   :  { %13669 = vst [vmem:[#allocation199_spill] sm:$0xff] %v8287_v45  ;;  %v13674_v45 = vld [vmem:[#allocation50_spill] sm:$0xff] }
  0xef   :  { %v8296_v39 = vpop.permute.xlu0 %714  ;;  %13673 = vst [vmem:[#allocation203_spill] sm:$0xff] %v8306_v9  ;;  %v886_v8 = vrot.slane %v13674_v45, 2 }
  0xf0   :  { %13671 = vst [vmem:[#allocation201_spill] sm:$0xff] %v8296_v39  ;;  %1016 = vrot.lane.b32.xlu2 %v8292_v35, %s7120_s11  ;;  %v883_v39 = vrot.slane %v13676_v25, 2  ;;  %v888_v35 = vrot.slane %v13679_v56, 2  ;;  %v13686_v56 = vld [vmem:[#allocation56_spill] sm:$0xff] }
  0xf1   :  { %1014 = vrot.lane.b32.xlu1 %v8299_v21, %s7120_s11  ;;  %v8318_v38 = vsel %vm13457_vm2, %v885_v11, %v886_v8  ;;  %v13684_v11 = vld [vmem:[#allocation61_spill] sm:$0xff] }
  0xf2   :  { %13678 = vst [vmem:[#allocation205_spill] sm:$0xff] %v8318_v38  ;;  %v8324_v21 = vsel %vm13457_vm2, %v881_v31, %v883_v39  ;;  %v8331_v25 = vsel %vm13457_vm2, %v886_v8, %v888_v35  ;;  %v13689_v39 = vld [vmem:[#allocation58_spill] sm:$0xff]  ;;  %v13690_v8 = vld [vmem:[#allocation60_spill] sm:$0xff] }
  0xf3   :  { %1018 = vrot.lane.b32.xlu0 %v8306_v9, %s7120_s11  ;;  %13681 = vst [vmem:[#allocation206_spill] sm:$0xff] %v8324_v21  ;;  %v893_v9 = vrot.slane %v13684_v11, 2  ;;  %v896_v35 = vrot.slane %v13690_v8, 2 }
  0xf4   :  { %v8310_v22 = vpop.permute.xlu2 %736  ;;  %v8313_v20 = vpop.permute.xlu1 %716  ;;  %13682 = vst [vmem:[#allocation207_spill] sm:$0xff] %v8331_v25 }
  0xf5   :  { %13675 = vst [vmem:[#allocation204_spill] sm:$0xff] %v8310_v22  ;;  %v13683_v22 = vld [vmem:[#allocation55_spill] sm:$0xff] }
  0xf6   :  { %13677 = vst [vmem:[#allocation48_spill] sm:$0xff] %v8313_v20  ;;  %v891_v20 = vrot.slane %v13683_v22, 2 }
  0xf7   :  { %v8321_v32 = vpop.permute.xlu0 %720 }
  0xf8   :  { %13680 = vst [vmem:[#allocation52_spill] sm:$0xff] %v8321_v32  ;;  %1022 = vrot.lane.b32.xlu2 %v8318_v38, %s7120_s11  ;;  %v890_v32 = vrot.slane %v13686_v56, 2  ;;  %v8343_v31 = vsel %vm13457_vm2, %v891_v20, %v893_v9  ;;  %v895_v38 = vrot.slane %v13689_v39, 2  ;;  %v13694_v9 = vld [vmem:[#allocation68_spill] sm:$0xff] }
  0xf9   :  { %1020 = vrot.lane.b32.xlu1 %v8324_v21, %s7120_s11  ;;  %13688 = vst [vmem:[#allocation209_spill] sm:$0xff] %v8343_v31 }
  0xfa   :  { %v8350_v11 = vsel %vm13457_vm2, %v890_v32, %v891_v20  ;;  %v13700_v32 = vld [vmem:[#allocation67_spill] sm:$0xff] }
  0xfb   :  { %1024 = vrot.lane.b32.xlu0 %v8331_v25, %s7120_s11  ;;  %13692 = vst [vmem:[#allocation211_spill] sm:$0xff] %v8350_v11  ;;  %v13695_v25 = vld [vmem:[#allocation65_spill] sm:$0xff] }
  0xfc   :  { %v8335_v60 = vpop.permute.xlu2 %742  ;;  %v8338_v4 = vpop.permute.xlu1 %722  ;;  %v901_v50 = vrot.slane %v13695_v25, 2 }
  0xfd   :  { %13685 = vst [vmem:[#allocation61_spill] sm:$0xff] %v8335_v60  ;;  %v8357_v60 = vsel %vm13457_vm2, %v895_v38, %v896_v35 }
  0xfe   :  { %13687 = vst [vmem:[#allocation208_spill] sm:$0xff] %v8338_v4  ;;  %v900_v4 = vrot.slane %v13694_v9, 2 }
  0xff   :  { %v8347_v21 = vpop.permute.xlu0 %726  ;;  %13693 = vst [vmem:[#allocation212_spill] sm:$0xff] %v8357_v60 }
 0x100   :  { %13691 = vst [vmem:[#allocation210_spill] sm:$0xff] %v8347_v21  ;;  %1028 = vrot.lane.b32.xlu2 %v8343_v31, %s7120_s11  ;;  %v898_v21 = vrot.slane %v13697_v61, 2  ;;  %v8369_v20 = vsel %vm13457_vm2, %v900_v4, %v901_v50  ;;  %v903_v31 = vrot.slane %v13700_v32, 2  ;;  %v13705_v4 = vld [vmem:[#allocation77_spill] sm:$0xff]  ;;  %v13707_v32 = vld [vmem:[#allocation71_spill] sm:$0xff] }
 0x101   :  { %1026 = vrot.lane.b32.xlu1 %v8350_v11, %s7120_s11  ;;  %13699 = vst [vmem:[#allocation214_spill] sm:$0xff] %v8369_v20 }
 0x102   :  { %v8375_v11 = vsel %vm13457_vm2, %v896_v35, %v898_v21  ;;  %v8382_v61 = vsel %vm13457_vm2, %v901_v50, %v903_v31  ;;  %v13710_v35 = vld [vmem:[#allocation74_spill] sm:$0xff]  ;;  %v13711_v50 = vld [vmem:[#allocation76_spill] sm:$0xff] }
 0x103   :  { %1030 = vrot.lane.b32.xlu0 %v8357_v60, %s7120_s11  ;;  %13702 = vst [vmem:[#allocation215_spill] sm:$0xff] %v8375_v11  ;;  %v908_v60 = vrot.slane %v13705_v4, 2  ;;  %v911_v31 = vrot.slane %v13711_v50, 2 }
 0x104   :  { %v8361_v1 = vpop.permute.xlu2 %962  ;;  %v8364_v40 = vpop.permute.xlu1 %728  ;;  %13703 = vst [vmem:[#allocation216_spill] sm:$0xff] %v8382_v61 }
 0x105   :  { %13696 = vst [vmem:[#allocation213_spill] sm:$0xff] %v8361_v1 }
 0x106   :  { %13698 = vst [vmem:[#allocation63_spill] sm:$0xff] %v8364_v40  ;;  %v13704_v40 = vld [vmem:[#allocation70_spill] sm:$0xff] }
 0x107   :  { %v8372_v38 = vpop.permute.xlu0 %732  ;;  %v906_v1 = vrot.slane %v13704_v40, 2 }
 0x108   :  { %13701 = vst [vmem:[#allocation67_spill] sm:$0xff] %v8372_v38  ;;  %1034 = vrot.lane.b32.xlu2 %v8369_v20, %s7120_s11  ;;  %v905_v38 = vrot.slane %v13707_v32, 2  ;;  %v910_v20 = vrot.slane %v13710_v35, 2 }
 0x109   :  { %1032 = vrot.lane.b32.xlu1 %v8375_v11, %s7120_s11  ;;  %v8394_v21 = vsel %vm13457_vm2, %v906_v1, %v908_v60  ;;  %v13715_v60 = vld [vmem:[#allocation85_spill] sm:$0xff] }
 0x10a   :  { %13709 = vst [vmem:[#allocation217_spill] sm:$0xff] %v8394_v21  ;;  %v8401_v4 = vsel %vm13457_vm2, %v905_v38, %v906_v1  ;;  %v13721_v38 = vld [vmem:[#allocation84_spill] sm:$0xff] }
 0x10b   :  { %1036 = vrot.lane.b32.xlu0 %v8382_v61, %s7120_s11  ;;  %13713 = vst [vmem:[#allocation218_spill] sm:$0xff] %v8401_v4  ;;  %v13716_v61 = vld [vmem:[#allocation82_spill] sm:$0xff] }
 0x10c   :  { %v8386_v0 = vpop.permute.xlu2 %968  ;;  %v8389_v34 = vpop.permute.xlu1 %734  ;;  %v916_v17 = vrot.slane %v13716_v61, 2 }
 0x10d   :  { %13706 = vst [vmem:[#allocation70_spill] sm:$0xff] %v8386_v0  ;;  %v915_v0 = vrot.slane %v13715_v60, 2 }
 0x10e   :  { %13708 = vst [vmem:[#allocation77_spill] sm:$0xff] %v8389_v34  ;;  %v8408_v34 = vsel %vm13457_vm2, %v910_v20, %v911_v31 }
 0x10f   :  { %v8398_v11 = vpop.permute.xlu0 %738  ;;  %13714 = vst [vmem:[#allocation219_spill] sm:$0xff] %v8408_v34  ;;  %v8420_v1 = vsel %vm13457_vm2, %v915_v0, %v916_v17  ;;  %v13726_v0 = vld [vmem:[#allocation95_spill] sm:$0xff] }
 0x110   :  { %13712 = vst [vmem:[#allocation74_spill] sm:$0xff] %v8398_v11  ;;  %1040 = vrot.lane.b32.xlu2 %v8394_v21, %s7120_s11  ;;  %v913_v11 = vrot.slane %v13718_v36, 2  ;;  %v918_v21 = vrot.slane %v13721_v38, 2  ;;  %v13728_v38 = vld [vmem:[#allocation88_spill] sm:$0xff] }
 0x111   :  { %1038 = vrot.lane.b32.xlu1 %v8401_v4, %s7120_s11  ;;  %13720 = vst [vmem:[#allocation221_spill] sm:$0xff] %v8420_v1 }
 0x112   :  { %v8426_v4 = vsel %vm13457_vm2, %v911_v31, %v913_v11  ;;  %v8433_v36 = vsel %vm13457_vm2, %v916_v17, %v918_v21  ;;  %v13731_v31 = vld [vmem:[#allocation91_spill] sm:$0xff]  ;;  %v13732_v17 = vld [vmem:[#allocation94_spill] sm:$0xff] }
 0x113   :  { %1042 = vrot.lane.b32.xlu0 %v8408_v34, %s7120_s11  ;;  %13723 = vst [vmem:[#allocation222_spill] sm:$0xff] %v8426_v4  ;;  %v923_v34 = vrot.slane %v13726_v0, 2  ;;  %v926_v21 = vrot.slane %v13732_v17, 2  ;;  %v13739_v17 = vld [vmem:[#allocation97_spill] sm:$0xff] }
 0x114   :  { %v8412_v14 = vpop.permute.xlu2 %974  ;;  %v8415_v5 = vpop.permute.xlu1 %740  ;;  %13724 = vst [vmem:[#allocation223_spill] sm:$0xff] %v8433_v36 }
 0x115   :  { %13717 = vst [vmem:[#allocation220_spill] sm:$0xff] %v8412_v14 }
 0x116   :  { %13719 = vst [vmem:[#allocation79_spill] sm:$0xff] %v8415_v5  ;;  %v13725_v5 = vld [vmem:[#allocation87_spill] sm:$0xff] }
 0x117   :  { %v8423_v20 = vpop.permute.xlu0 %744  ;;  %v921_v14 = vrot.slane %v13725_v5, 2 }
 0x118   :  { %13722 = vst [vmem:[#allocation84_spill] sm:$0xff] %v8423_v20  ;;  %1046 = vrot.lane.b32.xlu2 %v8420_v1, %s7120_s11  ;;  %v920_v20 = vrot.slane %v13728_v38, 2  ;;  %v925_v1 = vrot.slane %v13731_v31, 2 }
 0x119   :  { %1044 = vrot.lane.b32.xlu1 %v8426_v4, %s7120_s11  ;;  %v8445_v11 = vsel %vm13457_vm2, %v921_v14, %v923_v34  ;;  %v13736_v34 = vld [vmem:[#allocation105_spill] sm:$0xff] }
 0x11a   :  { %13730 = vst [vmem:[#allocation225_spill] sm:$0xff] %v8445_v11  ;;  %v8452_v0 = vsel %vm13457_vm2, %v920_v20, %v921_v14  ;;  %v13742_v20 = vld [vmem:[#allocation104_spill] sm:$0xff] }
 0x11b   :  { %1048 = vrot.lane.b32.xlu0 %v8433_v36, %s7120_s11  ;;  %13734 = vst [vmem:[#allocation227_spill] sm:$0xff] %v8452_v0  ;;  %v13737_v36 = vld [vmem:[#allocation101_spill] sm:$0xff] }
 0x11c   :  { %v8437_v60 = vpop.permute.xlu2 %980  ;;  %v8440_v61 = vpop.permute.xlu1 %960  ;;  %v931_v5 = vrot.slane %v13737_v36, 2 }
 0x11d   :  { %13727 = vst [vmem:[#allocation95_spill] sm:$0xff] %v8437_v60  ;;  %v8459_v60 = vsel %vm13457_vm2, %v925_v1, %v926_v21 }
 0x11e   :  { %13729 = vst [vmem:[#allocation224_spill] sm:$0xff] %v8440_v61  ;;  %v930_v61 = vrot.slane %v13736_v34, 2 }
 0x11f   :  { %v8449_v4 = vpop.permute.xlu0 %964  ;;  %13735 = vst [vmem:[#allocation228_spill] sm:$0xff] %v8459_v60 }
 0x120   :  { %13733 = vst [vmem:[#allocation226_spill] sm:$0xff] %v8449_v4  ;;  %1052 = vrot.lane.b32.xlu2 %v8445_v11, %s7120_s11  ;;  %v928_v4 = vrot.slane %v13739_v17, 2  ;;  %v8471_v14 = vsel %vm13457_vm2, %v930_v61, %v931_v5  ;;  %v933_v11 = vrot.slane %v13742_v20, 2  ;;  %v13747_v61 = vld [vmem:[#allocation116_spill] sm:$0xff] }
 0x121   :  { %1050 = vrot.lane.b32.xlu1 %v8452_v0, %s7120_s11  ;;  %13741 = vst [vmem:[#allocation230_spill] sm:$0xff] %v8471_v14  ;;  %v13749_v20 = vld [vmem:[#allocation108_spill] sm:$0xff] }
 0x122   :  { %v8477_v0 = vsel %vm13457_vm2, %v926_v21, %v928_v4  ;;  %v8484_v17 = vsel %vm13457_vm2, %v931_v5, %v933_v11  ;;  %v13752_v21 = vld [vmem:[#allocation112_spill] sm:$0xff]  ;;  %v13753_v5 = vld [vmem:[#allocation115_spill] sm:$0xff] }
 0x123   :  { %1054 = vrot.lane.b32.xlu0 %v8459_v60, %s7120_s11  ;;  %13744 = vst [vmem:[#allocation231_spill] sm:$0xff] %v8477_v0  ;;  %v938_v60 = vrot.slane %v13747_v61, 2  ;;  %v941_v11 = vrot.slane %v13753_v5, 2  ;;  %v13759_v5 = vld [vmem:[#allocation119_spill] sm:$0xff] }
 0x124   :  { %v8463_v31 = vpop.permute.xlu2 %986  ;;  %v8466_v38 = vpop.permute.xlu1 %966  ;;  %13745 = vst [vmem:[#allocation232_spill] sm:$0xff] %v8484_v17 }
 0x125   :  { %13738 = vst [vmem:[#allocation229_spill] sm:$0xff] %v8463_v31  ;;  %v13746_v31 = vld [vmem:[#allocation107_spill] sm:$0xff] }
 0x126   :  { %13740 = vst [vmem:[#allocation97_spill] sm:$0xff] %v8466_v38  ;;  %v936_v38 = vrot.slane %v13746_v31, 2 }
 0x127   :  { %v8474_v1 = vpop.permute.xlu0 %970 }
 0x128   :  { %13743 = vst [vmem:[#allocation104_spill] sm:$0xff] %v8474_v1  ;;  %1058 = vrot.lane.b32.xlu2 %v8471_v14, %s7120_s11  ;;  %v935_v1 = vrot.slane %v13749_v20, 2  ;;  %v8496_v4 = vsel %vm13457_vm2, %v936_v38, %v938_v60  ;;  %v940_v14 = vrot.slane %v13752_v21, 2  ;;  %v945_v60 = vrot.slane %v7970_v41, 2 }
 0x129   :  { %1056 = vrot.lane.b32.xlu1 %v8477_v0, %s7120_s11  ;;  %13751 = vst [vmem:[#allocation234_spill] sm:$0xff] %v8496_v4 }
 0x12a   :  { %v8503_v61 = vsel %vm13457_vm2, %v935_v1, %v936_v38  ;;  %v13762_v1 = vld [vmem:[#allocation125_spill] sm:$0xff] }
 0x12b   :  { %1060 = vrot.lane.b32.xlu0 %v8484_v17, %s7120_s11  ;;  %13755 = vst [vmem:[#allocation236_spill] sm:$0xff] %v8503_v61 }
 0x12c   :  { %v8488_v34 = vpop.permute.xlu2 %992  ;;  %v8491_v36 = vpop.permute.xlu1 %972 }
 0x12d   :  { %13748 = vst [vmem:[#allocation116_spill] sm:$0xff] %v8488_v34  ;;  %v8510_v34 = vsel %vm13457_vm2, %v940_v14, %v941_v11 }
 0x12e   :  { %13750 = vst [vmem:[#allocation233_spill] sm:$0xff] %v8491_v36  ;;  %v13757_v36 = vld [vmem:[#allocation123_spill] sm:$0xff] }
 0x12f   :  { %v8500_v0 = vpop.permute.xlu0 %976  ;;  %13756 = vst [vmem:[#allocation237_spill] sm:$0xff] %v8510_v34  ;;  %v946_v17 = vrot.slane %v13757_v36, 2 }
 0x130   :  { %13754 = vst [vmem:[#allocation235_spill] sm:$0xff] %v8500_v0  ;;  %1064 = vrot.lane.b32.xlu2 %v8496_v4, %s7120_s11  ;;  %v943_v0 = vrot.slane %v13759_v5, 2  ;;  %v948_v4 = vrot.slane %v13762_v1, 2  ;;  %v950_v1 = vrot.slane %v7994_v52, 2 }
 0x131   :  { %1062 = vrot.lane.b32.xlu1 %v8503_v61, %s7120_s11  ;;  %v8522_v38 = vsel %vm13457_vm2, %v945_v60, %v946_v17  ;;  %v953_v60 = vrot.slane %v8017_v58, 2 }
 0x132   :  { %13761 = vst [vmem:[#allocation239_spill] sm:$0xff] %v8522_v38  ;;  %v8528_v61 = vsel %vm13457_vm2, %v941_v11, %v943_v0  ;;  %v8535_v5 = vsel %vm13457_vm2, %v946_v17, %v948_v4  ;;  %v955_v11 = vrot.slane %v8014_v15, 2  ;;  %v956_v17 = vrot.slane %v8011_v49, 2 }
 0x133   :  { %1066 = vrot.lane.b32.xlu0 %v8510_v34, %s7120_s11  ;;  %13764 = vst [vmem:[#allocation240_spill] sm:$0xff] %v8528_v61 }
 0x134   :  { %v8514_v31 = vpop.permute.xlu2 %998  ;;  %v8517_v21 = vpop.permute.xlu1 %978  ;;  %13765 = vst [vmem:[#allocation241_spill] sm:$0xff] %v8535_v5 }
 0x135   :  { %13758 = vst [vmem:[#allocation238_spill] sm:$0xff] %v8514_v31  ;;  %v951_v31 = vrot.slane %v7991_v12, 2 }
 0x136   :  { %13760 = vst [vmem:[#allocation119_spill] sm:$0xff] %v8517_v21 }
 0x137   :  { %v8525_v14 = vpop.permute.xlu0 %982  ;;  %v8547_v0 = vsel %vm13457_vm2, %v951_v31, %v953_v60  ;;  %v8554_v58 = vsel %vm13457_vm2, %v950_v1, %v951_v31 }
 0x138   :  { %13763 = vst [vmem:[#allocation125_spill] sm:$0xff] %v8525_v14  ;;  %1070 = vrot.lane.b32.xlu2 %v8522_v38, %s7120_s11 }
 0x139   :  { %1068 = vrot.lane.b32.xlu1 %v8528_v61, %s7120_s11  ;;  %13768 = vst [vmem:[#allocation244_spill] sm:$0xff] %v8547_v0 }
 0x13a   :  { %13770 = vst [vmem:[#allocation246_spill] sm:$0xff] %v8554_v58 }
 0x13b   :  { %1072 = vrot.lane.b32.xlu0 %v8535_v5, %s7120_s11 }
 0x13c   :  { %v8539_v21 = vpop.permute.xlu2 %1004  ;;  %v8542_v14 = vpop.permute.xlu1 %984 }
 0x13d   :  { %13766 = vst [vmem:[#allocation242_spill] sm:$0xff] %v8539_v21  ;;  %v958_v21 = vrot.slane %v8032_v7, 2 }
 0x13e   :  { %13767 = vst [vmem:[#allocation243_spill] sm:$0xff] %v8542_v14  ;;  %v8561_v14 = vsel %vm13457_vm2, %v955_v11, %v956_v17 }
 0x13f   :  { %v8551_v4 = vpop.permute.xlu0 %988  ;;  %13771 = vst [vmem:[#allocation247_spill] sm:$0xff] %v8561_v14  ;;  %v8573_v1 = vsel %vm13457_vm2, %v956_v17, %v958_v21 }
 0x140   :  { %13769 = vst [vmem:[#allocation245_spill] sm:$0xff] %v8551_v4  ;;  %1076 = vrot.lane.b32.xlu2 %v8547_v0, %s7120_s11 }
 0x141   :  { %1074 = vrot.lane.b32.xlu1 %v8554_v58, %s7120_s11  ;;  %13775 = vst [vmem:[#allocation251_spill] sm:$0xff] %v8573_v1 }
 0x143   :  { %1078 = vrot.lane.b32.xlu0 %v8561_v14, %s7120_s11 }
 0x144   :  { %v8563_v60 = vpop.permute.xlu2 %1010  ;;  %v8566_v5 = vpop.permute.xlu1 %990 }
 0x145   :  { %13772 = vst [vmem:[#allocation248_spill] sm:$0xff] %v8563_v60 }
 0x146   :  { %13773 = vst [vmem:[#allocation249_spill] sm:$0xff] %v8566_v5 }
 0x147   :  { %v8570_v31 = vpop.permute.xlu0 %994 }
 0x148   :  { %13774 = vst [vmem:[#allocation250_spill] sm:$0xff] %v8570_v31  ;;  %1145 = vrot.lane.b32.xlu2 %v7216_v23, %s7121_s13 }
 0x149   :  { %1080 = vrot.lane.b32.xlu1 %v8573_v1, %s7120_s11 }
 0x14b   :  { %1147 = vrot.lane.b32.xlu0 %v7208_v19, %s7121_s13 }
 0x14c   :  { %v8579_v11 = vpop.permute.xlu2 %1016  ;;  %v8581_v7 = vpop.permute.xlu1 %996 }
 0x14d   :  { %13776 = vst [vmem:[#allocation252_spill] sm:$0xff] %v8579_v11 }
 0x14e   :  { %13777 = vst [vmem:[#allocation253_spill] sm:$0xff] %v8581_v7 }
 0x14f   :  { %v8585_v5 = vpop.permute.xlu0 %1000 }
 0x150   :  { %13778 = vst [vmem:[#allocation254_spill] sm:$0xff] %v8585_v5  ;;  %1151 = vrot.lane.b32.xlu2 %v7197_v13, %s7121_s13 }
 0x151   :  { %1149 = vrot.lane.b32.xlu1 %v7203_v16, %s7121_s13 }
 0x153   :  { %1153 = vrot.lane.b32.xlu0 %v7226_v27, %s7121_s13 }
 0x154   :  { %v8591_v21 = vpop.permute.xlu2 %1022  ;;  %v8593_v17 = vpop.permute.xlu1 %1002 }
 0x155   :  { %13779 = vst [vmem:[#allocation255_spill] sm:$0xff] %v8591_v21 }
 0x156   :  { %13780 = vst [vmem:[#allocation256_spill] sm:$0xff] %v8593_v17 }
 0x157   :  { %v8597_v31 = vpop.permute.xlu0 %1006 }
 0x158   :  { %13781 = vst [vmem:[#allocation257_spill] sm:$0xff] %v8597_v31  ;;  %1157 = vrot.lane.b32.xlu2 %v7272_v46, %s7121_s13 }
 0x159   :  { %1155 = vrot.lane.b32.xlu1 %v7219_v24, %s7121_s13 }
 0x15b   :  { %1159 = vrot.lane.b32.xlu0 %v7266_v44, %s7121_s13 }
 0x15c   :  { %v8603_v5 = vpop.permute.xlu2 %1028  ;;  %v8605_v7 = vpop.permute.xlu1 %1008 }
 0x15d   :  { %13782 = vst [vmem:[#allocation258_spill] sm:$0xff] %v8603_v5 }
 0x15e   :  { %13783 = vst [vmem:[#allocation259_spill] sm:$0xff] %v8605_v7 }
 0x15f   :  { %v8609_v21 = vpop.permute.xlu0 %1012 }
 0x160   :  { %13784 = vst [vmem:[#allocation260_spill] sm:$0xff] %v8609_v21  ;;  %1163 = vrot.lane.b32.xlu2 %v7291_v54, %s7121_s13 }
 0x161   :  { %1161 = vrot.lane.b32.xlu1 %v7294_v55, %s7121_s13 }
 0x163   :  { %1165 = vrot.lane.b32.xlu0 %v7310_v63, %s7121_s13 }
 0x164   :  { %v8615_v17 = vpop.permute.xlu2 %1034  ;;  %v8617_v4 = vpop.permute.xlu1 %1014 }
 0x165   :  { %13785 = vst [vmem:[#allocation261_spill] sm:$0xff] %v8615_v17 }
 0x166   :  { %13786 = vst [vmem:[#allocation262_spill] sm:$0xff] %v8617_v4 }
 0x167   :  { %v8621_v5 = vpop.permute.xlu0 %1018 }
 0x168   :  { %13787 = vst [vmem:[#allocation263_spill] sm:$0xff] %v8621_v5  ;;  %1169 = vrot.lane.b32.xlu2 %v7359_v33, %s7121_s13 }
 0x169   :  { %1167 = vrot.lane.b32.xlu1 %v7307_v62, %s7121_s13 }
 0x16b   :  { %1171 = vrot.lane.b32.xlu0 %v7353_v29, %s7121_s13 }
 0x16c   :  { %v8627_v11 = vpop.permute.xlu2 %1040  ;;  %v8629_v21 = vpop.permute.xlu1 %1020 }
 0x16d   :  { %13788 = vst [vmem:[#allocation264_spill] sm:$0xff] %v8627_v11 }
 0x16e   :  { %13789 = vst [vmem:[#allocation265_spill] sm:$0xff] %v8629_v21 }
 0x16f   :  { %v8633_v17 = vpop.permute.xlu0 %1024 }
 0x170   :  { %13790 = vst [vmem:[#allocation266_spill] sm:$0xff] %v8633_v17  ;;  %1175 = vrot.lane.b32.xlu2 %v7374_v42, %s7121_s13 }
 0x171   :  { %1173 = vrot.lane.b32.xlu1 %v7377_v43, %s7121_s13 }
 0x173   :  { %1177 = vrot.lane.b32.xlu0 %v7388_v53, %s7121_s13 }
 0x174   :  { %v8639_v5 = vpop.permute.xlu2 %1046  ;;  %v8641_v4 = vpop.permute.xlu1 %1026 }
 0x175   :  { %13791 = vst [vmem:[#allocation267_spill] sm:$0xff] %v8639_v5 }
 0x176   :  { %13792 = vst [vmem:[#allocation268_spill] sm:$0xff] %v8641_v4 }
 0x177   :  { %v8645_v11 = vpop.permute.xlu0 %1030 }
 0x178   :  { %13793 = vst [vmem:[#allocation269_spill] sm:$0xff] %v8645_v11  ;;  %1181 = vrot.lane.b32.xlu2 %v7443_v48, %s7121_s13 }
 0x179   :  { %1179 = vrot.lane.b32.xlu1 %v7394_v57, %s7121_s13 }
 0x17b   :  { %1183 = vrot.lane.b32.xlu0 %v7431_v26, %s7121_s13 }
 0x17c   :  { %v8651_v17 = vpop.permute.xlu2 %1052  ;;  %v8653_v21 = vpop.permute.xlu1 %1032 }
 0x17d   :  { %13794 = vst [vmem:[#allocation270_spill] sm:$0xff] %v8651_v17 }
 0x17e   :  { %13795 = vst [vmem:[#allocation271_spill] sm:$0xff] %v8653_v21 }
 0x17f   :  { %v8657_v5 = vpop.permute.xlu0 %1036 }
 0x180   :  { %13796 = vst [vmem:[#allocation272_spill] sm:$0xff] %v8657_v5  ;;  %1187 = vrot.lane.b32.xlu2 %v7458_v6, %s7121_s13 }
 0x181   :  { %1185 = vrot.lane.b32.xlu1 %v7461_v10, %s7121_s13 }
 0x183   :  { %1189 = vrot.lane.b32.xlu0 %v7472_v2, %s7121_s13 }
 0x184   :  { %v8663_v11 = vpop.permute.xlu2 %1058  ;;  %v8665_v4 = vpop.permute.xlu1 %1038 }
 0x185   :  { %13797 = vst [vmem:[#allocation273_spill] sm:$0xff] %v8663_v11 }
 0x186   :  { %13798 = vst [vmem:[#allocation274_spill] sm:$0xff] %v8665_v4  ;;  %v57_v4 = vld [vmem:[%s13099_s0 + $0xf0] sm:$0xff] }
 0x187   :  { %v8669_v17 = vpop.permute.xlu0 %1042 }
 0x188   :  { %13799 = vst [vmem:[#allocation275_spill] sm:$0xff] %v8669_v17  ;;  %1193 = vrot.lane.b32.xlu2 %v7527_v18, %s7121_s13  ;;  %v201_v17 = vrot.slane %v57_v4, 7 }
 0x189   :  { %1191 = vrot.lane.b32.xlu1 %v7478_v47, %s7121_s13 }
 0x18b   :  { %1195 = vrot.lane.b32.xlu0 %v7515_v3, %s7121_s13 }
 0x18c   :  { %v8675_v5 = vpop.permute.xlu2 %1064  ;;  %v8677_v21 = vpop.permute.xlu1 %1044 }
 0x18d   :  { %13800 = vst [vmem:[#allocation276_spill] sm:$0xff] %v8675_v5  ;;  %v8695_v5 = vld [vmem:[%s13099_s0 + $0xf8] sm:$0xff] }
 0x18e   :  { %13801 = vst [vmem:[#allocation277_spill] sm:$0xff] %v8677_v21  ;;  %v13395_v7 = vrot.slane %v8695_v5, 7 }
 0x18f   :  { %v8681_v11 = vpop.permute.xlu0 %1048 }
 0x190   :  { %13802 = vst [vmem:[#allocation278_spill] sm:$0xff] %v8681_v11  ;;  %1199 = vrot.lane.b32.xlu2 %v7542_v51, %s7121_s13  ;;  %v8702_v11 = vsel %vm13459_vm0, 0.0, %v201_v17  ;;  %v8714_v4 = vsel %vm13459_vm0, %v201_v17, %v13395_v7 }
 0x191   :  { %1197 = vrot.lane.b32.xlu1 %v7545_v37, %s7121_s13 }
 0x193   :  { %1201 = vrot.lane.b32.xlu0 %v7556_v28, %s7121_s13 }
 0x194   :  { %v8690_v60 = vpop.permute.xlu2 %1070  ;;  %v8697_v21 = vpop.permute.xlu1 %1050 }
 0x195   :  { %13803 = vst [vmem:[#allocation279_spill] sm:$0xff] %v8690_v60 }
 0x196   :  { %13804 = vst [vmem:[#allocation280_spill] sm:$0xff] %v8697_v21 }
 0x197   :  { %v8705_v31 = vpop.permute.xlu0 %1054 }
 0x198   :  { %13805 = vst [vmem:[#allocation281_spill] sm:$0xff] %v8705_v31  ;;  %1205 = vrot.lane.b32.xlu2 %v8702_v11, %s7121_s13 }
 0x199   :  { %1203 = vrot.lane.b32.xlu1 %v7562_v59, %s7121_s13 }
 0x19b   :  { %1207 = vrot.lane.b32.xlu0 %v8714_v4, %s7121_s13 }
 0x19c   :  { %v8716_v60 = vpop.permute.xlu2 %1076  ;;  %v8718_v21 = vpop.permute.xlu1 %1056 }
 0x19d   :  { %13806 = vst [vmem:[#allocation282_spill] sm:$0xff] %v8716_v60 }
 0x19e   :  { %13807 = vst [vmem:[#allocation283_spill] sm:$0xff] %v8718_v21 }
 0x19f   :  { %v8722_v19 = vpop.permute.xlu0 %1060 }
 0x1a0   :  { %13808 = vst [vmem:[#allocation284_spill] sm:$0xff] %v8722_v19  ;;  %1211 = vrot.lane.b32.xlu2 %v13674_v45, %s7121_s13 }
 0x1a1   :  { %1209 = vrot.lane.b32.xlu1 %v7611_v30, %s7121_s13 }
 0x1a3   :  { %1213 = vrot.lane.b32.xlu0 %v13686_v56, %s7121_s13 }
 0x1a4   :  { %v8728_v31 = vpop.permute.xlu2 %1145  ;;  %v8730_v23 = vpop.permute.xlu1 %1062 }
 0x1a5   :  { %13809 = vst [vmem:[#allocation285_spill] sm:$0xff] %v8728_v31 }
 0x1a6   :  { %13810 = vst [vmem:[#allocation286_spill] sm:$0xff] %v8730_v23 }
 0x1a7   :  { %v8734_v17 = vpop.permute.xlu0 %1066 }
 0x1a8   :  { %13811 = vst [vmem:[#allocation287_spill] sm:$0xff] %v8734_v17  ;;  %1217 = vrot.lane.b32.xlu2 %v13689_v39, %s7121_s13 }
 0x1a9   :  { %1215 = vrot.lane.b32.xlu1 %v13683_v22, %s7121_s13 }
 0x1ab   :  { %1219 = vrot.lane.b32.xlu0 %v13690_v8, %s7121_s13 }
 0x1ac   :  { %v8740_v7 = vpop.permute.xlu2 %1151  ;;  %v8742_v60 = vpop.permute.xlu1 %1068 }
 0x1ad   :  { %13812 = vst [vmem:[#allocation288_spill] sm:$0xff] %v8740_v7  ;;  %v13825_v7 = vld [vmem:[#allocation88_spill] sm:$0xff] }
 0x1ae   :  { %13813 = vst [vmem:[#allocation289_spill] sm:$0xff] %v8742_v60 }
 0x1af   :  { %v8746_v19 = vpop.permute.xlu0 %1072 }
 0x1b0   :  { %13814 = vst [vmem:[#allocation290_spill] sm:$0xff] %v8746_v19  ;;  %1223 = vrot.lane.b32.xlu2 %v13695_v25, %s7121_s13 }
 0x1b1   :  { %1221 = vrot.lane.b32.xlu1 %v13694_v9, %s7121_s13 }
 0x1b3   :  { %1225 = vrot.lane.b32.xlu0 %v13707_v32, %s7121_s13 }
 0x1b4   :  { %v8752_v17 = vpop.permute.xlu2 %1157  ;;  %v8754_v23 = vpop.permute.xlu1 %1074 }
 0x1b5   :  { %13815 = vst [vmem:[#allocation291_spill] sm:$0xff] %v8752_v17 }
 0x1b6   :  { %13816 = vst [vmem:[#allocation292_spill] sm:$0xff] %v8754_v23  ;;  %v13821_v23 = vld [vmem:[#allocation82_spill] sm:$0xff] }
 0x1b7   :  { %v8758_v21 = vpop.permute.xlu0 %1078 }
 0x1b8   :  { %13817 = vst [vmem:[#allocation293_spill] sm:$0xff] %v8758_v21  ;;  %1229 = vrot.lane.b32.xlu2 %v13710_v35, %s7121_s13  ;;  %v13822_v21 = vld [vmem:[#allocation85_spill] sm:$0xff] }
 0x1b9   :  { %1227 = vrot.lane.b32.xlu1 %v13704_v40, %s7121_s13 }
 0x1bb   :  { %1231 = vrot.lane.b32.xlu0 %v13711_v50, %s7121_s13 }
 0x1bc   :  { %v8764_v19 = vpop.permute.xlu2 %1163  ;;  %v8766_v60 = vpop.permute.xlu1 %1080 }
 0x1bd   :  { %13818 = vst [vmem:[#allocation294_spill] sm:$0xff] %v8764_v19 }
 0x1be   :  { %13819 = vst [vmem:[#allocation295_spill] sm:$0xff] %v8766_v60  ;;  %v13827_v60 = vld [vmem:[#allocation91_spill] sm:$0xff] }
 0x1bf   :  { %v8770_v30 = vpop.permute.xlu0 %1147 }
 0x1c0   :  { %13820 = vst [vmem:[#allocation296_spill] sm:$0xff] %v8770_v30  ;;  %1235 = vrot.lane.b32.xlu2 %v13821_v23, %s7121_s13  ;;  %v13828_v30 = vld [vmem:[#allocation87_spill] sm:$0xff] }
 0x1c1   :  { %1233 = vrot.lane.b32.xlu1 %v13822_v21, %s7121_s13  ;;  %v13831_v21 = vld [vmem:[#allocation94_spill] sm:$0xff] }
 0x1c3   :  { %1237 = vrot.lane.b32.xlu0 %v13825_v7, %s7121_s13 }
 0x1c4   :  { %v8776_v45 = vpop.permute.xlu2 %1169  ;;  %v8778_v17 = vpop.permute.xlu1 %1149 }
 0x1c5   :  { %13823 = vst [vmem:[#allocation297_spill] sm:$0xff] %v8776_v45 }
 0x1c6   :  { %13824 = vst [vmem:[#allocation298_spill] sm:$0xff] %v8778_v17  ;;  %v13833_v17 = vld [vmem:[#allocation101_spill] sm:$0xff] }
 0x1c7   :  { %v8782_v19 = vpop.permute.xlu0 %1153 }
 0x1c8   :  { %13826 = vst [vmem:[#allocation299_spill] sm:$0xff] %v8782_v19  ;;  %1241 = vrot.lane.b32.xlu2 %v13827_v60, %s7121_s13  ;;  %v13834_v19 = vld [vmem:[#allocation105_spill] sm:$0xff] }
 0x1c9   :  { %1239 = vrot.lane.b32.xlu1 %v13828_v30, %s7121_s13 }
 0x1cb   :  { %1243 = vrot.lane.b32.xlu0 %v13831_v21, %s7121_s13 }
 0x1cc   :  { %v8788_v31 = vpop.permute.xlu2 %1175  ;;  %v8790_v23 = vpop.permute.xlu1 %1155 }
 0x1cd   :  { %13829 = vst [vmem:[#allocation300_spill] sm:$0xff] %v8788_v31 }
 0x1ce   :  { %13830 = vst [vmem:[#allocation301_spill] sm:$0xff] %v8790_v23  ;;  %v13838_v23 = vld [vmem:[#allocation112_spill] sm:$0xff] }
 0x1cf   :  { %v8794_v45 = vpop.permute.xlu0 %1159 }
 0x1d0   :  { %13832 = vst [vmem:[#allocation302_spill] sm:$0xff] %v8794_v45  ;;  %1247 = vrot.lane.b32.xlu2 %v13833_v17, %s7121_s13  ;;  %v13839_v45 = vld [vmem:[#allocation107_spill] sm:$0xff] }
 0x1d1   :  { %1245 = vrot.lane.b32.xlu1 %v13834_v19, %s7121_s13  ;;  %v13842_v19 = vld [vmem:[#allocation115_spill] sm:$0xff] }
 0x1d3   :  { %1249 = vrot.lane.b32.xlu0 %v13749_v20, %s7121_s13 }
 0x1d4   :  { %v8800_v7 = vpop.permute.xlu2 %1181  ;;  %v8802_v60 = vpop.permute.xlu1 %1161 }
 0x1d5   :  { %13835 = vst [vmem:[#allocation303_spill] sm:$0xff] %v8800_v7 }
 0x1d6   :  { %13836 = vst [vmem:[#allocation304_spill] sm:$0xff] %v8802_v60 }
 0x1d7   :  { %v8806_v31 = vpop.permute.xlu0 %1165 }
 0x1d8   :  { %13837 = vst [vmem:[#allocation305_spill] sm:$0xff] %v8806_v31  ;;  %1253 = vrot.lane.b32.xlu2 %v13838_v23, %s7121_s13 }
 0x1d9   :  { %1251 = vrot.lane.b32.xlu1 %v13839_v45, %s7121_s13 }
 0x1db   :  { %1255 = vrot.lane.b32.xlu0 %v13842_v19, %s7121_s13  ;;  %v89_v19 = vld [vmem:[%s13099_s0 + $0x1f0] sm:$0xff] }
 0x1dc   :  { %v8812_v21 = vpop.permute.xlu2 %1187  ;;  %v8814_v17 = vpop.permute.xlu1 %1167 }
 0x1dd   :  { %13840 = vst [vmem:[#allocation306_spill] sm:$0xff] %v8812_v21 }
 0x1de   :  { %13841 = vst [vmem:[#allocation307_spill] sm:$0xff] %v8814_v17 }
 0x1df   :  { %v8818_v7 = vpop.permute.xlu0 %1171 }
 0x1e0   :  { %13843 = vst [vmem:[#allocation308_spill] sm:$0xff] %v8818_v7  ;;  %1259 = vrot.lane.b32.xlu2 %v13757_v36, %s7121_s13  ;;  %v8838_v36 = vld [vmem:[%s13099_s0 + $0x1f8] sm:$0xff]  ;;  %s7122_s0 = smov 16  }
 0x1e1   :  { %1257 = vrot.lane.b32.xlu1 %v7970_v41, %s7121_s13  ;;  %v249_v41 = vrot.slane %v89_v19, 7 }
 0x1e3   :  { %1261 = vrot.lane.b32.xlu0 %v7994_v52, %s7121_s13  ;;  %v13409_v52 = vrot.slane %v8838_v36, 7 }
 0x1e4   :  { %v8824_v31 = vpop.permute.xlu2 %1193  ;;  %v8826_v23 = vpop.permute.xlu1 %1173 }
 0x1e5   :  { %13844 = vst [vmem:[#allocation309_spill] sm:$0xff] %v8824_v31  ;;  %v8854_v7 = vsel %vm13459_vm0, %v249_v41, %v13409_v52  ;;  %v13868_v31 = vld [vmem:[#allocation18_spill] sm:$0xff] }
 0x1e6   :  { %13845 = vst [vmem:[#allocation310_spill] sm:$0xff] %v8826_v23 }
 0x1e7   :  { %v8830_v21 = vpop.permute.xlu0 %1177  ;;  %13849 = vst [vmem:[#allocation314_spill] sm:$0xff] %v8854_v7 }
 0x1e8   :  { %13846 = vst [vmem:[#allocation311_spill] sm:$0xff] %v8830_v21  ;;  %1265 = vrot.lane.b32.xlu2 %v8014_v15, %s7121_s13  ;;  %v8859_v15 = vsel %vm13459_vm0, 0.0, %v249_v41  ;;  %v13857_v41 = vld [vmem:[#allocation9_spill] sm:$0xff] }
 0x1e9   :  { %1263 = vrot.lane.b32.xlu1 %v7991_v12, %s7121_s13  ;;  %13851 = vst [vmem:[#allocation316_spill] sm:$0xff] %v8859_v15 }
 0x1eb   :  { %1267 = vrot.lane.b32.xlu0 %v8011_v49, %s7121_s13  ;;  %v13854_v49 = vld [vmem:[#allocation10_spill] sm:$0xff] }
 0x1ec   :  { %v8845_v23 = vpop.permute.xlu2 %1199  ;;  %v8847_v21 = vpop.permute.xlu1 %1179 }
 0x1ed   :  { %13847 = vst [vmem:[#allocation312_spill] sm:$0xff] %v8845_v23  ;;  %v13862_v23 = vld [vmem:[#allocation13_spill] sm:$0xff] }
 0x1ee   :  { %13848 = vst [vmem:[#allocation313_spill] sm:$0xff] %v8847_v21 }
 0x1ef   :  { %v8856_v17 = vpop.permute.xlu0 %1183 }
 0x1f0   :  { %13850 = vst [vmem:[#allocation315_spill] sm:$0xff] %v8856_v17  ;;  %1271 = vrot.lane.b32.xlu2 %v8854_v7, %s7121_s13  ;;  %v13856_v17 = vld [vmem:[#allocation12_spill] sm:$0xff] }
 0x1f1   :  { %1269 = vrot.lane.b32.xlu1 %v8859_v15, %s7121_s13 }
 0x1f3   :  { %1349 = vrot.lane.b32.xlu0 %v13854_v49, %s7122_s0  ;;  %v13863_v49 = vld [vmem:[#allocation11_spill] sm:$0xff] }
 0x1f4   :  { %v8865_v19 = vpop.permute.xlu2 %1205  ;;  %v8867_v12 = vpop.permute.xlu1 %1185 }
 0x1f5   :  { %13852 = vst [vmem:[#allocation317_spill] sm:$0xff] %v8865_v19  ;;  %v13860_v19 = vld [vmem:[#allocation8_spill] sm:$0xff] }
 0x1f6   :  { %13853 = vst [vmem:[#allocation318_spill] sm:$0xff] %v8867_v12 }
 0x1f7   :  { %v8871_v52 = vpop.permute.xlu0 %1189 }
 0x1f8   :  { %13855 = vst [vmem:[#allocation10_spill] sm:$0xff] %v8871_v52  ;;  %1353 = vrot.lane.b32.xlu2 %v13856_v17, %s7122_s0 }
 0x1f9   :  { %1351 = vrot.lane.b32.xlu1 %v13857_v41, %s7122_s0  ;;  %v13866_v41 = vld [vmem:[#allocation15_spill] sm:$0xff] }
 0x1fb   :  { %1355 = vrot.lane.b32.xlu0 %v13860_v19, %s7122_s0 }
 0x1fc   :  { %v8877_v21 = vpop.permute.xlu2 %1211  ;;  %v8879_v45 = vpop.permute.xlu1 %1191 }
 0x1fd   :  { %13858 = vst [vmem:[#allocation12_spill] sm:$0xff] %v8877_v21 }
 0x1fe   :  { %13859 = vst [vmem:[#allocation9_spill] sm:$0xff] %v8879_v45 }
 0x1ff   :  { %v8883_v12 = vpop.permute.xlu0 %1195 }
 0x200   :  { %13861 = vst [vmem:[#allocation319_spill] sm:$0xff] %v8883_v12  ;;  %1359 = vrot.lane.b32.xlu2 %v13862_v23, %s7122_s0  ;;  %v13869_v12 = vld [vmem:[#allocation14_spill] sm:$0xff]  ;;  %v13872_v23 = vld [vmem:[#allocation20_spill] sm:$0xff] }
 0x201   :  { %1357 = vrot.lane.b32.xlu1 %v13863_v49, %s7122_s0 }
 0x203   :  { %1361 = vrot.lane.b32.xlu0 %v13866_v41, %s7122_s0 }
 0x204   :  { %v8889_v52 = vpop.permute.xlu2 %1217  ;;  %v8891_v60 = vpop.permute.xlu1 %1197 }
 0x205   :  { %13864 = vst [vmem:[#allocation320_spill] sm:$0xff] %v8889_v52 }
 0x206   :  { %13865 = vst [vmem:[#allocation321_spill] sm:$0xff] %v8891_v60  ;;  %v13874_v60 = vld [vmem:[#allocation23_spill] sm:$0xff] }
 0x207   :  { %v8895_v21 = vpop.permute.xlu0 %1201 }
 0x208   :  { %13867 = vst [vmem:[#allocation322_spill] sm:$0xff] %v8895_v21  ;;  %1365 = vrot.lane.b32.xlu2 %v13868_v31, %s7122_s0  ;;  %v13875_v21 = vld [vmem:[#allocation19_spill] sm:$0xff] }
 0x209   :  { %1363 = vrot.lane.b32.xlu1 %v13869_v12, %s7122_s0  ;;  %v13878_v12 = vld [vmem:[#allocation28_spill] sm:$0xff] }
 0x20b   :  { %1367 = vrot.lane.b32.xlu0 %v13872_v23, %s7122_s0 }
 0x20c   :  { %v8901_v45 = vpop.permute.xlu2 %1223  ;;  %v8903_v20 = vpop.permute.xlu1 %1203 }
 0x20d   :  { %13870 = vst [vmem:[#allocation323_spill] sm:$0xff] %v8901_v45 }
 0x20e   :  { %13871 = vst [vmem:[#allocation324_spill] sm:$0xff] %v8903_v20  ;;  %v13880_v20 = vld [vmem:[#allocation30_spill] sm:$0xff] }
 0x20f   :  { %v8907_v52 = vpop.permute.xlu0 %1207 }
 0x210   :  { %13873 = vst [vmem:[#allocation325_spill] sm:$0xff] %v8907_v52  ;;  %1371 = vrot.lane.b32.xlu2 %v13874_v60, %s7122_s0  ;;  %v13881_v52 = vld [vmem:[#allocation26_spill] sm:$0xff] }
 0x211   :  { %1369 = vrot.lane.b32.xlu1 %v13875_v21, %s7122_s0  ;;  %v13884_v21 = vld [vmem:[#allocation33_spill] sm:$0xff] }
 0x213   :  { %1373 = vrot.lane.b32.xlu0 %v13878_v12, %s7122_s0 }
 0x214   :  { %v8913_v41 = vpop.permute.xlu2 %1229  ;;  %v8915_v31 = vpop.permute.xlu1 %1209 }
 0x215   :  { %13876 = vst [vmem:[#allocation326_spill] sm:$0xff] %v8913_v41 }
 0x216   :  { %13877 = vst [vmem:[#allocation327_spill] sm:$0xff] %v8915_v31  ;;  %v13886_v31 = vld [vmem:[#allocation35_spill] sm:$0xff] }
 0x217   :  { %v8919_v45 = vpop.permute.xlu0 %1213 }
 0x218   :  { %13879 = vst [vmem:[#allocation328_spill] sm:$0xff] %v8919_v45  ;;  %1377 = vrot.lane.b32.xlu2 %v13880_v20, %s7122_s0  ;;  %v13887_v45 = vld [vmem:[#allocation31_spill] sm:$0xff] }
 0x219   :  { %1375 = vrot.lane.b32.xlu1 %v13881_v52, %s7122_s0  ;;  %v13890_v52 = vld [vmem:[#allocation38_spill] sm:$0xff] }
 0x21b   :  { %1379 = vrot.lane.b32.xlu0 %v13884_v21, %s7122_s0 }
 0x21c   :  { %v8925_v23 = vpop.permute.xlu2 %1235  ;;  %v8927_v60 = vpop.permute.xlu1 %1215 }
 0x21d   :  { %13882 = vst [vmem:[#allocation329_spill] sm:$0xff] %v8925_v23 }
 0x21e   :  { %13883 = vst [vmem:[#allocation330_spill] sm:$0xff] %v8927_v60  ;;  %v13892_v60 = vld [vmem:[#allocation39_spill] sm:$0xff] }
 0x21f   :  { %v8931_v41 = vpop.permute.xlu0 %1219 }
 0x220   :  { %13885 = vst [vmem:[#allocation331_spill] sm:$0xff] %v8931_v41  ;;  %1383 = vrot.lane.b32.xlu2 %v13886_v31, %s7122_s0  ;;  %v13893_v41 = vld [vmem:[#allocation37_spill] sm:$0xff] }
 0x221   :  { %1381 = vrot.lane.b32.xlu1 %v13887_v45, %s7122_s0  ;;  %v13896_v45 = vld [vmem:[#allocation41_spill] sm:$0xff] }
 0x223   :  { %1385 = vrot.lane.b32.xlu0 %v13890_v52, %s7122_s0 }
 0x224   :  { %v8937_v12 = vpop.permute.xlu2 %1241  ;;  %v8939_v20 = vpop.permute.xlu1 %1221 }
 0x225   :  { %13888 = vst [vmem:[#allocation332_spill] sm:$0xff] %v8937_v12 }
 0x226   :  { %13889 = vst [vmem:[#allocation333_spill] sm:$0xff] %v8939_v20  ;;  %v13898_v20 = vld [vmem:[#allocation42_spill] sm:$0xff] }
 0x227   :  { %v8943_v23 = vpop.permute.xlu0 %1225 }
 0x228   :  { %13891 = vst [vmem:[#allocation334_spill] sm:$0xff] %v8943_v23  ;;  %1389 = vrot.lane.b32.xlu2 %v13892_v60, %s7122_s0  ;;  %v13899_v23 = vld [vmem:[#allocation40_spill] sm:$0xff] }
 0x229   :  { %1387 = vrot.lane.b32.xlu1 %v13893_v41, %s7122_s0  ;;  %v13902_v41 = vld [vmem:[#allocation45_spill] sm:$0xff] }
 0x22b   :  { %1391 = vrot.lane.b32.xlu0 %v13896_v45, %s7122_s0  ;;  %v13905_v45 = vld [vmem:[#allocation43_spill] sm:$0xff] }
 0x22c   :  { %v8949_v21 = vpop.permute.xlu2 %1247  ;;  %v8951_v31 = vpop.permute.xlu1 %1227 }
 0x22d   :  { %13894 = vst [vmem:[#allocation335_spill] sm:$0xff] %v8949_v21 }
 0x22e   :  { %13895 = vst [vmem:[#allocation336_spill] sm:$0xff] %v8951_v31  ;;  %v13904_v31 = vld [vmem:[#allocation47_spill] sm:$0xff] }
 0x22f   :  { %v8955_v12 = vpop.permute.xlu0 %1231 }
 0x230   :  { %13897 = vst [vmem:[#allocation337_spill] sm:$0xff] %v8955_v12  ;;  %1395 = vrot.lane.b32.xlu2 %v13898_v20, %s7122_s0 }
 0x231   :  { %1393 = vrot.lane.b32.xlu1 %v13899_v23, %s7122_s0  ;;  %v13908_v23 = vld [vmem:[#allocation51_spill] sm:$0xff] }
 0x233   :  { %1397 = vrot.lane.b32.xlu0 %v13902_v41, %s7122_s0 }
 0x234   :  { %v8961_v52 = vpop.permute.xlu2 %1253  ;;  %v8963_v60 = vpop.permute.xlu1 %1233 }
 0x235   :  { %13900 = vst [vmem:[#allocation338_spill] sm:$0xff] %v8961_v52  ;;  %v1339_v52 = vrot.slane %v8702_v11, 1 }
 0x236   :  { %13901 = vst [vmem:[#allocation339_spill] sm:$0xff] %v8963_v60  ;;  %v1340_v60 = vrot.slane %v8714_v4, 1 }
 0x237   :  { %v8967_v21 = vpop.permute.xlu0 %1237 }
 0x238   :  { %13903 = vst [vmem:[#allocation340_spill] sm:$0xff] %v8967_v21  ;;  %1401 = vrot.lane.b32.xlu2 %v13904_v31, %s7122_s0  ;;  %v13910_v21 = vrot.slane %v8695_v5, 7 }
 0x239   :  { %1399 = vrot.lane.b32.xlu1 %v13905_v45, %s7122_s0  ;;  %v13911_v45 = vld [vmem:[#allocation54_spill] sm:$0xff] }
 0x23a   :  { %v8986_v31 = vsel %vm13459_vm0, %v13910_v21, 0.0 }
 0x23b   :  { %1403 = vrot.lane.b32.xlu0 %v13908_v23, %s7122_s0  ;;  %v1342_v49 = vrot.slane %v8986_v31, 1 }
 0x23c   :  { %v8973_v12 = vpop.permute.xlu2 %1259  ;;  %v8975_v20 = vpop.permute.xlu1 %1239 }
 0x23d   :  { %13906 = vst [vmem:[#allocation341_spill] sm:$0xff] %v8973_v12  ;;  %v13912_v12 = vld [vmem:[#allocation49_spill] sm:$0xff]  ;;  %v9005_v21 = vsel %vm13458_vm1, %v1340_v60, %v1342_v49 }
 0x23e   :  { %13907 = vst [vmem:[#allocation342_spill] sm:$0xff] %v8975_v20  ;;  %v8993_v20 = vsel %vm13458_vm1, %v1339_v52, %v1340_v60  ;;  %v13924_v60 = vld [vmem:[#allocation62_spill] sm:$0xff] }
 0x23f   :  { %v8981_v41 = vpop.permute.xlu0 %1243  ;;  %13913 = vst [vmem:[#allocation344_spill] sm:$0xff] %v8993_v20 }
 0x240   :  { %13909 = vst [vmem:[#allocation343_spill] sm:$0xff] %v8981_v41  ;;  %1407 = vrot.lane.b32.xlu2 %v13911_v45, %s7122_s0  ;;  %v13918_v41 = vld [vmem:[#allocation59_spill] sm:$0xff] }
 0x241   :  { %1405 = vrot.lane.b32.xlu1 %v13912_v12, %s7122_s0  ;;  %13917 = vst [vmem:[#allocation348_spill] sm:$0xff] %v9005_v21 }
 0x243   :  { %1409 = vrot.lane.b32.xlu0 %v8993_v20, %s7122_s0 }
 0x244   :  { %v8995_v23 = vpop.permute.xlu2 %1265  ;;  %v8998_v19 = vpop.permute.xlu1 %1245 }
 0x245   :  { %13914 = vst [vmem:[#allocation345_spill] sm:$0xff] %v8995_v23 }
 0x246   :  { %13915 = vst [vmem:[#allocation346_spill] sm:$0xff] %v8998_v19  ;;  %v13921_v19 = vld [vmem:[#allocation57_spill] sm:$0xff] }
 0x247   :  { %v9002_v5 = vpop.permute.xlu0 %1249 }
 0x248   :  { %13916 = vst [vmem:[#allocation347_spill] sm:$0xff] %v9002_v5  ;;  %1413 = vrot.lane.b32.xlu2 %v13918_v41, %s7122_s0  ;;  %v13923_v5 = vld [vmem:[#allocation66_spill] sm:$0xff] }
 0x249   :  { %1411 = vrot.lane.b32.xlu1 %v9005_v21, %s7122_s0  ;;  %v13927_v21 = vld [vmem:[#allocation64_spill] sm:$0xff] }
 0x24b   :  { %1415 = vrot.lane.b32.xlu0 %v13921_v19, %s7122_s0  ;;  %v13930_v19 = vld [vmem:[#allocation69_spill] sm:$0xff] }
 0x24c   :  { %v9011_v52 = vpop.permute.xlu2 %1271  ;;  %v9013_v23 = vpop.permute.xlu1 %1251 }
 0x24d   :  { %13919 = vst [vmem:[#allocation59_spill] sm:$0xff] %v9011_v52 }
 0x24e   :  { %13920 = vst [vmem:[#allocation349_spill] sm:$0xff] %v9013_v23  ;;  %v13929_v23 = vld [vmem:[#allocation75_spill] sm:$0xff] }
 0x24f   :  { %v9017_v45 = vpop.permute.xlu0 %1255 }
 0x250   :  { %13922 = vst [vmem:[#allocation57_spill] sm:$0xff] %v9017_v45  ;;  %1419 = vrot.lane.b32.xlu2 %v13923_v5, %s7122_s0 }
 0x251   :  { %1417 = vrot.lane.b32.xlu1 %v13924_v60, %s7122_s0  ;;  %v13933_v60 = vld [vmem:[#allocation73_spill] sm:$0xff] }
 0x253   :  { %1421 = vrot.lane.b32.xlu0 %v13927_v21, %s7122_s0 }
 0x254   :  { %v9023_v49 = vpop.permute.xlu2 %1353  ;;  %v9025_v41 = vpop.permute.xlu1 %1257 }
 0x255   :  { %13925 = vst [vmem:[#allocation350_spill] sm:$0xff] %v9023_v49 }
 0x256   :  { %13926 = vst [vmem:[#allocation351_spill] sm:$0xff] %v9025_v41  ;;  %v13935_v41 = vld [vmem:[#allocation83_spill] sm:$0xff] }
 0x257   :  { %v9029_v52 = vpop.permute.xlu0 %1261 }
 0x258   :  { %13928 = vst [vmem:[#allocation352_spill] sm:$0xff] %v9029_v52  ;;  %1425 = vrot.lane.b32.xlu2 %v13929_v23, %s7122_s0  ;;  %v13936_v52 = vld [vmem:[#allocation78_spill] sm:$0xff] }
 0x259   :  { %1423 = vrot.lane.b32.xlu1 %v13930_v19, %s7122_s0  ;;  %v13939_v19 = vld [vmem:[#allocation81_spill] sm:$0xff] }
 0x25b   :  { %1427 = vrot.lane.b32.xlu0 %v13933_v60, %s7122_s0 }
 0x25c   :  { %v9035_v45 = vpop.permute.xlu2 %1359  ;;  %v9037_v5 = vpop.permute.xlu1 %1263 }
 0x25d   :  { %13931 = vst [vmem:[#allocation353_spill] sm:$0xff] %v9035_v45 }
 0x25e   :  { %13932 = vst [vmem:[#allocation354_spill] sm:$0xff] %v9037_v5  ;;  %v13941_v5 = vld [vmem:[#allocation93_spill] sm:$0xff] }
 0x25f   :  { %v9041_v49 = vpop.permute.xlu0 %1267 }
 0x260   :  { %13934 = vst [vmem:[#allocation355_spill] sm:$0xff] %v9041_v49  ;;  %1431 = vrot.lane.b32.xlu2 %v13935_v41, %s7122_s0  ;;  %v13942_v49 = vld [vmem:[#allocation86_spill] sm:$0xff] }
 0x261   :  { %1429 = vrot.lane.b32.xlu1 %v13936_v52, %s7122_s0  ;;  %v13945_v52 = vld [vmem:[#allocation90_spill] sm:$0xff] }
 0x263   :  { %1433 = vrot.lane.b32.xlu0 %v13939_v19, %s7122_s0  ;;  %v13948_v19 = vld [vmem:[#allocation96_spill] sm:$0xff] }
 0x264   :  { %v9047_v21 = vpop.permute.xlu2 %1365  ;;  %v9049_v23 = vpop.permute.xlu1 %1269 }
 0x265   :  { %13937 = vst [vmem:[#allocation356_spill] sm:$0xff] %v9047_v21 }
 0x266   :  { %13938 = vst [vmem:[#allocation357_spill] sm:$0xff] %v9049_v23  ;;  %v13947_v23 = vld [vmem:[#allocation103_spill] sm:$0xff] }
 0x267   :  { %v9053_v45 = vpop.permute.xlu0 %1349 }
 0x268   :  { %13940 = vst [vmem:[#allocation358_spill] sm:$0xff] %v9053_v45  ;;  %1437 = vrot.lane.b32.xlu2 %v13941_v5, %s7122_s0 }
 0x269   :  { %1435 = vrot.lane.b32.xlu1 %v13942_v49, %s7122_s0  ;;  %v13951_v49 = vld [vmem:[#allocation100_spill] sm:$0xff] }
 0x26b   :  { %1439 = vrot.lane.b32.xlu0 %v13945_v52, %s7122_s0 }
 0x26c   :  { %v9059_v60 = vpop.permute.xlu2 %1371  ;;  %v9061_v41 = vpop.permute.xlu1 %1351 }
 0x26d   :  { %13943 = vst [vmem:[#allocation359_spill] sm:$0xff] %v9059_v60 }
 0x26e   :  { %13944 = vst [vmem:[#allocation360_spill] sm:$0xff] %v9061_v41  ;;  %v13953_v41 = vld [vmem:[#allocation114_spill] sm:$0xff] }
 0x26f   :  { %v9065_v21 = vpop.permute.xlu0 %1355 }
 0x270   :  { %13946 = vst [vmem:[#allocation361_spill] sm:$0xff] %v9065_v21  ;;  %1443 = vrot.lane.b32.xlu2 %v13947_v23, %s7122_s0  ;;  %v13954_v21 = vld [vmem:[#allocation106_spill] sm:$0xff] }
 0x271   :  { %1441 = vrot.lane.b32.xlu1 %v13948_v19, %s7122_s0  ;;  %v13957_v19 = vld [vmem:[#allocation111_spill] sm:$0xff] }
 0x273   :  { %1445 = vrot.lane.b32.xlu0 %v13951_v49, %s7122_s0 }
 0x274   :  { %v9071_v45 = vpop.permute.xlu2 %1377  ;;  %v9073_v5 = vpop.permute.xlu1 %1357 }
 0x275   :  { %13949 = vst [vmem:[#allocation362_spill] sm:$0xff] %v9071_v45 }
 0x276   :  { %13950 = vst [vmem:[#allocation363_spill] sm:$0xff] %v9073_v5  ;;  %v13959_v5 = vld [vmem:[#allocation122_spill] sm:$0xff] }
 0x277   :  { %v9077_v60 = vpop.permute.xlu0 %1361 }
 0x278   :  { %13952 = vst [vmem:[#allocation364_spill] sm:$0xff] %v9077_v60  ;;  %1449 = vrot.lane.b32.xlu2 %v13953_v41, %s7122_s0  ;;  %v13960_v60 = vld [vmem:[#allocation117_spill] sm:$0xff] }
 0x279   :  { %1447 = vrot.lane.b32.xlu1 %v13954_v21, %s7122_s0  ;;  %v13963_v21 = vld [vmem:[#allocation121_spill] sm:$0xff] }
 0x27b   :  { %1451 = vrot.lane.b32.xlu0 %v13957_v19, %s7122_s0 }
 0x27c   :  { %v9083_v20 = vpop.permute.xlu2 %1383  ;;  %v9085_v23 = vpop.permute.xlu1 %1363 }
 0x27d   :  { %13955 = vst [vmem:[#allocation365_spill] sm:$0xff] %v9083_v20 }
 0x27e   :  { %13956 = vst [vmem:[#allocation366_spill] sm:$0xff] %v9085_v23  ;;  %v13965_v23 = vld [vmem:[#allocation134_spill] sm:$0xff] }
 0x27f   :  { %v9089_v45 = vpop.permute.xlu0 %1367 }
 0x280   :  { %13958 = vst [vmem:[#allocation367_spill] sm:$0xff] %v9089_v45  ;;  %1455 = vrot.lane.b32.xlu2 %v13959_v5, %s7122_s0  ;;  %v13966_v45 = vld [vmem:[#allocation127_spill] sm:$0xff] }
 0x281   :  { %1453 = vrot.lane.b32.xlu1 %v13960_v60, %s7122_s0  ;;  %v13969_v60 = vld [vmem:[#allocation132_spill] sm:$0xff] }
 0x283   :  { %1457 = vrot.lane.b32.xlu0 %v13963_v21, %s7122_s0  ;;  %v1344_v21 = vrot.slane %v8859_v15, 1 }
 0x284   :  { %v9095_v49 = vpop.permute.xlu2 %1389  ;;  %v9097_v41 = vpop.permute.xlu1 %1369 }
 0x285   :  { %13961 = vst [vmem:[#allocation368_spill] sm:$0xff] %v9095_v49 }
 0x286   :  { %13962 = vst [vmem:[#allocation369_spill] sm:$0xff] %v9097_v41  ;;  %v13971_v41 = vld [vmem:[#allocation142_spill] sm:$0xff] }
 0x287   :  { %v9101_v20 = vpop.permute.xlu0 %1373 }
 0x288   :  { %13964 = vst [vmem:[#allocation370_spill] sm:$0xff] %v9101_v20  ;;  %1461 = vrot.lane.b32.xlu2 %v13965_v23, %s7122_s0  ;;  %v1345_v20 = vrot.slane %v8854_v7, 1  ;;  %v13972_v23 = vld [vmem:[#allocation137_spill] sm:$0xff] }
 0x289   :  { %1459 = vrot.lane.b32.xlu1 %v13966_v45, %s7122_s0 }
 0x28b   :  { %1463 = vrot.lane.b32.xlu0 %v13969_v60, %s7122_s0 }
 0x28c   :  { %v9107_v19 = vpop.permute.xlu2 %1395  ;;  %v9109_v5 = vpop.permute.xlu1 %1375 }
 0x28d   :  { %13967 = vst [vmem:[#allocation371_spill] sm:$0xff] %v9107_v19  ;;  %v13974_v19 = vrot.slane %v8838_v36, 7  ;;  %v13979_v36 = vld [vmem:[#allocation143_spill] sm:$0xff] }
 0x28e   :  { %13968 = vst [vmem:[#allocation372_spill] sm:$0xff] %v9109_v5 }
 0x28f   :  { %v9113_v49 = vpop.permute.xlu0 %1379  ;;  %v9126_v5 = vsel %vm13459_vm0, %v13974_v19, 0.0 }
 0x290   :  { %13970 = vst [vmem:[#allocation373_spill] sm:$0xff] %v9113_v49  ;;  %1467 = vrot.lane.b32.xlu2 %v13971_v41, %s7122_s0  ;;  %v13976_v49 = vld [vmem:[#allocation140_spill] sm:$0xff]  ;;  %v9133_v41 = vsel %vm13458_vm1, %v1344_v21, %v1345_v20  ;;  %v1347_v52 = vrot.slane %v9126_v5, 1 }
 0x291   :  { %1465 = vrot.lane.b32.xlu1 %v13972_v23, %s7122_s0  ;;  %13977 = vst [vmem:[#allocation376_spill] sm:$0xff] %v9133_v41 }
 0x292   :  { %v9143_v19 = vsel %vm13458_vm1, %v1345_v20, %v1347_v52  ;;  %v13988_v52 = vld [vmem:[#allocation154_spill] sm:$0xff] }
 0x293   :  { %1469 = vrot.lane.b32.xlu0 %v13976_v49, %s7122_s0  ;;  %13980 = vst [vmem:[#allocation378_spill] sm:$0xff] %v9143_v19  ;;  %v13984_v49 = vld [vmem:[#allocation149_spill] sm:$0xff] }
 0x294   :  { %v9121_v45 = vpop.permute.xlu2 %1401  ;;  %v9128_v60 = vpop.permute.xlu1 %1381 }
 0x295   :  { %13973 = vst [vmem:[#allocation374_spill] sm:$0xff] %v9121_v45 }
 0x296   :  { %13975 = vst [vmem:[#allocation375_spill] sm:$0xff] %v9128_v60 }
 0x297   :  { %v9136_v12 = vpop.permute.xlu0 %1385 }
 0x298   :  { %13978 = vst [vmem:[#allocation377_spill] sm:$0xff] %v9136_v12  ;;  %1473 = vrot.lane.b32.xlu2 %v9133_v41, %s7122_s0  ;;  %v13985_v41 = vld [vmem:[#allocation146_spill] sm:$0xff] }
 0x299   :  { %1471 = vrot.lane.b32.xlu1 %v13979_v36, %s7122_s0 }
 0x29b   :  { %1475 = vrot.lane.b32.xlu0 %v9143_v19, %s7122_s0  ;;  %v13990_v19 = vld [vmem:[#allocation155_spill] sm:$0xff] }
 0x29c   :  { %v9145_v23 = vpop.permute.xlu2 %1407  ;;  %v9147_v60 = vpop.permute.xlu1 %1387 }
 0x29d   :  { %13981 = vst [vmem:[#allocation379_spill] sm:$0xff] %v9145_v23  ;;  %v13997_v23 = vld [vmem:[#allocation158_spill] sm:$0xff] }
 0x29e   :  { %13982 = vst [vmem:[#allocation380_spill] sm:$0xff] %v9147_v60 }
 0x29f   :  { %v9151_v21 = vpop.permute.xlu0 %1391 }
 0x2a0   :  { %13983 = vst [vmem:[#allocation381_spill] sm:$0xff] %v9151_v21  ;;  %1553 = vrot.lane.b32.xlu2 %v13984_v49, %s7123_s21  ;;  %v13991_v21 = vld [vmem:[#allocation152_spill] sm:$0xff] }
 0x2a1   :  { %1551 = vrot.lane.b32.xlu1 %v13985_v41, %s7123_s21  ;;  %v13994_v41 = vld [vmem:[#allocation160_spill] sm:$0xff] }
 0x2a3   :  { %1555 = vrot.lane.b32.xlu0 %v13988_v52, %s7123_s21 }
 0x2a4   :  { %v9157_v36 = vpop.permute.xlu2 %1413  ;;  %v9159_v20 = vpop.permute.xlu1 %1393 }
 0x2a5   :  { %13986 = vst [vmem:[#allocation149_spill] sm:$0xff] %v9157_v36 }
 0x2a6   :  { %13987 = vst [vmem:[#allocation146_spill] sm:$0xff] %v9159_v20  ;;  %v13996_v20 = vld [vmem:[#allocation161_spill] sm:$0xff] }
 0x2a7   :  { %v9163_v60 = vpop.permute.xlu0 %1397 }
 0x2a8   :  { %13989 = vst [vmem:[#allocation154_spill] sm:$0xff] %v9163_v60  ;;  %1559 = vrot.lane.b32.xlu2 %v13990_v19, %s7123_s21  ;;  %v14000_v19 = vld [vmem:[#allocation166_spill] sm:$0xff] }
 0x2a9   :  { %1557 = vrot.lane.b32.xlu1 %v13991_v21, %s7123_s21 }
 0x2ab   :  { %1561 = vrot.lane.b32.xlu0 %v13994_v41, %s7123_s21 }
 0x2ac   :  { %v9169_v12 = vpop.permute.xlu2 %1419  ;;  %v9171_v49 = vpop.permute.xlu1 %1399 }
 0x2ad   :  { %13992 = vst [vmem:[#allocation382_spill] sm:$0xff] %v9169_v12 }
 0x2ae   :  { %13993 = vst [vmem:[#allocation383_spill] sm:$0xff] %v9171_v49  ;;  %v14002_v49 = vld [vmem:[#allocation167_spill] sm:$0xff] }
 0x2af   :  { %v9175_v36 = vpop.permute.xlu0 %1403 }
 0x2b0   :  { %13995 = vst [vmem:[#allocation384_spill] sm:$0xff] %v9175_v36  ;;  %1565 = vrot.lane.b32.xlu2 %v13996_v20, %s7123_s21  ;;  %v14003_v36 = vld [vmem:[#allocation164_spill] sm:$0xff] }
 0x2b1   :  { %1563 = vrot.lane.b32.xlu1 %v13997_v23, %s7123_s21  ;;  %v14006_v23 = vld [vmem:[#allocation172_spill] sm:$0xff] }
 0x2b3   :  { %1567 = vrot.lane.b32.xlu0 %v14000_v19, %s7123_s21 }
 0x2b4   :  { %v9181_v45 = vpop.permute.xlu2 %1425  ;;  %v9183_v60 = vpop.permute.xlu1 %1405 }
 0x2b5   :  { %13998 = vst [vmem:[#allocation385_spill] sm:$0xff] %v9181_v45 }
 0x2b6   :  { %13999 = vst [vmem:[#allocation386_spill] sm:$0xff] %v9183_v60  ;;  %v14008_v60 = vld [vmem:[#allocation173_spill] sm:$0xff] }
 0x2b7   :  { %v9187_v12 = vpop.permute.xlu0 %1409 }
 0x2b8   :  { %14001 = vst [vmem:[#allocation387_spill] sm:$0xff] %v9187_v12  ;;  %1571 = vrot.lane.b32.xlu2 %v14002_v49, %s7123_s21  ;;  %v14009_v12 = vld [vmem:[#allocation170_spill] sm:$0xff] }
 0x2b9   :  { %1569 = vrot.lane.b32.xlu1 %v14003_v36, %s7123_s21  ;;  %v14012_v36 = vld [vmem:[#allocation178_spill] sm:$0xff] }
 0x2bb   :  { %1573 = vrot.lane.b32.xlu0 %v14006_v23, %s7123_s21 }
 0x2bc   :  { %v9193_v41 = vpop.permute.xlu2 %1431  ;;  %v9195_v20 = vpop.permute.xlu1 %1411 }
 0x2bd   :  { %14004 = vst [vmem:[#allocation388_spill] sm:$0xff] %v9193_v41 }
 0x2be   :  { %14005 = vst [vmem:[#allocation389_spill] sm:$0xff] %v9195_v20  ;;  %v14014_v20 = vld [vmem:[#allocation179_spill] sm:$0xff] }
 0x2bf   :  { %v9199_v45 = vpop.permute.xlu0 %1415 }
 0x2c0   :  { %14007 = vst [vmem:[#allocation390_spill] sm:$0xff] %v9199_v45  ;;  %1577 = vrot.lane.b32.xlu2 %v14008_v60, %s7123_s21  ;;  %v14015_v45 = vld [vmem:[#allocation176_spill] sm:$0xff] }
 0x2c1   :  { %1575 = vrot.lane.b32.xlu1 %v14009_v12, %s7123_s21  ;;  %v14018_v12 = vld [vmem:[#allocation184_spill] sm:$0xff] }
 0x2c3   :  { %1579 = vrot.lane.b32.xlu0 %v14012_v36, %s7123_s21 }
 0x2c4   :  { %v9205_v19 = vpop.permute.xlu2 %1437  ;;  %v9207_v49 = vpop.permute.xlu1 %1417 }
 0x2c5   :  { %14010 = vst [vmem:[#allocation391_spill] sm:$0xff] %v9205_v19 }
 0x2c6   :  { %14011 = vst [vmem:[#allocation392_spill] sm:$0xff] %v9207_v49  ;;  %v14020_v49 = vld [vmem:[#allocation185_spill] sm:$0xff] }
 0x2c7   :  { %v9211_v41 = vpop.permute.xlu0 %1421 }
 0x2c8   :  { %14013 = vst [vmem:[#allocation393_spill] sm:$0xff] %v9211_v41  ;;  %1583 = vrot.lane.b32.xlu2 %v14014_v20, %s7123_s21  ;;  %v14021_v41 = vld [vmem:[#allocation182_spill] sm:$0xff] }
 0x2c9   :  { %1581 = vrot.lane.b32.xlu1 %v14015_v45, %s7123_s21  ;;  %v14024_v45 = vld [vmem:[#allocation190_spill] sm:$0xff] }
 0x2cb   :  { %1585 = vrot.lane.b32.xlu0 %v14018_v12, %s7123_s21 }
 0x2cc   :  { %v9217_v23 = vpop.permute.xlu2 %1443  ;;  %v9219_v60 = vpop.permute.xlu1 %1423 }
 0x2cd   :  { %14016 = vst [vmem:[#allocation394_spill] sm:$0xff] %v9217_v23 }
 0x2ce   :  { %14017 = vst [vmem:[#allocation395_spill] sm:$0xff] %v9219_v60  ;;  %v14026_v60 = vld [vmem:[#allocation191_spill] sm:$0xff] }
 0x2cf   :  { %v9223_v19 = vpop.permute.xlu0 %1427 }
 0x2d0   :  { %14019 = vst [vmem:[#allocation396_spill] sm:$0xff] %v9223_v19  ;;  %1589 = vrot.lane.b32.xlu2 %v14020_v49, %s7123_s21  ;;  %v14027_v19 = vld [vmem:[#allocation188_spill] sm:$0xff] }
 0x2d1   :  { %1587 = vrot.lane.b32.xlu1 %v14021_v41, %s7123_s21  ;;  %v14030_v41 = vld [vmem:[#allocation196_spill] sm:$0xff] }
 0x2d3   :  { %1591 = vrot.lane.b32.xlu0 %v14024_v45, %s7123_s21 }
 0x2d4   :  { %v9229_v36 = vpop.permute.xlu2 %1449  ;;  %v9231_v20 = vpop.permute.xlu1 %1429 }
 0x2d5   :  { %14022 = vst [vmem:[#allocation397_spill] sm:$0xff] %v9229_v36 }
 0x2d6   :  { %14023 = vst [vmem:[#allocation398_spill] sm:$0xff] %v9231_v20  ;;  %v14032_v20 = vld [vmem:[#allocation197_spill] sm:$0xff] }
 0x2d7   :  { %v9235_v23 = vpop.permute.xlu0 %1433 }
 0x2d8   :  { %14025 = vst [vmem:[#allocation399_spill] sm:$0xff] %v9235_v23  ;;  %1595 = vrot.lane.b32.xlu2 %v14026_v60, %s7123_s21  ;;  %v14033_v23 = vld [vmem:[#allocation194_spill] sm:$0xff] }
 0x2d9   :  { %1593 = vrot.lane.b32.xlu1 %v14027_v19, %s7123_s21  ;;  %v14036_v19 = vld [vmem:[#allocation202_spill] sm:$0xff] }
 0x2db   :  { %1597 = vrot.lane.b32.xlu0 %v14030_v41, %s7123_s21  ;;  %v1542_v41 = vrot.slane %v8714_v4, 2 }
 0x2dc   :  { %v9241_v12 = vpop.permute.xlu2 %1455  ;;  %v9243_v49 = vpop.permute.xlu1 %1435 }
 0x2dd   :  { %14028 = vst [vmem:[#allocation400_spill] sm:$0xff] %v9241_v12 }
 0x2de   :  { %14029 = vst [vmem:[#allocation401_spill] sm:$0xff] %v9243_v49  ;;  %v14038_v49 = vld [vmem:[#allocation203_spill] sm:$0xff] }
 0x2df   :  { %v9247_v36 = vpop.permute.xlu0 %1439 }
 0x2e0   :  { %14031 = vst [vmem:[#allocation402_spill] sm:$0xff] %v9247_v36  ;;  %1601 = vrot.lane.b32.xlu2 %v14032_v20, %s7123_s21  ;;  %v14039_v36 = vld [vmem:[#allocation200_spill] sm:$0xff]  ;;  %v1544_v20 = vrot.slane %v8986_v31, 2 }
 0x2e1   :  { %1599 = vrot.lane.b32.xlu1 %v14033_v23, %s7123_s21  ;;  %v1541_v23 = vrot.slane %v8702_v11, 2 }
 0x2e3   :  { %1603 = vrot.lane.b32.xlu0 %v14036_v19, %s7123_s21  ;;  %v14042_v19 = vld [vmem:[#allocation206_spill] sm:$0xff]  ;;  %v9280_v21 = vsel %vm13457_vm2, %v1541_v23, %v1542_v41  ;;  %v14051_v23 = vld [vmem:[#allocation207_spill] sm:$0xff] }
 0x2e4   :  { %v9253_v45 = vpop.permute.xlu2 %1461  ;;  %v9255_v60 = vpop.permute.xlu1 %1441  ;;  %14045 = vst [vmem:[#allocation408_spill] sm:$0xff] %v9280_v21 }
 0x2e5   :  { %14034 = vst [vmem:[#allocation403_spill] sm:$0xff] %v9253_v45 }
 0x2e6   :  { %14035 = vst [vmem:[#allocation404_spill] sm:$0xff] %v9255_v60 }
 0x2e7   :  { %v9259_v12 = vpop.permute.xlu0 %1445 }
 0x2e8   :  { %14037 = vst [vmem:[#allocation405_spill] sm:$0xff] %v9259_v12  ;;  %1607 = vrot.lane.b32.xlu2 %v14038_v49, %s7123_s21  ;;  %v9275_v12 = vsel %vm13457_vm2, %v1542_v41, %v1544_v20 }
 0x2e9   :  { %1605 = vrot.lane.b32.xlu1 %v14039_v36, %s7123_s21  ;;  %14043 = vst [vmem:[#allocation206_spill] sm:$0xff] %v9275_v12 }
 0x2eb   :  { %1609 = vrot.lane.b32.xlu0 %v14042_v19, %s7123_s21 }
 0x2ec   :  { %v9268_v45 = vpop.permute.xlu2 %1467  ;;  %v9270_v60 = vpop.permute.xlu1 %1447 }
 0x2ed   :  { %14040 = vst [vmem:[#allocation200_spill] sm:$0xff] %v9268_v45 }
 0x2ee   :  { %14041 = vst [vmem:[#allocation406_spill] sm:$0xff] %v9270_v60  ;;  %v14048_v60 = vld [vmem:[#allocation205_spill] sm:$0xff] }
 0x2ef   :  { %v9277_v49 = vpop.permute.xlu0 %1451 }
 0x2f0   :  { %14044 = vst [vmem:[#allocation407_spill] sm:$0xff] %v9277_v49  ;;  %1613 = vrot.lane.b32.xlu2 %v9275_v12, %s7123_s21  ;;  %v14050_v49 = vld [vmem:[#allocation211_spill] sm:$0xff] }
 0x2f1   :  { %1611 = vrot.lane.b32.xlu1 %v9280_v21, %s7123_s21  ;;  %v14054_v21 = vld [vmem:[#allocation209_spill] sm:$0xff] }
 0x2f3   :  { %1615 = vrot.lane.b32.xlu0 %v14048_v60, %s7123_s21  ;;  %v14057_v60 = vld [vmem:[#allocation212_spill] sm:$0xff] }
 0x2f4   :  { %v9286_v31 = vpop.permute.xlu2 %1473  ;;  %v9288_v45 = vpop.permute.xlu1 %1453 }
 0x2f5   :  { %14046 = vst [vmem:[#allocation409_spill] sm:$0xff] %v9286_v31 }
 0x2f6   :  { %14047 = vst [vmem:[#allocation410_spill] sm:$0xff] %v9288_v45  ;;  %v14056_v45 = vld [vmem:[#allocation215_spill] sm:$0xff] }
 0x2f7   :  { %v9292_v20 = vpop.permute.xlu0 %1457 }
 0x2f8   :  { %14049 = vst [vmem:[#allocation205_spill] sm:$0xff] %v9292_v20  ;;  %1619 = vrot.lane.b32.xlu2 %v14050_v49, %s7123_s21 }
 0x2f9   :  { %1617 = vrot.lane.b32.xlu1 %v14051_v23, %s7123_s21  ;;  %v14060_v23 = vld [vmem:[#allocation214_spill] sm:$0xff] }
 0x2fb   :  { %1621 = vrot.lane.b32.xlu0 %v14054_v21, %s7123_s21 }
 0x2fc   :  { %v9298_v41 = vpop.permute.xlu2 %1553  ;;  %v9300_v12 = vpop.permute.xlu1 %1459 }
 0x2fd   :  { %14052 = vst [vmem:[#allocation207_spill] sm:$0xff] %v9298_v41 }
 0x2fe   :  { %14053 = vst [vmem:[#allocation411_spill] sm:$0xff] %v9300_v12  ;;  %v14062_v12 = vld [vmem:[#allocation218_spill] sm:$0xff] }
 0x2ff   :  { %v9304_v31 = vpop.permute.xlu0 %1463 }
 0x300   :  { %14055 = vst [vmem:[#allocation412_spill] sm:$0xff] %v9304_v31  ;;  %1625 = vrot.lane.b32.xlu2 %v14056_v45, %s7123_s21  ;;  %v14063_v31 = vld [vmem:[#allocation216_spill] sm:$0xff] }
 0x301   :  { %1623 = vrot.lane.b32.xlu1 %v14057_v60, %s7123_s21  ;;  %v14066_v60 = vld [vmem:[#allocation217_spill] sm:$0xff] }
 0x303   :  { %1627 = vrot.lane.b32.xlu0 %v14060_v23, %s7123_s21 }
 0x304   :  { %v9310_v20 = vpop.permute.xlu2 %1559  ;;  %v9312_v49 = vpop.permute.xlu1 %1465 }
 0x305   :  { %14058 = vst [vmem:[#allocation413_spill] sm:$0xff] %v9310_v20 }
 0x306   :  { %14059 = vst [vmem:[#allocation414_spill] sm:$0xff] %v9312_v49  ;;  %v14068_v49 = vld [vmem:[#allocation222_spill] sm:$0xff] }
 0x307   :  { %v9316_v41 = vpop.permute.xlu0 %1469 }
 0x308   :  { %14061 = vst [vmem:[#allocation415_spill] sm:$0xff] %v9316_v41  ;;  %1631 = vrot.lane.b32.xlu2 %v14062_v12, %s7123_s21  ;;  %v14069_v41 = vld [vmem:[#allocation219_spill] sm:$0xff] }
 0x309   :  { %1629 = vrot.lane.b32.xlu1 %v14063_v31, %s7123_s21  ;;  %v14072_v31 = vld [vmem:[#allocation221_spill] sm:$0xff] }
 0x30b   :  { %1633 = vrot.lane.b32.xlu0 %v14066_v60, %s7123_s21 }
 0x30c   :  { %v9322_v21 = vpop.permute.xlu2 %1565  ;;  %v9324_v45 = vpop.permute.xlu1 %1471 }
 0x30d   :  { %14064 = vst [vmem:[#allocation416_spill] sm:$0xff] %v9322_v21 }
 0x30e   :  { %14065 = vst [vmem:[#allocation417_spill] sm:$0xff] %v9324_v45  ;;  %v14074_v45 = vld [vmem:[#allocation227_spill] sm:$0xff] }
 0x30f   :  { %v9328_v20 = vpop.permute.xlu0 %1475 }
 0x310   :  { %14067 = vst [vmem:[#allocation418_spill] sm:$0xff] %v9328_v20  ;;  %1637 = vrot.lane.b32.xlu2 %v14068_v49, %s7123_s21  ;;  %v14075_v20 = vld [vmem:[#allocation223_spill] sm:$0xff] }
 0x311   :  { %1635 = vrot.lane.b32.xlu1 %v14069_v41, %s7123_s21  ;;  %v14078_v41 = vld [vmem:[#allocation225_spill] sm:$0xff] }
 0x313   :  { %1639 = vrot.lane.b32.xlu0 %v14072_v31, %s7123_s21  ;;  %v14081_v31 = vld [vmem:[#allocation228_spill] sm:$0xff] }
 0x314   :  { %v9334_v23 = vpop.permute.xlu2 %1571  ;;  %v9336_v12 = vpop.permute.xlu1 %1551 }
 0x315   :  { %14070 = vst [vmem:[#allocation419_spill] sm:$0xff] %v9334_v23 }
 0x316   :  { %14071 = vst [vmem:[#allocation420_spill] sm:$0xff] %v9336_v12  ;;  %v14080_v12 = vld [vmem:[#allocation231_spill] sm:$0xff] }
 0x317   :  { %v9340_v21 = vpop.permute.xlu0 %1555 }
 0x318   :  { %14073 = vst [vmem:[#allocation421_spill] sm:$0xff] %v9340_v21  ;;  %1643 = vrot.lane.b32.xlu2 %v14074_v45, %s7123_s21 }
 0x319   :  { %1641 = vrot.lane.b32.xlu1 %v14075_v20, %s7123_s21  ;;  %v14083_v20 = vld [vmem:[#allocation230_spill] sm:$0xff] }
 0x31b   :  { %1645 = vrot.lane.b32.xlu0 %v14078_v41, %s7123_s21 }
 0x31c   :  { %v9346_v60 = vpop.permute.xlu2 %1577  ;;  %v9348_v49 = vpop.permute.xlu1 %1557 }
 0x31d   :  { %14076 = vst [vmem:[#allocation422_spill] sm:$0xff] %v9346_v60 }
 0x31e   :  { %14077 = vst [vmem:[#allocation423_spill] sm:$0xff] %v9348_v49  ;;  %v14085_v49 = vld [vmem:[#allocation236_spill] sm:$0xff] }
 0x31f   :  { %v9352_v23 = vpop.permute.xlu0 %1561 }
 0x320   :  { %14079 = vst [vmem:[#allocation424_spill] sm:$0xff] %v9352_v23  ;;  %1649 = vrot.lane.b32.xlu2 %v14080_v12, %s7123_s21  ;;  %v14086_v23 = vld [vmem:[#allocation232_spill] sm:$0xff] }
 0x321   :  { %1647 = vrot.lane.b32.xlu1 %v14081_v31, %s7123_s21  ;;  %v14088_v31 = vld [vmem:[#allocation234_spill] sm:$0xff] }
 0x323   :  { %1651 = vrot.lane.b32.xlu0 %v14083_v20, %s7123_s21 }
 0x324   :  { %v9358_v21 = vpop.permute.xlu2 %1583  ;;  %v9360_v45 = vpop.permute.xlu1 %1563 }
 0x325   :  { %14082 = vst [vmem:[#allocation425_spill] sm:$0xff] %v9358_v21 }
 0x327   :  { %v9364_v60 = vpop.permute.xlu0 %1567 }
 0x328   :  { %14084 = vst [vmem:[#allocation230_spill] sm:$0xff] %v9364_v60  ;;  %1655 = vrot.lane.b32.xlu2 %v14085_v49, %s7123_s21 }
 0x329   :  { %1653 = vrot.lane.b32.xlu1 %v14086_v23, %s7123_s21 }
 0x32b   :  { %1657 = vrot.lane.b32.xlu0 %v14088_v31, %s7123_s21 }
 0x32c   :  { %v9370_v41 = vpop.permute.xlu2 %1589  ;;  %v9372_v12 = vpop.permute.xlu1 %1569 }
 0x32d   :  { %14087 = vst [vmem:[#allocation232_spill] sm:$0xff] %v9370_v41 }
 0x32f   :  { %v9376_v21 = vpop.permute.xlu0 %1573 }
 0x330   :  { %14089 = vst [vmem:[#allocation426_spill] sm:$0xff] %v9376_v21  ;;  %1661 = vrot.lane.b32.xlu2 %v8528_v61, %s7123_s21  ;;  %v14093_v21 = vld [vmem:[#allocation241_spill] sm:$0xff] }
 0x331   :  { %1659 = vrot.lane.b32.xlu1 %v8510_v34, %s7123_s21 }
 0x333   :  { %1663 = vrot.lane.b32.xlu0 %v8522_v38, %s7123_s21 }
 0x334   :  { %v9382_v60 = vpop.permute.xlu2 %1595  ;;  %v9384_v49 = vpop.permute.xlu1 %1575 }
 0x335   :  { %14090 = vst [vmem:[#allocation427_spill] sm:$0xff] %v9382_v60  ;;  %v1547_v60 = vrot.slane %v8854_v7, 2 }
 0x336   :  { %14091 = vst [vmem:[#allocation428_spill] sm:$0xff] %v9384_v49  ;;  %v1546_v49 = vrot.slane %v8859_v15, 2 }
 0x337   :  { %v9388_v41 = vpop.permute.xlu0 %1579 }
 0x338   :  { %14092 = vst [vmem:[#allocation429_spill] sm:$0xff] %v9388_v41  ;;  %1667 = vrot.lane.b32.xlu2 %v8554_v58, %s7123_s21  ;;  %v9409_v58 = vsel %vm13457_vm2, %v1546_v49, %v1547_v60  ;;  %v14146_v41 = vld [vmem:[#allocation101_spill] sm:$0xff] }
 0x339   :  { %1665 = vrot.lane.b32.xlu1 %v14093_v21, %s7123_s21  ;;  %14096 = vst [vmem:[#allocation432_spill] sm:$0xff] %v9409_v58 }
 0x33b   :  { %1669 = vrot.lane.b32.xlu0 %v8547_v0, %s7123_s21 }
 0x33c   :  { %v9394_v31 = vpop.permute.xlu2 %1601  ;;  %v9396_v61 = vpop.permute.xlu1 %1581 }
 0x33d   :  { %14094 = vst [vmem:[#allocation430_spill] sm:$0xff] %v9396_v61  ;;  %v1549_v61 = vrot.slane %v9126_v5, 2 }
 0x33f   :  { %v9402_v38 = vpop.permute.xlu0 %1585  ;;  %v9421_v15 = vsel %vm13457_vm2, %v1547_v60, %v1549_v61 }
 0x340   :  { %14095 = vst [vmem:[#allocation431_spill] sm:$0xff] %v9402_v38  ;;  %1673 = vrot.lane.b32.xlu2 %v8573_v1, %s7123_s21 }
 0x341   :  { %1671 = vrot.lane.b32.xlu1 %v8561_v14, %s7123_s21  ;;  %14099 = vst [vmem:[#allocation435_spill] sm:$0xff] %v9421_v15 }
 0x343   :  { %1675 = vrot.lane.b32.xlu0 %v9409_v58, %s7123_s21 }
 0x344   :  { %v9411_v21 = vpop.permute.xlu2 %1607  ;;  %v9414_v0 = vpop.permute.xlu1 %1587 }
 0x345   :  { %14097 = vst [vmem:[#allocation433_spill] sm:$0xff] %v9414_v0 }
 0x347   :  { %v9418_v7 = vpop.permute.xlu0 %1591 }
 0x348   :  { %14098 = vst [vmem:[#allocation434_spill] sm:$0xff] %v9418_v7  ;;  %1743 = vrot.lane.b32.xlu2 %v7203_v16, %s7124_s22 }
 0x349   :  { %1677 = vrot.lane.b32.xlu1 %v9421_v15, %s7123_s21 }
 0x34b   :  { %1745 = vrot.lane.b32.xlu0 %v7197_v13, %s7124_s22 }
 0x34c   :  { %v9427_v49 = vpop.permute.xlu2 %1613  ;;  %v9429_v5 = vpop.permute.xlu1 %1593 }
 0x34d   :  { %14100 = vst [vmem:[#allocation436_spill] sm:$0xff] %v9427_v49 }
 0x34e   :  { %14101 = vst [vmem:[#allocation437_spill] sm:$0xff] %v9429_v5 }
 0x34f   :  { %v9433_v58 = vpop.permute.xlu0 %1597 }
 0x350   :  { %1749 = vrot.lane.b32.xlu2 %v7219_v24, %s7124_s22 }
 0x351   :  { %1747 = vrot.lane.b32.xlu1 %v7226_v27, %s7124_s22 }
 0x353   :  { %1751 = vrot.lane.b32.xlu0 %v7272_v46, %s7124_s22 }
 0x354   :  { %v9439_v61 = vpop.permute.xlu2 %1619  ;;  %v9441_v60 = vpop.permute.xlu1 %1599 }
 0x355   :  { %14102 = vst [vmem:[#allocation438_spill] sm:$0xff] %v9439_v61 }
 0x357   :  { %v9445_v15 = vpop.permute.xlu0 %1603 }
 0x358   :  { %1755 = vrot.lane.b32.xlu2 %v7294_v55, %s7124_s22 }
 0x359   :  { %1753 = vrot.lane.b32.xlu1 %v7266_v44, %s7124_s22 }
 0x35b   :  { %1757 = vrot.lane.b32.xlu0 %v7291_v54, %s7124_s22 }
 0x35c   :  { %v9451_v5 = vpop.permute.xlu2 %1625  ;;  %v9453_v1 = vpop.permute.xlu1 %1605 }
 0x35d   :  { %14103 = vst [vmem:[#allocation439_spill] sm:$0xff] %v9451_v5 }
 0x35f   :  { %v9457_v14 = vpop.permute.xlu0 %1609 }
 0x360   :  { %1761 = vrot.lane.b32.xlu2 %v7307_v62, %s7124_s22  ;;  %v14156_v62 = vld [vmem:[#allocation14_spill] sm:$0xff] }
 0x361   :  { %1759 = vrot.lane.b32.xlu1 %v7310_v63, %s7124_s22 }
 0x363   :  { %1763 = vrot.lane.b32.xlu0 %v7359_v33, %s7124_s22 }
 0x364   :  { %v9463_v7 = vpop.permute.xlu2 %1631  ;;  %v9465_v0 = vpop.permute.xlu1 %1611 }
 0x365   :  { %14104 = vst [vmem:[#allocation440_spill] sm:$0xff] %v9463_v7 }
 0x366   :  { %14105 = vst [vmem:[#allocation441_spill] sm:$0xff] %v9465_v0 }
 0x367   :  { %v9469_v5 = vpop.permute.xlu0 %1615 }
 0x368   :  { %14106 = vst [vmem:[#allocation442_spill] sm:$0xff] %v9469_v5  ;;  %1767 = vrot.lane.b32.xlu2 %v7377_v43, %s7124_s22 }
 0x369   :  { %1765 = vrot.lane.b32.xlu1 %v7353_v29, %s7124_s22 }
 0x36b   :  { %1769 = vrot.lane.b32.xlu0 %v7374_v42, %s7124_s22 }
 0x36c   :  { %v9475_v38 = vpop.permute.xlu2 %1637  ;;  %v9477_v61 = vpop.permute.xlu1 %1617 }
 0x36d   :  { %14107 = vst [vmem:[#allocation443_spill] sm:$0xff] %v9477_v61  ;;  %v14141_v61 = vld [vmem:[#allocation105_spill] sm:$0xff] }
 0x36f   :  { %v9481_v7 = vpop.permute.xlu0 %1621 }
 0x370   :  { %14108 = vst [vmem:[#allocation444_spill] sm:$0xff] %v9481_v7  ;;  %1773 = vrot.lane.b32.xlu2 %v7394_v57, %s7124_s22 }
 0x371   :  { %1771 = vrot.lane.b32.xlu1 %v7388_v53, %s7124_s22 }
 0x373   :  { %1775 = vrot.lane.b32.xlu0 %v7443_v48, %s7124_s22 }
 0x374   :  { %v9487_v5 = vpop.permute.xlu2 %1643  ;;  %v9489_v43 = vpop.permute.xlu1 %1623 }
 0x375   :  { %14109 = vst [vmem:[#allocation445_spill] sm:$0xff] %v9487_v5 }
 0x376   :  { %14110 = vst [vmem:[#allocation446_spill] sm:$0xff] %v9489_v43 }
 0x377   :  { %v9493_v29 = vpop.permute.xlu0 %1627 }
 0x378   :  { %14111 = vst [vmem:[#allocation447_spill] sm:$0xff] %v9493_v29  ;;  %1779 = vrot.lane.b32.xlu2 %v7461_v10, %s7124_s22 }
 0x379   :  { %1777 = vrot.lane.b32.xlu1 %v7431_v26, %s7124_s22 }
 0x37b   :  { %1781 = vrot.lane.b32.xlu0 %v7458_v6, %s7124_s22 }
 0x37c   :  { %v9499_v7 = vpop.permute.xlu2 %1649  ;;  %v9501_v57 = vpop.permute.xlu1 %1629 }
 0x37d   :  { %14112 = vst [vmem:[#allocation448_spill] sm:$0xff] %v9499_v7  ;;  %v14123_v7 = vmov 0.0  }
 0x37e   :  { %14113 = vst [vmem:[#allocation449_spill] sm:$0xff] %v9501_v57 }
 0x37f   :  { %v9505_v42 = vpop.permute.xlu0 %1633 }
 0x380   :  { %14114 = vst [vmem:[#allocation450_spill] sm:$0xff] %v9505_v42  ;;  %1785 = vrot.lane.b32.xlu2 %v7478_v47, %s7124_s22 }
 0x381   :  { %1783 = vrot.lane.b32.xlu1 %v7472_v2, %s7124_s22 }
 0x383   :  { %1787 = vrot.lane.b32.xlu0 %v7527_v18, %s7124_s22 }
 0x384   :  { %v9511_v29 = vpop.permute.xlu2 %1655  ;;  %v9513_v43 = vpop.permute.xlu1 %1635 }
 0x385   :  { %14115 = vst [vmem:[#allocation451_spill] sm:$0xff] %v9511_v29 }
 0x386   :  { %14116 = vst [vmem:[#allocation452_spill] sm:$0xff] %v9513_v43 }
 0x387   :  { %v9517_v10 = vpop.permute.xlu0 %1639 }
 0x388   :  { %1791 = vrot.lane.b32.xlu2 %v7545_v37, %s7124_s22 }
 0x389   :  { %1789 = vrot.lane.b32.xlu1 %v7515_v3, %s7124_s22 }
 0x38b   :  { %1793 = vrot.lane.b32.xlu0 %v7542_v51, %s7124_s22 }
 0x38c   :  { %v9523_v42 = vpop.permute.xlu2 %1661  ;;  %v9525_v57 = vpop.permute.xlu1 %1641 }
 0x38d   :  { %14117 = vst [vmem:[#allocation453_spill] sm:$0xff] %v9523_v42 }
 0x38e   :  { %14118 = vst [vmem:[#allocation454_spill] sm:$0xff] %v9525_v57  ;;  %v14206_v57 = vld [vmem:[#allocation224_spill] sm:$0xff] }
 0x38f   :  { %v9529_v29 = vpop.permute.xlu0 %1645 }
 0x390   :  { %14119 = vst [vmem:[#allocation455_spill] sm:$0xff] %v9529_v29  ;;  %1797 = vrot.lane.b32.xlu2 %v7562_v59, %s7124_s22  ;;  %v14151_v29 = vld [vmem:[#allocation108_spill] sm:$0xff] }
 0x391   :  { %1795 = vrot.lane.b32.xlu1 %v7556_v28, %s7124_s22 }
 0x393   :  { %1799 = vrot.lane.b32.xlu0 %v8702_v11, %s7124_s22 }
 0x394   :  { %v9535_v43 = vpop.permute.xlu2 %1667  ;;  %v9537_v48 = vpop.permute.xlu1 %1647 }
 0x395   :  { %14120 = vst [vmem:[#allocation456_spill] sm:$0xff] %v9535_v43 }
 0x396   :  { %14121 = vst [vmem:[#allocation457_spill] sm:$0xff] %v9537_v48  ;;  %v14143_v48 = vld [vmem:[#allocation8_spill] sm:$0xff] }
 0x397   :  { %v9541_v42 = vpop.permute.xlu0 %1651 }
 0x398   :  { %14122 = vst [vmem:[#allocation458_spill] sm:$0xff] %v9541_v42  ;;  %1803 = vrot.lane.b32.xlu2 %v14123_v7, %s7124_s22 }
 0x399   :  { %1801 = vrot.lane.b32.xlu1 %v8714_v4, %s7124_s22 }
 0x39b   :  { %1805 = vrot.lane.b32.xlu0 %v13686_v56, %s7124_s22 }
 0x39c   :  { %v9547_v26 = vpop.permute.xlu2 %1673  ;;  %v9549_v53 = vpop.permute.xlu1 %1653 }
 0x39d   :  { %14124 = vst [vmem:[#allocation459_spill] sm:$0xff] %v9547_v26 }
 0x39e   :  { %14125 = vst [vmem:[#allocation460_spill] sm:$0xff] %v9549_v53 }
 0x39f   :  { %v9553_v43 = vpop.permute.xlu0 %1657 }
 0x3a0   :  { %14126 = vst [vmem:[#allocation461_spill] sm:$0xff] %v9553_v43  ;;  %1809 = vrot.lane.b32.xlu2 %v13689_v39, %s7124_s22 }
 0x3a1   :  { %1807 = vrot.lane.b32.xlu1 %v13683_v22, %s7124_s22  ;;  %v14139_v22 = vld [vmem:[#allocation94_spill] sm:$0xff] }
 0x3a3   :  { %1811 = vrot.lane.b32.xlu0 %v13690_v8, %s7124_s22 }
 0x3a4   :  { %v9559_v11 = vpop.permute.xlu2 %1743  ;;  %v9561_v7 = vpop.permute.xlu1 %1659 }
 0x3a5   :  { %14127 = vst [vmem:[#allocation462_spill] sm:$0xff] %v9561_v7 }
 0x3a7   :  { %v9565_v4 = vpop.permute.xlu0 %1663 }
 0x3a8   :  { %14128 = vst [vmem:[#allocation463_spill] sm:$0xff] %v9565_v4  ;;  %1815 = vrot.lane.b32.xlu2 %v13695_v25, %s7124_s22  ;;  %v14136_v25 = vld [vmem:[#allocation88_spill] sm:$0xff] }
 0x3a9   :  { %1813 = vrot.lane.b32.xlu1 %v13694_v9, %s7124_s22 }
 0x3ab   :  { %1817 = vrot.lane.b32.xlu0 %v13707_v32, %s7124_s22 }
 0x3ac   :  { %v9571_v26 = vpop.permute.xlu2 %1749  ;;  %v9573_v39 = vpop.permute.xlu1 %1665 }
 0x3ad   :  { %14129 = vst [vmem:[#allocation464_spill] sm:$0xff] %v9573_v39  ;;  %v14133_v39 = vld [vmem:[#allocation82_spill] sm:$0xff] }
 0x3af   :  { %v9577_v43 = vpop.permute.xlu0 %1669 }
 0x3b0   :  { %14130 = vst [vmem:[#allocation465_spill] sm:$0xff] %v9577_v43  ;;  %1821 = vrot.lane.b32.xlu2 %v13710_v35, %s7124_s22  ;;  %v14134_v43 = vld [vmem:[#allocation85_spill] sm:$0xff] }
 0x3b1   :  { %1819 = vrot.lane.b32.xlu1 %v13704_v40, %s7124_s22 }
 0x3b3   :  { %1823 = vrot.lane.b32.xlu0 %v13711_v50, %s7124_s22 }
 0x3b4   :  { %v9583_v4 = vpop.permute.xlu2 %1755  ;;  %v9585_v8 = vpop.permute.xlu1 %1671 }
 0x3b5   :  { %14131 = vst [vmem:[#allocation466_spill] sm:$0xff] %v9585_v8  ;;  %v14137_v8 = vld [vmem:[#allocation91_spill] sm:$0xff] }
 0x3b7   :  { %v9589_v9 = vpop.permute.xlu0 %1675 }
 0x3b8   :  { %14132 = vst [vmem:[#allocation467_spill] sm:$0xff] %v9589_v9  ;;  %1827 = vrot.lane.b32.xlu2 %v14133_v39, %s7124_s22 }
 0x3b9   :  { %1825 = vrot.lane.b32.xlu1 %v14134_v43, %s7124_s22  ;;  %v14175_v43 = vld [vmem:[#allocation19_spill] sm:$0xff] }
 0x3bb   :  { %1829 = vrot.lane.b32.xlu0 %v14136_v25, %s7124_s22 }
 0x3bc   :  { %v9595_v32 = vpop.permute.xlu2 %1761  ;;  %v9597_v7 = vpop.permute.xlu1 %1677 }
 0x3bd   :  { %14135 = vst [vmem:[#allocation468_spill] sm:$0xff] %v9597_v7 }
 0x3bf   :  { %v9601_v53 = vpop.permute.xlu0 %1745 }
 0x3c0   :  { %1833 = vrot.lane.b32.xlu2 %v14137_v8, %s7124_s22 }
 0x3c1   :  { %1831 = vrot.lane.b32.xlu1 %v13828_v30, %s7124_s22 }
 0x3c3   :  { %1835 = vrot.lane.b32.xlu0 %v14139_v22, %s7124_s22  ;;  %v14142_v22 = vld [vmem:[#allocation152_spill] sm:$0xff] }
 0x3c4   :  { %v9607_v9 = vpop.permute.xlu2 %1767  ;;  %v9609_v42 = vpop.permute.xlu1 %1747 }
 0x3c5   :  { %14138 = vst [vmem:[#allocation469_spill] sm:$0xff] %v9607_v9  ;;  %v14193_v9 = vld [vmem:[#allocation28_spill] sm:$0xff] }
 0x3c7   :  { %v9613_v56 = vpop.permute.xlu0 %1751 }
 0x3c8   :  { %2109 = vrot.lane.b32.xlu2 %v13988_v52, %s7125_s23 }
 0x3c9   :  { %1926 = vrot.lane.b32.xlu1 %v13856_v17, %s7126_s24  ;;  %v14145_v17 = vld [vmem:[#allocation11_spill] sm:$0xff] }
 0x3cb   :  { %1837 = vrot.lane.b32.xlu0 %v14141_v61, %s7124_s22  ;;  %v14147_v61 = vld [vmem:[#allocation155_spill] sm:$0xff] }
 0x3cc   :  { %v9619_v7 = vpop.permute.xlu2 %1773  ;;  %v9621_v8 = vpop.permute.xlu1 %1753 }
 0x3cd   :  { %14140 = vst [vmem:[#allocation470_spill] sm:$0xff] %v9619_v7 }
 0x3cf   :  { %v9625_v30 = vpop.permute.xlu0 %1757 }
 0x3d0   :  { %2111 = vrot.lane.b32.xlu2 %v14142_v22, %s7125_s23 }
 0x3d1   :  { %1928 = vrot.lane.b32.xlu1 %v14143_v48, %s7126_s24  ;;  %v14149_v48 = vld [vmem:[#allocation13_spill] sm:$0xff] }
 0x3d3   :  { %1930 = vrot.lane.b32.xlu0 %v14145_v17, %s7126_s24  ;;  %v14152_v17 = vld [vmem:[#allocation160_spill] sm:$0xff] }
 0x3d4   :  { %v9631_v52 = vpop.permute.xlu2 %1779  ;;  %v9633_v25 = vpop.permute.xlu1 %1759 }
 0x3d5   :  { %14144 = vst [vmem:[#allocation152_spill] sm:$0xff] %v9631_v52 }
 0x3d7   :  { %v9637_v7 = vpop.permute.xlu0 %1763 }
 0x3d8   :  { %1839 = vrot.lane.b32.xlu2 %v14146_v41, %s7124_s22 }
 0x3d9   :  { %2113 = vrot.lane.b32.xlu1 %v14147_v61, %s7125_s23  ;;  %v14154_v61 = vld [vmem:[#allocation15_spill] sm:$0xff] }
 0x3db   :  { %1932 = vrot.lane.b32.xlu0 %v14149_v48, %s7126_s24  ;;  %v14157_v48 = vld [vmem:[#allocation158_spill] sm:$0xff] }
 0x3dc   :  { %v9643_v33 = vpop.permute.xlu2 %1785  ;;  %v9645_v22 = vpop.permute.xlu1 %1765 }
 0x3dd   :  { %14148 = vst [vmem:[#allocation8_spill] sm:$0xff] %v9643_v33 }
 0x3df   :  { %v9649_v52 = vpop.permute.xlu0 %1769 }
 0x3e0   :  { %14150 = vst [vmem:[#allocation11_spill] sm:$0xff] %v9649_v52  ;;  %1841 = vrot.lane.b32.xlu2 %v14151_v29, %s7124_s22 }
 0x3e1   :  { %2115 = vrot.lane.b32.xlu1 %v14152_v17, %s7125_s23  ;;  %v14159_v17 = vld [vmem:[#allocation161_spill] sm:$0xff] }
 0x3e3   :  { %1934 = vrot.lane.b32.xlu0 %v14154_v61, %s7126_s24  ;;  %v14162_v61 = vld [vmem:[#allocation43_spill] sm:$0xff] }
 0x3e4   :  { %v9655_v39 = vpop.permute.xlu2 %1791  ;;  %v9657_v41 = vpop.permute.xlu1 %1771 }
 0x3e5   :  { %14153 = vst [vmem:[#allocation155_spill] sm:$0xff] %v9657_v41  ;;  %v14161_v41 = vld [vmem:[#allocation197_spill] sm:$0xff] }
 0x3e7   :  { %v9661_v33 = vpop.permute.xlu0 %1775 }
 0x3e8   :  { %14155 = vst [vmem:[#allocation13_spill] sm:$0xff] %v9661_v33  ;;  %1936 = vrot.lane.b32.xlu2 %v14156_v62, %s7126_s24 }
 0x3e9   :  { %2117 = vrot.lane.b32.xlu1 %v14157_v48, %s7125_s23  ;;  %v14165_v48 = vld [vmem:[#allocation18_spill] sm:$0xff] }
 0x3eb   :  { %2119 = vrot.lane.b32.xlu0 %v14159_v17, %s7125_s23  ;;  %v14168_v17 = vld [vmem:[#allocation166_spill] sm:$0xff] }
 0x3ec   :  { %v9667_v52 = vpop.permute.xlu2 %1797  ;;  %v9669_v29 = vpop.permute.xlu1 %1777 }
 0x3ed   :  { %14158 = vst [vmem:[#allocation160_spill] sm:$0xff] %v9669_v29  ;;  %v14167_v29 = vld [vmem:[#allocation47_spill] sm:$0xff] }
 0x3ef   :  { %v9673_v49 = vpop.permute.xlu0 %1781 }
 0x3f0   :  { %14160 = vst [vmem:[#allocation15_spill] sm:$0xff] %v9673_v49  ;;  %2155 = vrot.lane.b32.xlu2 %v14161_v41, %s7125_s23 }
 0x3f1   :  { %1972 = vrot.lane.b32.xlu1 %v14162_v61, %s7126_s24  ;;  %v14170_v61 = vld [vmem:[#allocation202_spill] sm:$0xff] }
 0x3f3   :  { %1938 = vrot.lane.b32.xlu0 %v14165_v48, %s7126_s24  ;;  %v14172_v48 = vld [vmem:[#allocation20_spill] sm:$0xff] }
 0x3f4   :  { %v9679_v33 = vpop.permute.xlu2 %1803  ;;  %v9681_v62 = vpop.permute.xlu1 %1783 }
 0x3f5   :  { %14163 = vst [vmem:[#allocation14_spill] sm:$0xff] %v9679_v33  ;;  %v14180_v33 = vld [vmem:[#allocation203_spill] sm:$0xff] }
 0x3f6   :  { %14164 = vst [vmem:[#allocation158_spill] sm:$0xff] %v9681_v62  ;;  %v14171_v62 = vld [vmem:[#allocation164_spill] sm:$0xff] }
 0x3f7   :  { %v9685_v5 = vpop.permute.xlu0 %1787 }
 0x3f8   :  { %14166 = vst [vmem:[#allocation161_spill] sm:$0xff] %v9685_v5  ;;  %1974 = vrot.lane.b32.xlu2 %v14167_v29, %s7126_s24 }
 0x3f9   :  { %2121 = vrot.lane.b32.xlu1 %v14168_v17, %s7125_s23  ;;  %v14174_v17 = vld [vmem:[#allocation51_spill] sm:$0xff] }
 0x3fb   :  { %2157 = vrot.lane.b32.xlu0 %v14170_v61, %s7125_s23 }
 0x3fc   :  { %v9691_v49 = vpop.permute.xlu2 %1809  ;;  %v9693_v41 = vpop.permute.xlu1 %1789 }
 0x3fd   :  { %14169 = vst [vmem:[#allocation197_spill] sm:$0xff] %v9691_v49 }
 0x3ff   :  { %v9697_v59 = vpop.permute.xlu0 %1793 }
 0x400   :  { %2123 = vrot.lane.b32.xlu2 %v14171_v62, %s7125_s23 }
 0x401   :  { %1940 = vrot.lane.b32.xlu1 %v14172_v48, %s7126_s24  ;;  %v14178_v48 = vld [vmem:[#allocation167_spill] sm:$0xff] }
 0x403   :  { %1976 = vrot.lane.b32.xlu0 %v14174_v17, %s7126_s24  ;;  %v14181_v17 = vld [vmem:[#allocation49_spill] sm:$0xff] }
 0x404   :  { %v9703_v5 = vpop.permute.xlu2 %1815  ;;  %v9705_v29 = vpop.permute.xlu1 %1795 }
 0x405   :  { %14173 = vst [vmem:[#allocation43_spill] sm:$0xff] %v9703_v5 }
 0x407   :  { %v9709_v49 = vpop.permute.xlu0 %1799 }
 0x408   :  { %1942 = vrot.lane.b32.xlu2 %v14175_v43, %s7126_s24 }
 0x409   :  { %2159 = vrot.lane.b32.xlu1 %v14039_v36, %s7125_s23  ;;  %v14183_v36 = vld [vmem:[#allocation23_spill] sm:$0xff] }
 0x40b   :  { %2125 = vrot.lane.b32.xlu0 %v14178_v48, %s7125_s23  ;;  %v2809_v48 = vld [vmem:[%s13100_s1 + $0x18] sm:$0xff] }
 0x40c   :  { %v9715_v61 = vpop.permute.xlu2 %1821  ;;  %v9717_v62 = vpop.permute.xlu1 %1801 }
 0x40d   :  { %14176 = vst [vmem:[#allocation18_spill] sm:$0xff] %v9715_v61  ;;  %v2810_v61 = vld [vmem:[%s13100_s1 + $0x20] sm:$0xf] }
 0x40e   :  { %14177 = vst [vmem:[#allocation47_spill] sm:$0xff] %v9717_v62  ;;  %6651 = vmatpush.msk.msra.mxu0 %vm3008_vm3, %v2810_v61  ;;  %7054 = vmatpush.msk.msra.mxu2 %vm3008_vm3, %v2810_v61  ;;  %v14225_v62 = vld [vmem:[#allocation298_spill] sm:$0xff] }
 0x40f   :  { %v9721_v5 = vpop.permute.xlu0 %1805  ;;  %7055 = vmatpush.msk.msra.mxu3 %vm3008_vm3, %v2810_v61  ;;  %7053 = vmatpush.msk.msra.mxu1 %vm3008_vm3, %v2810_v61  ;;  %vm13455_vm3 = vcmask 1045509  }
 0x410   :  { %14179 = vst [vmem:[#allocation166_spill] sm:$0xff] %v9721_v5  ;;  %2161 = vrot.lane.b32.xlu2 %v14180_v33, %s7125_s23  ;;  %3024 = vmatpush.msra.mxu0 %v2809_v48 }
 0x411   :  { %1978 = vrot.lane.b32.xlu1 %v14181_v17, %s7126_s24  ;;  %v2808_v17 = vld [vmem:[%s13100_s1 + $0x10] sm:$0xff]  ;;  %7057 = vmatpush.msra.mxu2 %v2809_v48 }
 0x412   :  { %7058 = vmatpush.msra.mxu3 %v2809_v48  ;;  %3025 = vmatpush.msra.mxu0 %v2808_v17 }
 0x413   :  { %1944 = vrot.lane.b32.xlu0 %v14183_v36, %s7126_s24  ;;  %v14185_v36 = vld [vmem:[#allocation54_spill] sm:$0xff]  ;;  %7060 = vmatpush.msra.mxu2 %v2808_v17 }
 0x414   :  { %v9727_v0 = vpop.permute.xlu2 %1827  ;;  %v9729_v43 = vpop.permute.xlu1 %1807  ;;  %7061 = vmatpush.msra.mxu3 %v2808_v17  ;;  %7056 = vmatpush.msra.mxu1 %v2809_v48  ;;  %v14191_v48 = vld [vmem:[#allocation90_spill] sm:$0xff] }
 0x415   :  { %14182 = vst [vmem:[#allocation202_spill] sm:$0xff] %v9729_v43  ;;  %v14186_v43 = vld [vmem:[#allocation172_spill] sm:$0xff] }
 0x416   :  { %7059 = vmatpush.msra.mxu1 %v2808_v17  ;;  %v14196_v17 = vld [vmem:[#allocation170_spill] sm:$0xff] }
 0x417   :  { %v9739_v33 = vpop.permute.xlu0 %1811 }
 0x418   :  { %14184 = vst [vmem:[#allocation164_spill] sm:$0xff] %v9739_v33  ;;  %1980 = vrot.lane.b32.xlu2 %v14185_v36, %s7126_s24  ;;  %v2807_v33 = vld [vmem:[%s13100_s1 + $0x8] sm:$0xff] }
 0x419   :  { %2127 = vrot.lane.b32.xlu1 %v14186_v43, %s7125_s23  ;;  %3026 = vmatpush.msra.mxu0 %v2807_v33  ;;  %v2806_v43 = vld [vmem:[%s13100_s1] sm:$0xff] }
 0x41a   :  { %7063 = vmatpush.msra.mxu2 %v2807_v33  ;;  %7064 = vmatpush.msra.mxu3 %v2807_v33 }
 0x41b   :  { %2163 = vrot.lane.b32.xlu0 %v14042_v19, %s7125_s23  ;;  %3027 = vmatpush.msra.mxu0 %v2806_v43 }
 0x41c   :  { %v9751_v5 = vpop.permute.xlu2 %1833  ;;  %v9753_v61 = vpop.permute.xlu1 %1813  ;;  %7066 = vmatpush.msra.mxu2 %v2806_v43  ;;  %7067 = vmatpush.msra.mxu3 %v2806_v43 }
 0x41d   :  { %14187 = vst [vmem:[#allocation20_spill] sm:$0xff] %v9751_v5  ;;  %v14190_v5 = vld [vmem:[#allocation223_spill] sm:$0xff]  ;;  %7062 = vmatpush.msra.mxu1 %v2807_v33 }
 0x41e   :  { %14188 = vst [vmem:[#allocation51_spill] sm:$0xff] %v9753_v61 }
 0x41f   :  { %v9760_v36 = vpop.permute.xlu0 %1817  ;;  %7065 = vmatpush.msra.mxu1 %v2806_v43 }
 0x420   :  { %14189 = vst [vmem:[#allocation19_spill] sm:$0xff] %v9760_v36  ;;  %2193 = vrot.lane.b32.xlu2 %v14190_v5, %s7125_s23  ;;  %v14195_v36 = vld [vmem:[#allocation344_spill] sm:$0xff] }
 0x421   :  { %2010 = vrot.lane.b32.xlu1 %v14191_v48, %s7126_s24  ;;  %v14198_v48 = vld [vmem:[#allocation408_spill] sm:$0xff] }
 0x423   :  { %1946 = vrot.lane.b32.xlu0 %v14193_v9, %s7126_s24  ;;  %v14200_v9 = vld [vmem:[#allocation96_spill] sm:$0xff] }
 0x424   :  { %v2110_v19 = vpop.permute.xlu2 %2109  ;;  %v9766_v61 = vpop.permute.xlu1 %1819 }
 0x425   :  { %14192 = vst [vmem:[#allocation167_spill] sm:$0xff] %v9766_v61  ;;  %v14199_v61 = vld [vmem:[#allocation227_spill] sm:$0xff] }
 0x427   :  { %v9770_v28 = vpop.permute.xlu0 %1823 }
 0x428   :  { %14194 = vst [vmem:[#allocation203_spill] sm:$0xff] %v9770_v28  ;;  %1982 = vrot.lane.b32.xlu2 %v14195_v36, %s7126_s24 }
 0x429   :  { %2129 = vrot.lane.b32.xlu1 %v14196_v17, %s7125_s23  ;;  %v14203_v17 = vld [vmem:[#allocation26_spill] sm:$0xff] }
 0x42b   :  { %2165 = vrot.lane.b32.xlu0 %v14198_v48, %s7125_s23 }
 0x42c   :  { %v2112_v5 = vpop.permute.xlu2 %2111  ;;  %v9776_v33 = vpop.permute.xlu1 %1825 }
 0x42d   :  { %14197 = vst [vmem:[#allocation49_spill] sm:$0xff] %v9776_v33  ;;  %v14204_v33 = vld [vmem:[#allocation92_spill] sm:$0xff] }
 0x42e   :  { %v2293_v48 = vsel %vm13454_vm4, 0.0, %v14204_v33  ;;  %v14211_v33 = vld [vmem:[#allocation173_spill] sm:$0xff] }
 0x42f   :  { %v9780_v43 = vpop.permute.xlu0 %1829 }
 0x430   :  { %2195 = vrot.lane.b32.xlu2 %v14199_v61, %s7125_s23  ;;  %v9798_v61 = vsel %vm13453_vm6, %v2293_v48, %v14206_v57 }
 0x431   :  { %2012 = vrot.lane.b32.xlu1 %v14200_v9, %s7126_s24  ;;  %14207 = vst [vmem:[#allocation223_spill] sm:$0xff] %v9798_v61  ;;  %v14208_v9 = vld [vmem:[#allocation285_spill] sm:$0xff] }
 0x433   :  { %1948 = vrot.lane.b32.xlu0 %v14203_v17, %s7126_s24  ;;  %v14210_v17 = vld [vmem:[#allocation358_spill] sm:$0xff] }
 0x434   :  { %v9786_v28 = vpop.permute.xlu2 %1839  ;;  %v9788_v36 = vpop.permute.xlu1 %1831 }
 0x435   :  { %14201 = vst [vmem:[#allocation23_spill] sm:$0xff] %v9786_v28  ;;  %v2417_v28 = vsel %vm2416_vm5, %v9798_v61, %v14208_v9 }
 0x436   :  { %14202 = vst [vmem:[#allocation54_spill] sm:$0xff] %v9788_v36  ;;  %v14209_v36 = vld [vmem:[#allocation348_spill] sm:$0xff]  ;;  %v2482_v34 = vsel %vm2481_vm7, %v2417_v28, %v14210_v17  ;;  %v14214_v28 = vld [vmem:[#allocation206_spill] sm:$0xff] }
 0x437   :  { %v9794_v63 = vpop.permute.xlu0 %1835 }
 0x438   :  { %14205 = vst [vmem:[#allocation172_spill] sm:$0xff] %v9794_v63  ;;  %1984 = vrot.lane.b32.xlu2 %v14209_v36, %s7126_s24  ;;  %v14212_v63 = vld [vmem:[#allocation420_spill] sm:$0xff] }
 0x439   :  { %2131 = vrot.lane.b32.xlu1 %v14211_v33, %s7125_s23  ;;  %v2547_v57 = vsel %vm2546_vm9, %v2482_v34, %v14212_v63  ;;  %v14216_v63 = vld [vmem:[#allocation296_spill] sm:$0xff] }
 0x43a   :  { %v2612_v9 = vsel %vm2611_vm8, %v2547_v57, %v9559_v11  ;;  %v2418_v34 = vsel %vm2416_vm5, %v9798_v61, %v14216_v63  ;;  %v14218_v11 = vld [vmem:[#allocation360_spill] sm:$0xff]  ;;  %v14223_v61 = vld [vmem:[#allocation7_spill] sm:$0xff] }
 0x43b   :  { %2167 = vrot.lane.b32.xlu0 %v14214_v28, %s7125_s23  ;;  %v2483_v57 = vsel %vm2481_vm7, %v2418_v34, %v14218_v11 }
 0x43c   :  { %v9811_v48 = vpop.permute.xlu2 %1841  ;;  %v1927_v50 = vpop.permute.xlu1 %1926 }
 0x43d   :  { %14213 = vst [vmem:[#allocation90_spill] sm:$0xff] %v9811_v48  ;;  %v2677_v36 = vsel %vm2676_vm10, %v2612_v9, %v1927_v50  ;;  %v14217_v48 = vld [vmem:[#allocation225_spill] sm:$0xff]  ;;  %v14219_v50 = vld [vmem:[#allocation103_spill] sm:$0xff] }
 0x43e   :  { %v2742_v17 = vsel %vm2741_vm11, %v2677_v36, %v2110_v19  ;;  %v14220_v9 = vld [vmem:[#allocation207_spill] sm:$0xff] }
 0x43f   :  { %6652 = vmatmul.msk.f32.vlgmr.msra.gmra.mxu0 %vm2815_vm12, %v2742_v17  ;;  %v9820_v33 = vpop.permute.xlu0 %1837  ;;  %v2548_v19 = vsel %vm2546_vm9, %v2483_v57, %v14220_v9 }
 0x440   :  { %14215 = vst [vmem:[#allocation28_spill] sm:$0xff] %v9820_v33  ;;  %2197 = vrot.lane.b32.xlu2 %v14217_v48, %s7125_s23  ;;  %v2613_v28 = vsel %vm2611_vm8, %v2548_v19, %v9601_v53  ;;  %v14221_v33 = vld [vmem:[#allocation30_spill] sm:$0xff] }
 0x441   :  { %2014 = vrot.lane.b32.xlu1 %v14219_v50, %s7126_s24  ;;  %v14222_v48 = vld [vmem:[#allocation102_spill] sm:$0xff]  ;;  %v14224_v50 = vld [vmem:[#allocation213_spill] sm:$0xff] }
 0x442   :  { %v2294_v34 = vsel %vm13454_vm4, %v14223_v61, %v14222_v48  ;;  %v14226_v19 = vld [vmem:[#allocation350_spill] sm:$0xff] }
 0x443   :  { %1950 = vrot.lane.b32.xlu0 %v14221_v33, %s7126_s24  ;;  %v2356_v57 = vsel %vm13453_vm6, %v2294_v34, %v14224_v50  ;;  %v14227_v33 = vld [vmem:[#allocation5_spill] sm:$0xff] }
 0x444   :  { %v9833_v36 = vpop.permute.xlu2 %1936  ;;  %v1929_v17 = vpop.permute.xlu1 %1928  ;;  %v2419_v53 = vsel %vm2416_vm5, %v2356_v57, %v14225_v62  ;;  %v14230_v62 = vld [vmem:[#allocation147_spill] sm:$0xff] }
 0x445   :  { %v2678_v63 = vsel %vm2676_vm10, %v2613_v28, %v1929_v17  ;;  %v2484_v28 = vsel %vm2481_vm7, %v2419_v53, %v14226_v19  ;;  %v14228_v17 = vld [vmem:[#allocation421_spill] sm:$0xff]  ;;  %v14231_v57 = vld [vmem:[#allocation99_spill] sm:$0xff]  ;;  %v14232_v53 = vld [vmem:[#allocation6_spill] sm:$0xff] }
 0x446   :  { %v2743_v11 = vsel %vm2741_vm11, %v2678_v63, %v2112_v5  ;;  %v2549_v61 = vsel %vm2546_vm9, %v2484_v28, %v14228_v17  ;;  %v14229_v5 = vld [vmem:[#allocation178_spill] sm:$0xff]  ;;  %v2295_v19 = vsel %vm13454_vm4, %v14232_v53, %v14231_v57  ;;  %v14238_v57 = vld [vmem:[#allocation100_spill] sm:$0xff] }
 0x447   :  { %6653 = vmatmul.msk.f32.gmra.mxu0 %vm2815_vm12, %v2743_v11  ;;  %v1931_v9 = vpop.permute.xlu0 %1930  ;;  %v2614_v63 = vsel %vm2611_vm8, %v2549_v61, %v9609_v42  ;;  %v14233_v28 = vld [vmem:[#allocation226_spill] sm:$0xff]  ;;  %v14234_v42 = vld [vmem:[#allocation288_spill] sm:$0xff] }
 0x448   :  { %1986 = vrot.lane.b32.xlu2 %v14227_v33, %s7126_s24  ;;  %v2679_v34 = vsel %vm2676_vm10, %v2614_v63, %v1931_v9  ;;  %v2357_v17 = vsel %vm13453_vm6, %v2295_v19, %v14233_v28  ;;  %v14235_v9 = vld [vmem:[#allocation361_spill] sm:$0xff] }
 0x449   :  { %2133 = vrot.lane.b32.xlu1 %v14229_v5, %s7125_s23  ;;  %v2420_v61 = vsel %vm2416_vm5, %v2357_v17, %v14234_v42  ;;  %v14239_v17 = vld [vmem:[#allocation33_spill] sm:$0xff] }
 0x44a   :  { %v2485_v63 = vsel %vm2481_vm7, %v2420_v61, %v14235_v9  ;;  %v14241_v9 = vld [vmem:[#allocation97_spill] sm:$0xff] }
 0x44b   :  { %2169 = vrot.lane.b32.xlu0 %v14230_v62, %s7125_s23  ;;  %v14236_v62 = vld [vmem:[#allocation228_spill] sm:$0xff] }
 0x44c   :  { %v2156_v48 = vpop.permute.xlu2 %2155  ;;  %v2114_v11 = vpop.permute.xlu1 %2113 }
 0x44d   :  { %v2744_v50 = vsel %vm2741_vm11, %v2679_v34, %v2114_v11  ;;  %v14237_v34 = vld [vmem:[#allocation423_spill] sm:$0xff] }
 0x44e   :  { %v2550_v11 = vsel %vm2546_vm9, %v2485_v63, %v14237_v34  ;;  %v14242_v34 = vld [vmem:[#allocation299_spill] sm:$0xff] }
 0x44f   :  { %6654 = vmatmul.msk.f32.gmra.mxu0 %vm2815_vm12, %v2744_v50  ;;  %v1933_v5 = vpop.permute.xlu0 %1932  ;;  %v2615_v53 = vsel %vm2611_vm8, %v2550_v11, %v9571_v26 }
 0x450   :  { %2199 = vrot.lane.b32.xlu2 %v14236_v62, %s7125_s23  ;;  %v2680_v19 = vsel %vm2676_vm10, %v2615_v53, %v1933_v5  ;;  %v14240_v62 = vld [vmem:[#allocation110_spill] sm:$0xff]  ;;  %v14243_v5 = vld [vmem:[#allocation363_spill] sm:$0xff] }
 0x451   :  { %2016 = vrot.lane.b32.xlu1 %v14238_v57, %s7126_s24  ;;  %v2296_v61 = vsel %vm13454_vm4, %v7203_v16, %v14240_v62  ;;  %v14244_v53 = vld [vmem:[#allocation106_spill] sm:$0xff]  ;;  %v14246_v16 = vld [vmem:[#allocation176_spill] sm:$0xff] }
 0x452   :  { %v2358_v63 = vsel %vm13453_vm6, %v2296_v61, %v14241_v9  ;;  %v14247_v9 = vld [vmem:[#allocation231_spill] sm:$0xff] }
 0x453   :  { %1952 = vrot.lane.b32.xlu0 %v14239_v17, %s7126_s24  ;;  %v2421_v11 = vsel %vm2416_vm5, %v2358_v63, %v14242_v34  ;;  %v14248_v34 = vld [vmem:[#allocation72_spill] sm:$0xff] }
 0x454   :  { %v9881_v50 = vpop.permute.xlu2 %1974  ;;  %v2116_v28 = vpop.permute.xlu1 %2115  ;;  %v2486_v57 = vsel %vm2481_vm7, %v2421_v11, %v14243_v5  ;;  %v2297_v11 = vsel %vm13454_vm4, %v7197_v13, %v14248_v34  ;;  %v14249_v5 = vld [vmem:[#allocation157_spill] sm:$0xff]  ;;  %v14254_v13 = vld [vmem:[#allocation179_spill] sm:$0xff] }
 0x455   :  { %v2745_v42 = vsel %vm2741_vm11, %v2680_v19, %v2116_v28  ;;  %v14245_v19 = vld [vmem:[#allocation413_spill] sm:$0xff] }
 0x456   :  { %v2551_v28 = vsel %vm2546_vm9, %v2486_v57, %v14245_v19  ;;  %v2315_v57 = vsel %vm13454_vm4, %v7458_v6, %v14249_v5  ;;  %v14251_v19 = vld [vmem:[#allocation242_spill] sm:$0xff]  ;;  %v14258_v5 = vld [vmem:[#allocation424_spill] sm:$0xff] }
 0x457   :  { %6655 = vmatmul.msk.f32.gmra.mxu0 %vm2815_vm12, %v2745_v42  ;;  %v1935_v26 = vpop.permute.xlu0 %1934  ;;  %v2616_v17 = vsel %vm2611_vm8, %v2551_v28, %v9613_v56  ;;  %v2377_v28 = vsel %vm13453_vm6, %v2315_v57, %v14251_v19 }
 0x458   :  { %2018 = vrot.lane.b32.xlu2 %v14244_v53, %s7126_s24  ;;  %v2681_v62 = vsel %vm2676_vm10, %v2616_v17, %v1935_v26  ;;  %v14250_v53 = vld [vmem:[#allocation70_spill] sm:$0xff] }
 0x459   :  { %2135 = vrot.lane.b32.xlu1 %v14246_v16, %s7125_s23  ;;  %v2359_v26 = vsel %vm13453_vm6, %v2297_v11, %v14250_v53  ;;  %v14252_v16 = vld [vmem:[#allocation301_spill] sm:$0xff]  ;;  %v14257_v11 = vld [vmem:[#allocation31_spill] sm:$0xff] }
 0x45a   :  { %v2422_v17 = vsel %vm2416_vm5, %v2359_v26, %v14252_v16 }
 0x45b   :  { %2201 = vrot.lane.b32.xlu0 %v14247_v9, %s7125_s23  ;;  %v14255_v9 = vld [vmem:[#allocation353_spill] sm:$0xff] }
 0x45c   :  { %v9905_v42 = vpop.permute.xlu2 %2123  ;;  %v2118_v61 = vpop.permute.xlu1 %2117  ;;  %v2487_v6 = vsel %vm2481_vm7, %v2422_v17, %v14255_v9 }
 0x45d   :  { %v2746_v63 = vsel %vm2741_vm11, %v2681_v62, %v2118_v61  ;;  %v14253_v62 = vld [vmem:[#allocation9_spill] sm:$0xff]  ;;  %v2552_v57 = vsel %vm2546_vm9, %v2487_v6, %v14258_v5  ;;  %v14261_v6 = vld [vmem:[#allocation104_spill] sm:$0xff] }
 0x45e   :  { %v2440_v61 = vsel %vm2416_vm5, %v2377_v28, %v14253_v62  ;;  %v2617_v19 = vsel %vm2611_vm8, %v2552_v57, %v9621_v8  ;;  %v14266_v57 = vld [vmem:[#allocation257_spill] sm:$0xff] }
 0x45f   :  { %6656 = vmatmul.msk.f32.gmra.mxu0 %vm2815_vm12, %v2746_v63  ;;  %v2120_v56 = vpop.permute.xlu0 %2119  ;;  %v14256_v63 = vld [vmem:[#allocation371_spill] sm:$0xff]  ;;  %v2682_v17 = vsel %vm2676_vm10, %v2617_v19, %v9833_v36 }
 0x460   :  { %2137 = vrot.lane.b32.xlu2 %v14254_v13, %s7125_s23  ;;  %v2505_v34 = vsel %vm2481_vm7, %v2440_v61, %v14256_v63  ;;  %v14259_v61 = vld [vmem:[#allocation62_spill] sm:$0xff]  ;;  %v14260_v13 = vld [vmem:[#allocation80_spill] sm:$0xff]  ;;  %v2747_v9 = vsel %vm2741_vm11, %v2682_v17, %v2120_v56  ;;  %v14262_v63 = vld [vmem:[#allocation291_spill] sm:$0xff] }
 0x461   :  { %1954 = vrot.lane.b32.xlu1 %v14257_v11, %s7126_s24  ;;  %v2570_v53 = vsel %vm2546_vm9, %v2505_v34, %v9433_v58  ;;  %v2298_v58 = vsel %vm13454_vm4, %v7226_v27, %v14260_v13  ;;  %v14263_v11 = vld [vmem:[#allocation138_spill] sm:$0xff]  ;;  %v14264_v27 = vld [vmem:[#allocation364_spill] sm:$0xff] }
 0x462   :  { %v2635_v28 = vsel %vm2611_vm8, %v2570_v53, %v9693_v41  ;;  %v2360_v41 = vsel %vm13453_vm6, %v2298_v58, %v14261_v6  ;;  %v2316_v5 = vsel %vm13454_vm4, %v7472_v2, %v14263_v11  ;;  %v14272_v11 = vld [vmem:[#allocation302_spill] sm:$0xff] }
 0x463   :  { %1988 = vrot.lane.b32.xlu0 %v14259_v61, %s7126_s24  ;;  %v2423_v34 = vsel %vm2416_vm5, %v2360_v41, %v14262_v63  ;;  %v2378_v53 = vsel %vm13453_vm6, %v2316_v5, %v14266_v57  ;;  %v14269_v61 = vld [vmem:[#allocation154_spill] sm:$0xff] }
 0x464   :  { %v9938_v26 = vpop.permute.xlu2 %1942  ;;  %v1973_v16 = vpop.permute.xlu1 %1972  ;;  %v2488_v56 = vsel %vm2481_vm7, %v2423_v34, %v14264_v27  ;;  %v14271_v34 = vld [vmem:[#allocation233_spill] sm:$0xff] }
 0x465   :  { %v2700_v62 = vsel %vm2676_vm10, %v2635_v28, %v1973_v16  ;;  %v2553_v19 = vsel %vm2546_vm9, %v2488_v56, %v9360_v45  ;;  %v14267_v28 = vld [vmem:[#allocation211_spill] sm:$0xff]  ;;  %v14268_v16 = vld [vmem:[#allocation309_spill] sm:$0xff]  ;;  %v14276_v56 = vld [vmem:[#allocation416_spill] sm:$0xff] }
 0x466   :  { %v2765_v8 = vsel %vm2741_vm11, %v2700_v62, %v2156_v48  ;;  %v14265_v48 = vld [vmem:[#allocation114_spill] sm:$0xff]  ;;  %v2441_v17 = vsel %vm2416_vm5, %v2378_v53, %v14268_v16  ;;  %v2618_v2 = vsel %vm2611_vm8, %v2553_v19, %v9583_v4  ;;  %v14270_v4 = vld [vmem:[#allocation113_spill] sm:$0xff] }
 0x467   :  { %6657 = vmatmul.msk.f32.gmra.mxu0 %vm2815_vm12, %v2747_v9  ;;  %6675 = vmatmul.msk.f32.vlgmr.msra.gmra.mxu2 %vm2815_vm12, %v2765_v8  ;;  %v1939_v36 = vpop.permute.xlu0 %1938  ;;  %v2506_v13 = vsel %vm2481_vm7, %v2441_v17, %v14269_v61  ;;  %v2299_v41 = vsel %vm13454_vm4, %v7219_v24, %v14270_v4  ;;  %v14274_v24 = vld [vmem:[#allocation366_spill] sm:$0xff]  ;;  %v14278_v17 = vld [vmem:[#allocation159_spill] sm:$0xff] }
 0x468   :  { %2020 = vrot.lane.b32.xlu2 %v14265_v48, %s7126_s24  ;;  %v2683_v58 = vsel %vm2676_vm10, %v2618_v2, %v1939_v36  ;;  %v2571_v45 = vsel %vm2546_vm9, %v2506_v13, %v9441_v60  ;;  %v2361_v60 = vsel %vm13453_vm6, %v2299_v41, %v14271_v34  ;;  %v14277_v16 = vld [vmem:[#allocation66_spill] sm:$0xff]  ;;  %v2317_v2 = vsel %vm13454_vm4, %v7478_v47, %v14278_v17  ;;  %v14279_v13 = vld [vmem:[#allocation259_spill] sm:$0xff]  ;;  %v14285_v34 = vld [vmem:[#allocation209_spill] sm:$0xff] }
 0x469   :  { %2171 = vrot.lane.b32.xlu1 %v14267_v28, %s7125_s23  ;;  %v2636_v6 = vsel %vm2611_vm8, %v2571_v45, %v9655_v39  ;;  %v2424_v5 = vsel %vm2416_vm5, %v2361_v60, %v14272_v11  ;;  %v14273_v39 = vld [vmem:[#allocation184_spill] sm:$0xff]  ;;  %v14282_v4 = vld [vmem:[#allocation383_spill] sm:$0xff] }
 0x46a   :  { %v2701_v63 = vsel %vm2676_vm10, %v2636_v6, %v9881_v50  ;;  %v2489_v27 = vsel %vm2481_vm7, %v2424_v5, %v14274_v24  ;;  %v14275_v50 = vld [vmem:[#allocation35_spill] sm:$0xff]  ;;  %v14286_v60 = vld [vmem:[#allocation304_spill] sm:$0xff] }
 0x46b   :  { %2203 = vrot.lane.b32.xlu0 %v14083_v20, %s7125_s23  ;;  %v2554_v48 = vsel %vm2546_vm9, %v2489_v27, %v14276_v56  ;;  %v14283_v47 = vld [vmem:[#allocation111_spill] sm:$0xff]  ;;  %v14287_v5 = vld [vmem:[#allocation356_spill] sm:$0xff] }
 0x46c   :  { %v9977_v62 = vpop.permute.xlu2 %2161  ;;  %v2122_v9 = vpop.permute.xlu1 %2121  ;;  %v2619_v53 = vsel %vm2611_vm8, %v2554_v48, %v9625_v30  ;;  %v14280_v30 = vld [vmem:[#allocation319_spill] sm:$0xff] }
 0x46d   :  { %v2748_v8 = vsel %vm2741_vm11, %v2683_v58, %v2122_v9  ;;  %v2379_v58 = vsel %vm13453_vm6, %v2317_v2, %v14279_v13  ;;  %v14291_v2 = vld [vmem:[#allocation321_spill] sm:$0xff]  ;;  %v14293_v13 = vld [vmem:[#allocation374_spill] sm:$0xff] }
 0x46e   :  { %v2442_v45 = vsel %vm2416_vm5, %v2379_v58, %v14280_v30  ;;  %v14294_v58 = vld [vmem:[#allocation38_spill] sm:$0xff] }
 0x46f   :  { %6658 = vmatmul.msk.f32.gmra.mxu0 %vm2815_vm12, %v2748_v8  ;;  %v2158_v36 = vpop.permute.xlu0 %2157  ;;  %v14281_v8 = vld [vmem:[#allocation120_spill] sm:$0xff]  ;;  %v2507_v41 = vsel %vm2481_vm7, %v2442_v45, %v14282_v4  ;;  %v14296_v4 = vld [vmem:[#allocation89_spill] sm:$0xff] }
 0x470   :  { %v2766_v20 = vsel %vm2741_vm11, %v2701_v63, %v2158_v36  ;;  %2139 = vrot.lane.b32.xlu2 %v14273_v39, %s7125_s23  ;;  %v2300_v6 = vsel %vm13454_vm4, %v7272_v46, %v14281_v8  ;;  %v2572_v36 = vsel %vm2546_vm9, %v2507_v41, %v9394_v31  ;;  %v2301_v41 = vsel %vm13454_vm4, %v7266_v44, %v14296_v4  ;;  %v14301_v44 = vld [vmem:[#allocation117_spill] sm:$0xff] }
 0x471   :  { %6676 = vmatmul.msk.f32.gmra.mxu2 %vm2815_vm12, %v2766_v20  ;;  %1956 = vrot.lane.b32.xlu1 %v14275_v50, %s7126_s24  ;;  %v2637_v46 = vsel %vm2611_vm8, %v2572_v36, %v9697_v59  ;;  %v14288_v50 = vld [vmem:[#allocation230_spill] sm:$0xff]  ;;  %v14289_v59 = vld [vmem:[#allocation163_spill] sm:$0xff]  ;;  %v14313_v4 = vld [vmem:[#allocation69_spill] sm:$0xff] }
 0x473   :  { %1990 = vrot.lane.b32.xlu0 %v14277_v16, %s7126_s24  ;;  %v14290_v16 = vld [vmem:[#allocation248_spill] sm:$0xff] }
 0x474   :  { %v10009_v57 = vpop.permute.xlu2 %1980  ;;  %v1941_v19 = vpop.permute.xlu1 %1940 }
 0x475   :  { %v2684_v28 = vsel %vm2676_vm10, %v2619_v53, %v1941_v19  ;;  %v2318_v53 = vsel %vm13454_vm4, %v7527_v18, %v14289_v59 }
 0x476   :  { %v2749_v61 = vsel %vm2741_vm11, %v2684_v28, %v9905_v42  ;;  %v14284_v42 = vld [vmem:[#allocation220_spill] sm:$0xff]  ;;  %v2380_v17 = vsel %vm13453_vm6, %v2318_v53, %v14290_v16 }
 0x477   :  { %6659 = vmatmul.msk.f32.gmra.mxu0 %vm2815_vm12, %v2749_v61  ;;  %v1977_v9 = vpop.permute.xlu0 %1976  ;;  %v2362_v63 = vsel %vm13453_vm6, %v2300_v6, %v14284_v42  ;;  %v2443_v61 = vsel %vm2416_vm5, %v2380_v17, %v14291_v2  ;;  %v14295_v6 = vld [vmem:[#allocation64_spill] sm:$0xff]  ;;  %v14297_v42 = vld [vmem:[#allocation235_spill] sm:$0xff] }
 0x478   :  { %2022 = vrot.lane.b32.xlu2 %v14283_v47, %s7126_s24  ;;  %v2425_v20 = vsel %vm2416_vm5, %v2362_v63, %v14286_v60  ;;  %v2702_v24 = vsel %vm2676_vm10, %v2637_v46, %v1977_v9  ;;  %v2508_v18 = vsel %vm2481_vm7, %v2443_v61, %v14293_v13  ;;  %v14308_v61 = vld [vmem:[#allocation264_spill] sm:$0xff]  ;;  %v14309_v13 = vld [vmem:[#allocation337_spill] sm:$0xff] }
 0x479   :  { %2173 = vrot.lane.b32.xlu1 %v14285_v34, %s7125_s23  ;;  %v2490_v39 = vsel %vm2481_vm7, %v2425_v20, %v14287_v5  ;;  %v14299_v34 = vld [vmem:[#allocation144_spill] sm:$0xff]  ;;  %v14300_v20 = vld [vmem:[#allocation367_spill] sm:$0xff] }
 0x47a   :  { %v2555_v31 = vsel %vm2546_vm9, %v2490_v39, %v14288_v50  ;;  %v2319_v60 = vsel %vm13454_vm4, %v7515_v3, %v14299_v34 }
 0x47b   :  { %2205 = vrot.lane.b32.xlu0 %v14086_v23, %s7125_s23  ;;  %v2620_v48 = vsel %vm2611_vm8, %v2555_v31, %v9633_v25  ;;  %v14292_v25 = vld [vmem:[#allocation182_spill] sm:$0xff] }
 0x47c   :  { %v10043_v11 = vpop.permute.xlu2 %2193  ;;  %v2160_v27 = vpop.permute.xlu1 %2159  ;;  %v2685_v19 = vsel %vm2676_vm10, %v2620_v48, %v9938_v26  ;;  %v2573_v26 = vsel %vm2546_vm9, %v2508_v18, %v9445_v15  ;;  %v2363_v15 = vsel %vm13453_vm6, %v2301_v41, %v14297_v42  ;;  %v14314_v41 = vld [vmem:[#allocation124_spill] sm:$0xff] }
 0x47d   :  { %v2767_v56 = vsel %vm2741_vm11, %v2702_v24, %v2160_v27  ;;  %v2638_v30 = vsel %vm2611_vm8, %v2573_v26, %v9705_v29  ;;  %v14298_v29 = vld [vmem:[#allocation294_spill] sm:$0xff]  ;;  %v14303_v24 = vld [vmem:[#allocation212_spill] sm:$0xff]  ;;  %v14312_v26 = vld [vmem:[#allocation37_spill] sm:$0xff] }
 0x47e   :  { %6677 = vmatmul.msk.f32.gmra.mxu2 %vm2815_vm12, %v2767_v56  ;;  %v2426_v36 = vsel %vm2416_vm5, %v2363_v15, %v14298_v29  ;;  %v14304_v27 = vld [vmem:[#allocation312_spill] sm:$0xff]  ;;  %v14315_v15 = vld [vmem:[#allocation119_spill] sm:$0xff] }
 0x47f   :  { %v2126_v28 = vpop.permute.xlu0 %2125  ;;  %v2491_v46 = vsel %vm2481_vm7, %v2426_v36, %v14300_v20  ;;  %v14305_v56 = vld [vmem:[#allocation384_spill] sm:$0xff]  ;;  %v14317_v36 = vld [vmem:[#allocation165_spill] sm:$0xff] }
 0x480   :  { %v2750_v23 = vsel %vm2741_vm11, %v2685_v19, %v2126_v28  ;;  %2141 = vrot.lane.b32.xlu2 %v14292_v25, %s7125_s23  ;;  %v2556_v39 = vsel %vm2546_vm9, %v2491_v46, %v9372_v12  ;;  %v14306_v19 = vld [vmem:[#allocation236_spill] sm:$0xff]  ;;  %v2320_v34 = vsel %vm13454_vm4, %v7545_v37, %v14317_v36 }
 0x481   :  { %6660 = vmatmul.msk.f32.gmra.mxu0 %vm2815_vm12, %v2750_v23  ;;  %1958 = vrot.lane.b32.xlu1 %v14294_v58, %s7126_s24  ;;  %v2621_v3 = vsel %vm2611_vm8, %v2556_v39, %v9595_v32  ;;  %v14307_v32 = vld [vmem:[#allocation193_spill] sm:$0xff]  ;;  %v14323_v39 = vld [vmem:[#allocation322_spill] sm:$0xff]  ;;  %v14342_v36 = vld [vmem:[#allocation324_spill] sm:$0xff] }
 0x482   :  { %v2333_v17 = vsel %vm13454_vm4, %v13704_v40, %v14307_v32  ;;  %v14311_v58 = vld [vmem:[#allocation401_spill] sm:$0xff] }
 0x483   :  { %1992 = vrot.lane.b32.xlu0 %v14295_v6, %s7126_s24 }
 0x484   :  { %v10075_v9 = vpop.permute.xlu2 %1982  ;;  %v1979_v45 = vpop.permute.xlu1 %1978 }
 0x485   :  { %v2703_v8 = vsel %vm2676_vm10, %v2638_v30, %v1979_v45 }
 0x486   :  { %v2768_v47 = vsel %vm2741_vm11, %v2703_v8, %v9977_v62  ;;  %v14302_v62 = vld [vmem:[#allocation260_spill] sm:$0xff] }
 0x487   :  { %6678 = vmatmul.msk.f32.gmra.mxu2 %vm2815_vm12, %v2768_v47  ;;  %v1945_v63 = vpop.permute.xlu0 %1944  ;;  %v2381_v5 = vsel %vm13453_vm6, %v2319_v60, %v14302_v62  ;;  %v2302_v47 = vsel %vm13454_vm4, %v7294_v55, %v14314_v41  ;;  %v14318_v60 = vld [vmem:[#allocation369_spill] sm:$0xff]  ;;  %v14319_v55 = vld [vmem:[#allocation107_spill] sm:$0xff] }
 0x488   :  { %2024 = vrot.lane.b32.xlu2 %v14301_v44, %s7126_s24  ;;  %v2444_v50 = vsel %vm2416_vm5, %v2381_v5, %v14304_v27  ;;  %v2686_v59 = vsel %vm2676_vm10, %v2621_v3, %v1945_v63  ;;  %v14321_v44 = vld [vmem:[#allocation419_spill] sm:$0xff]  ;;  %v14336_v41 = vld [vmem:[#allocation169_spill] sm:$0xff] }
 0x489   :  { %2175 = vrot.lane.b32.xlu1 %v14303_v24, %s7125_s23  ;;  %v2509_v48 = vsel %vm2481_vm7, %v2444_v50, %v14305_v56  ;;  %v14322_v5 = vld [vmem:[#allocation215_spill] sm:$0xff]  ;;  %v14324_v50 = vld [vmem:[#allocation386_spill] sm:$0xff] }
 0x48a   :  { %v2574_v12 = vsel %vm2546_vm9, %v2509_v48, %v9453_v1  ;;  %v2395_v1 = vsel %vm13453_vm6, %v2333_v17, %v14308_v61  ;;  %v14327_v17 = vld [vmem:[#allocation275_spill] sm:$0xff] }
 0x48b   :  { %2207 = vrot.lane.b32.xlu0 %v14306_v19, %s7125_s23  ;;  %v2639_v16 = vsel %vm2611_vm8, %v2574_v12, %v9667_v52  ;;  %v2460_v18 = vsel %vm2416_vm5, %v2395_v1, %v14309_v13  ;;  %v14310_v52 = vld [vmem:[#allocation185_spill] sm:$0xff]  ;;  %v14330_v1 = vld [vmem:[#allocation391_spill] sm:$0xff] }
 0x48c   :  { %v10109_v31 = vpop.permute.xlu2 %2195  ;;  %v2128_v53 = vpop.permute.xlu1 %2127  ;;  %v2704_v23 = vsel %vm2676_vm10, %v2639_v16, %v10009_v57  ;;  %v2525_v40 = vsel %vm2481_vm7, %v2460_v18, %v14311_v58 }
 0x48d   :  { %v2751_v28 = vsel %vm2741_vm11, %v2686_v59, %v2128_v53  ;;  %v2590_v57 = vsel %vm2546_vm9, %v2525_v40, %v9475_v38  ;;  %v2364_v38 = vsel %vm13453_vm6, %v2302_v47, %v14315_v15  ;;  %v14325_v53 = vld [vmem:[#allocation122_spill] sm:$0xff]  ;;  %v2321_v47 = vsel %vm13454_vm4, %v7542_v51, %v14336_v41 }
 0x48e   :  { %6661 = vmatmul.msk.f32.gmra.mxu0 %vm2815_vm12, %v2751_v28  ;;  %v2655_v45 = vsel %vm2611_vm8, %v2590_v57, %v9727_v0  ;;  %v14316_v0 = vld [vmem:[#allocation305_spill] sm:$0xff]  ;;  %v14332_v40 = vld [vmem:[#allocation190_spill] sm:$0xff] }
 0x48f   :  { %v2164_v2 = vpop.permute.xlu0 %2163  ;;  %v2427_v29 = vsel %vm2416_vm5, %v2364_v38, %v14316_v0 }
 0x490   :  { %v2769_v25 = vsel %vm2741_vm11, %v2704_v23, %v2164_v2  ;;  %2143 = vrot.lane.b32.xlu2 %v14310_v52, %s7125_s23  ;;  %v2492_v20 = vsel %vm2481_vm7, %v2427_v29, %v14318_v60  ;;  %v14328_v2 = vld [vmem:[#allocation339_spill] sm:$0xff] }
 0x491   :  { %6679 = vmatmul.msk.f32.gmra.mxu2 %vm2815_vm12, %v2769_v25  ;;  %1960 = vrot.lane.b32.xlu1 %v14312_v26, %s7126_s24  ;;  %v2557_v62 = vsel %vm2546_vm9, %v2492_v20, %v14321_v44  ;;  %v14331_v25 = vld [vmem:[#allocation234_spill] sm:$0xff]  ;;  %v14333_v26 = vld [vmem:[#allocation131_spill] sm:$0xff] }
 0x492   :  { %v2622_v37 = vsel %vm2611_vm8, %v2557_v62, %v9637_v7  ;;  %v14326_v7 = vld [vmem:[#allocation174_spill] sm:$0xff]  ;;  %v2303_v57 = vsel %vm13454_vm4, %v7291_v54, %v14333_v26  ;;  %v14341_v29 = vld [vmem:[#allocation75_spill] sm:$0xff]  ;;  %v14359_v26 = vld [vmem:[#allocation297_spill] sm:$0xff] }
 0x493   :  { %1994 = vrot.lane.b32.xlu0 %v14313_v4, %s7126_s24  ;;  %v2334_v28 = vsel %vm13454_vm4, %v13710_v35, %v14326_v7  ;;  %v14338_v54 = vld [vmem:[#allocation214_spill] sm:$0xff]  ;;  %v14343_v20 = vld [vmem:[#allocation379_spill] sm:$0xff]  ;;  %v14350_v7 = vld [vmem:[#allocation237_spill] sm:$0xff] }
 0x494   :  { %v10141_v30 = vpop.permute.xlu2 %1984  ;;  %v2011_v8 = vpop.permute.xlu1 %2010 }
 0x495   :  { %v2720_v6 = vsel %vm2676_vm10, %v2655_v45, %v2011_v8  ;;  %v14334_v8 = vld [vmem:[#allocation95_spill] sm:$0xff] }
 0x496   :  { %v2785_v42 = vsel %vm2741_vm11, %v2720_v6, %v10043_v11  ;;  %v14320_v11 = vld [vmem:[#allocation262_spill] sm:$0xff] }
 0x497   :  { %6695 = vmatmul.msk.f32.vlgmr.msra.gmra.mxu3 %vm2815_vm12, %v2785_v42  ;;  %v1947_v63 = vpop.permute.xlu0 %1946  ;;  %v2382_v46 = vsel %vm13453_vm6, %v2320_v34, %v14320_v11  ;;  %v14337_v42 = vld [vmem:[#allocation359_spill] sm:$0xff] }
 0x498   :  { %1843 = vrot.lane.b32.xlu2 %v14319_v55, %s7124_s22  ;;  %v2445_v24 = vsel %vm2416_vm5, %v2382_v46, %v14323_v39  ;;  %v2687_v56 = vsel %vm2676_vm10, %v2622_v37, %v1947_v63  ;;  %v14340_v63 = vld [vmem:[#allocation426_spill] sm:$0xff] }
 0x499   :  { %2177 = vrot.lane.b32.xlu1 %v14322_v5, %s7125_s23  ;;  %v2510_v3 = vsel %vm2481_vm7, %v2445_v24, %v14324_v50  ;;  %v14344_v5 = vld [vmem:[#allocation112_spill] sm:$0xff]  ;;  %v14345_v24 = vld [vmem:[#allocation47_spill] sm:$0xff] }
 0x49a   :  { %v2575_v59 = vsel %vm2546_vm9, %v2510_v3, %v9411_v21  ;;  %v2396_v21 = vsel %vm13453_vm6, %v2334_v28, %v14327_v17  ;;  %v14347_v50 = vld [vmem:[#allocation76_spill] sm:$0xff]  ;;  %v14351_v28 = vld [vmem:[#allocation402_spill] sm:$0xff] }
 0x49b   :  { %2026 = vrot.lane.b32.xlu0 %v14325_v53, %s7126_s24  ;;  %v2640_v19 = vsel %vm2611_vm8, %v2575_v59, %v9709_v49  ;;  %v2461_v61 = vsel %vm2416_vm5, %v2396_v21, %v14328_v2  ;;  %v14329_v49 = vld [vmem:[#allocation39_spill] sm:$0xff]  ;;  %v14348_v59 = vld [vmem:[#allocation277_spill] sm:$0xff] }
 0x49c   :  { %v10175_v27 = vpop.permute.xlu2 %2197  ;;  %v2130_v48 = vpop.permute.xlu1 %2129  ;;  %v2705_v16 = vsel %vm2676_vm10, %v2640_v19, %v10075_v9  ;;  %v2526_v35 = vsel %vm2481_vm7, %v2461_v61, %v14330_v1  ;;  %v14355_v1 = vld [vmem:[#allocation41_spill] sm:$0xff] }
 0x49d   :  { %v2752_v12 = vsel %vm2741_vm11, %v2687_v56, %v2130_v48  ;;  %v2591_v9 = vsel %vm2546_vm9, %v2526_v35, %v9517_v10  ;;  %v2365_v10 = vsel %vm13453_vm6, %v2303_v57, %v14334_v8  ;;  %v14356_v35 = vld [vmem:[#allocation98_spill] sm:$0xff]  ;;  %v14361_v8 = vld [vmem:[#allocation44_spill] sm:$0xff] }
 0x49e   :  { %6662 = vmatmul.msk.f32.gmra.mxu0 %vm2815_vm12, %v2752_v12  ;;  %v2656_v18 = vsel %vm2611_vm8, %v2591_v9, %v9780_v43  ;;  %v14335_v43 = vld [vmem:[#allocation307_spill] sm:$0xff]  ;;  %v14349_v12 = vld [vmem:[#allocation329_spill] sm:$0xff] }
 0x49f   :  { %v2166_v32 = vpop.permute.xlu0 %2165  ;;  %v2428_v4 = vsel %vm2416_vm5, %v2365_v10, %v14335_v43 }
 0x4a0   :  { %v2770_v23 = vsel %vm2741_vm11, %v2705_v16, %v2166_v32  ;;  %1962 = vrot.lane.b32.xlu2 %v14329_v49, %s7126_s24  ;;  %v2493_v15 = vsel %vm2481_vm7, %v2428_v4, %v14337_v42  ;;  %v14352_v32 = vld [vmem:[#allocation121_spill] sm:$0xff]  ;;  %v14363_v4 = vld [vmem:[#allocation188_spill] sm:$0xff] }
 0x4a1   :  { %6680 = vmatmul.msk.f32.gmra.mxu2 %vm2815_vm12, %v2770_v23  ;;  %2209 = vrot.lane.b32.xlu1 %v14331_v25, %s7125_s23  ;;  %v2558_v0 = vsel %vm2546_vm9, %v2493_v15, %v14340_v63  ;;  %v14354_v23 = vld [vmem:[#allocation54_spill] sm:$0xff]  ;;  %v14357_v25 = vld [vmem:[#allocation17_spill] sm:$0xff] }
 0x4a2   :  { %v2623_v51 = vsel %vm2611_vm8, %v2558_v0, %v9645_v22  ;;  %v14346_v22 = vld [vmem:[#allocation195_spill] sm:$0xff]  ;;  %v2304_v9 = vsel %vm13454_vm4, %v14357_v25, %v14356_v35  ;;  %v14366_v15 = vld [vmem:[#allocation42_spill] sm:$0xff]  ;;  %v14385_v25 = vld [vmem:[#allocation389_spill] sm:$0xff] }
 0x4a3   :  { %2145 = vrot.lane.b32.xlu0 %v14332_v40, %s7125_s23  ;;  %v2335_v3 = vsel %vm13454_vm4, %v14347_v50, %v14346_v22 }
 0x4a4   :  { %v10207_v13 = vpop.permute.xlu2 %1986  ;;  %v2013_v52 = vpop.permute.xlu1 %2012 }
 0x4a5   :  { %v2721_v58 = vsel %vm2676_vm10, %v2656_v18, %v2013_v52  ;;  %v14358_v52 = vld [vmem:[#allocation125_spill] sm:$0xff] }
 0x4a6   :  { %v2786_v45 = vsel %vm2741_vm11, %v2721_v58, %v10109_v31  ;;  %v14339_v31 = vld [vmem:[#allocation252_spill] sm:$0xff]  ;;  %v2366_v58 = vsel %vm13453_vm6, %v2304_v9, %v14358_v52 }
 0x4a7   :  { %6696 = vmatmul.msk.f32.gmra.mxu3 %vm2815_vm12, %v2786_v45  ;;  %v1949_v6 = vpop.permute.xlu0 %1948  ;;  %v2383_v38 = vsel %vm13453_vm6, %v2321_v47, %v14339_v31  ;;  %v2429_v57 = vsel %vm2416_vm5, %v2366_v58, %v14359_v26  ;;  %v14360_v45 = vld [vmem:[#allocation150_spill] sm:$0xff]  ;;  %v14365_v47 = vld [vmem:[#allocation428_spill] sm:$0xff] }
 0x4a8   :  { %2179 = vrot.lane.b32.xlu2 %v14338_v54, %s7125_s23  ;;  %v2446_v34 = vsel %vm2416_vm5, %v2383_v38, %v14342_v36  ;;  %v2688_v46 = vsel %vm2676_vm10, %v2623_v51, %v1949_v6  ;;  %v2322_v10 = vsel %vm13454_vm4, %v14361_v8, %v14360_v45  ;;  %v14362_v6 = vld [vmem:[#allocation370_spill] sm:$0xff]  ;;  %v14367_v54 = vld [vmem:[#allocation317_spill] sm:$0xff]  ;;  %v14387_v26 = vld [vmem:[#allocation436_spill] sm:$0xff] }
 0x4a9   :  { %1996 = vrot.lane.b32.xlu1 %v14341_v29, %s7126_s24  ;;  %v2511_v11 = vsel %vm2481_vm7, %v2446_v34, %v14343_v20  ;;  %v2494_v43 = vsel %vm2481_vm7, %v2429_v57, %v14362_v6  ;;  %v14368_v38 = vld [vmem:[#allocation469_spill] sm:$0xff]  ;;  %v14369_v29 = vld [vmem:[#allocation387_spill] sm:$0xff]  ;;  %v14390_v6 = vld [vmem:[#allocation16_spill] sm:$0xff] }
 0x4aa   :  { %v2576_v62 = vsel %vm2546_vm9, %v2511_v11, %v9457_v14  ;;  %v2397_v14 = vsel %vm13453_vm6, %v2335_v3, %v14348_v59  ;;  %v2559_v42 = vsel %vm2546_vm9, %v2494_v43, %v14365_v47  ;;  %v14370_v20 = vld [vmem:[#allocation441_spill] sm:$0xff]  ;;  %v14388_v8 = vld [vmem:[#allocation115_spill] sm:$0xff] }
 0x4ab   :  { %1845 = vrot.lane.b32.xlu0 %v14344_v5, %s7124_s22  ;;  %v2641_v37 = vsel %vm2611_vm8, %v2576_v62, %v14345_v24  ;;  %v2462_v19 = vsel %vm2416_vm5, %v2397_v14, %v14349_v12  ;;  %v2624_v63 = vsel %vm2611_vm8, %v2559_v42, %v14368_v38  ;;  %v14372_v62 = vld [vmem:[#allocation14_spill] sm:$0xff]  ;;  %v14373_v24 = vld [vmem:[#allocation199_spill] sm:$0xff] }
 0x4ac   :  { %v10241_v60 = vpop.permute.xlu2 %2199  ;;  %v2132_v44 = vpop.permute.xlu1 %2131  ;;  %v2706_v56 = vsel %vm2676_vm10, %v2641_v37, %v10141_v30  ;;  %v2527_v16 = vsel %vm2481_vm7, %v2462_v19, %v14351_v28  ;;  %v14353_v30 = vld [vmem:[#allocation454_spill] sm:$0xff]  ;;  %v14374_v37 = vld [vmem:[#allocation85_spill] sm:$0xff]  ;;  %v14376_v14 = vld [vmem:[#allocation171_spill] sm:$0xff] }
 0x4ad   :  { %v2753_v39 = vsel %vm2741_vm11, %v2688_v46, %v2132_v44  ;;  %v2592_v17 = vsel %vm2546_vm9, %v2527_v16, %v14353_v30  ;;  %v14371_v46 = vld [vmem:[#allocation196_spill] sm:$0xff]  ;;  %v2336_v22 = vsel %vm13454_vm4, %v14374_v37, %v14373_v24  ;;  %v14380_v16 = vld [vmem:[#allocation265_spill] sm:$0xff]  ;;  %v14400_v24 = vld [vmem:[#allocation342_spill] sm:$0xff] }
 0x4ae   :  { %6663 = vmatmul.msk.f32.gmra.mxu0 %vm2815_vm12, %v2753_v39  ;;  %v2657_v2 = vsel %vm2611_vm8, %v2592_v17, %v14354_v23  ;;  %v14378_v19 = vld [vmem:[#allocation340_spill] sm:$0xff]  ;;  %v14382_v23 = vld [vmem:[#allocation73_spill] sm:$0xff] }
 0x4af   :  { %v2168_v48 = vpop.permute.xlu0 %2167  ;;  %v14379_v28 = vld [vmem:[#allocation216_spill] sm:$0xff] }
 0x4b0   :  { %v2771_v53 = vsel %vm2741_vm11, %v2706_v56, %v2168_v48  ;;  %2211 = vrot.lane.b32.xlu2 %v14350_v7, %s7125_s23  ;;  %v14375_v56 = vld [vmem:[#allocation267_spill] sm:$0xff]  ;;  %v14381_v30 = vld [vmem:[#allocation404_spill] sm:$0xff] }
 0x4b1   :  { %6681 = vmatmul.msk.f32.gmra.mxu2 %vm2815_vm12, %v2771_v53  ;;  %2028 = vrot.lane.b32.xlu1 %v14352_v32, %s7126_s24  ;;  %v2398_v48 = vsel %vm13453_vm6, %v2336_v22, %v14375_v56  ;;  %v14377_v53 = vld [vmem:[#allocation46_spill] sm:$0xff]  ;;  %v14401_v22 = vld [vmem:[#allocation11_spill] sm:$0xff] }
 0x4b2   :  { %v2323_v12 = vsel %vm13454_vm4, %v14377_v53, %v14376_v14  ;;  %v2463_v7 = vsel %vm2416_vm5, %v2398_v48, %v14378_v19  ;;  %v14402_v48 = vld [vmem:[#allocation394_spill] sm:$0xff] }
 0x4b3   :  { %1964 = vrot.lane.b32.xlu0 %v14355_v1, %s7126_s24  ;;  %v2385_v32 = vsel %vm13453_vm6, %v2323_v12, %v14380_v16  ;;  %v2528_v17 = vsel %vm2481_vm7, %v2463_v7, %v14381_v30  ;;  %v14403_v12 = vld [vmem:[#allocation455_spill] sm:$0xff]  ;;  %v14404_v7 = vld [vmem:[#allocation40_spill] sm:$0xff] }
 0x4b4   :  { %v10273_v21 = vpop.permute.xlu2 %2018  ;;  %v2015_v61 = vpop.permute.xlu1 %2014  ;;  %v14405_v16 = vld [vmem:[#allocation172_spill] sm:$0xff] }
 0x4b5   :  { %v2722_v49 = vsel %vm2676_vm10, %v2657_v2, %v2015_v61  ;;  %v14383_v2 = vld [vmem:[#allocation325_spill] sm:$0xff] }
 0x4b6   :  { %v2787_v18 = vsel %vm2741_vm11, %v2722_v49, %v10175_v27  ;;  %v14364_v27 = vld [vmem:[#allocation263_spill] sm:$0xff]  ;;  %v2448_v61 = vsel %vm2416_vm5, %v2385_v32, %v14383_v2  ;;  %v14384_v49 = vld [vmem:[#allocation445_spill] sm:$0xff] }
 0x4b7   :  { %6697 = vmatmul.msk.f32.gmra.mxu3 %vm2815_vm12, %v2787_v18  ;;  %v1951_v40 = vpop.permute.xlu0 %1950  ;;  %v2384_v41 = vsel %vm13453_vm6, %v2322_v10, %v14364_v27  ;;  %v2593_v1 = vsel %vm2546_vm9, %v2528_v17, %v14384_v49  ;;  %v2513_v9 = vsel %vm2481_vm7, %v2448_v61, %v14385_v25  ;;  %v14386_v18 = vld [vmem:[#allocation20_spill] sm:$0xff]  ;;  %v14389_v10 = vld [vmem:[#allocation133_spill] sm:$0xff]  ;;  %v14406_v2 = vld [vmem:[#allocation139_spill] sm:$0xff] }
 0x4b8   :  { %2147 = vrot.lane.b32.xlu2 %v14363_v4, %s7125_s23  ;;  %v2447_v31 = vsel %vm2416_vm5, %v2384_v41, %v14367_v54  ;;  %v2689_v34 = vsel %vm2676_vm10, %v2624_v63, %v1951_v40  ;;  %v2658_v52 = vsel %vm2611_vm8, %v2593_v1, %v14386_v18  ;;  %v2578_v57 = vsel %vm2546_vm9, %v2513_v9, %v14387_v26  ;;  %v14391_v41 = vld [vmem:[#allocation243_spill] sm:$0xff]  ;;  %v14392_v54 = vld [vmem:[#allocation308_spill] sm:$0xff]  ;;  %v14407_v61 = vld [vmem:[#allocation22_spill] sm:$0xff] }
 0x4b9   :  { %1968 = vrot.lane.b32.xlu1 %v14366_v15, %s7126_s24  ;;  %v2512_v36 = vsel %vm2481_vm7, %v2447_v31, %v14369_v29  ;;  %v2305_v43 = vsel %vm13454_vm4, %v14390_v6, %v14389_v10  ;;  %v2643_v27 = vsel %vm2611_vm8, %v2578_v57, %v14372_v62  ;;  %v14393_v63 = vld [vmem:[#allocation180_spill] sm:$0xff]  ;;  %v2306_v49 = vsel %vm13454_vm4, %v14407_v61, %v14406_v2  ;;  %v14408_v25 = vld [vmem:[#allocation229_spill] sm:$0xff]  ;;  %v14409_v18 = vld [vmem:[#allocation191_spill] sm:$0xff] }
 0x4ba   :  { %v2577_v11 = vsel %vm2546_vm9, %v2512_v36, %v14370_v20  ;;  %v2367_v47 = vsel %vm13453_vm6, %v2305_v43, %v14391_v41  ;;  %v2708_v15 = vsel %vm2676_vm10, %v2643_v27, %v10207_v13  ;;  %v14395_v36 = vld [vmem:[#allocation372_spill] sm:$0xff]  ;;  %v14397_v20 = vld [vmem:[#allocation278_spill] sm:$0xff]  ;;  %v2368_v9 = vsel %vm13453_vm6, %v2306_v49, %v14408_v25  ;;  %v14413_v10 = vld [vmem:[#allocation429_spill] sm:$0xff] }
 0x4bb   :  { %2151 = vrot.lane.b32.xlu0 %v14371_v46, %s7125_s23  ;;  %v2642_v39 = vsel %vm2611_vm8, %v2577_v11, %v14372_v62  ;;  %v2430_v31 = vsel %vm2416_vm5, %v2367_v47, %v14392_v54  ;;  %v14398_v46 = vld [vmem:[#allocation422_spill] sm:$0xff]  ;;  %v14416_v54 = vld [vmem:[#allocation327_spill] sm:$0xff]  ;;  %v14432_v2 = vld [vmem:[#allocation21_spill] sm:$0xff] }
 0x4bc   :  { %v10307_v0 = vpop.permute.xlu2 %2137  ;;  %v2134_v51 = vpop.permute.xlu1 %2133  ;;  %v2707_v3 = vsel %vm2676_vm10, %v2642_v39, %v10207_v13  ;;  %v14399_v39 = vld [vmem:[#allocation127_spill] sm:$0xff]  ;;  %v14412_v26 = vld [vmem:[#allocation362_spill] sm:$0xff]  ;;  %v14433_v25 = vld [vmem:[#allocation245_spill] sm:$0xff] }
 0x4bd   :  { %v2754_v44 = vsel %vm2741_vm11, %v2689_v34, %v2134_v51  ;;  %v10355_v58 = vpop.f32.mrf.mxu0  ;;  %v2495_v34 = vsel %vm2481_vm7, %v2430_v31, %v14395_v36  ;;  %v14396_v51 = vld [vmem:[#allocation240_spill] sm:$0xff]  ;;  %v14415_v41 = vld [vmem:[#allocation194_spill] sm:$0xff]  ;;  %v14417_v31 = vld [vmem:[#allocation223_spill] sm:$0xff] }
 0x4be   :  { %6664 = vmatmul.msk.f32.gmra.mxu0 %vm2815_vm12, %v2754_v44  ;;  %v2560_v44 = vsel %vm2546_vm9, %v2495_v34, %v14398_v46  ;;  %v14420_v34 = vld [vmem:[#allocation149_spill] sm:$0xff]  ;;  %v14423_v46 = vld [vmem:[#allocation442_spill] sm:$0xff] }
 0x4bf   :  { %v10323_v50 = vpop.permute.xlu0 %2169 }
 0x4c0   :  { %v2772_v59 = vsel %vm2741_vm11, %v2707_v3, %v10323_v50  ;;  %2181 = vrot.lane.b32.xlu2 %v14379_v28, %s7125_s23  ;;  %v2773_v38 = vsel %vm2741_vm11, %v2708_v15, %v10323_v50  ;;  %v2625_v3 = vsel %vm2611_vm8, %v2560_v44, %v14401_v22  ;;  %v14426_v22 = vld [vmem:[#allocation166_spill] sm:$0xff] }
 0x4c1   :  { %6682 = vmatmul.msk.f32.gmra.mxu2 %vm2815_vm12, %v2772_v59  ;;  %1998 = vrot.lane.b32.xlu1 %v14382_v23, %s7126_s24 }
 0x4c3   :  { %1847 = vrot.lane.b32.xlu0 %v14388_v8, %s7124_s22 }
 0x4c4   :  { %v10349_v35 = vpop.permute.xlu2 %2020  ;;  %v2017_v40 = vpop.permute.xlu1 %2016 }
 0x4c5   :  { %v2723_v45 = vsel %vm2676_vm10, %v2658_v52, %v2017_v40  ;;  %v10408_v30 = vpop.f32.mrf.mxu0  ;;  %v14410_v52 = vld [vmem:[#allocation310_spill] sm:$0xff] }
 0x4c6   :  { %v2788_v4 = vsel %vm2741_vm11, %v2723_v45, %v10241_v60  ;;  %v14394_v60 = vld [vmem:[#allocation82_spill] sm:$0xff]  ;;  %v2431_v40 = vsel %vm2416_vm5, %v2368_v9, %v14410_v52  ;;  %v14434_v52 = vld [vmem:[#allocation300_spill] sm:$0xff] }
 0x4c7   :  { %6698 = vmatmul.msk.f32.gmra.mxu3 %vm2815_vm12, %v2788_v4  ;;  %v1953_v42 = vpop.permute.xlu0 %1952  ;;  %v2337_v29 = vsel %vm13454_vm4, %v14394_v60, %v14393_v63  ;;  %v2496_v57 = vsel %vm2481_vm7, %v2431_v40, %v14412_v26  ;;  %v14414_v4 = vld [vmem:[#allocation155_spill] sm:$0xff]  ;;  %v14418_v60 = vld [vmem:[#allocation201_spill] sm:$0xff] }
 0x4c8   :  { %2213 = vrot.lane.b32.xlu2 %v14396_v51, %s7125_s23  ;;  %v2399_v11 = vsel %vm13453_vm6, %v2337_v29, %v14397_v20  ;;  %v2690_v14 = vsel %vm2676_vm10, %v2625_v3, %v1953_v42  ;;  %v2561_v6 = vsel %vm2546_vm9, %v2496_v57, %v14413_v10  ;;  %v14419_v29 = vld [vmem:[#allocation88_spill] sm:$0xff]  ;;  %v14421_v20 = vld [vmem:[#allocation218_spill] sm:$0xff]  ;;  %v14436_v26 = vld [vmem:[#allocation373_spill] sm:$0xff] }
 0x4c9   :  { %6683 = vmatmul.msk.f32.gmra.mxu2 %vm2815_vm12, %v2773_v38  ;;  %2030 = vrot.lane.b32.xlu1 %v14399_v39, %s7126_s24  ;;  %v2464_v37 = vsel %vm2416_vm5, %v2399_v11, %v14400_v24  ;;  %v2626_v27 = vsel %vm2611_vm8, %v2561_v6, %v14414_v4  ;;  %v2449_v38 = vsel %vm2416_vm5, %v14417_v31, %v14416_v54  ;;  %v14424_v39 = vld [vmem:[#allocation78_spill] sm:$0xff]  ;;  %v14425_v24 = vld [vmem:[#allocation332_spill] sm:$0xff] }
 0x4ca   :  { %v2529_v59 = vsel %vm2481_vm7, %v2464_v37, %v14402_v48  ;;  %v2338_v36 = vsel %vm13454_vm4, %v14419_v29, %v14418_v60  ;;  %v2514_v51 = vsel %vm2481_vm7, %v2449_v38, %v14420_v34  ;;  %v14438_v6 = vld [vmem:[#allocation430_spill] sm:$0xff]  ;;  %v14441_v60 = vld [vmem:[#allocation12_spill] sm:$0xff]  ;;  %v14443_v34 = vld [vmem:[#allocation87_spill] sm:$0xff] }
 0x4cb   :  { %v2594_v19 = vsel %vm2546_vm9, %v2529_v59, %v14403_v12  ;;  %1966 = vrot.lane.b32.xlu0 %v14404_v7, %s7126_s24  ;;  %v2579_v44 = vsel %vm2546_vm9, %v2514_v51, %v14423_v46  ;;  %v14427_v59 = vld [vmem:[#allocation405_spill] sm:$0xff]  ;;  %v2450_v29 = vsel %vm2416_vm5, %v14417_v31, %v14441_v60  ;;  %v14446_v46 = vld [vmem:[#allocation270_spill] sm:$0xff]  ;;  %v14449_v31 = vld [vmem:[#allocation343_spill] sm:$0xff] }
 0x4cc   :  { %v10396_v56 = vpop.permute.xlu2 %2139  ;;  %v2136_v53 = vpop.permute.xlu1 %2135  ;;  %v2659_v32 = vsel %vm2611_vm8, %v2594_v19, %v14405_v16  ;;  %v2644_v3 = vsel %vm2611_vm8, %v2579_v44, %v14426_v22  ;;  %v14428_v19 = vld [vmem:[#allocation457_spill] sm:$0xff]  ;;  %v14447_v44 = vld [vmem:[#allocation443_spill] sm:$0xff]  ;;  %v14450_v22 = vld [vmem:[#allocation202_spill] sm:$0xff] }
 0x4cd   :  { %v2755_v28 = vsel %vm2741_vm11, %v2690_v14, %v2136_v53  ;;  %v2724_v17 = vsel %vm2676_vm10, %v2659_v32, %v10273_v21  ;;  %v14411_v21 = vld [vmem:[#allocation45_spill] sm:$0xff]  ;;  %v10442_v63 = vpop.f32.mrf.mxu0  ;;  %v14430_v32 = vld [vmem:[#allocation28_spill] sm:$0xff] }
 0x4ce   :  { %6665 = vmatmul.msk.f32.gmra.mxu0 %vm2815_vm12, %v2755_v28  ;;  %v14429_v28 = vld [vmem:[#allocation126_spill] sm:$0xff] }
 0x4cf   :  { %v2202_v23 = vpop.permute.xlu0 %2201 }
 0x4d0   :  { %v2789_v1 = vsel %vm2741_vm11, %v2724_v17, %v2202_v23  ;;  %2149 = vrot.lane.b32.xlu2 %v14409_v18, %s7125_s23  ;;  %v14431_v23 = vld [vmem:[#allocation109_spill] sm:$0xff] }
 0x4d1   :  { %6699 = vmatmul.msk.f32.gmra.mxu3 %vm2815_vm12, %v2789_v1  ;;  %1970 = vrot.lane.b32.xlu1 %v14411_v21, %s7126_s24  ;;  %v2307_v61 = vsel %vm13454_vm4, %v14432_v2, %v14431_v23  ;;  %v14435_v21 = vld [vmem:[#allocation239_spill] sm:$0xff]  ;;  %v14454_v23 = vld [vmem:[#allocation128_spill] sm:$0xff] }
 0x4d2   :  { %v2369_v9 = vsel %vm13453_vm6, %v2307_v61, %v14433_v25  ;;  %v14455_v2 = vld [vmem:[#allocation32_spill] sm:$0xff] }
 0x4d3   :  { %2153 = vrot.lane.b32.xlu0 %v14415_v41, %s7125_s23  ;;  %v2432_v40 = vsel %vm2416_vm5, %v2369_v9, %v14434_v52  ;;  %v2313_v61 = vsel %vm13454_vm4, %v14455_v2, %v14454_v23  ;;  %v14457_v25 = vld [vmem:[#allocation132_spill] sm:$0xff]  ;;  %v14459_v52 = vld [vmem:[#allocation25_spill] sm:$0xff] }
 0x4d4   :  { %v10428_v45 = vpop.permute.xlu2 %2022  ;;  %v1955_v43 = vpop.permute.xlu1 %1954  ;;  %v2497_v57 = vsel %vm2481_vm7, %v2432_v40, %v14436_v26  ;;  %v14461_v26 = vld [vmem:[#allocation24_spill] sm:$0xff]  ;;  %v14481_v23 = vld [vmem:[#allocation81_spill] sm:$0xff] }
 0x4d5   :  { %v2691_v47 = vsel %vm2676_vm10, %v2626_v27, %v1955_v43  ;;  %v10490_v10 = vpop.f32.mrf.mxu0  ;;  %v2562_v43 = vsel %vm2546_vm9, %v2497_v57, %v14438_v6  ;;  %v14439_v27 = vld [vmem:[#allocation470_spill] sm:$0xff]  ;;  %v14463_v6 = vld [vmem:[#allocation29_spill] sm:$0xff]  ;;  %v14482_v2 = vld [vmem:[#allocation192_spill] sm:$0xff] }
 0x4d6   :  { %v2756_v42 = vsel %vm2741_vm11, %v2691_v47, %v10307_v0  ;;  %v14422_v0 = vld [vmem:[#allocation280_spill] sm:$0xff]  ;;  %v2627_v41 = vsel %vm2611_vm8, %v2562_v43, %v14439_v27  ;;  %v14464_v27 = vld [vmem:[#allocation23_spill] sm:$0xff] }
 0x4d7   :  { %v1989_v15 = vpop.permute.xlu0 %1988  ;;  %6666 = vmatmul.msk.f32.gmra.mxu0 %vm2815_vm12, %v2756_v42  ;;  %v2400_v11 = vsel %vm13453_vm6, %v2338_v36, %v14422_v0  ;;  %v14442_v36 = vld [vmem:[#allocation48_spill] sm:$0xff] }
 0x4d8   :  { %2183 = vrot.lane.b32.xlu2 %v14421_v20, %s7125_s23  ;;  %v2465_v37 = vsel %vm2416_vm5, %v2400_v11, %v14425_v24  ;;  %v2709_v53 = vsel %vm2676_vm10, %v2644_v3, %v1989_v15  ;;  %v14440_v15 = vld [vmem:[#allocation83_spill] sm:$0xff]  ;;  %v2339_v51 = vsel %vm13454_vm4, %v14443_v34, %v14442_v36  ;;  %v14444_v20 = vld [vmem:[#allocation390_spill] sm:$0xff]  ;;  %v14448_v24 = vld [vmem:[#allocation217_spill] sm:$0xff] }
 0x4d9   :  { %2000 = vrot.lane.b32.xlu1 %v14424_v39, %s7126_s24  ;;  %v2530_v14 = vsel %vm2481_vm7, %v2465_v37, %v14427_v59  ;;  %v2515_v0 = vsel %vm2481_vm7, %v2450_v29, %v14444_v20  ;;  %v14445_v11 = vld [vmem:[#allocation123_spill] sm:$0xff]  ;;  %v14469_v29 = vld [vmem:[#allocation156_spill] sm:$0xff]  ;;  %v14470_v36 = vld [vmem:[#allocation50_spill] sm:$0xff] }
 0x4da   :  { %v2595_v7 = vsel %vm2546_vm9, %v2530_v14, %v14428_v19  ;;  %v2580_v39 = vsel %vm2546_vm9, %v2515_v0, %v14447_v44  ;;  %v14451_v14 = vld [vmem:[#allocation406_spill] sm:$0xff]  ;;  %v2325_v34 = vsel %vm13454_vm4, %v14470_v36, %v14469_v29  ;;  %v14471_v0 = vld [vmem:[#allocation175_spill] sm:$0xff]  ;;  %v14473_v44 = vld [vmem:[#allocation177_spill] sm:$0xff] }
 0x4db   :  { %1849 = vrot.lane.b32.xlu0 %v14429_v28, %s7124_s22  ;;  %v2660_v17 = vsel %vm2611_vm8, %v2595_v7, %v14430_v32  ;;  %v2645_v3 = vsel %vm2611_vm8, %v2580_v39, %v14450_v22  ;;  %v14453_v32 = vld [vmem:[#allocation27_spill] sm:$0xff]  ;;  %v14474_v39 = vld [vmem:[#allocation56_spill] sm:$0xff]  ;;  %v14493_v29 = vld [vmem:[#allocation425_spill] sm:$0xff] }
 0x4dc   :  { %v10462_v48 = vpop.permute.xlu2 %2141  ;;  %v2172_v12 = vpop.permute.xlu1 %2171  ;;  %v2725_v49 = vsel %vm2676_vm10, %v2660_v17, %v10349_v35  ;;  %v14437_v35 = vld [vmem:[#allocation134_spill] sm:$0xff] }
 0x4dd   :  { %v2774_v16 = vsel %vm2741_vm11, %v2709_v53, %v2172_v12  ;;  %v10530_v12 = vpop.f32.mrf.mxu0 }
 0x4de   :  { %6684 = vmatmul.msk.f32.gmra.mxu2 %vm2815_vm12, %v2774_v16  ;;  %v14452_v16 = vld [vmem:[#allocation118_spill] sm:$0xff] }
 0x4df   :  { %v2204_v1 = vpop.permute.xlu0 %2203  ;;  %v2310_v17 = vsel %vm13454_vm4, %v14453_v32, %v14452_v16  ;;  %v14480_v16 = vld [vmem:[#allocation311_spill] sm:$0xff] }
 0x4e0   :  { %v2790_v18 = vsel %vm2741_vm11, %v2725_v49, %v2204_v1  ;;  %2215 = vrot.lane.b32.xlu2 %v14435_v21, %s7125_s23  ;;  %v14456_v49 = vld [vmem:[#allocation448_spill] sm:$0xff]  ;;  %v14460_v21 = vld [vmem:[#allocation145_spill] sm:$0xff] }
 0x4e1   :  { %6700 = vmatmul.msk.f32.gmra.mxu3 %vm2815_vm12, %v2790_v18  ;;  %2032 = vrot.lane.b32.xlu1 %v14437_v35, %s7126_s24  ;;  %v14458_v18 = vld [vmem:[#allocation141_spill] sm:$0xff]  ;;  %v2309_v57 = vsel %vm13454_vm4, %v14461_v26, %v14460_v21  ;;  %v14462_v35 = vld [vmem:[#allocation148_spill] sm:$0xff]  ;;  %v14488_v26 = vld [vmem:[#allocation375_spill] sm:$0xff] }
 0x4e2   :  { %v2308_v40 = vsel %vm13454_vm4, %v14459_v52, %v14458_v18  ;;  %v2311_v43 = vsel %vm13454_vm4, %v14463_v6, %v14462_v35  ;;  %v14486_v52 = vld [vmem:[#allocation208_spill] sm:$0xff]  ;;  %v14489_v6 = vld [vmem:[#allocation241_spill] sm:$0xff] }
 0x4e3   :  { %2002 = vrot.lane.b32.xlu0 %v14440_v15, %s7126_s24 }
 0x4e4   :  { %v10496_v4 = vpop.permute.xlu2 %2024  ;;  %v1957_v47 = vpop.permute.xlu1 %1956 }
 0x4e5   :  { %v2692_v42 = vsel %vm2676_vm10, %v2627_v41, %v1957_v47  ;;  %v14465_v47 = vld [vmem:[#allocation151_spill] sm:$0xff] }
 0x4e6   :  { %v2757_v54 = vsel %vm2741_vm11, %v2692_v42, %v10396_v56  ;;  %v2401_v56 = vsel %vm13453_vm6, %v2339_v51, %v14446_v46  ;;  %v14466_v42 = vld [vmem:[#allocation34_spill] sm:$0xff]  ;;  %v14472_v46 = vld [vmem:[#allocation53_spill] sm:$0xff] }
 0x4e7   :  { %6667 = vmatmul.msk.f32.gmra.mxu0 %vm2815_vm12, %v2757_v54  ;;  %v1991_v38 = vpop.permute.xlu0 %1990  ;;  %v2466_v37 = vsel %vm2416_vm5, %v2401_v56, %v14449_v31  ;;  %v2312_v15 = vsel %vm13454_vm4, %v14466_v42, %v14465_v47  ;;  %v14467_v54 = vld [vmem:[#allocation153_spill] sm:$0xff]  ;;  %v2324_v56 = vsel %vm13454_vm4, %v14472_v46, %v14471_v0  ;;  %v14491_v47 = vld [vmem:[#allocation238_spill] sm:$0xff] }
 0x4e8   :  { %1851 = vrot.lane.b32.xlu2 %v14445_v11, %s7124_s22  ;;  %v2531_v53 = vsel %vm2481_vm7, %v2466_v37, %v14451_v14  ;;  %v2710_v19 = vsel %vm2676_vm10, %v2645_v3, %v1991_v38  ;;  %v14468_v38 = vld [vmem:[#allocation36_spill] sm:$0xff]  ;;  %v14475_v31 = vld [vmem:[#allocation249_spill] sm:$0xff]  ;;  %v14477_v14 = vld [vmem:[#allocation55_spill] sm:$0xff]  ;;  %v2374_v42 = vsel %vm13453_vm6, %v2312_v15, %v14491_v47 }
 0x4e9   :  { %2185 = vrot.lane.b32.xlu1 %v14448_v24, %s7125_s23  ;;  %v2596_v1 = vsel %vm2546_vm9, %v2531_v53, %v14456_v49  ;;  %v2314_v60 = vsel %vm13454_vm4, %v14468_v38, %v14467_v54  ;;  %v2326_v24 = vsel %vm13454_vm4, %v14474_v39, %v14473_v44  ;;  %v2370_v37 = vsel %vm13453_vm6, %v2308_v40, %v14475_v31  ;;  %v14476_v3 = vld [vmem:[#allocation181_spill] sm:$0xff]  ;;  %v14492_v54 = vld [vmem:[#allocation250_spill] sm:$0xff]  ;;  %v14496_v39 = vld [vmem:[#allocation255_spill] sm:$0xff] }
 0x4ea   :  { %v2661_v41 = vsel %vm2611_vm8, %v2596_v1, %v14464_v27  ;;  %v2327_v53 = vsel %vm13454_vm4, %v14477_v14, %v14476_v3  ;;  %v2433_v32 = vsel %vm2416_vm5, %v2370_v37, %v14480_v16  ;;  %v14483_v49 = vld [vmem:[#allocation101_spill] sm:$0xff]  ;;  %v14490_v27 = vld [vmem:[#allocation116_spill] sm:$0xff]  ;;  %v2372_v38 = vsel %vm13453_vm6, %v2310_v17, %v14492_v54  ;;  %v14495_v46 = vld [vmem:[#allocation254_spill] sm:$0xff] }
 0x4eb   :  { %2034 = vrot.lane.b32.xlu0 %v14457_v25, %s7126_s24  ;;  %v2726_v51 = vsel %vm2676_vm10, %v2661_v41, %v10428_v45  ;;  %v14479_v45 = vld [vmem:[#allocation91_spill] sm:$0xff]  ;;  %v2343_v1 = vsel %vm13454_vm4, %v14483_v49, %v14482_v2  ;;  %v14484_v25 = vld [vmem:[#allocation52_spill] sm:$0xff]  ;;  %v14487_v40 = vld [vmem:[#allocation105_spill] sm:$0xff]  ;;  %v2498_v35 = vsel %vm2481_vm7, %v2433_v32, %v14488_v26  ;;  %v2371_v41 = vsel %vm13453_vm6, %v2309_v57, %v14490_v27 }
 0x4ec   :  { %v10526_v59 = vpop.permute.xlu2 %2143  ;;  %v2174_v7 = vpop.permute.xlu1 %2173  ;;  %v2342_v21 = vsel %vm13454_vm4, %v14487_v40, %v14486_v52  ;;  %v2563_v36 = vsel %vm2546_vm9, %v2498_v35, %v14493_v29  ;;  %v2375_v44 = vsel %vm13453_vm6, %v2313_v61, %v14495_v46  ;;  %v2386_v57 = vsel %vm13453_vm6, %v2324_v56, %v14496_v39  ;;  %v14497_v31 = vld [vmem:[#allocation13_spill] sm:$0xff]  ;;  %v14499_v3 = vld [vmem:[#allocation258_spill] sm:$0xff]  ;;  %v14501_v61 = vld [vmem:[#allocation219_spill] sm:$0xff] }
 0x4ed   :  { %v2775_v9 = vsel %vm2741_vm11, %v2710_v19, %v2174_v7  ;;  %v14478_v19 = vld [vmem:[#allocation186_spill] sm:$0xff]  ;;  %v2628_v15 = vsel %vm2611_vm8, %v2563_v36, %v14497_v31  ;;  %v2389_v14 = vsel %vm13453_vm6, %v2327_v53, %v14499_v3  ;;  %v14502_v56 = vld [vmem:[#allocation268_spill] sm:$0xff]  ;;  %v14503_v32 = vld [vmem:[#allocation273_spill] sm:$0xff] }
 0x4ee   :  { %6685 = vmatmul.msk.f32.gmra.mxu2 %vm2815_vm12, %v2775_v9  ;;  %v2340_v7 = vsel %vm13454_vm4, %v14479_v45, %v14478_v19  ;;  %v14485_v9 = vld [vmem:[#allocation94_spill] sm:$0xff]  ;;  %v2388_v16 = vsel %vm13453_vm6, %v2326_v24, %v14502_v56  ;;  %v14504_v2 = vld [vmem:[#allocation281_spill] sm:$0xff]  ;;  %v14505_v49 = vld [vmem:[#allocation283_spill] sm:$0xff] }
 0x4ef   :  { %v2206_v20 = vpop.permute.xlu0 %2205  ;;  %v2341_v18 = vsel %vm13454_vm4, %v14485_v9, %v14484_v25  ;;  %v14500_v19 = vld [vmem:[#allocation266_spill] sm:$0xff]  ;;  %v10642_v25 = vpop.f32.mrf.mxu0  ;;  %v14506_v9 = vld [vmem:[#allocation284_spill] sm:$0xff]  ;;  %v14507_v24 = vld [vmem:[#allocation303_spill] sm:$0xff]  ;;  %vm5151_vm4 = vcmask 1047559  }
 0x4f0   :  { %v2791_v22 = vsel %vm2741_vm11, %v2726_v51, %v2206_v20  ;;  %2004 = vrot.lane.b32.xlu2 %v14481_v23, %s7126_s24  ;;  %v14494_v20 = vld [vmem:[#allocation253_spill] sm:$0xff]  ;;  %v2404_v23 = vsel %vm13453_vm6, %v2342_v21, %v14503_v32  ;;  %v2403_v53 = vsel %vm13453_vm6, %v2341_v18, %v14505_v49  ;;  %v2405_v52 = vsel %vm13453_vm6, %v2343_v1, %v14506_v9  ;;  %v14508_v21 = vld [vmem:[#allocation306_spill] sm:$0xff]  ;;  %v14510_v27 = vld [vmem:[#allocation315_spill] sm:$0xff] }
 0x4f1   :  { %6701 = vmatmul.msk.f32.gmra.mxu3 %vm2815_vm12, %v2791_v22  ;;  %2217 = vrot.lane.b32.xlu1 %v14489_v6, %s7125_s23  ;;  %v2373_v0 = vsel %vm13453_vm6, %v2311_v43, %v14494_v20  ;;  %v14498_v22 = vld [vmem:[#allocation256_spill] sm:$0xff]  ;;  %v2387_v43 = vsel %vm13453_vm6, %v2325_v34, %v14500_v19  ;;  %v2435_v40 = vsel %vm2416_vm5, %v2372_v38, %v14507_v24  ;;  %v14509_v35 = vld [vmem:[#allocation313_spill] sm:$0xff]  ;;  %v14512_v38 = vld [vmem:[#allocation318_spill] sm:$0xff] }
 0x4f2   :  { %v10620_v17 = vsel %vm13453_vm6, %v2314_v60, %v14498_v22  ;;  %v2402_v60 = vsel %vm13453_vm6, %v2340_v7, %v14504_v2  ;;  %v10640_v34 = vld [vmem:[%s13101_s2] ss:$0 sm:$0xff]  ;;  %v2438_v26 = vsel %vm2416_vm5, %v2375_v44, %v14508_v21  ;;  %v2434_v6 = vsel %vm2416_vm5, %v2371_v41, %v14509_v35  ;;  %v14514_v46 = vld [vmem:[#allocation330_spill] sm:$0xff]  ;;  %v14516_v39 = vld [vmem:[#allocation137_spill] sm:$0xff] }
 0x4f3   :  { %2187 = vrot.lane.b32.xlu0 %v14501_v61, %s7125_s23  ;;  %v2436_v47 = vsel %vm2416_vm5, %v2373_v0, %v14510_v27  ;;  %v14511_v54 = vld [vmem:[#allocation328_spill] sm:$0xff]  ;;  %v3036_v1 = vadd.f32 %v10640_v34, %v10442_v63  ;;  %v2437_v36 = vsel %vm2416_vm5, %v2374_v42, %v14512_v38  ;;  %v2452_v41 = vsel %vm2416_vm5, %v2387_v43, %v14514_v46  ;;  %v14518_v31 = vld [vmem:[#allocation335_spill] sm:$0xff]  ;;  %v14520_v3 = vld [vmem:[#allocation130_spill] sm:$0xff] }
 0x4f4   :  { %v10608_v51 = vpop.permute.xlu2 %1843  ;;  %v1959_v37 = vpop.permute.xlu1 %1958  ;;  %v2451_v29 = vsel %vm2416_vm5, %v2386_v57, %v14511_v54  ;;  %v14513_v20 = vld [vmem:[#allocation320_spill] sm:$0xff]  ;;  %v14517_v57 = vld [vmem:[#allocation331_spill] sm:$0xff]  ;;  %v3030_v22 = vadd.f32 %v10640_v34, %v10355_v58  ;;  %v14521_v19 = vld [vmem:[#allocation346_spill] sm:$0xff]  ;;  %vm5149_vm6 = vcmask 1046534  }
 0x4f5   :  { %v2693_v45 = vsel %vm2676_vm10, %v2628_v15, %v1959_v37  ;;  %v14515_v44 = vld [vmem:[#allocation392_spill] sm:$0xff]  ;;  %v2454_v63 = vsel %vm2416_vm5, %v2389_v14, %v14517_v57  ;;  %v2468_v15 = vsel %vm2416_vm5, %v2403_v53, %v14518_v31  ;;  %v14519_v37 = vld [vmem:[#allocation438_spill] sm:$0xff]  ;;  %v2467_v43 = vsel %vm2416_vm5, %v2402_v60, %v14521_v19  ;;  %v14523_v56 = vld [vmem:[#allocation349_spill] sm:$0xff] }
 0x4f6   :  { %v2758_v7 = vsel %vm2741_vm11, %v2693_v45, %v10462_v48  ;;  %v2453_v48 = vsel %vm2416_vm5, %v2388_v16, %v14513_v20  ;;  %v2516_v0 = vsel %vm2481_vm7, %v2451_v29, %v14515_v44  ;;  %v14522_v45 = vld [vmem:[#allocation347_spill] sm:$0xff]  ;;  %v2470_v14 = vsel %vm2416_vm5, %v2405_v52, %v14523_v56  ;;  %v14524_v16 = vld [vmem:[#allocation197_spill] sm:$0xff]  ;;  %v14529_v27 = vld [vmem:[#allocation458_spill] sm:$0xff] }
 0x4f7   :  { %v1993_v18 = vpop.permute.xlu0 %1992  ;;  %6668 = vmatmul.msk.f32.gmra.mxu0 %vm2815_vm12, %v2758_v7  ;;  %v2581_v42 = vsel %vm2546_vm9, %v2516_v0, %v14519_v37  ;;  %v2469_v61 = vsel %vm2416_vm5, %v2404_v23, %v14522_v45  ;;  %v14525_v49 = vld [vmem:[#allocation365_spill] sm:$0xff]  ;;  %v10695_v24 = vmax.f32 %v3036_v1, 0.0  ;;  %v14527_v23 = vld [vmem:[#allocation368_spill] sm:$0xff]  ;;  %v14530_v29 = vld [vmem:[#allocation246_spill] sm:$0xff]  ;;  %v10715_v44 = vmax.f32 %v3030_v22, 0.0  ;;  %v3047_v45 = vpop.f32.mrf.mxu0 }
 0x4f8   :  { %2036 = vrot.lane.b32.xlu2 %v14516_v39, %s7126_s24  ;;  %v2646_v32 = vsel %vm2611_vm8, %v2581_v42, %v14524_v16  ;;  %v2499_v58 = vsel %vm2481_vm7, %v2434_v6, %v14525_v49  ;;  %v14526_v53 = vld [vmem:[#allocation397_spill] sm:$0xff]  ;;  %v2502_v7 = vsel %vm2481_vm7, %v2437_v36, %v14527_v23  ;;  %v14531_v38 = vld [vmem:[#allocation380_spill] sm:$0xff]  ;;  %v14533_v46 = vld [vmem:[#allocation90_spill] sm:$0xff] }
 0x4f9   :  { %1853 = vrot.lane.b32.xlu1 %v14520_v3, %s7124_s22  ;;  %v2532_v9 = vsel %vm2481_vm7, %v2467_v43, %v14526_v53  ;;  %v2711_v60 = vsel %vm2676_vm10, %v2646_v32, %v1993_v18  ;;  %v14528_v52 = vld [vmem:[#allocation377_spill] sm:$0xff]  ;;  %v2501_v1 = vsel %vm2481_vm7, %v2436_v47, %v14531_v38  ;;  %v14536_v31 = vld [vmem:[#allocation395_spill] sm:$0xff]  ;;  %v14537_v42 = vld [vmem:[#allocation400_spill] sm:$0xff] }
 0x4fa   :  { %v2500_v35 = vsel %vm2481_vm7, %v2435_v40, %v14528_v52  ;;  %v2597_v54 = vsel %vm2546_vm9, %v2532_v9, %v14529_v27  ;;  %v14532_v20 = vld [vmem:[#allocation381_spill] sm:$0xff]  ;;  %v14534_v40 = vld [vmem:[#allocation382_spill] sm:$0xff]  ;;  %v10724_v47 = vsel %vm2481_vm7, %v2454_v63, %v14536_v31  ;;  %v10730_v22 = vsel %vm2481_vm7, %v2470_v14, %v14537_v42  ;;  %v14538_v19 = vld [vmem:[#allocation407_spill] sm:$0xff] }
 0x4fb   :  { %2219 = vrot.lane.b32.xlu0 %v14530_v29, %s7125_s23  ;;  %v10711_v18 = vsel %vm2481_vm7, %v2438_v26, %v14532_v20  ;;  %v2662_v36 = vsel %vm2611_vm8, %v2597_v54, %v14533_v46  ;;  %v2517_v0 = vsel %vm2481_vm7, %v2452_v41, %v14534_v40  ;;  %v14535_v39 = vld [vmem:[#allocation393_spill] sm:$0xff]  ;;  %v2533_v43 = vsel %vm2481_vm7, %v2468_v15, %v14538_v19  ;;  %v14539_v56 = vld [vmem:[#allocation410_spill] sm:$0xff]  ;;  %v14540_v16 = vld [vmem:[#allocation232_spill] sm:$0xff] }
 0x4fc   :  { %v10689_v2 = vpop.permute.xlu2 %1962  ;;  %v2176_v21 = vpop.permute.xlu1 %2175  ;;  %v2518_v57 = vsel %vm2481_vm7, %v2453_v48, %v14535_v39  ;;  %v2727_v26 = vsel %vm2676_vm10, %v2662_v36, %v10496_v4  ;;  %v3355_v41 = vrot.slane %v10695_v24, 2  ;;  %v2534_v63 = vsel %vm2481_vm7, %v2469_v61, %v14539_v56  ;;  %v14541_v4 = vld [vmem:[#allocation431_spill] sm:$0xff]  ;;  %v14542_v14 = vld [vmem:[#allocation222_spill] sm:$0xff]  ;;  %v14543_v15 = vld [vmem:[#allocation433_spill] sm:$0xff] }
 0x4fd   :  { %v2776_v6 = vsel %vm2741_vm11, %v2711_v60, %v2176_v21  ;;  %v2566_v32 = vsel %vm2546_vm9, %v2501_v1, %v14540_v16  ;;  %v2564_v49 = vsel %vm2546_vm9, %v2499_v58, %v14541_v4  ;;  %v2565_v53 = vsel %vm2546_vm9, %v2500_v35, %v14543_v15  ;;  %v14544_v9 = vld [vmem:[#allocation434_spill] sm:$0xff]  ;;  %v14546_v58 = vld [vmem:[#allocation444_spill] sm:$0xff] }
 0x4fe   :  { %6686 = vmatmul.msk.f32.gmra.mxu2 %vm2815_vm12, %v2776_v6  ;;  %v10749_v60 = vsel %vm2546_vm9, %v2502_v7, %v14544_v9  ;;  %v3349_v61 = vrot.slane %v10715_v44, 2  ;;  %v3033_v21 = vadd.f32 %v10640_v34, %v10408_v30  ;;  %v14545_v23 = vld [vmem:[#allocation86_spill] sm:$0xff]  ;;  %v2582_v52 = vsel %vm2546_vm9, %v2517_v0, %v14546_v58  ;;  %v14548_v6 = vld [vmem:[#allocation451_spill] sm:$0xff]  ;;  %v14549_v30 = vld [vmem:[#allocation460_spill] sm:$0xff] }
 0x4ff   :  { %v2208_v37 = vpop.permute.xlu0 %2207  ;;  %v14547_v27 = vld [vmem:[#allocation446_spill] sm:$0xff]  ;;  %v3350_v35 = vrot.slane %v10715_v44, 4  ;;  %v3356_v29 = vrot.slane %v10695_v24, 4  ;;  %v10766_v38 = vsel %vm2546_vm9, %v2534_v63, %v14548_v6  ;;  %v10770_v1 = vsel %vm2546_vm9, %v2533_v43, %v14549_v30  ;;  %v14550_v40 = vld [vmem:[#allocation152_spill] sm:$0xff] }
 0x500   :  { %v2792_v48 = vsel %vm2741_vm11, %v2727_v26, %v2208_v37  ;;  %2189 = vrot.lane.b32.xlu2 %v14542_v14, %s7125_s23  ;;  %v2583_v54 = vsel %vm2546_vm9, %v2518_v57, %v14547_v27  ;;  %v6725_v20 = vrot.slane %v3355_v41, 9  ;;  %v3039_v46 = vadd.f32 %v10640_v34, %v10490_v10  ;;  %v14551_v39 = vld [vmem:[#allocation160_spill] sm:$0xff]  ;;  %v14552_v37 = vld [vmem:[#allocation129_spill] sm:$0xff] }
 0x501   :  { %6702 = vmatmul.msk.f32.gmra.mxu3 %vm2815_vm12, %v2792_v48  ;;  %2006 = vrot.lane.b32.xlu1 %v14545_v23, %s7126_s24  ;;  %v10776_v0 = vsel %vm2611_vm8, %v2565_v53, %v14550_v40  ;;  %v2629_v57 = vsel %vm2611_vm8, %v2564_v49, %v14551_v39  ;;  %v3351_v31 = vrot.slane %v10715_v44, 6  ;;  %v3357_v26 = vrot.slane %v10695_v24, 6  ;;  %v14553_v48 = vld [vmem:[#allocation15_spill] sm:$0xff]  ;;  %v14554_v14 = vld [vmem:[#allocation164_spill] sm:$0xff] }
 0x502   :  { %v6716_v42 = vrot.slane %v10715_v44, 9  ;;  %v6717_v19 = vrot.slane %v3349_v61, 9  ;;  %v10785_v43 = vmax.f32 %v3033_v21, 0.0  ;;  %v6724_v10 = vrot.slane %v10695_v24, 9  ;;  %v14555_v23 = vld [vmem:[#allocation51_spill] sm:$0xff]  ;;  %v14556_v6 = vld [vmem:[#allocation244_spill] sm:$0xff] }
 0x503   :  { %1855 = vrot.lane.b32.xlu0 %v14552_v37, %s7124_s22  ;;  %v10790_v56 = vsel %vm2611_vm8, %v2566_v32, %v14553_v48  ;;  %v6718_v63 = vrot.slane %v3350_v35, 9  ;;  %v6726_v16 = vrot.slane %v3356_v29, 9  ;;  %v2647_v15 = vsel %vm2611_vm8, %v2582_v52, %v14554_v14 }
 0x504   :  { %v10762_v7 = vpop.permute.xlu2 %2179  ;;  %v1961_v36 = vpop.permute.xlu1 %1960  ;;  %v4510_v53 = vmax.f32 %v3355_v41, %v6725_v20  ;;  %v10795_v9 = vmax.f32 %v3039_v46, 0.0  ;;  %v10801_v58 = vsel %vm2611_vm8, %v2583_v54, %v14555_v23  ;;  %v6719_v32 = vrot.slane %v3351_v31, 9  ;;  %v14557_v46 = vld [vmem:[#allocation142_spill] sm:$0xff] }
 0x505   :  { %v2694_v4 = vsel %vm2676_vm10, %v2629_v57, %v1961_v36  ;;  %v6727_v27 = vrot.slane %v3357_v26, 9  ;;  %v4501_v52 = vmax.f32 %v10715_v44, %v6716_v42  ;;  %v4502_v41 = vmax.f32 %v3349_v61, %v6717_v19 }
 0x506   :  { %v2759_v21 = vsel %vm2741_vm11, %v2694_v4, %v10526_v59  ;;  %v3352_v30 = vrot.slane %v10785_v43, 2  ;;  %v4509_v20 = vmax.f32 %v10695_v24, %v6724_v10  ;;  %v3050_v59 = vpop.f32.mrf.mxu0  ;;  %v4503_v54 = vmax.f32 %v3350_v35, %v6718_v63 }
 0x507   :  { %v1995_v49 = vpop.permute.xlu0 %1994  ;;  %6669 = vmatmul.msk.f32.gmra.mxu0 %vm2815_vm12, %v2759_v21  ;;  %v4511_v36 = vmax.f32 %v3356_v29, %v6726_v16  ;;  %v3048_v40 = vadd.f32 %v10640_v34, %v3047_v45  ;;  %v3353_v57 = vrot.slane %v10785_v43, 4  ;;  %v4758_v48 = vmax.f32 %v4502_v41, %v4510_v53  ;;  %v14558_v45 = vld [vmem:[#allocation93_spill] sm:$0xff] }
 0x508   :  { %2221 = vrot.lane.b32.xlu2 %v14556_v6, %s7125_s23  ;;  %v3358_v44 = vrot.slane %v10795_v9, 2  ;;  %v6728_v61 = vrot.slane %v10795_v9, 9  ;;  %v2712_v42 = vsel %vm2676_vm10, %v2647_v15, %v1995_v49  ;;  %v6720_v19 = vrot.slane %v10785_v43, 9  ;;  %v14559_v6 = vld [vmem:[#allocation136_spill] sm:$0xff] }
 0x509   :  { %2038 = vrot.lane.b32.xlu1 %v14557_v46, %s7126_s24  ;;  %v4512_v10 = vmax.f32 %v3357_v26, %v6727_v27  ;;  %v3042_v35 = vadd.f32 %v10640_v34, %v10530_v12  ;;  %v4504_v63 = vmax.f32 %v3351_v31, %v6719_v32  ;;  %v3354_v16 = vrot.slane %v10785_v43, 6 }
 0x50a   :  { %v6721_v4 = vrot.slane %v3352_v30, 9  ;;  %v4757_v14 = vmax.f32 %v4501_v52, %v4509_v20  ;;  %v4759_v49 = vmax.f32 %v4503_v54, %v4511_v36  ;;  %v10826_v15 = vmax.f32 %v3048_v40, 0.0  ;;  %v14560_v54 = vld [vmem:[#allocation221_spill] sm:$0xff] }
 0x50b   :  { %2008 = vrot.lane.b32.xlu0 %v14558_v45, %s7126_s24  ;;  %v3359_v26 = vrot.slane %v10795_v9, 4  ;;  %v6722_v21 = vrot.slane %v3353_v57, 9  ;;  %v5014_v12 = vperm.slane %v4758_v48, 0  ;;  %v6729_v23 = vrot.slane %v3358_v44, 9 }
 0x50c   :  { %v10812_v39 = vpop.permute.xlu2 %2211  ;;  %v2178_v24 = vpop.permute.xlu1 %2177  ;;  %v4513_v27 = vmax.f32 %v10795_v9, %v6728_v61  ;;  %v4505_v31 = vmax.f32 %v10785_v43, %v6720_v19  ;;  %v10831_v32 = vmax.f32 %v3042_v35, 0.0  ;;  %v4760_v52 = vmax.f32 %v4504_v63, %v4512_v10 }
 0x50d   :  { %v2777_v29 = vsel %vm2741_vm11, %v2712_v42, %v2178_v24  ;;  %v5013_v41 = vperm.slane %v4757_v14, 0  ;;  %v3360_v20 = vrot.slane %v10795_v9, 6  ;;  %v4506_v36 = vmax.f32 %v3352_v30, %v6721_v4  ;;  %v14561_v4 = vld [vmem:[#allocation140_spill] sm:$0xff] }
 0x50e   :  { %6687 = vmatmul.msk.f32.gmra.mxu2 %vm2815_vm12, %v2777_v29  ;;  %v10836_v46 = vpop.f32.mrf.mxu0  ;;  %v6723_v40 = vrot.slane %v3354_v16, 9  ;;  %v3367_v48 = vrot.slane %v10826_v15, 2  ;;  %v6730_v61 = vrot.slane %v3359_v26, 9  ;;  %v10843_v42 = vmax.f32 %v3353_v57, %v6722_v21 }
 0x50f   :  { %v2027_v53 = vpop.permute.xlu0 %2026  ;;  %v5015_v24 = vperm.slane %v4759_v49, 0  ;;  %v2663_v19 = vsel %vm2611_vm8, %v10770_v1, %v10608_v51  ;;  %v4514_v10 = vmax.f32 %v3358_v44, %v6729_v23  ;;  %v4761_v35 = vmax.f32 %v4505_v31, %v4513_v27 }
 0x510   :  { %1857 = vrot.lane.b32.xlu2 %v14559_v6, %s7124_s22  ;;  %v5142_v45 = vsel %vm5141_vm13, %v5014_v12, %v5013_v41  ;;  %v3361_v30 = vrot.slane %v10831_v32, 2  ;;  %v3051_v29 = vadd.f32 %v10640_v34, %v3050_v59  ;;  %v2728_v63 = vsel %vm2676_vm10, %v2663_v19, %v2027_v53  ;;  %v14562_v19 = vld [vmem:[#allocation135_spill] sm:$0xff] }
 0x511   :  { %2191 = vrot.lane.b32.xlu1 %v14560_v54, %s7125_s23  ;;  %v5016_v57 = vperm.slane %v4760_v52, 0  ;;  %v3045_v14 = vadd.f32 %v10640_v34, %v10642_v25  ;;  %v3368_v51 = vrot.slane %v10826_v15, 4  ;;  %v6731_v44 = vrot.slane %v3360_v20, 9 }
 0x512   :  { %v6741_v49 = vrot.slane %v3367_v48, 9  ;;  %v2695_v59 = vsel %vm2676_vm10, %v10776_v0, %v10689_v2  ;;  %v4515_v21 = vmax.f32 %v3359_v26, %v6730_v61  ;;  %v5144_v12 = vsel %vm5143_vm14, %v5015_v24, %v5142_v45 }
 0x513   :  { %2040 = vrot.lane.b32.xlu0 %v14561_v4, %s7126_s24  ;;  %v3362_v23 = vrot.slane %v10831_v32, 4  ;;  %v4762_v27 = vmax.f32 %v4506_v36, %v4514_v10  ;;  %v5017_v31 = vperm.slane %v4761_v35, 0  ;;  %v6733_v52 = vrot.slane %v3361_v30, 9  ;;  %v14563_v36 = vld [vmem:[#allocation247_spill] sm:$0xff] }
 0x514   :  { %v10841_v43 = vpop.permute.xlu2 %2147  ;;  %v2210_v9 = vpop.permute.xlu1 %2209  ;;  %v6740_v41 = vrot.slane %v10826_v15, 9  ;;  %v10866_v54 = vmax.f32 %v3051_v29, 0.0  ;;  %v10871_v2 = vmax.f32 %v3354_v16, %v6723_v40  ;;  %v10873_v0 = vmax.f32 %v3045_v14, 0.0 }
 0x515   :  { %v2793_v1 = vsel %vm2741_vm11, %v2728_v63, %v2210_v9  ;;  %v6742_v26 = vrot.slane %v3368_v51, 9  ;;  %v5146_v24 = vsel %vm13456_vm15, %v5016_v57, %v5144_v12  ;;  %v10880_v9 = vmax.f32 %v3360_v20, %v6731_v44 }
 0x516   :  { %6703 = vmatmul.msk.f32.gmra.mxu3 %vm2815_vm12, %v2793_v1  ;;  %v10875_v61 = vpop.f32.mrf.mxu0  ;;  %v3363_v10 = vrot.slane %v10831_v32, 6  ;;  %v6732_v35 = vrot.slane %v10831_v32, 9  ;;  %v3369_v45 = vrot.slane %v10826_v15, 6  ;;  %v4526_v16 = vmax.f32 %v3367_v48, %v6741_v49 }
 0x517   :  { %v2146_v53 = vpop.permute.xlu0 %2145  ;;  %v6734_v29 = vrot.slane %v3362_v23, 9  ;;  %v4763_v4 = vmax.f32 %v10843_v42, %v4515_v21  ;;  %v5018_v14 = vperm.slane %v4762_v27, 0  ;;  %v5148_v1 = vsel %vm13455_vm3, %v5017_v31, %v5146_v24 }
 0x518   :  { %v2760_v25 = vsel %vm2741_vm11, %v2695_v59, %v2146_v53  ;;  %1859 = vrot.lane.b32.xlu2 %v14562_v19, %s7124_s22  ;;  %v4518_v59 = vmax.f32 %v3361_v30, %v6733_v52  ;;  %v4525_v20 = vmax.f32 %v10826_v15, %v6740_v41  ;;  %v3370_v57 = vrot.slane %v10866_v54, 2  ;;  %v14564_v53 = vld [vmem:[#allocation143_spill] sm:$0xff] }
 0x519   :  { %6670 = vmatmul.msk.f32.gmra.mxu0 %vm2815_vm12, %v2760_v25  ;;  %2223 = vrot.lane.b32.xlu1 %v14563_v36, %s7125_s23  ;;  %v3364_v48 = vrot.slane %v10873_v0, 2  ;;  %v4527_v49 = vmax.f32 %v3368_v51, %v6742_v26  ;;  %v6744_v12 = vrot.slane %v10866_v54, 9  ;;  %v6735_v21 = vrot.slane %v3363_v10, 9  ;;  %v14565_v36 = vld [vmem:[#allocation316_spill] sm:$0xff] }
 0x51a   :  { %v4517_v30 = vmax.f32 %v10831_v32, %v6732_v35  ;;  %v6743_v15 = vrot.slane %v3369_v45, 9  ;;  %v4766_v25 = vmax.f32 %v4518_v59, %v4526_v16  ;;  %v6736_v31 = vrot.slane %v10873_v0, 9 }
 0x51b   :  { %2042 = vrot.lane.b32.xlu0 %v14564_v53, %s7126_s24  ;;  %v3371_v52 = vrot.slane %v10866_v54, 4  ;;  %v5019_v41 = vperm.slane %v4763_v4, 0  ;;  %v6745_v26 = vrot.slane %v3370_v57, 9  ;;  %v4764_v32 = vmax.f32 %v10871_v2, %v10880_v9 }
 0x51c   :  { %v10885_v40 = vpop.permute.xlu2 %2181  ;;  %v1997_v63 = vpop.permute.xlu1 %1996  ;;  %v4765_v51 = vmax.f32 %v4517_v30, %v4525_v20  ;;  %v3365_v24 = vrot.slane %v10873_v0, 4  ;;  %v6737_v35 = vrot.slane %v3364_v48, 9  ;;  %v4529_v16 = vmax.f32 %v10866_v54, %v6744_v12 }
 0x51d   :  { %v2713_v44 = vsel %vm2676_vm10, %v10801_v58, %v1997_v63  ;;  %v4519_v58 = vmax.f32 %v3362_v23, %v6734_v29  ;;  %v14566_v63 = vld [vmem:[#allocation251_spill] sm:$0xff]  ;;  %v4520_v4 = vmax.f32 %v3363_v10, %v6735_v21  ;;  %v3366_v59 = vrot.slane %v10873_v0, 6 }
 0x51e   :  { %v2778_v42 = vsel %vm2741_vm11, %v2713_v44, %v10762_v7  ;;  %v5150_v7 = vsel %vm5149_vm6, %v5018_v14, %v5148_v1  ;;  %v3059_v29 = vpop.f32.mrf.mxu0  ;;  %v4528_v20 = vmax.f32 %v3369_v45, %v6743_v15  ;;  %v5022_v44 = vperm.slane %v4766_v25, 0  ;;  %v14567_v45 = vld [vmem:[#allocation376_spill] sm:$0xff] }
 0x51f   :  { %6688 = vmatmul.msk.f32.gmra.mxu2 %vm2815_vm12, %v2778_v42  ;;  %v1846_v27 = vpop.permute.xlu0 %1845  ;;  %v4767_v23 = vmax.f32 %v4519_v58, %v4527_v49  ;;  %v4521_v14 = vmax.f32 %v10873_v0, %v6736_v31  ;;  %v3372_v2 = vrot.slane %v10866_v54, 6  ;;  %v6746_v9 = vrot.slane %v3371_v52, 9 }
 0x520   :  { %1861 = vrot.lane.b32.xlu2 %v14565_v36, %s7124_s22  ;;  %v2664_v1 = vsel %vm2611_vm8, %v10766_v38, %v1846_v27  ;;  %v5021_v12 = vperm.slane %v4765_v51, 0  ;;  %v4530_v42 = vmax.f32 %v3370_v57, %v6745_v26  ;;  %v3060_v30 = vadd.f32 %v10640_v34, %v3059_v29  ;;  %v14568_v36 = vld [vmem:[#allocation437_spill] sm:$0xff]  ;;  %v14570_v29 = vld [vmem:[#allocation432_spill] sm:$0xff] }
 0x521   :  { %2225 = vrot.lane.b32.xlu1 %v14566_v63, %s7125_s23  ;;  %v6738_v21 = vrot.slane %v3365_v24, 9  ;;  %v4522_v15 = vmax.f32 %v3364_v48, %v6737_v35  ;;  %v5023_v25 = vperm.slane %v4767_v23, 0  ;;  %v4769_v0 = vmax.f32 %v4521_v14, %v4529_v16 }
 0x522   :  { %v4768_v58 = vmax.f32 %v4520_v4, %v4528_v20  ;;  %v3054_v54 = vadd.f32 %v10640_v34, %v10836_v46  ;;  %v5153_v57 = vsel %vm5141_vm13, %v5022_v44, %v5021_v12  ;;  %v5020_v51 = vperm.slane %v4764_v32, 0  ;;  %v14569_v46 = vld [vmem:[#allocation314_spill] sm:$0xff]  ;;  %v14571_v4 = vld [vmem:[#allocation439_spill] sm:$0xff] }
 0x523   :  { %2044 = vrot.lane.b32.xlu0 %v14567_v45, %s7126_s24  ;;  %v4531_v26 = vmax.f32 %v3371_v52, %v6746_v9  ;;  %v6747_v48 = vrot.slane %v3372_v2, 9  ;;  %v2568_v35 = vsel %vm2546_vm9, %v10711_v18, %v14568_v36  ;;  %v10934_v23 = vmax.f32 %v3060_v30, 0.0  ;;  %v14573_v30 = vld [vmem:[#allocation8_spill] sm:$0xff] }
 0x524   :  { %v10913_v53 = vpop.permute.xlu2 %2213  ;;  %v2029_v49 = vpop.permute.xlu1 %2028  ;;  %v6739_v16 = vrot.slane %v3366_v59, 9  ;;  %v4523_v32 = vmax.f32 %v3365_v24, %v6738_v21  ;;  %v5025_v52 = vperm.slane %v4769_v0, 0  ;;  %v5154_v63 = vsel %vm5143_vm14, %v5023_v25, %v5153_v57  ;;  %v14574_v21 = vld [vmem:[#allocation378_spill] sm:$0xff] }
 0x525   :  { %v2729_v10 = vsel %vm2676_vm10, %v2664_v1, %v2029_v49  ;;  %v2584_v18 = vsel %vm2546_vm9, %v10724_v47, %v14571_v4  ;;  %v10946_v20 = vmax.f32 %v3054_v54, 0.0  ;;  %v5152_v14 = vsel %vm5151_vm4, %v5019_v41, %v5150_v7  ;;  %v14572_v1 = vld [vmem:[#allocation461_spill] sm:$0xff] }
 0x526   :  { %v2794_v38 = vsel %vm2741_vm11, %v2729_v10, %v10812_v39  ;;  %v4770_v39 = vmax.f32 %v4522_v15, %v4530_v42  ;;  %v5024_v9 = vperm.slane %v4768_v58, 0  ;;  %v5291_v12 = vsel %vm13459_vm0, %v5020_v51, 0.0  ;;  %v14575_v15 = vld [vmem:[#allocation158_spill] sm:$0xff]  ;;  %v14576_v58 = vld [vmem:[#allocation43_spill] sm:$0xff] }
 0x527   :  { %v1965_v27 = vpop.permute.xlu0 %1964  ;;  %6704 = vmatmul.msk.f32.gmra.mxu3 %vm2815_vm12, %v2794_v38  ;;  %v4771_v42 = vmax.f32 %v4523_v32, %v4531_v26  ;;  %v4532_v47 = vmax.f32 %v3372_v2, %v6747_v48  ;;  %v2633_v10 = vsel %vm2611_vm8, %v2568_v35, %v14573_v30  ;;  %v3379_v45 = vrot.slane %v10934_v23, 2 }
 0x528   :  { %v2696_v31 = vsel %vm2676_vm10, %v10790_v56, %v1965_v27  ;;  %1863 = vrot.lane.b32.xlu2 %v14569_v46, %s7124_s22  ;;  %v5026_v41 = vperm.slane %v4770_v39, 0  ;;  %v5155_v7 = vsel %vm13456_vm15, %v5024_v9, %v5154_v63  ;;  %v10970_v25 = vsel %vm13459_vm0, 0.0, %v5152_v14 }
 0x529   :  { %2227 = vrot.lane.b32.xlu1 %v14570_v29, %s7125_s23  ;;  %v2761_v56 = vsel %vm2741_vm11, %v2696_v31, %v10841_v43  ;;  %v10955_v43 = vsel %vm2546_vm9, %v10730_v22, %v14572_v1  ;;  %v10967_v22 = vsel %vm2611_vm8, %v10749_v60, %v14575_v15  ;;  %v5156_v2 = vsel %vm13455_vm3, %v5025_v52, %v5155_v7 }
 0x52a   :  { %6671 = vmatmul.msk.f32.gmra.mxu0 %vm2815_vm12, %v2761_v56  ;;  %v4524_v0 = vmax.f32 %v3366_v59, %v6739_v16  ;;  %v2649_v54 = vsel %vm2611_vm8, %v2584_v18, %v14576_v58  ;;  %v3373_v38 = vrot.slane %v10946_v20, 2  ;;  %v5336_v31 = vrot.slane %v5291_v12, 1  ;;  %v14577_v56 = vld [vmem:[#allocation435_spill] sm:$0xff] }
 0x52b   :  { %v3062_v24 = vpop.f32.mrf.mxu0  ;;  %2046 = vrot.lane.b32.xlu0 %v14574_v21, %s7126_s24  ;;  %v3380_v51 = vrot.slane %v10934_v23, 4  ;;  %v5423_v26 = vrot.slane %v5291_v12, 2  ;;  %v5027_v60 = vperm.slane %v4771_v42, 0  ;;  %v3057_v36 = vadd.f32 %v10640_v34, %v10875_v61 }
 0x52c   :  { %v10949_v44 = vpop.permute.xlu2 %2149  ;;  %v1969_v49 = vpop.permute.xlu1 %1968  ;;  %v3063_v27 = vadd.f32 %v10640_v34, %v3062_v24  ;;  %v4772_v48 = vmax.f32 %v4524_v0, %v4532_v47  ;;  %v6757_v35 = vrot.slane %v3379_v45, 9  ;;  %v5335_v59 = vrot.slane %v10970_v25, 1 }
 0x52d   :  { %v5157_v46 = vsel %vm5149_vm6, %v5026_v41, %v5156_v2  ;;  %v3374_v39 = vrot.slane %v10946_v20, 4  ;;  %v3375_v16 = vrot.slane %v10946_v20, 6  ;;  %v2698_v29 = vsel %vm2676_vm10, %v2633_v10, %v1969_v49  ;;  %v14578_v10 = vld [vmem:[#allocation147_spill] sm:$0xff] }
 0x52e   :  { %v5422_v32 = vrot.slane %v10970_v25, 2  ;;  %v6749_v61 = vrot.slane %v3373_v38, 9  ;;  %v6756_v52 = vrot.slane %v10934_v23, 9  ;;  %v10991_v63 = vmax.f32 %v3063_v27, 0.0 }
 0x52f   :  { %v2152_v57 = vpop.permute.xlu0 %2151  ;;  %v6748_v14 = vrot.slane %v10946_v20, 9  ;;  %v6758_v9 = vrot.slane %v3380_v51, 9  ;;  %v5158_v24 = vsel %vm5151_vm4, %v5027_v60, %v5157_v46  ;;  %v5028_v49 = vperm.slane %v4772_v48, 0 }
 0x530   :  { %5377 = vrot.lane.b32.xlu2 %v14227_v33, %s7120_s11  ;;  %v2763_v4 = vsel %vm2741_vm11, %v2698_v29, %v2152_v57  ;;  %v10999_v12 = vmax.f32 %v3057_v36, 0.0  ;;  %v3381_v42 = vrot.slane %v10934_v23, 6  ;;  %v4542_v47 = vmax.f32 %v3379_v45, %v6757_v35 }
 0x531   :  { %2229 = vrot.lane.b32.xlu1 %v14577_v56, %s7125_s23  ;;  %6673 = vmatmul.msk.f32.vlgmr.msra.gmra.mxu1 %vm2815_vm12, %v2763_v4  ;;  %v6750_v21 = vrot.slane %v3374_v39, 9  ;;  %v6751_v41 = vrot.slane %v3375_v16, 9  ;;  %v11008_v15 = vsel %vm13458_vm1, %v5335_v59, %v5336_v31  ;;  %v4534_v2 = vmax.f32 %v3373_v38, %v6749_v61 }
 0x532   :  { %v4541_v0 = vmax.f32 %v10934_v23, %v6756_v52  ;;  %v3382_v58 = vrot.slane %v10991_v63, 2  ;;  %v4543_v27 = vmax.f32 %v3380_v51, %v6758_v9  ;;  %v6760_v57 = vrot.slane %v10991_v63, 9 }
 0x533   :  { %5464 = vrot.lane.b32.xlu0 %v14578_v10, %s7122_s0  ;;  %v11018_v60 = vsel %vm13459_vm0, 0.0, %v5158_v24  ;;  %v4533_v38 = vmax.f32 %v10946_v20, %v6748_v14  ;;  %v3376_v23 = vrot.slane %v10999_v12, 2  ;;  %v6759_v31 = vrot.slane %v3381_v42, 9 }
 0x534   :  { %v10994_v18 = vpop.permute.xlu2 %2183  ;;  %v1999_v1 = vpop.permute.xlu1 %1998  ;;  %v4774_v48 = vmax.f32 %v4534_v2, %v4542_v47  ;;  %v4535_v36 = vmax.f32 %v3374_v39, %v6750_v21  ;;  %v6752_v51 = vrot.slane %v10999_v12, 9  ;;  %v3383_v35 = vrot.slane %v10991_v63, 4 }
 0x535   :  { %v2714_v30 = vsel %vm2676_vm10, %v2649_v54, %v1999_v1  ;;  %v11014_v54 = vsel %vm13457_vm2, %v5422_v32, %v5423_v26  ;;  %v4536_v26 = vmax.f32 %v3375_v16, %v6751_v41  ;;  %v4773_v59 = vmax.f32 %v4533_v38, %v4541_v0 }
 0x536   :  { %v2779_v7 = vsel %vm2741_vm11, %v2714_v30, %v10885_v40  ;;  %v5292_v40 = vsel %vm13459_vm0, %v5028_v49, 0.0  ;;  %v6761_v46 = vrot.slane %v3382_v58, 9  ;;  %v5338_v20 = vrot.slane %v11018_v60, 1 }
 0x537   :  { %6689 = vmatmul.msk.f32.gmra.mxu2 %vm2815_vm12, %v2779_v7  ;;  %v1848_v45 = vpop.permute.xlu0 %1847  ;;  %v5339_v56 = vrot.slane %v5292_v40, 1  ;;  %v3377_v32 = vrot.slane %v10999_v12, 4  ;;  %v4775_v61 = vmax.f32 %v4535_v36, %v4543_v27  ;;  %v4545_v39 = vmax.f32 %v10991_v63, %v6760_v57 }
 0x538   :  { %5567 = vrot.lane.b32.xlu2 %v11008_v15, %s7125_s23  ;;  %v2665_v16 = vsel %vm2611_vm8, %v10955_v43, %v1848_v45  ;;  %v6753_v4 = vrot.slane %v3376_v23, 9  ;;  %v4544_v14 = vmax.f32 %v3381_v42, %v6759_v31  ;;  %v5030_v9 = vperm.slane %v4774_v48, 0  ;;  %v14580_v48 = vld [vmem:[#allocation146_spill] sm:$0xff] }
 0x539   :  { %5511 = vrot.lane.b32.xlu1 %v10970_v25, %s7124_s22  ;;  %v4537_v24 = vmax.f32 %v10999_v12, %v6752_v51  ;;  %v6762_v49 = vrot.slane %v3383_v35, 9  ;;  %v5425_v30 = vrot.slane %v11018_v60, 2  ;;  %v3378_v43 = vrot.slane %v10999_v12, 6  ;;  %v14579_v12 = vld [vmem:[#allocation10_spill] sm:$0xff] }
 0x53a   :  { %v5029_v21 = vperm.slane %v4773_v59, 0  ;;  %v3384_v42 = vrot.slane %v10991_v63, 6  ;;  %v4546_v41 = vmax.f32 %v3382_v58, %v6761_v46  ;;  %v6754_v2 = vrot.slane %v3377_v32, 9 }
 0x53b   :  { %5621 = vrot.lane.b32.xlu0 %v11014_v54, %s7127_s14  ;;  %v5031_v0 = vperm.slane %v4775_v61, 0  ;;  %v4777_v45 = vmax.f32 %v4537_v24, %v4545_v39  ;;  %v11047_v27 = vsel %vm13458_vm1, %v5338_v20, %v5339_v56  ;;  %v4538_v57 = vmax.f32 %v3376_v23, %v6753_v4  ;;  %v3065_v46 = vpop.f32.mrf.mxu0  ;;  %v14581_v61 = vld [vmem:[#allocation427_spill] sm:$0xff] }
 0x53c   :  { %v11029_v29 = vpop.permute.xlu2 %2215  ;;  %v2031_v52 = vpop.permute.xlu1 %2030  ;;  %v4776_v38 = vmax.f32 %v4536_v26, %v4544_v14  ;;  %v5159_v63 = vsel %vm5141_vm13, %v5030_v9, %v5029_v21  ;;  %v2439_v58 = vsel %vm2416_vm5, %v10620_v17, %v14579_v12  ;;  %v5426_v31 = vrot.slane %v5292_v40, 2 }
 0x53d   :  { %v2730_v1 = vsel %vm2676_vm10, %v2665_v16, %v2031_v52  ;;  %v4547_v23 = vmax.f32 %v3383_v35, %v6762_v49  ;;  %v2504_v36 = vsel %vm2481_vm7, %v2439_v58, %v14580_v48  ;;  %v4778_v51 = vmax.f32 %v4538_v57, %v4546_v41  ;;  %v14582_v52 = vld [vmem:[#allocation161_spill] sm:$0xff]  ;;  %v14583_v57 = vld [vmem:[#allocation162_spill] sm:$0xff] }
 0x53e   :  { %v2795_v47 = vsel %vm2741_vm11, %v2730_v1, %v10913_v53  ;;  %v6763_v59 = vrot.slane %v3384_v42, 9  ;;  %v11067_v20 = vsel %vm13457_vm2, %v5425_v30, %v5426_v31  ;;  %v4539_v56 = vmax.f32 %v3377_v32, %v6754_v2  ;;  %v14588_v58 = vld [vmem:[#allocation333_spill] sm:$0xff] }
 0x53f   :  { %6705 = vmatmul.msk.f32.gmra.mxu3 %vm2815_vm12, %v2795_v47  ;;  %v1967_v7 = vpop.permute.xlu0 %1966  ;;  %v5033_v40 = vperm.slane %v4777_v45, 0  ;;  %v5160_v35 = vsel %vm5143_vm14, %v5031_v0, %v5159_v63  ;;  %v2569_v39 = vsel %vm2546_vm9, %v2504_v36, %v14581_v61  ;;  %v6755_v16 = vrot.slane %v3378_v43, 9  ;;  %v14586_v63 = vld [vmem:[#allocation269_spill] sm:$0xff] }
 0x540   :  { %v2697_v53 = vsel %vm2676_vm10, %v10967_v22, %v1967_v7  ;;  %5714 = vrot.lane.b32.xlu2 %v11047_v27, %s7128_s15  ;;  %v2634_v4 = vsel %vm2611_vm8, %v2569_v39, %v14582_v52  ;;  %v4779_v14 = vmax.f32 %v4539_v56, %v4547_v23  ;;  %v5034_v32 = vperm.slane %v4778_v51, 0  ;;  %v14589_v48 = vld [vmem:[#allocation385_spill] sm:$0xff]  ;;  %v14592_v56 = vld [vmem:[#allocation108_spill] sm:$0xff] }
 0x541   :  { %5669 = vrot.lane.b32.xlu1 %v11018_v60, %s7129_s16  ;;  %v2762_v22 = vsel %vm2741_vm11, %v2697_v53, %v10949_v44  ;;  %v5032_v44 = vperm.slane %v4776_v38, 0  ;;  %v4548_v49 = vmax.f32 %v3384_v42, %v6763_v59  ;;  %v4540_v21 = vmax.f32 %v3378_v43, %v6755_v16  ;;  %v14584_v38 = vld [vmem:[#allocation58_spill] sm:$0xff] }
 0x542   :  { %6672 = vmatmul.msk.f32.gmra.mxu0 %vm2815_vm12, %v2762_v22  ;;  %v5035_v41 = vperm.slane %v4779_v14, 0  ;;  %v14590_v22 = vld [vmem:[#allocation447_spill] sm:$0xff]  ;;  %v14595_v16 = vld [vmem:[#allocation286_spill] sm:$0xff] }
 0x543   :  { %5759 = vrot.lane.b32.xlu0 %v11067_v20, %s7130_s17  ;;  %v5161_v24 = vsel %vm13456_vm15, %v5032_v44, %v5160_v35  ;;  %v4780_v2 = vmax.f32 %v4540_v21, %v4548_v49  ;;  %vm14587_vm15 = vcmask 64512   ;;  %v14594_v35 = vld [vmem:[#allocation19_spill] sm:$0xff] }
 0x544   :  { %v11063_v26 = vpop.permute.xlu2 %1851  ;;  %v1971_v17 = vpop.permute.xlu1 %1970  ;;  %v5162_v30 = vsel %vm13455_vm3, %v5033_v40, %v5161_v24  ;;  %vm14585_vm3 = vcmask 31744  }
 0x545   :  { %v2699_v9 = vsel %vm2676_vm10, %v2634_v4, %v1971_v17  ;;  %v5163_v7 = vsel %vm5149_vm6, %v5034_v32, %v5162_v30  ;;  %v2328_v43 = vsel %vm14585_vm3, %v14584_v38, %v14583_v57  ;;  %v14591_v17 = vld [vmem:[#allocation210_spill] sm:$0xff]  ;;  %v3066_v4 = vadd.f32 %v10640_v34, %v3065_v46  ;;  %v14599_v46 = vld [vmem:[#allocation168_spill] sm:$0xff] }
 0x546   :  { %v2390_v12 = vsel %vm14587_vm15, %v2328_v43, %v14586_v63  ;;  %vm14593_vm15 = vmmov %vm14585_vm3  ;;  %vm14596_vm3 = vcmask 64512  }
 0x547   :  { %v2154_v1 = vpop.permute.xlu0 %2153  ;;  %v2455_v31 = vsel %vm2416_vm5, %v2390_v12, %v14588_v58  ;;  %v2344_v40 = vsel %vm14593_vm15, %v14592_v56, %v14591_v17  ;;  %v14610_v56 = vld [vmem:[#allocation63_spill] sm:$0xff] }
 0x548   :  { %v2764_v47 = vsel %vm2741_vm11, %v2699_v9, %v2154_v1  ;;  %5466 = vrot.lane.b32.xlu2 %v11014_v54, %s7122_s0  ;;  %v5164_v54 = vsel %vm5151_vm4, %v5035_v41, %v5163_v7  ;;  %v2520_v36 = vsel %vm2481_vm7, %v2455_v31, %v14589_v48  ;;  %v2406_v52 = vsel %vm14596_vm3, %v2344_v40, %v14595_v16  ;;  %v14597_v1 = vld [vmem:[#allocation338_spill] sm:$0xff]  ;;  %v14602_v31 = vld [vmem:[#allocation183_spill] sm:$0xff]  ;;  %v14603_v48 = vld [vmem:[#allocation60_spill] sm:$0xff] }
 0x549   :  { %6674 = vmatmul.msk.f32.gmra.mxu1 %vm2815_vm12, %v2764_v47  ;;  %5379 = vrot.lane.b32.xlu1 %v11008_v15, %s7120_s11  ;;  %v5036_v15 = vperm.slane %v4780_v2, 0  ;;  %v11103_v23 = vsel %vm13459_vm0, 0.0, %v5164_v54  ;;  %v2585_v51 = vsel %vm2546_vm9, %v2520_v36, %v14590_v22  ;;  %v2471_v32 = vsel %vm2416_vm5, %v2406_v52, %v14597_v1  ;;  %v14598_v47 = vld [vmem:[#allocation205_spill] sm:$0xff]  ;;  %v14601_v54 = vld [vmem:[#allocation462_spill] sm:$0xff]  ;;  %vm14604_vm3 = vmmov %vm14593_vm15 }
 0x54a   :  { %v2650_v61 = vsel %vm2611_vm8, %v2585_v51, %v14594_v35  ;;  %v5428_v44 = vrot.slane %v11103_v23, 2  ;;  %v5341_v9 = vrot.slane %v11103_v23, 1  ;;  %v2536_v30 = vsel %vm2481_vm7, %v2471_v32, %v14598_v47  ;;  %v14600_v2 = vld [vmem:[#allocation65_spill] sm:$0xff]  ;;  %v14605_v36 = vld [vmem:[#allocation187_spill] sm:$0xff]  ;;  %v14606_v22 = vld [vmem:[#allocation68_spill] sm:$0xff] }
 0x54b   :  { %v11086_v0 = vpop.f32.mrf.mxu0  ;;  %5513 = vrot.lane.b32.xlu0 %v11018_v60, %s7124_s22  ;;  %v5293_v59 = vsel %vm13459_vm0, %v5036_v15, 0.0  ;;  %v2601_v57 = vsel %vm2546_vm9, %v2536_v30, %v14601_v54  ;;  %v11143_v15 = vmax.f32 %v3066_v4, 0.0  ;;  %v14612_v35 = vld [vmem:[#allocation271_spill] sm:$0xff]  ;;  %vm14613_vm0 = vcmask 64512   ;;  %v14614_v52 = vld [vmem:[#allocation261_spill] sm:$0xff]  ;;  %v14616_v4 = vld [vmem:[#allocation276_spill] sm:$0xff] }
 0x54c   :  { %v2001_v42 = vpop.permute.xlu1 %2000  ;;  %v11088_v45 = vpop.permute.xlu2 %2004  ;;  %v5429_v49 = vrot.slane %v5293_v59, 2  ;;  %v5342_v7 = vrot.slane %v5293_v59, 1  ;;  %v14608_v59 = vld [vmem:[#allocation198_spill] sm:$0xff]  ;;  %v14620_v1 = vld [vmem:[#allocation323_spill] sm:$0xff]  ;;  %v14622_v47 = vld [vmem:[#allocation57_spill] sm:$0xff] }
 0x54d   :  { %v2715_v14 = vsel %vm2676_vm10, %v2650_v61, %v2001_v42  ;;  %v11134_v42 = vsel %vm14593_vm15, %v14600_v2, %v14599_v46  ;;  %vm14607_vm15 = vmmov %vm14604_vm3  ;;  %v3385_v30 = vrot.slane %v11143_v15, 2  ;;  %v14623_v46 = vld [vmem:[#allocation351_spill] sm:$0xff]  ;;  %v14624_v54 = vld [vmem:[#allocation396_spill] sm:$0xff] }
 0x54e   :  { %v2780_v38 = vsel %vm2741_vm11, %v2715_v14, %v10994_v18  ;;  %v11141_v43 = vsel %vm13457_vm2, %v5428_v44, %v5429_v49  ;;  %v11151_v58 = vsel %vm13458_vm1, %v5341_v9, %v5342_v7  ;;  %v2329_v18 = vsel %vm14604_vm3, %v14603_v48, %v14602_v31  ;;  %vm14609_vm2 = vmmov %vm14604_vm3  ;;  %v14618_v14 = vld [vmem:[#allocation287_spill] sm:$0xff] }
 0x54f   :  { %v1850_v53 = vpop.permute.xlu0 %1849  ;;  %6690 = vmatmul.msk.f32.gmra.mxu2 %vm2815_vm12, %v2780_v38  ;;  %v2330_v51 = vsel %vm14607_vm15, %v14606_v22, %v14605_v36  ;;  %vm14611_vm1 = vmmov %vm14609_vm2  ;;  %v2391_v61 = vsel %vm14613_vm0, %v2329_v18, %v14612_v35  ;;  %v3069_v38 = vadd.f32 %v10640_v34, %v11086_v0  ;;  %v14626_v48 = vld [vmem:[#allocation403_spill] sm:$0xff]  ;;  %v14627_v36 = vld [vmem:[#allocation449_spill] sm:$0xff]  ;;  %v6765_v35 = vrot.slane %v3385_v30, 9 }
 0x550   :  { %5623 = vrot.lane.b32.xlu2 %v11067_v20, %s7127_s14  ;;  %v2666_v63 = vsel %vm2611_vm8, %v2601_v57, %v1850_v53  ;;  %v2346_v53 = vsel %vm14609_vm2, %v14344_v5, %v14608_v59  ;;  %v2345_v40 = vsel %vm14611_vm1, %v14319_v55, %v14610_v56  ;;  %vm14615_vm3 = vmmov %vm14613_vm0  ;;  %v2456_v55 = vsel %vm2416_vm5, %v2391_v61, %v14620_v1  ;;  %v14628_v59 = vld [vmem:[#allocation167_spill] sm:$0xff]  ;;  %v14631_v1 = vld [vmem:[#allocation440_spill] sm:$0xff] }
 0x551   :  { %5569 = vrot.lane.b32.xlu1 %v11047_v27, %s7125_s23  ;;  %v2392_v5 = vsel %vm14615_vm3, %v2330_v51, %v14614_v52  ;;  %vm14617_vm2 = vmmov %vm14613_vm0  ;;  %v2521_v57 = vsel %vm2481_vm7, %v2456_v55, %v14624_v54  ;;  %v14629_v56 = vld [vmem:[#allocation411_spill] sm:$0xff]  ;;  %vm14638_vm1 = vcmask 1044484   ;;  %vm14640_vm3 = vcmask 1045509  }
 0x552   :  { %vm14619_vm15 = vmmov %vm14613_vm0 }
 0x553   :  { %5671 = vrot.lane.b32.xlu0 %v11103_v23, %s7129_s16  ;;  %v2408_v9 = vsel %vm14619_vm15, %v2346_v53, %v14618_v14  ;;  %vm14644_vm15 = vcmask 31744  }
 0x554   :  { %v2033_v39 = vpop.permute.xlu1 %2032  ;;  %v3071_v24 = vpop.f32.mrf.mxu0  ;;  %v2473_v2 = vsel %vm2416_vm5, %v2408_v9, %v14623_v46 }
 0x555   :  { %v11129_v21 = vpop.permute.xlu2 %2036  ;;  %v3072_v12 = vadd.f32 %v10640_v34, %v3071_v24  ;;  %v2731_v17 = vsel %vm2676_vm10, %v2666_v63, %v2033_v39  ;;  %v2407_v39 = vsel %vm14617_vm2, %v2345_v40, %v14616_v4  ;;  %v14621_v24 = vld [vmem:[#allocation334_spill] sm:$0xff]  ;;  %v11202_v18 = vsel %vm2481_vm7, %v2473_v2, %v14626_v48 }
 0x556   :  { %v2796_v16 = vsel %vm2741_vm11, %v2731_v17, %v11029_v29  ;;  %v2457_v49 = vsel %vm2416_vm5, %v2392_v5, %v14621_v24  ;;  %v2472_v29 = vsel %vm2416_vm5, %v2407_v39, %v14622_v47  ;;  %v3386_v17 = vrot.slane %v11143_v15, 4  ;;  %v14630_v5 = vld [vmem:[#allocation453_spill] sm:$0xff] }
 0x557   :  { %v2003_v41 = vpop.permute.xlu0 %2002  ;;  %v11170_v44 = vmax.f32 %v3072_v12, 0.0  ;;  %6706 = vmatmul.msk.f32.gmra.mxu3 %vm2815_vm12, %v2796_v16  ;;  %v14625_v12 = vld [vmem:[#allocation398_spill] sm:$0xff]  ;;  %v3387_v34 = vrot.slane %v11143_v15, 6  ;;  %v2537_v40 = vsel %vm2481_vm7, %v2472_v29, %v14629_v56  ;;  %v11221_v39 = vmax.f32 %v3069_v38, 0.0  ;;  %v11237_v38 = vld [vmem:[%s13101_s2] ss:$0 sm:$0xff] }
 0x558   :  { %5761 = vrot.lane.b32.xlu2 %v11141_v43, %s7130_s17  ;;  %v2522_v31 = vsel %vm2481_vm7, %v2457_v49, %v14625_v12  ;;  %v2602_v4 = vsel %vm2546_vm9, %v2537_v40, %v14630_v5  ;;  %v6766_v47 = vrot.slane %v3386_v17, 9  ;;  %vm14641_vm2 = vcmask 1040384  }
 0x559   :  { %5716 = vrot.lane.b32.xlu1 %v11151_v58, %s7128_s15  ;;  %v3391_v7 = vrot.slane %v11170_v44, 2  ;;  %v3392_v63 = vrot.slane %v11170_v44, 4  ;;  %v3393_v0 = vrot.slane %v11170_v44, 6  ;;  %v6772_v61 = vrot.slane %v11170_v44, 9 }
 0x55a   :  { %v2587_v55 = vsel %vm2546_vm9, %v2522_v31, %v14631_v1  ;;  %v2667_v24 = vsel %vm2611_vm8, %v2602_v4, %v11063_v26  ;;  %v6767_v29 = vrot.slane %v3387_v34, 9  ;;  %v3388_v12 = vrot.slane %v11221_v39, 2 }
 0x55b   :  { %5381 = vrot.lane.b32.xlu0 %v11047_v27, %s7120_s11  ;;  %v2586_v27 = vsel %vm2546_vm9, %v2521_v57, %v14627_v36  ;;  %v6773_v22 = vrot.slane %v3391_v7, 9  ;;  %v6774_v14 = vrot.slane %v3392_v63, 9  ;;  %v6775_v46 = vrot.slane %v3393_v0, 9 }
 0x55c   :  { %v2186_v32 = vpop.permute.xlu1 %2185  ;;  %v2651_v53 = vsel %vm2611_vm8, %v2586_v27, %v14628_v59  ;;  %v4550_v57 = vmax.f32 %v3385_v30, %v6765_v35  ;;  %v3389_v31 = vrot.slane %v11221_v39, 4  ;;  %v6768_v30 = vrot.slane %v11221_v39, 9 }
 0x55d   :  { %v2716_v16 = vsel %vm2676_vm10, %v2651_v53, %v2003_v41  ;;  %v11215_v52 = vpop.permute.xlu2 %2189  ;;  %v6764_v41 = vrot.slane %v11143_v15, 9  ;;  %v4558_v49 = vmax.f32 %v3391_v7, %v6773_v22  ;;  %v4559_v48 = vmax.f32 %v3392_v63, %v6774_v14 }
 0x55e   :  { %v2781_v9 = vsel %vm2741_vm11, %v2716_v16, %v2186_v32  ;;  %v4551_v53 = vmax.f32 %v3386_v17, %v6766_v47  ;;  %v4552_v56 = vmax.f32 %v3387_v34, %v6767_v29  ;;  %v4560_v35 = vmax.f32 %v3393_v0, %v6775_v46 }
 0x55f   :  { %v2035_v51 = vpop.permute.xlu0 %2034  ;;  %6691 = vmatmul.msk.f32.gmra.mxu2 %vm2815_vm12, %v2781_v9  ;;  %v4549_v27 = vmax.f32 %v11143_v15, %v6764_v41  ;;  %v4782_v22 = vmax.f32 %v4550_v57, %v4558_v49  ;;  %v6769_v15 = vrot.slane %v3388_v12, 9  ;;  %v6770_v14 = vrot.slane %v3389_v31, 9  ;;  %v14633_v41 = vld [vmem:[#allocation272_spill] sm:$0xff]  ;;  %v14634_v49 = vld [vmem:[#allocation463_spill] sm:$0xff] }
 0x560   :  { %5515 = vrot.lane.b32.xlu2 %v11103_v23, %s7124_s22  ;;  %v2732_v2 = vsel %vm2676_vm10, %v2667_v24, %v2035_v51  ;;  %v4553_v9 = vmax.f32 %v11221_v39, %v6768_v30  ;;  %v4783_v1 = vmax.f32 %v4551_v53, %v4559_v48  ;;  %v2393_v24 = vsel %vm14613_vm0, %v11134_v42, %v14633_v41 }
 0x561   :  { %5468 = vrot.lane.b32.xlu1 %v11067_v20, %s7122_s0  ;;  %v4557_v20 = vmax.f32 %v11170_v44, %v6772_v61  ;;  %v14632_v44 = vld [vmem:[#allocation18_spill] sm:$0xff]  ;;  %v11254_v61 = vpop.f32.mrf.mxu2  ;;  %v5038_v17 = vperm.slane %v4782_v22, 0  ;;  %v2603_v47 = vsel %vm2546_vm9, %v11202_v18, %v14634_v49  ;;  %v3390_v29 = vrot.slane %v11221_v39, 6 }
 0x562   :  { %v2652_v36 = vsel %vm2611_vm8, %v2587_v55, %v14632_v44  ;;  %v4555_v42 = vmax.f32 %v3389_v31, %v6770_v14 }
 0x563   :  { %5571 = vrot.lane.b32.xlu0 %v11151_v58, %s7125_s23  ;;  %v2717_v40 = vsel %vm2676_vm10, %v2652_v36, %v11088_v45  ;;  %v4781_v63 = vmax.f32 %v4549_v27, %v4557_v20  ;;  %v14635_v27 = vld [vmem:[#allocation336_spill] sm:$0xff]  ;;  %v6771_v14 = vrot.slane %v3390_v29, 9 }
 0x564   :  { %v2218_v32 = vpop.permute.xlu1 %2217  ;;  %v3074_v54 = vpop.f32.mrf.mxu0  ;;  %v2458_v22 = vsel %vm2416_vm5, %v2393_v24, %v14635_v27  ;;  %v14649_v27 = vld [vmem:[#allocation189_spill] sm:$0xff] }
 0x565   :  { %v3075_v26 = vadd.f32 %v11237_v38, %v3074_v54  ;;  %v2797_v7 = vsel %vm2741_vm11, %v2732_v2, %v2218_v32  ;;  %v11262_v45 = vpop.permute.xlu2 %2221  ;;  %v4784_v32 = vmax.f32 %v4552_v56, %v4560_v35  ;;  %v5037_v54 = vperm.slane %v4781_v63, 0 }
 0x566   :  { %6707 = vmatmul.msk.f32.gmra.mxu3 %vm2815_vm12, %v2797_v7  ;;  %v5039_v7 = vperm.slane %v4783_v1, 0  ;;  %v14639_v1 = vld [vmem:[#allocation203_spill] sm:$0xff] }
 0x567   :  { %v11250_v51 = vmax.f32 %v3075_v26, 0.0  ;;  %v2188_v59 = vpop.permute.xlu0 %2187  ;;  %v4554_v26 = vmax.f32 %v3388_v12, %v6769_v15  ;;  %v5165_v36 = vsel %vm5141_vm13, %v5038_v17, %v5037_v54  ;;  %v14636_v12 = vld [vmem:[#allocation388_spill] sm:$0xff] }
 0x568   :  { %v2782_v46 = vsel %vm2741_vm11, %v2717_v40, %v2188_v59  ;;  %v2523_v56 = vsel %vm2481_vm7, %v2458_v22, %v14636_v12  ;;  %v14650_v22 = vld [vmem:[#allocation71_spill] sm:$0xff] }
 0x569   :  { %v3394_v16 = vrot.slane %v11250_v51, 2  ;;  %v3395_v5 = vrot.slane %v11250_v51, 4  ;;  %v6776_v4 = vrot.slane %v11250_v51, 9  ;;  %5625 = vrot.lane.b32.xlu1 %v11141_v43, %s7127_s14  ;;  %6692 = vmatmul.msk.f32.gmra.mxu2 %vm2815_vm12, %v2782_v46  ;;  %v3396_v48 = vrot.slane %v11250_v51, 6  ;;  %v11284_v40 = vpop.f32.mrf.mxu2 }
 0x56b   :  { %v6777_v34 = vrot.slane %v3394_v16, 9  ;;  %v6778_v0 = vrot.slane %v3395_v5, 9  ;;  %v4561_v55 = vmax.f32 %v11250_v51, %v6776_v4  ;;  %v5040_v51 = vperm.slane %v4784_v32, 0 }
 0x56c   :  { %v1854_v2 = vpop.permute.xlu1 %1853  ;;  %v4556_v32 = vmax.f32 %v3390_v29, %v6771_v14 }
 0x56d   :  { %v4562_v57 = vmax.f32 %v3394_v16, %v6777_v34  ;;  %v4785_v20 = vmax.f32 %v4553_v9, %v4561_v55  ;;  %v2668_v30 = vsel %vm2611_vm8, %v2603_v47, %v1854_v2  ;;  %v4563_v39 = vmax.f32 %v3395_v5, %v6778_v0  ;;  %v11294_v55 = vpop.permute.xlu2 %1857 }
 0x56e   :  { %v2733_v18 = vsel %vm2676_vm10, %v2668_v30, %v11129_v21  ;;  %v14637_v21 = vld [vmem:[#allocation450_spill] sm:$0xff]  ;;  %v5166_v5 = vsel %vm5143_vm14, %v5039_v7, %v5165_v36  ;;  %v6779_v9 = vrot.slane %v3396_v48, 9  ;;  %v14645_v30 = vld [vmem:[#allocation289_spill] sm:$0xff] }
 0x56f   :  { %v2220_v44 = vpop.permute.xlu0 %2219  ;;  %v4786_v53 = vmax.f32 %v4554_v26, %v4562_v57  ;;  %v4787_v31 = vmax.f32 %v4555_v42, %v4563_v39  ;;  %v5041_v35 = vperm.slane %v4785_v20, 0  ;;  %v2588_v63 = vsel %vm2546_vm9, %v2523_v56, %v14637_v21  ;;  %v14643_v57 = vld [vmem:[#allocation67_spill] sm:$0xff]  ;;  %v14646_v42 = vld [vmem:[#allocation341_spill] sm:$0xff]  ;;  %v14648_v39 = vld [vmem:[#allocation464_spill] sm:$0xff] }
 0x570   :  { %v2798_v59 = vsel %vm2741_vm11, %v2733_v18, %v2220_v44  ;;  %v5167_v15 = vsel %vm14638_vm1, %v5040_v51, %v5166_v5  ;;  %v2653_v17 = vsel %vm2611_vm8, %v2588_v63, %v14639_v1  ;;  %v4564_v49 = vmax.f32 %v3396_v48, %v6779_v9  ;;  %v14647_v48 = vld [vmem:[#allocation412_spill] sm:$0xff]  ;;  %vm14651_vm1 = vmmov %vm14644_vm15  ;;  %v14654_v5 = vld [vmem:[#allocation326_spill] sm:$0xff] }
 0x571   :  { %6708 = vmatmul.msk.f32.gmra.mxu3 %vm2815_vm12, %v2798_v59  ;;  %v5042_v16 = vperm.slane %v4786_v53, 0  ;;  %v5043_v4 = vperm.slane %v4787_v31, 0  ;;  %v5168_v0 = vsel %vm14640_vm3, %v5041_v35, %v5167_v15  ;;  %v2347_v20 = vsel %vm14644_vm15, %v14388_v8, %v14643_v57  ;;  %v11308_v26 = vpop.f32.mrf.mxu2  ;;  %v14652_v31 = vld [vmem:[#allocation274_spill] sm:$0xff]  ;;  %vm14653_vm3 = vmmov %vm14613_vm0  ;;  %v14655_v1 = vld [vmem:[#allocation399_spill] sm:$0xff] }
 0x572   :  { %v4788_v7 = vmax.f32 %v4556_v32, %v4564_v49  ;;  %v2332_v59 = vsel %vm14651_vm1, %v14650_v22, %v14649_v27  ;;  %vm14657_vm15 = vcmask 1045504   ;;  %v14659_v49 = vld [vmem:[#allocation49_spill] sm:$0xff]  ;;  %v14675_v27 = vld [vmem:[#allocation290_spill] sm:$0xff] }
 0x573   :  { %v5169_v24 = vsel %vm5149_vm6, %v5042_v16, %v5168_v0  ;;  %v2394_v51 = vsel %vm14653_vm3, %v2332_v59, %v14652_v31  ;;  %v14661_v57 = vld [vmem:[#allocation61_spill] sm:$0xff]  ;;  %vm14662_vm3 = vmmov %vm14651_vm1  ;;  %v14681_v31 = vld [vmem:[#allocation295_spill] sm:$0xff] }
 0x574   :  { %v2007_v34 = vpop.permute.xlu1 %2006  ;;  %v5170_v47 = vsel %vm5151_vm4, %v5043_v4, %v5169_v24  ;;  %v5044_v8 = vperm.slane %v4788_v7, 0  ;;  %v2459_v4 = vsel %vm2416_vm5, %v2394_v51, %v14654_v5  ;;  %v14663_v7 = vld [vmem:[#allocation77_spill] sm:$0xff]  ;;  %v14684_v5 = vld [vmem:[#allocation59_spill] sm:$0xff] }
 0x575   :  { %v2718_v41 = vsel %vm2676_vm10, %v2653_v17, %v2007_v34  ;;  %v11302_v54 = vsel %vm14641_vm2, 0.0, %v5170_v47  ;;  %v11328_v35 = vpop.permute.xlu2 %1859  ;;  %v2524_v17 = vsel %vm2481_vm7, %v2459_v4, %v14655_v1  ;;  %v14656_v34 = vld [vmem:[#allocation452_spill] sm:$0xff]  ;;  %v14687_v1 = vld [vmem:[#allocation357_spill] sm:$0xff] }
 0x576   :  { %v2783_v46 = vsel %vm2741_vm11, %v2718_v41, %v11215_v52  ;;  %14642 = vst [vmem:[#allocation344_spill] sm:$0xff] %v11302_v54  ;;  %5673 = vrot.lane.b32.xlu2 %v11302_v54, %s7129_s16  ;;  %v2409_v52 = vsel %vm14613_vm0, %v2347_v20, %v14645_v30  ;;  %v5431_v12 = vrot.slane %v11302_v54, 2  ;;  %v5344_v56 = vrot.slane %v11302_v54, 1 }
 0x577   :  { %v1856_v2 = vpop.permute.xlu0 %1855  ;;  %6693 = vmatmul.msk.f32.gmra.mxu2 %vm2815_vm12, %v2783_v46  ;;  %v2474_v29 = vsel %vm2416_vm5, %v2409_v52, %v14646_v42  ;;  %v5294_v21 = vsel %vm14641_vm2, %v5044_v8, 0.0  ;;  %v2589_v0 = vsel %vm2546_vm9, %v2524_v17, %v14656_v34  ;;  %vm14658_vm0 = vcmask 1046528   ;;  %vm14664_vm2 = vmmov %vm14651_vm1  ;;  %v14665_v52 = vld [vmem:[#allocation74_spill] sm:$0xff] }
 0x578   :  { %v2539_v44 = vsel %vm2481_vm7, %v2474_v29, %v14647_v48  ;;  %v5432_v15 = vrot.slane %v5294_v21, 2  ;;  %v5345_v14 = vrot.slane %v5294_v21, 1  ;;  %v2352_v20 = vsel %vm14662_vm3, %v14559_v6, %v14661_v57  ;;  %v14667_v48 = vld [vmem:[#allocation79_spill] sm:$0xff]  ;;  %v14683_v21 = vld [vmem:[#allocation345_spill] sm:$0xff] }
 0x579   :  { %v2604_v36 = vsel %vm2546_vm9, %v2539_v44, %v14648_v39  ;;  %v3107_v47 = vpop.f32.mrf.mxu2  ;;  %v2348_v30 = vsel %vm14664_vm2, %v14429_v28, %v14663_v7  ;;  %v14669_v44 = vld [vmem:[#allocation84_spill] sm:$0xff]  ;;  %v14671_v39 = vld [vmem:[#allocation279_spill] sm:$0xff]  ;;  %vm14672_vm3 = vcmask 64512   ;;  %v11378_v28 = vpop.f32.mrf.mxu0  ;;  %v14693_v7 = vld [vmem:[#allocation417_spill] sm:$0xff] }
 0x57a   :  { %v2669_v53 = vsel %vm2611_vm8, %v2604_v36, %v1856_v2  ;;  %v11344_v41 = vsel %vm14657_vm15, %v5431_v12, %v5432_v15  ;;  %v11347_v24 = vsel %vm14658_vm0, %v5344_v56, %v5345_v14  ;;  %vm14666_vm15 = vmmov %vm14651_vm1  ;;  %v2410_v6 = vsel %vm14672_vm3, %v2348_v30, %v14671_v39  ;;  %v14679_v12 = vld [vmem:[#allocation293_spill] sm:$0xff]  ;;  %v14685_v15 = vld [vmem:[#allocation352_spill] sm:$0xff] }
 0x57b   :  { %5763 = vrot.lane.b32.xlu1 %v11344_v41, %s7130_s17  ;;  %5718 = vrot.lane.b32.xlu0 %v11347_v24, %s7128_s15  ;;  %v2350_v42 = vsel %vm14666_vm15, %v14520_v3, %v14665_v52  ;;  %vm14668_vm0 = vmmov %vm14651_vm1  ;;  %v3108_v36 = vadd.f32 %v11237_v38, %v3107_v47  ;;  %v14673_v3 = vld [vmem:[#allocation282_spill] sm:$0xff]  ;;  %v2475_v14 = vsel %vm2416_vm5, %v2410_v6, %v14685_v15  ;;  %v14690_v47 = vld [vmem:[#allocation409_spill] sm:$0xff] }
 0x57c   :  { %v2039_v18 = vpop.permute.xlu1 %2038  ;;  %vm14674_vm2 = vmmov %vm14672_vm3  ;;  %v14692_v57 = vld [vmem:[#allocation415_spill] sm:$0xff] }
 0x57d   :  { %v2734_v63 = vsel %vm2676_vm10, %v2669_v53, %v2039_v18  ;;  %vm14676_vm15 = vmmov %vm14674_vm2  ;;  %v11405_v34 = vpop.permute.xlu2 %1861 }
 0x57e   :  { %v2799_v9 = vsel %vm2741_vm11, %v2734_v63, %v11262_v45  ;;  %5383 = vrot.lane.b32.xlu2 %v11151_v58, %s7120_s11  ;;  %v2654_v45 = vsel %vm2611_vm8, %v2589_v0, %v14659_v49  ;;  %v14660_v58 = vld [vmem:[#allocation204_spill] sm:$0xff]  ;;  %v14688_v0 = vld [vmem:[#allocation355_spill] sm:$0xff] }
 0x57f   :  { %v2009_v16 = vpop.permute.xlu0 %2008  ;;  %6709 = vmatmul.msk.f32.gmra.mxu3 %vm2815_vm12, %v2799_v9  ;;  %v2349_v46 = vsel %vm14651_vm1, %v14445_v11, %v14660_v58  ;;  %v2351_v11 = vsel %vm14668_vm0, %v14552_v37, %v14667_v48  ;;  %vm14670_vm1 = vmmov %vm14668_vm0  ;;  %v14677_v37 = vld [vmem:[#allocation292_spill] sm:$0xff] }
 0x580   :  { %v2719_v2 = vsel %vm2676_vm10, %v2654_v45, %v2009_v16  ;;  %v2353_v18 = vsel %vm14670_vm1, %v14562_v19, %v14669_v44  ;;  %v2413_v8 = vsel %vm14674_vm2, %v2351_v11, %v14673_v3  ;;  %v2411_v22 = vsel %vm14676_vm15, %v2349_v46, %v14675_v27  ;;  %vm14678_vm0 = vmmov %vm14674_vm2  ;;  %v14689_v49 = vld [vmem:[#allocation200_spill] sm:$0xff]  ;;  %v14696_v44 = vld [vmem:[#allocation467_spill] sm:$0xff] }
 0x581   :  { %v2412_v59 = vsel %vm14678_vm0, %v2350_v42, %v14677_v37  ;;  %v3099_v19 = vadd.f32 %v11237_v38, %v11254_v61  ;;  %vm14680_vm1 = vmmov %vm14678_vm0  ;;  %v3102_v16 = vadd.f32 %v11237_v38, %v11284_v40  ;;  %v14686_v61 = vld [vmem:[#allocation354_spill] sm:$0xff]  ;;  %v2478_v40 = vsel %vm2416_vm5, %v2413_v8, %v14688_v0  ;;  %v14695_v48 = vld [vmem:[#allocation456_spill] sm:$0xff] }
 0x582   :  { %v2414_v56 = vsel %vm14680_vm1, %v2352_v20, %v14679_v12  ;;  %vm14682_vm3 = vmmov %vm14678_vm0  ;;  %v2477_v63 = vsel %vm2416_vm5, %v2412_v59, %v14683_v21  ;;  %v2476_v9 = vsel %vm2416_vm5, %v2411_v22, %v14686_v61  ;;  %v11415_v46 = vmax.f32 %v3108_v36, 0.0  ;;  %v14694_v42 = vld [vmem:[#allocation418_spill] sm:$0xff]  ;;  %v14697_v36 = vld [vmem:[#allocation459_spill] sm:$0xff] }
 0x583   :  { %v2415_v51 = vsel %vm14682_vm3, %v2353_v18, %v14681_v31  ;;  %v2479_v17 = vsel %vm2416_vm5, %v2414_v56, %v14687_v1  ;;  %v2541_v45 = vsel %vm2481_vm7, %v2476_v9, %v14689_v49  ;;  %v2542_v20 = vsel %vm2481_vm7, %v2477_v63, %v14692_v57  ;;  %5517 = vrot.lane.b32.xlu1 %v11302_v54, %s7124_s22  ;;  %v14698_v8 = vld [vmem:[#allocation465_spill] sm:$0xff] }
 0x584   :  { %v2192_v32 = vpop.permute.xlu1 %2191  ;;  %v2480_v4 = vsel %vm2416_vm5, %v2415_v51, %v14684_v5  ;;  %v2544_v58 = vsel %vm2481_vm7, %v2479_v17, %v14690_v47  ;;  %v2543_v30 = vsel %vm2481_vm7, %v2478_v40, %v14693_v7  ;;  %v11423_v52 = vmax.f32 %v3099_v19, 0.0  ;;  %5470 = vrot.lane.b32.xlu0 %v11141_v43, %s7122_s0  ;;  %v14699_v43 = vld [vmem:[#allocation468_spill] sm:$0xff]  ;;  %v11450_v12 = vpop.f32.mrf.mxu0  ;;  %vm14701_vm5 = vmmov %vm14678_vm0 }
 0x585   :  { %v2784_v29 = vsel %vm2741_vm11, %v2719_v2, %v2192_v32  ;;  %v14691_v2 = vld [vmem:[#allocation414_spill] sm:$0xff]  ;;  %v2609_v18 = vsel %vm2546_vm9, %v2544_v58, %v14696_v44  ;;  %v11435_v39 = vmax.f32 %v3102_v16, 0.0  ;;  %v11439_v3 = vsel %vm2546_vm9, %v2543_v30, %v14697_v36  ;;  %v3110_v40 = vpop.f32.mrf.mxu2  ;;  %v5942_v49 = vld [vmem:[%s13102_s3 + $0x40] sm:$0xff]  ;;  %v5941_v44 = vld [vmem:[%s13102_s3 + $0x38] sm:$0xff] }
 0x586   :  { %6694 = vmatmul.msk.f32.gmra.mxu2 %vm2815_vm12, %v2784_v29  ;;  %5573 = vrot.lane.b32.xlu2 %v11347_v24, %s7125_s23  ;;  %v2540_v32 = vsel %vm2481_vm7, %v2475_v14, %v14691_v2  ;;  %v2545_v29 = vsel %vm2481_vm7, %v2480_v4, %v14694_v42  ;;  %v2606_v27 = vsel %vm2546_vm9, %v2541_v45, %v14698_v8  ;;  %v3427_v59 = vrot.slane %v11415_v46, 2  ;;  %v11497_v2 = vpop.permute.xlu2 %1863 }
 0x587   :  { %v2041_v53 = vpop.permute.xlu0 %2040  ;;  %v2605_v11 = vsel %vm2546_vm9, %v2540_v32, %v14695_v48  ;;  %v2610_v22 = vsel %vm2546_vm9, %v2545_v29, %v14699_v43  ;;  %v2674_v37 = vsel %vm2611_vm8, %v2609_v18, %v14372_v62  ;;  %v3418_v51 = vrot.slane %v11423_v52, 2  ;;  %6003 = vmatpush.msrb.mxu1 %v5942_v49  ;;  %v5940_v18 = vld [vmem:[%s13102_s3 + $0x30] sm:$0xff] }
 0x588   :  { %v2670_v19 = vsel %vm2611_vm8, %v2605_v11, %v11294_v55  ;;  %v2739_v56 = vsel %vm2676_vm10, %v2674_v37, %v10207_v13  ;;  %v2675_v31 = vsel %vm2611_vm8, %v2610_v22, %v14372_v62  ;;  %v3419_v21 = vrot.slane %v11423_v52, 4  ;;  %v14700_v62 = vld [vmem:[#allocation466_spill] sm:$0xff] }
 0x589   :  { %v3105_v63 = vadd.f32 %v11237_v38, %v11308_v26  ;;  %v2735_v16 = vsel %vm2676_vm10, %v2670_v19, %v2041_v53  ;;  %v3421_v55 = vrot.slane %v11435_v39, 2  ;;  %v3428_v4 = vrot.slane %v11415_v46, 4  ;;  %6004 = vmatpush.msrb.mxu1 %v5941_v44 }
 0x58a   :  { %v2740_v14 = vsel %vm2676_vm10, %v2675_v31, %v10207_v13  ;;  %v11468_v61 = vsel %vm2546_vm9, %v2542_v20, %v14700_v62  ;;  %v3429_v9 = vrot.slane %v11415_v46, 6  ;;  %v11474_v26 = vsel %vm2741_vm11, %v2739_v56, %v10323_v50 }
 0x58b   :  { %v11478_v53 = vsel %vm2741_vm11, %v2740_v14, %v10323_v50  ;;  %v13461_v1 = vrot.slane %v11423_v52, 6  ;;  %v6808_v13 = vrot.slane %v11423_v52, 9  ;;  %v3422_v17 = vrot.slane %v11435_v39, 4  ;;  %6005 = vmatpush.msrb.mxu1 %v5940_v18 }
 0x58c   :  { %v2224_v6 = vpop.permute.xlu1 %2223  ;;  %v6821_v0 = vrot.slane %v3427_v59, 9  ;;  %v11488_v45 = vrot.slane %v3418_v51, 9  ;;  %v11492_v50 = vrot.slane %v3419_v21, 9  ;;  %v3423_v47 = vrot.slane %v11435_v39, 6  ;;  %5627 = vrot.lane.b32.xlu0 %v11344_v41, %s7127_s14 }
 0x58d   :  { %v2800_v15 = vsel %vm2741_vm11, %v2735_v16, %v2224_v6  ;;  %v11495_v58 = vmax.f32 %v3105_v63, 0.0  ;;  %v6813_v32 = vrot.slane %v3421_v55, 9  ;;  %v6820_v57 = vrot.slane %v11415_v46, 9 }
 0x58e   :  { %6710 = vmatmul.msk.f32.gmra.mxu3 %vm2815_vm12, %v2800_v15  ;;  %v6822_v20 = vrot.slane %v3428_v4, 9  ;;  %v2671_v7 = vsel %vm2611_vm8, %v2606_v27, %v11328_v35  ;;  %v6812_v42 = vrot.slane %v11435_v39, 9  ;;  %v6823_v29 = vrot.slane %v3429_v9, 9 }
 0x58f   :  { %v2043_v5 = vpop.permute.xlu0 %2042  ;;  %v3078_v48 = vadd.f32 %v11237_v38, %v11378_v28  ;;  %v11515_v6 = vmax.f32 %v11423_v52, %v6808_v13  ;;  %v6814_v35 = vrot.slane %v3422_v17, 9  ;;  %v4606_v36 = vmax.f32 %v3427_v59, %v6821_v0 }
 0x590   :  { %v2736_v11 = vsel %vm2676_vm10, %v2671_v7, %v2043_v5  ;;  %v6815_v28 = vrot.slane %v3423_v47, 9  ;;  %v3424_v43 = vrot.slane %v11495_v58, 2  ;;  %v3425_v22 = vrot.slane %v11495_v58, 4 }
 0x591   :  { %v4598_v56 = vmax.f32 %v3421_v55, %v6813_v32  ;;  %v4605_v31 = vmax.f32 %v11415_v46, %v6820_v57  ;;  %v4607_v63 = vmax.f32 %v3428_v4, %v6822_v20  ;;  %v3111_v16 = vadd.f32 %v11237_v38, %v3110_v40  ;;  %v11531_v46 = vpop.f32.mrf.mxu2  ;;  %v5939_v4 = vld [vmem:[%s13102_s3 + $0x28] sm:$0xff] }
 0x592   :  { %v4597_v59 = vmax.f32 %v11435_v39, %v6812_v42  ;;  %v4608_v5 = vmax.f32 %v3429_v9, %v6823_v29  ;;  %v11524_v15 = vmax.f32 %v3078_v48, 0.0  ;;  %v4599_v62 = vmax.f32 %v3422_v17, %v6814_v35  ;;  %v5938_v39 = vld [vmem:[%s13102_s3 + $0x20] sm:$0xff]  ;;  %6006 = vmatpush.msrb.mxu1 %v5939_v4  ;;  %v5937_v42 = vld [vmem:[%s13102_s3 + $0x18] sm:$0xff]  ;;  %v11549_v48 = vpop.permute.xlu2 %5377  ;;  %v5936_v35 = vld [vmem:[%s13102_s3 + $0x10] sm:$0xff] }
 0x593   :  { %v13460_v13 = vrot.slane %v11495_v58, 6  ;;  %v6816_v55 = vrot.slane %v11495_v58, 9  ;;  %v4806_v0 = vmax.f32 %v4598_v56, %v4606_v36  ;;  %v4600_v9 = vmax.f32 %v3423_v47, %v6815_v28 }
 0x594   :  { %v2226_v30 = vpop.permute.xlu1 %2225  ;;  %v6817_v40 = vrot.slane %v3424_v43, 9  ;;  %v6818_v49 = vrot.slane %v3425_v22, 9  ;;  %v4805_v32 = vmax.f32 %v4597_v59, %v4605_v31  ;;  %v4807_v57 = vmax.f32 %v4599_v62, %v4607_v63  ;;  %6007 = vmatpush.msrb.mxu1 %v5938_v39 }
 0x595   :  { %v2801_v8 = vsel %vm2741_vm11, %v2736_v11, %v2226_v30  ;;  %v11540_v20 = vmax.f32 %v3111_v16, 0.0  ;;  %v2672_v7 = vsel %vm2611_vm8, %v11468_v61, %v11405_v34  ;;  %v4808_v29 = vmax.f32 %v4600_v9, %v4608_v5  ;;  %v5935_v5 = vld [vmem:[%s13102_s3 + $0x8] sm:$0xff] }
 0x596   :  { %v3083_v27 = vpop.f32.mrf.mxu0  ;;  %6711 = vmatmul.msk.f32.gmra.mxu3 %vm2815_vm12, %v2801_v8  ;;  %v3397_v47 = vrot.slane %v11524_v15, 2  ;;  %v11554_v44 = vrot.slane %v13461_v1, 9  ;;  %v11557_v18 = vmax.f32 %v11495_v58, %v6816_v55  ;;  %v5062_v34 = vperm.slane %v4806_v0, 0  ;;  %6008 = vmatpush.msrb.mxu1 %v5937_v42 }
 0x597   :  { %v3084_v37 = vadd.f32 %v11237_v38, %v3083_v27  ;;  %v2045_v19 = vpop.permute.xlu0 %2044  ;;  %v11565_v36 = vrot.slane %v13460_v13, 9  ;;  %v11567_v8 = vmax.f32 %v3424_v43, %v6817_v40  ;;  %v3158_v27 = vpop.f32.mrf.mxu3  ;;  %v11570_v56 = vmax.f32 %v3425_v22, %v6818_v49  ;;  %v5934_v40 = vld [vmem:[%s13102_s3] sm:$0xff] }
 0x598   :  { %v2737_v11 = vsel %vm2676_vm10, %v2672_v7, %v2045_v19  ;;  %v5061_v31 = vperm.slane %v4805_v32, 0  ;;  %v5063_v63 = vperm.slane %v4807_v57, 0  ;;  %v3430_v16 = vrot.slane %v11540_v20, 2  ;;  %6009 = vmatpush.msrb.mxu1 %v5936_v35 }
 0x599   :  { %v11527_v14 = vmax.f32 %v3084_v37, 0.0  ;;  %v3398_v59 = vrot.slane %v11524_v15, 4  ;;  %v6781_v43 = vrot.slane %v3397_v47, 9  ;;  %v3081_v62 = vadd.f32 %v11237_v38, %v11450_v12  ;;  %v11586_v9 = vpop.f32.mrf.mxu2 }
 0x59a   :  { %v11581_v22 = vperm.slane %v4808_v29, 0  ;;  %v3431_v0 = vrot.slane %v11540_v20, 4  ;;  %v6824_v4 = vrot.slane %v11540_v20, 9  ;;  %v3159_v39 = vadd.f32 %v11237_v38, %v3158_v27  ;;  %6010 = vmatpush.msrb.mxu1 %v5935_v5 }
 0x59b   :  { %v3403_v17 = vrot.slane %v11527_v14, 2  ;;  %v3404_v28 = vrot.slane %v11527_v14, 4  ;;  %v6788_v55 = vrot.slane %v11527_v14, 9  ;;  %v5183_v12 = vsel %vm5141_vm13, %v5062_v34, %v5061_v31 }
 0x59c   :  { %v2228_v30 = vpop.permute.xlu1 %2227  ;;  %v6780_v49 = vrot.slane %v11524_v15, 9  ;;  %v3405_v32 = vrot.slane %v11527_v14, 6  ;;  %v3399_v42 = vrot.slane %v11524_v15, 6  ;;  %v6782_v29 = vrot.slane %v3398_v59, 9  ;;  %6011 = vmatpush.msrb.mxu1 %v5934_v40 }
 0x59d   :  { %v2802_v61 = vsel %vm2741_vm11, %v2737_v11, %v2228_v30  ;;  %v6789_v37 = vrot.slane %v3403_v17, 9  ;;  %v6790_v57 = vrot.slane %v3404_v28, 9  ;;  %v6825_v30 = vrot.slane %v3430_v16, 9 }
 0x59e   :  { %6712 = vmatmul.msk.f32.gmra.mxu3 %vm2815_vm12, %v2802_v61  ;;  %v2673_v11 = vsel %vm2611_vm8, %v11439_v3, %v11497_v2  ;;  %v4566_v35 = vmax.f32 %v3397_v47, %v6781_v43  ;;  %v11598_v27 = vmax.f32 %v3081_v62, 0.0  ;;  %v4573_v34 = vmax.f32 %v11527_v14, %v6788_v55  ;;  %v5568_v2 = vpop.permute.xlu2 %5567 }
 0x59f   :  { %v2047_v19 = vpop.permute.xlu0 %2046  ;;  %v4574_v7 = vmax.f32 %v3403_v17, %v6789_v37  ;;  %v3432_v17 = vrot.slane %v11540_v20, 6  ;;  %v11604_v37 = vmax.f32 %v11540_v20, %v6824_v4  ;;  %v11606_v5 = vmax.f32 %v3159_v39, 0.0 }
 0x5a0   :  { %v2738_v31 = vsel %vm2676_vm10, %v2673_v11, %v2047_v19  ;;  %v4565_v3 = vmax.f32 %v11524_v15, %v6780_v49  ;;  %v6791_v47 = vrot.slane %v3405_v32, 9  ;;  %v4575_v43 = vmax.f32 %v3404_v28, %v6790_v57 }
 0x5a1   :  { %v4790_v62 = vmax.f32 %v4566_v35, %v4574_v7  ;;  %v6826_v14 = vrot.slane %v3431_v0, 9  ;;  %v11610_v55 = vmax.f32 %v3430_v16, %v6825_v30  ;;  %v6783_v19 = vrot.slane %v3399_v42, 9  ;;  %v11621_v16 = vpop.f32.mrf.mxu2 }
 0x5a2   :  { %v11613_v11 = vsel %vm5143_vm14, %v5063_v63, %v5183_v12  ;;  %v4567_v4 = vmax.f32 %v3398_v59, %v6782_v29  ;;  %v3400_v39 = vrot.slane %v11598_v27, 2  ;;  %v4809_v15 = vmax.f32 %v11557_v18, %v11604_v37 }
 0x5a3   :  { %v3478_v28 = vrot.slane %v11606_v5, 2  ;;  %v5804_v49 = vsel %vm14701_vm5, 0.0, %v11549_v48  ;;  %v6784_v59 = vrot.slane %v11598_v27, 9  ;;  %v4576_v12 = vmax.f32 %v3405_v32, %v6791_v47 }
 0x5a4   :  { %v2230_v61 = vpop.permute.xlu1 %2229  ;;  %v4791_v57 = vmax.f32 %v4567_v4, %v4575_v43  ;;  %v5046_v7 = vperm.slane %v4790_v62, 0  ;;  %v4568_v30 = vmax.f32 %v3399_v42, %v6783_v19  ;;  %v11629_v35 = vmax.f32 %v3431_v0, %v6826_v14 }
 0x5a5   :  { %v2803_v13 = vsel %vm2741_vm11, %v2738_v31, %v2230_v61  ;;  %v3401_v61 = vrot.slane %v11598_v27, 4  ;;  %v4789_v31 = vmax.f32 %v4565_v3, %v4573_v34  ;;  %v4810_v18 = vmax.f32 %v11567_v8, %v11610_v55 }
 0x5a6   :  { %6713 = vmatmul.msk.f32.gmra.mxu3 %vm2815_vm12, %v2803_v13  ;;  %v6785_v34 = vrot.slane %v3400_v39, 9  ;;  %v3114_v32 = vadd.f32 %v11237_v38, %v11531_v46  ;;  %v4569_v0 = vmax.f32 %v11598_v27, %v6784_v59  ;;  %v4792_v62 = vmax.f32 %v4568_v30, %v4576_v12 }
 0x5a7   :  { %v5465_v1 = vpop.permute.xlu0 %5464  ;;  %v3086_v40 = vpop.f32.mrf.mxu0  ;;  %v6786_v37 = vrot.slane %v3401_v61, 9  ;;  %v5045_v3 = vperm.slane %v4789_v31, 0  ;;  %v5047_v14 = vperm.slane %v4791_v57, 0  ;;  %v3402_v4 = vrot.slane %v11598_v27, 6 }
 0x5a8   :  { %v3087_v63 = vadd.f32 %v11237_v38, %v3086_v40  ;;  %v11634_v48 = vsel %vm2481_vm7, %v5804_v49, %v5465_v1  ;;  %v4570_v31 = vmax.f32 %v3400_v39, %v6785_v34  ;;  %v5715_v49 = vpop.permute.xlu2 %5714  ;;  %vm5866_vm9 = vcmask 326656  }
 0x5a9   :  { %14702 = vst [vmem:[#allocation170_spill] sm:$0xff] %v11634_v48  ;;  %v5171_v55 = vsel %vm5141_vm13, %v5046_v7, %v5045_v3  ;;  %vm5883_vm10 = vcmask 392192   ;;  %vm5900_vm2 = vcmask 457728   ;;  %v5048_v30 = vperm.slane %v4792_v62, 0 }
 0x5aa   :  { %v11627_v29 = vmax.f32 %v3087_v63, 0.0  ;;  %v4571_v63 = vmax.f32 %v3401_v61, %v6786_v37  ;;  %v5172_v3 = vsel %vm5143_vm14, %v5047_v14, %v5171_v55  ;;  %vm5917_vm15 = vcmask 523264  }
 0x5ab   :  { %vm14703_vm0 = vcmask 1044484   ;;  %vm5947_vm1 = vcmask 588800   ;;  %vm14704_vm3 = vcmask 1045509  }
 0x5ac   :  { %v5512_v13 = vpop.permute.xlu1 %5511  ;;  %v3406_v47 = vrot.slane %v11627_v29, 2  ;;  %v3407_v42 = vrot.slane %v11627_v29, 4  ;;  %v6792_v43 = vrot.slane %v11627_v29, 9  ;;  %v3408_v61 = vrot.slane %v11627_v29, 6  ;;  %vm14705_vm5 = vmmov %vm14703_vm0 }
 0x5ad   :  { %v5834_v46 = vsel %vm2611_vm8, %v11634_v48, %v5512_v13  ;;  %v11651_v13 = vpop.f32.mrf.mxu2 }
 0x5ae   :  { %v6793_v19 = vrot.slane %v3406_v47, 9  ;;  %v6794_v40 = vrot.slane %v3407_v42, 9  ;;  %v4577_v1 = vmax.f32 %v11627_v29, %v6792_v43  ;;  %6714 = vmatmul.msk.f32.gmra.mxu3 %vm2815_vm12, %v11474_v26  ;;  %v5850_v7 = vsel %vm2741_vm11, %v5834_v46, %v5568_v2  ;;  %v3092_v29 = vpop.f32.mrf.mxu1 }
 0x5af   :  { %v5622_v8 = vpop.permute.xlu0 %5621  ;;  %v5173_v2 = vsel %vm14703_vm0, %v5048_v30, %v5172_v3  ;;  %v5185_v46 = vsel %vm14705_vm5, %v11581_v22, %v11613_v11  ;;  %vm14706_vm0 = vmmov %vm14704_vm3 }
 0x5b0   :  { %v4578_v59 = vmax.f32 %v3406_v47, %v6793_v19  ;;  %v4793_v12 = vmax.f32 %v4569_v0, %v4577_v1  ;;  %v4579_v57 = vmax.f32 %v3407_v42, %v6794_v40  ;;  %v5867_v27 = vsel %vm5866_vm9, %v5850_v7, %v5622_v8  ;;  %v5467_v11 = vpop.permute.xlu2 %5466 }
 0x5b1   :  { %v5065_v47 = vperm.slane %v4809_v15, 0  ;;  %v6787_v42 = vrot.slane %v3402_v4, 9  ;;  %v4811_v0 = vmax.f32 %v11570_v56, %v11629_v35  ;;  %v11661_v40 = vmax.f32 %v3114_v32, 0.0 }
 0x5b2   :  { %v4794_v34 = vmax.f32 %v4570_v31, %v4578_v59  ;;  %v4795_v43 = vmax.f32 %v4571_v63, %v4579_v57  ;;  %v5049_v26 = vperm.slane %v4793_v12, 0  ;;  %v5066_v15 = vperm.slane %v4810_v18, 0 }
 0x5b3   :  { %v13462_v31 = vrot.slane %v11606_v5, 4  ;;  %v6795_v35 = vrot.slane %v3408_v61, 9  ;;  %v5186_v32 = vsel %vm14706_vm0, %v5065_v47, %v5185_v46  ;;  %v6889_v18 = vrot.slane %v3478_v28, 9  ;;  %v3161_v47 = vpop.f32.mrf.mxu3 }
 0x5b4   :  { %v5670_v39 = vpop.permute.xlu1 %5669  ;;  %v5050_v8 = vperm.slane %v4794_v34, 0  ;;  %v5051_v55 = vperm.slane %v4795_v43, 0  ;;  %v5174_v19 = vsel %vm14704_vm3, %v5049_v26, %v5173_v2  ;;  %v5067_v22 = vperm.slane %v4811_v0, 0 }
 0x5b5   :  { %v5884_v37 = vsel %vm5883_vm10, %v5867_v27, %v5670_v39  ;;  %v3093_v59 = vadd.f32 %v11237_v38, %v3092_v29  ;;  %vm14707_vm3 = vcmask 1040384   ;;  %v4572_v12 = vmax.f32 %v3402_v4, %v6787_v42  ;;  %v11688_v27 = vpop.f32.mrf.mxu2 }
 0x5b6   :  { %v5901_v62 = vsel %vm5900_vm2, %v5884_v37, %v5715_v49  ;;  %6715 = vmatmul.msk.f32.gmra.mxu3 %vm2815_vm12, %v11478_v53  ;;  %v5175_v56 = vsel %vm5149_vm6, %v5050_v8, %v5174_v19  ;;  %v6888_v49 = vrot.slane %v11606_v5, 9  ;;  %v4580_v57 = vmax.f32 %v3408_v61, %v6795_v35  ;;  %vm14711_vm12 = vmmov %vm14707_vm3 }
 0x5b7   :  { %v5760_v14 = vpop.permute.xlu0 %5759  ;;  %v5176_v63 = vsel %vm5151_vm4, %v5051_v55, %v5175_v56  ;;  %v11684_v7 = vmax.f32 %v3418_v51, %v11488_v45  ;;  %v3433_v30 = vrot.slane %v11661_v40, 2  ;;  %v3434_v3 = vrot.slane %v11661_v40, 4  ;;  %vm14712_vm5 = vmmov %vm14707_vm3 }
 0x5b8   :  { %v5918_v1 = vsel %vm5917_vm15, %v5901_v62, %v5760_v14  ;;  %v11679_v53 = vsel %vm14707_vm3, 0.0, %v5176_v63  ;;  %v5187_v34 = vsel %vm5149_vm6, %v5066_v15, %v5186_v32  ;;  %v3435_v4 = vrot.slane %v11661_v40, 6 }
 0x5b9   :  { %6972 = vmatmul.msk.f32.vlgmr.msrb.gmra.mxu1 %vm5947_vm1, %v5918_v1  ;;  %14708 = vst [vmem:[#allocation408_spill] sm:$0xff] %v11679_v53  ;;  %5675 = vrot.lane.b32.xlu1 %v11679_v53, %s7129_s16  ;;  %v4796_v43 = vmax.f32 %v4572_v12, %v4580_v57  ;;  %v11697_v51 = vmax.f32 %v3419_v21, %v11492_v50  ;;  %v14709_v45 = vrot.slane %v11423_v52, 6  ;;  %v11707_v37 = vrot.slane %v13462_v31, 9 }
 0x5ba   :  { %v6827_v2 = vrot.slane %v3432_v17, 9  ;;  %v14710_v42 = vrot.slane %v11495_v58, 6  ;;  %v11717_v50 = vmax.f32 %v11606_v5, %v6888_v49  ;;  %v11721_v52 = vmax.f32 %v3478_v28, %v6889_v18 }
 0x5bb   :  { %v11702_v26 = vmax.f32 %v14709_v45, %v11554_v44  ;;  %v11723_v44 = vmax.f32 %v3093_v59, 0.0  ;;  %v5188_v62 = vsel %vm5151_vm4, %v5067_v22, %v5187_v34  ;;  %v6828_v14 = vrot.slane %v11661_v40, 9 }
 0x5bc   :  { %v5380_v39 = vpop.permute.xlu1 %5379  ;;  %v11714_v21 = vmax.f32 %v14710_v42, %v11565_v36  ;;  %v6829_v8 = vrot.slane %v3433_v30, 9  ;;  %v6830_v55 = vrot.slane %v3434_v3, 9  ;;  %v5052_v19 = vperm.slane %v4796_v43, 0 }
 0x5bd   :  { %v6831_v58 = vrot.slane %v3435_v4, 9  ;;  %v3162_v36 = vadd.f32 %v11237_v38, %v3161_v47  ;;  %v5434_v29 = vrot.slane %v11679_v53, 2  ;;  %v5347_v1 = vrot.slane %v11679_v53, 1  ;;  %v11749_v57 = vpop.f32.mrf.mxu2 }
 0x5be   :  { %v5295_v28 = vsel %vm14711_vm12, %v5052_v19, 0.0  ;;  %v11733_v56 = vsel %vm14712_vm5, 0.0, %v5188_v62  ;;  %v11737_v35 = vmax.f32 %v3432_v17, %v6827_v2  ;;  %v3412_v32 = vrot.slane %v11723_v44, 2 }
 0x5bf   :  { %v5514_v0 = vpop.permute.xlu0 %5513  ;;  %v3089_v15 = vpop.f32.mrf.mxu0  ;;  %14713 = vst [vmem:[#allocation227_spill] sm:$0xff] %v11733_v56  ;;  %vm14714_vm0 = vcmask 64512   ;;  %v5435_v18 = vrot.slane %v5295_v28, 2  ;;  %v5348_v63 = vrot.slane %v5295_v28, 1  ;;  %v11743_v22 = vmax.f32 %v11661_v40, %v6828_v14 }
 0x5c0   :  { %v3090_v46 = vadd.f32 %v11237_v38, %v3089_v15  ;;  %v5805_v49 = vsel %vm14714_vm0, %v10970_v25, %v5380_v39  ;;  %v11745_v59 = vmax.f32 %v3433_v30, %v6829_v8  ;;  %v11747_v12 = vmax.f32 %v3434_v3, %v6830_v55  ;;  %v5624_v25 = vpop.permute.xlu2 %5623 }
 0x5c1   :  { %5385 = vrot.lane.b32.xlu1 %v11347_v24, %s7120_s11  ;;  %v11753_v17 = vmax.f32 %v3435_v4, %v6831_v58  ;;  %v11755_v43 = vmax.f32 %v3162_v36, 0.0  ;;  %vm14715_vm3 = vcmask 1045504   ;;  %vm14716_vm12 = vcmask 1046528  }
 0x5c2   :  { %v3241_v34 = vmax.f32 %v3090_v46, 0.0  ;;  %v11758_v39 = vsel %vm14715_vm3, %v5434_v29, %v5435_v18  ;;  %v11761_v40 = vsel %vm14716_vm12, %v5347_v1, %v5348_v63  ;;  %v3414_v30 = vrot.slane %v11723_v44, 6 }
 0x5c3   :  { %5765 = vrot.lane.b32.xlu0 %v11758_v39, %s7130_s17  ;;  %5720 = vrot.lane.b32.xlu2 %v11761_v40, %s7128_s15  ;;  %v5820_v24 = vsel %vm2481_vm7, %v5805_v49, %v5467_v11  ;;  %v6800_v47 = vrot.slane %v11723_v44, 9  ;;  %v6801_v2 = vrot.slane %v3412_v32, 9  ;;  %v3120_v15 = vadd.f32 %v11237_v38, %v11621_v16 }
 0x5c4   :  { %v5570_v20 = vpop.permute.xlu1 %5569  ;;  %v5835_v42 = vsel %vm2611_vm8, %v5820_v24, %v5514_v0  ;;  %v3409_v14 = vrot.slane %v3241_v34, 2  ;;  %v3410_v8 = vrot.slane %v3241_v34, 4  ;;  %v3411_v55 = vrot.slane %v3241_v34, 6 }
 0x5c5   :  { %v5851_v19 = vsel %vm2741_vm11, %v5835_v42, %v5570_v20  ;;  %v3413_v0 = vrot.slane %v11723_v44, 4  ;;  %v6796_v28 = vrot.slane %v3241_v34, 9  ;;  %v6803_v46 = vrot.slane %v3414_v30, 9  ;;  %v11789_v24 = vpop.f32.mrf.mxu2 }
 0x5c6   :  { %v3095_v3 = vpop.f32.mrf.mxu1  ;;  %v11784_v49 = vmax.f32 %v11723_v44, %v6800_v47  ;;  %v11786_v18 = vmax.f32 %v3412_v32, %v6801_v2  ;;  %v5868_v20 = vsel %vm5866_vm9, %v5851_v19, %v5624_v25  ;;  %v6797_v42 = vrot.slane %v3409_v14, 9 }
 0x5c7   :  { %v3096_v29 = vadd.f32 %v11237_v38, %v3095_v3  ;;  %v5672_v1 = vpop.permute.xlu0 %5671  ;;  %v6798_v3 = vrot.slane %v3410_v8, 9  ;;  %v6799_v61 = vrot.slane %v3411_v55, 9  ;;  %v6802_v32 = vrot.slane %v3413_v0, 9 }
 0x5c8   :  { %v5885_v62 = vsel %vm5883_vm10, %v5868_v20, %v5672_v1  ;;  %v4581_v2 = vmax.f32 %v3241_v34, %v6796_v28  ;;  %v4588_v19 = vmax.f32 %v3414_v30, %v6803_v46  ;;  %v4582_v36 = vmax.f32 %v3409_v14, %v6797_v42  ;;  %v3164_v42 = vpop.f32.mrf.mxu3 }
 0x5c9   :  { %v3243_v63 = vmax.f32 %v3096_v29, 0.0  ;;  %5575 = vrot.lane.b32.xlu1 %v11761_v40, %s7125_s23  ;;  %v5762_v29 = vpop.permute.xlu2 %5761  ;;  %v4583_v58 = vmax.f32 %v3410_v8, %v6798_v3  ;;  %v4584_v11 = vmax.f32 %v3411_v55, %v6799_v61  ;;  %v14717_v30 = vrot.slane %v11755_v43, 2 }
 0x5ca   :  { %v14718_v46 = vrot.slane %v11755_v43, 4  ;;  %v4804_v55 = vmax.f32 %v4588_v19, %v11702_v26  ;;  %v11816_v3 = vmax.f32 %v3120_v15, 0.0  ;;  %vm14724_vm5 = vcmask 1044484  }
 0x5cb   :  { %v3415_v16 = vrot.slane %v3243_v63, 2  ;;  %v3416_v45 = vrot.slane %v3243_v63, 4  ;;  %v3417_v44 = vrot.slane %v3243_v63, 6  ;;  %v6804_v47 = vrot.slane %v3243_v63, 9  ;;  %5519 = vrot.lane.b32.xlu0 %v11679_v53, %s7124_s22  ;;  %5472 = vrot.lane.b32.xlu2 %v11344_v41, %s7122_s0 }
 0x5cc   :  { %v5717_v38 = vpop.permute.xlu1 %5716  ;;  %v6892_v41 = vrot.slane %v11755_v43, 9  ;;  %v14721_v15 = vmov %v14718_v46  ;;  %vm14725_vm0 = vcmask 1045509   ;;  %vm14728_vm3 = vcmask 1040384  }
 0x5cd   :  { %v5902_v25 = vsel %vm5900_vm2, %v5885_v62, %v5717_v38  ;;  %v6805_v1 = vrot.slane %v3415_v16, 9  ;;  %v6806_v20 = vrot.slane %v3416_v45, 9  ;;  %v6807_v31 = vrot.slane %v3417_v44, 9  ;;  %vm14729_vm12 = vmmov %vm14728_vm3 }
 0x5ce   :  { %v4589_v4 = vmax.f32 %v3243_v63, %v6804_v47  ;;  %v5919_v48 = vsel %vm5917_vm15, %v5902_v25, %v5762_v29  ;;  %v6893_v62 = vrot.slane %v14717_v30, 9  ;;  %v6894_v38 = vrot.slane %v14718_v46, 9 }
 0x5cf   :  { %v4590_v34 = vmax.f32 %v3415_v16, %v6805_v1  ;;  %v4591_v28 = vmax.f32 %v3416_v45, %v6806_v20  ;;  %v4592_v54 = vmax.f32 %v3417_v44, %v6807_v31  ;;  %6973 = vmatmul.msk.f32.gmra.mxu1 %vm5947_vm1, %v5919_v48  ;;  %v4587_v63 = vmax.f32 %v3413_v0, %v6802_v32  ;;  %v11812_v48 = vld [vmem:[%s13101_s2] ss:$0 sm:$0xff]  ;;  %v11818_v0 = vpop.f32.mrf.mxu2 }
 0x5d0   :  { %v4797_v53 = vmax.f32 %v4581_v2, %v4589_v4  ;;  %v14719_v45 = vrot.slane %v11755_v43, 6  ;;  %v3117_v4 = vadd.f32 %v11812_v48, %v11586_v9  ;;  %v11825_v16 = vmax.f32 %v11755_v43, %v6892_v41 }
 0x5d1   :  { %v4798_v14 = vmax.f32 %v4582_v36, %v4590_v34  ;;  %v4799_v8 = vmax.f32 %v4583_v58, %v4591_v28  ;;  %v4800_v61 = vmax.f32 %v4584_v11, %v4592_v54  ;;  %v4801_v54 = vmax.f32 %v11784_v49, %v11515_v6 }
 0x5d2   :  { %v6895_v31 = vrot.slane %v14719_v45, 9  ;;  %v5053_v26 = vperm.slane %v4797_v53, 0  ;;  %v4802_v36 = vmax.f32 %v11786_v18, %v11684_v7  ;;  %v14720_v44 = vmov %v14717_v30 }
 0x5d3   :  { %v5054_v11 = vperm.slane %v4798_v14, 0  ;;  %v5055_v58 = vperm.slane %v4799_v8, 0  ;;  %v11829_v9 = vmax.f32 %v14720_v44, %v6893_v62  ;;  %v11833_v47 = vmax.f32 %v14721_v15, %v6894_v38  ;;  %5629 = vrot.lane.b32.xlu2 %v11758_v39, %s7127_s14 }
 0x5d4   :  { %v4803_v6 = vmax.f32 %v4587_v63, %v11697_v51  ;;  %v3165_v53 = vadd.f32 %v11812_v48, %v3164_v42  ;;  %v5056_v49 = vperm.slane %v4800_v61, 0  ;;  %v5060_v18 = vperm.slane %v4804_v55, 0 }
 0x5d5   :  { %v5177_v7 = vsel %vm5141_vm13, %v5054_v11, %v5053_v26  ;;  %v11840_v32 = vmax.f32 %v3117_v4, 0.0  ;;  %v3439_v2 = vrot.slane %v11816_v3, 2  ;;  %v5057_v25 = vperm.slane %v4801_v54, 0 }
 0x5d6   :  { %v5178_v19 = vsel %vm5143_vm14, %v5055_v58, %v5177_v7  ;;  %v14722_v29 = vmov %v14719_v45  ;;  %v3123_v51 = vadd.f32 %v11812_v48, %v11651_v13  ;;  %v5058_v20 = vperm.slane %v4802_v36, 0 }
 0x5d7   :  { %v11846_v1 = vmax.f32 %v14722_v29, %v6895_v31  ;;  %v5179_v34 = vsel %vm14724_vm5, %v5056_v49, %v5178_v19  ;;  %v5059_v28 = vperm.slane %v4803_v6, 0  ;;  %v14726_v30 = vmax.f32 %v11714_v21, %v11737_v35  ;;  %v3167_v21 = vpop.f32.mrf.mxu3  ;;  %v11867_v35 = vpop.f32.mrf.mxu2  ;;  %vm14731_vm5 = vmmov %vm14728_vm3 }
 0x5d8   :  { %v5180_v41 = vsel %vm14725_vm0, %v5057_v25, %v5179_v34  ;;  %v14727_v46 = vrot.slane %v11606_v5, 4  ;;  %v11860_v43 = vmax.f32 %v3165_v53, 0.0  ;;  %v3440_v63 = vrot.slane %v11816_v3, 4 }
 0x5d9   :  { %14723 = vst [vmem:[#allocation96_spill] sm:$0xff] %v11846_v1  ;;  %v5068_v62 = vperm.slane %v14726_v30, 0  ;;  %v5181_v13 = vsel %vm5149_vm6, %v5058_v20, %v5180_v41  ;;  %v5296_v14 = vsel %vm14728_vm3, %v5060_v18, 0.0  ;;  %v3436_v8 = vrot.slane %v11840_v32, 2 }
 0x5da   :  { %v11858_v38 = vmax.f32 %v14727_v46, %v11707_v37  ;;  %v3437_v61 = vrot.slane %v11840_v32, 4  ;;  %v6837_v55 = vrot.slane %v3439_v2, 9  ;;  %v5182_v45 = vsel %vm5151_vm4, %v5059_v28, %v5181_v13  ;;  %v5382_v46 = vpop.permute.xlu0 %5381  ;;  %v5469_v13 = vpop.permute.xlu1 %5468 }
 0x5db   :  { %v3441_v37 = vrot.slane %v11816_v3, 6  ;;  %v6836_v31 = vrot.slane %v11816_v3, 9  ;;  %v11872_v4 = vmax.f32 %v3123_v51, 0.0  ;;  %v11875_v42 = vsel %vm14729_vm12, 0.0, %v5182_v45 }
 0x5dc   :  { %14730 = vst [vmem:[#allocation26_spill] sm:$0xff] %v11875_v42  ;;  %5677 = vrot.lane.b32.xlu0 %v11875_v42, %s7129_s16  ;;  %v5437_v54 = vrot.slane %v11875_v42, 2  ;;  %v5438_v26 = vrot.slane %v5296_v14, 2  ;;  %v5350_v11 = vrot.slane %v11875_v42, 1  ;;  %v5351_v58 = vrot.slane %v5296_v14, 1 }
 0x5dd   :  { %v3484_v36 = vrot.slane %v11860_v43, 2  ;;  %v6838_v44 = vrot.slane %v3440_v63, 9  ;;  %v3168_v15 = vadd.f32 %v11812_v48, %v3167_v21  ;;  %v11884_v6 = vsel %vm14731_vm5, %v5068_v62, 0.0 }
 0x5de   :  { %v6832_v53 = vrot.slane %v11840_v32, 9  ;;  %v4622_v49 = vmax.f32 %v3439_v2, %v6837_v55  ;;  %vm14732_vm0 = vcmask 1045504   ;;  %vm14733_vm3 = vcmask 1046528  }
 0x5df   :  { %v11888_v7 = vsel %vm14732_vm0, %v5437_v54, %v5438_v26  ;;  %v11891_v18 = vsel %vm14733_vm3, %v5350_v11, %v5351_v58  ;;  %v6833_v25 = vrot.slane %v3436_v8, 9  ;;  %v6834_v19 = vrot.slane %v3437_v61, 9  ;;  %v11908_v45 = vpop.f32.mrf.mxu2  ;;  %vm14735_vm12 = vmmov %vm14733_vm3 }
 0x5e0   :  { %v6839_v29 = vrot.slane %v3441_v37, 9  ;;  %v4621_v51 = vmax.f32 %v11816_v3, %v6836_v31  ;;  %5767 = vrot.lane.b32.xlu2 %v11888_v7, %s7130_s17  ;;  %5722 = vrot.lane.b32.xlu1 %v11891_v18, %s7128_s15  ;;  %v13467_v20 = vrot.slane %v11840_v32, 6  ;;  %v13466_v2 = vrot.slane %v11860_v43, 4 }
 0x5e1   :  { %v6896_v34 = vrot.slane %v11860_v43, 9  ;;  %v3442_v28 = vrot.slane %v11872_v4, 2  ;;  %v6897_v41 = vrot.slane %v3484_v36, 9  ;;  %v4623_v30 = vmax.f32 %v3440_v63, %v6838_v44 }
 0x5e2   :  { %v11902_v62 = vmax.f32 %v3168_v15, 0.0  ;;  %v6840_v3 = vrot.slane %v11872_v4, 9  ;;  %v4617_v14 = vmax.f32 %v11840_v32, %v6832_v53  ;;  %v4814_v55 = vmax.f32 %v11745_v59, %v4622_v49 }
 0x5e3   :  { %v3443_v21 = vrot.slane %v11872_v4, 4  ;;  %v5354_v31 = vrot.slane %v11884_v6, 1  ;;  %v4618_v54 = vmax.f32 %v3436_v8, %v6833_v25  ;;  %v11911_v26 = vmax.f32 %v3437_v61, %v6834_v19 }
 0x5e4   :  { %v4624_v63 = vmax.f32 %v3441_v37, %v6839_v29  ;;  %v4813_v11 = vmax.f32 %v11743_v22, %v4621_v51  ;;  %v11917_v44 = vrot.slane %v13466_v2, 9  ;;  %v11920_v59 = vmax.f32 %v11860_v43, %v6896_v34  ;;  %5387 = vrot.lane.b32.xlu0 %v11761_v40, %s7120_s11 }
 0x5e5   :  { %v6841_v15 = vrot.slane %v3442_v28, 9  ;;  %v11924_v53 = vmax.f32 %v3484_v36, %v6897_v41  ;;  %v4815_v8 = vmax.f32 %v11747_v12, %v4623_v30  ;;  %v3487_v61 = vrot.slane %v11902_v62, 2 }
 0x5e6   :  { %v4625_v22 = vmax.f32 %v11872_v4, %v6840_v3  ;;  %v5070_v37 = vperm.slane %v4814_v55, 0  ;;  %v3488_v49 = vrot.slane %v11902_v62, 4  ;;  %v6842_v25 = vrot.slane %v3443_v21, 9 }
 0x5e7   :  { %v14734_v19 = vrot.slane %v11733_v56, 1  ;;  %v4816_v51 = vmax.f32 %v11753_v17, %v4624_v63  ;;  %v5069_v40 = vperm.slane %v4813_v11, 0  ;;  %v5441_v12 = vrot.slane %v11884_v6, 2  ;;  %v11951_v2 = vpop.f32.mrf.mxu2 }
 0x5e8   :  { %5521 = vrot.lane.b32.xlu2 %v11875_v42, %s7124_s22  ;;  %5474 = vrot.lane.b32.xlu1 %v11758_v39, %s7122_s0  ;;  %v6835_v36 = vrot.slane %v13467_v20, 9  ;;  %v3489_v34 = vrot.slane %v11902_v62, 6  ;;  %v6900_v41 = vrot.slane %v11902_v62, 9  ;;  %v3444_v30 = vrot.slane %v11872_v4, 6 }
 0x5e9   :  { %v11933_v29 = vsel %vm14735_vm12, %v14734_v19, %v5354_v31  ;;  %v4626_v3 = vmax.f32 %v3442_v28, %v6841_v15  ;;  %v5071_v17 = vperm.slane %v4815_v8, 0  ;;  %v6901_v55 = vrot.slane %v3487_v61, 9  ;;  %v5516_v19 = vpop.permute.xlu2 %5515  ;;  %v5572_v15 = vpop.permute.xlu0 %5571 }
 0x5ea   :  { %v4817_v31 = vmax.f32 %v4617_v14, %v4625_v22  ;;  %v3132_v63 = vadd.f32 %v11812_v48, %v11789_v24  ;;  %v5189_v39 = vsel %vm5141_vm13, %v5070_v37, %v5069_v40  ;;  %v6902_v11 = vrot.slane %v3488_v49, 9  ;;  %v5626_v14 = vpop.permute.xlu1 %5625 }
 0x5eb   :  { %v4627_v6 = vmax.f32 %v3443_v21, %v6842_v25  ;;  %vm14736_vm5 = vcmask 64512   ;;  %v3126_v4 = vadd.f32 %v11812_v48, %v11688_v27  ;;  %v14737_v8 = vrot.slane %v11733_v56, 2 }
 0x5ec   :  { %v5806_v58 = vsel %vm14736_vm5, %v11018_v60, %v5382_v46  ;;  %v14738_v21 = vrot.slane %v11606_v5, 6  ;;  %v5072_v37 = vperm.slane %v4816_v51, 0  ;;  %v6903_v25 = vrot.slane %v3489_v34, 9  ;;  %5577 = vrot.lane.b32.xlu0 %v11891_v18, %s7125_s23 }
 0x5ed   :  { %v5821_v28 = vsel %vm2481_vm7, %v5806_v58, %v5469_v13  ;;  %v11959_v24 = vsel %vm14732_vm0, %v14737_v8, %v5441_v12  ;;  %v4818_v60 = vmax.f32 %v4618_v54, %v4626_v3  ;;  %v6843_v46 = vrot.slane %v3444_v30, 9 }
 0x5ee   :  { %v6891_v22 = vrot.slane %v14738_v21, 9  ;;  %v4685_v27 = vmax.f32 %v11902_v62, %v6900_v41  ;;  %v5073_v13 = vperm.slane %v4817_v31, 0  ;;  %v11966_v58 = vmax.f32 %v3132_v63, 0.0 }
 0x5ef   :  { %v5190_v40 = vsel %vm5143_vm14, %v5071_v17, %v5189_v39  ;;  %v4686_v20 = vmax.f32 %v3487_v61, %v6901_v55  ;;  %v4687_v12 = vmax.f32 %v3488_v49, %v6902_v11  ;;  %v4819_v8 = vmax.f32 %v11911_v26, %v4627_v6  ;;  %v3170_v39 = vpop.f32.mrf.mxu3 }
 0x5f0   :  { %v5836_v21 = vsel %vm2611_vm8, %v5821_v28, %v5516_v19  ;;  %v11971_v51 = vmax.f32 %v3126_v4, 0.0  ;;  %5679 = vrot.lane.b32.xlu2 %v11733_v56, %s7129_s16  ;;  %5631 = vrot.lane.b32.xlu1 %v11888_v7, %s7127_s14  ;;  %v14739_v62 = vrot.slane %v11840_v32, 6  ;;  %v14740_v61 = vrot.slane %v11606_v5, 6 }
 0x5f1   :  { %v5852_v54 = vsel %vm2741_vm11, %v5836_v21, %v5572_v15  ;;  %v5074_v26 = vperm.slane %v4818_v60, 0  ;;  %v4628_v17 = vmax.f32 %v3444_v30, %v6843_v46  ;;  %vm14741_vm3 = vcmask 1044484   ;;  %v5674_v19 = vpop.permute.xlu2 %5673  ;;  %v11995_v30 = vpop.f32.mrf.mxu2 }
 0x5f2   :  { %v4620_v41 = vmax.f32 %v14739_v62, %v6835_v36  ;;  %v11982_v49 = vmax.f32 %v14740_v61, %v6891_v22  ;;  %v5869_v3 = vsel %vm5866_vm9, %v5852_v54, %v5626_v14  ;;  %v5191_v55 = vsel %vm14741_vm3, %v5072_v37, %v5190_v40  ;;  %v5764_v15 = vpop.permute.xlu1 %5763  ;;  %v5719_v22 = vpop.permute.xlu0 %5718 }
 0x5f3   :  { %v11986_v31 = vmax.f32 %v3489_v34, %v6903_v25  ;;  %v4845_v63 = vmax.f32 %v11825_v16, %v4685_v27  ;;  %v3451_v11 = vrot.slane %v11966_v58, 2  ;;  %vm14743_vm12 = vcmask 1045509  }
 0x5f4   :  { %v5192_v32 = vsel %vm14743_vm12, %v5073_v13, %v5191_v55  ;;  %v4846_v36 = vmax.f32 %v11829_v9, %v4686_v20  ;;  %v4847_v5 = vmax.f32 %v11833_v47, %v4687_v12  ;;  %v3129_v6 = vadd.f32 %v11812_v48, %v11749_v57  ;;  %5724 = vrot.lane.b32.xlu0 %v11933_v29, %s7128_s15 }
 0x5f5   :  { %14742 = vst [vmem:[#allocation92_spill] sm:$0xff] %v11986_v31  ;;  %v5075_v4 = vperm.slane %v4819_v8, 0  ;;  %v3445_v34 = vrot.slane %v11971_v51, 2  ;;  %v3446_v16 = vrot.slane %v11971_v51, 4  ;;  %v3447_v28 = vrot.slane %v11971_v51, 6 }
 0x5f6   :  { %v5886_v14 = vsel %vm5883_vm10, %v5869_v3, %v5674_v19  ;;  %v3452_v9 = vrot.slane %v11966_v58, 4  ;;  %v4820_v57 = vmax.f32 %v4620_v41, %v4628_v17  ;;  %v5193_v20 = vsel %vm5149_vm6, %v5074_v26, %v5192_v32 }
 0x5f7   :  { %v5903_v47 = vsel %vm5900_vm2, %v5886_v14, %v5719_v22  ;;  %v12008_v25 = vperm.slane %v4845_v63, 0  ;;  %v3171_v60 = vadd.f32 %v11812_v48, %v3170_v39  ;;  %v6853_v46 = vrot.slane %v3451_v11, 9 }
 0x5f8   :  { %v6844_v27 = vrot.slane %v11971_v51, 9  ;;  %v12012_v13 = vmax.f32 %v3129_v6, 0.0  ;;  %v6852_v40 = vrot.slane %v11966_v58, 9  ;;  %v5920_v12 = vsel %vm5917_vm15, %v5903_v47, %v5764_v15  ;;  %5389 = vrot.lane.b32.xlu2 %v11891_v18, %s7120_s11  ;;  %5769 = vrot.lane.b32.xlu1 %v11959_v24, %s7130_s17 }
 0x5f9   :  { %v6845_v8 = vrot.slane %v3445_v34, 9  ;;  %v6846_v21 = vrot.slane %v3446_v16, 9  ;;  %v3135_v54 = vadd.f32 %v11812_v48, %v11818_v0  ;;  %6974 = vmatmul.msk.f32.gmra.mxu1 %vm5947_vm1, %v5920_v12  ;;  %v5194_v62 = vsel %vm5151_vm4, %v5075_v4, %v5193_v20  ;;  %v12041_v15 = vpop.f32.mrf.mxu2 }
 0x5fa   :  { %v12022_v41 = vperm.slane %v4846_v36, 0  ;;  %v6847_v61 = vrot.slane %v3447_v28, 9  ;;  %v6854_v26 = vrot.slane %v3452_v9, 9  ;;  %v5076_v3 = vperm.slane %v4820_v57, 0 }
 0x5fb   :  { %v12026_v17 = vperm.slane %v4847_v5, 0  ;;  %v12028_v55 = vmax.f32 %v3171_v60, 0.0  ;;  %v3453_v0 = vrot.slane %v11966_v58, 6  ;;  %v4638_v63 = vmax.f32 %v3451_v11, %v6853_v46 }
 0x5fc   :  { %v4629_v39 = vmax.f32 %v11971_v51, %v6844_v27  ;;  %v3448_v18 = vrot.slane %v12012_v13, 2  ;;  %v4637_v32 = vmax.f32 %v11966_v58, %v6852_v40  ;;  %vm14745_vm5 = vcmask 1040384   ;;  %5476 = vrot.lane.b32.xlu0 %v11888_v7, %s7122_s0 }
 0x5fd   :  { %14744 = vst [vmem:[#allocation224_spill] sm:$0xff] %v12026_v17  ;;  %v12035_v36 = vsel %vm14745_vm5, 0.0, %v5194_v62  ;;  %v4630_v6 = vmax.f32 %v3445_v34, %v6845_v8  ;;  %v4631_v19 = vmax.f32 %v3446_v16, %v6846_v21  ;;  %v12037_v4 = vmax.f32 %v3135_v54, 0.0  ;;  %vm14746_vm0 = vmmov %vm14745_vm5 }
 0x5fe   :  { %v3144_v5 = vadd.f32 %v11812_v48, %v11951_v2  ;;  %v12043_v14 = vmax.f32 %v3447_v28, %v6847_v61  ;;  %v4639_v11 = vmax.f32 %v3452_v9, %v6854_v26  ;;  %v3138_v51 = vadd.f32 %v11812_v48, %v11867_v35  ;;  %v12052_v2 = vpop.f32.mrf.mxu3 }
 0x5ff   :  { %v5298_v58 = vsel %vm14746_vm0, %v5076_v3, 0.0  ;;  %v6848_v34 = vrot.slane %v12012_v13, 9  ;;  %v6855_v16 = vrot.slane %v3453_v0, 9  ;;  %v4822_v22 = vmax.f32 %v4630_v6, %v4638_v63 }
 0x600   :  { %v5561_v47 = vrot.slane %v12035_v36, 1  ;;  %v3450_v28 = vrot.slane %v12012_v13, 6  ;;  %v6849_v57 = vrot.slane %v3448_v18, 9  ;;  %v4821_v9 = vmax.f32 %v4629_v39, %v4637_v32  ;;  %5579 = vrot.lane.b32.xlu2 %v11933_v29, %s7125_s23  ;;  %5523 = vrot.lane.b32.xlu1 %v11733_v56, %s7124_s22 }
 0x601   :  { %v5615_v20 = vrot.slane %v12035_v36, 2  ;;  %v3454_v35 = vrot.slane %v12037_v4, 2  ;;  %v12057_v60 = vmax.f32 %v3144_v5, 0.0  ;;  %v5562_v7 = vrot.slane %v5298_v58, 1 }
 0x602   :  { %v3449_v46 = vrot.slane %v12012_v13, 4  ;;  %v4823_v27 = vmax.f32 %v4631_v19, %v4639_v11  ;;  %v6856_v40 = vrot.slane %v12037_v4, 9  ;;  %v3257_v12 = vmax.f32 %v3138_v51, 0.0  ;;  %v12074_v19 = vpop.f32.mrf.mxu2 }
 0x603   :  { %v5616_v8 = vrot.slane %v5298_v58, 2  ;;  %v4633_v21 = vmax.f32 %v12012_v13, %v6848_v34  ;;  %v4640_v54 = vmax.f32 %v3453_v0, %v6855_v16  ;;  %v5078_v62 = vperm.slane %v4822_v22, 0 }
 0x604   :  { %vm14747_vm3 = vcmask 1046528   ;;  %v5077_v26 = vperm.slane %v4821_v9, 0  ;;  %vm14748_vm12 = vcmask 1045504   ;;  %v3455_v63 = vrot.slane %v12037_v4, 4  ;;  %5633 = vrot.lane.b32.xlu0 %v11959_v24, %s7127_s14 }
 0x605   :  { %v12067_v61 = vsel %vm14747_vm3, %v5561_v47, %v5562_v7  ;;  %v12070_v3 = vsel %vm14748_vm12, %v5615_v20, %v5616_v8  ;;  %v4634_v39 = vmax.f32 %v3448_v18, %v6849_v57  ;;  %v6857_v32 = vrot.slane %v3454_v35, 9 }
 0x606   :  { %v3463_v6 = vrot.slane %v12057_v60, 2  ;;  %v6850_v5 = vrot.slane %v3449_v46, 9  ;;  %v6851_v11 = vrot.slane %v3450_v28, 9  ;;  %v4641_v0 = vmax.f32 %v12037_v4, %v6856_v40  ;;  %v12083_v47 = vpop.f32.mrf.mxu3 }
 0x607   :  { %v3457_v51 = vrot.slane %v3257_v12, 2  ;;  %v5079_v58 = vperm.slane %v4823_v27, 0  ;;  %v3458_v34 = vrot.slane %v3257_v12, 4  ;;  %v3459_v16 = vrot.slane %v3257_v12, 6 }
 0x608   :  { %v3147_v18 = vadd.f32 %v11812_v48, %v11995_v30  ;;  %v5195_v22 = vsel %vm5141_vm13, %v5078_v62, %v5077_v26  ;;  %v6860_v57 = vrot.slane %v3257_v12, 9  ;;  %v3464_v9 = vrot.slane %v12057_v60, 4  ;;  %5726 = vrot.lane.b32.xlu2 %v12067_v61, %s7128_s15  ;;  %5681 = vrot.lane.b32.xlu1 %v12035_v36, %s7129_s16 }
 0x609   :  { %v6858_v20 = vrot.slane %v3455_v63, 9  ;;  %v4824_v7 = vmax.f32 %v12043_v14, %v4640_v54  ;;  %v3141_v40 = vadd.f32 %v11812_v48, %v11908_v45  ;;  %v6869_v8 = vrot.slane %v3463_v6, 9 }
 0x60a   :  { %v4642_v27 = vmax.f32 %v3454_v35, %v6857_v32  ;;  %v12091_v37 = vmax.f32 %v3450_v28, %v6851_v11  ;;  %v6861_v30 = vrot.slane %v3457_v51, 9  ;;  %v4635_v62 = vmax.f32 %v3449_v46, %v6850_v5  ;;  %v3155_v17 = vpop.f32.mrf.mxu2  ;;  %v12102_v5 = vpop.permute.xlu2 %5383 }
 0x60b   :  { %v4825_v26 = vmax.f32 %v4633_v21, %v4641_v0  ;;  %v5196_v13 = vsel %vm5143_vm14, %v5079_v58, %v5195_v22  ;;  %v6862_v56 = vrot.slane %v3458_v34, 9  ;;  %v6863_v14 = vrot.slane %v3459_v16, 9 }
 0x60c   :  { %v6868_v54 = vrot.slane %v12057_v60, 9  ;;  %v12097_v45 = vmax.f32 %v3147_v18, 0.0  ;;  %v4645_v42 = vmax.f32 %v3257_v12, %v6860_v57  ;;  %v6870_v31 = vrot.slane %v3464_v9, 9  ;;  %5771 = vrot.lane.b32.xlu0 %v12070_v3, %s7130_s17 }
 0x60d   :  { %v4643_v1 = vmax.f32 %v3455_v63, %v6858_v20  ;;  %v5080_v35 = vperm.slane %v4824_v7, 0  ;;  %v12099_v28 = vmax.f32 %v3141_v40, 0.0  ;;  %v3465_v32 = vrot.slane %v12057_v60, 6 }
 0x60e   :  { %v4654_v11 = vmax.f32 %v3463_v6, %v6869_v8  ;;  %v4826_v46 = vmax.f32 %v4634_v39, %v4642_v27  ;;  %v4646_v21 = vmax.f32 %v3457_v51, %v6861_v30  ;;  %v5081_v0 = vperm.slane %v4825_v26, 0  ;;  %v12113_v39 = vpop.f32.mrf.mxu3 }
 0x60f   :  { %vm14749_vm5 = vcmask 1044484   ;;  %v14750_v12 = vrot.slane %v12037_v4, 6  ;;  %v4647_v18 = vmax.f32 %v3458_v34, %v6862_v56  ;;  %v12109_v22 = vmax.f32 %v3459_v16, %v6863_v14 }
 0x610   :  { %v5197_v58 = vsel %vm14749_vm5, %v5080_v35, %v5196_v13  ;;  %v4653_v57 = vmax.f32 %v12057_v60, %v6868_v54  ;;  %v3466_v6 = vrot.slane %v12097_v45, 2  ;;  %v4655_v51 = vmax.f32 %v3464_v9, %v6870_v31  ;;  %5478 = vrot.lane.b32.xlu2 %v11959_v24, %s7122_s0  ;;  %5391 = vrot.lane.b32.xlu1 %v11933_v29, %s7120_s11  ;;  %vm14755_vm12 = vmmov %vm14749_vm5 }
 0x611   :  { %v6859_v63 = vrot.slane %v14750_v12, 9  ;;  %v6872_v20 = vrot.slane %v12097_v45, 9  ;;  %v3156_v7 = vadd.f32 %v11812_v48, %v3155_v17  ;;  %v4827_v40 = vmax.f32 %v4635_v62, %v4643_v1 }
 0x612   :  { %v3460_v13 = vrot.slane %v12099_v28, 2  ;;  %v6871_v8 = vrot.slane %v3465_v32, 9  ;;  %v4830_v27 = vmax.f32 %v4646_v21, %v4654_v11  ;;  %v5082_v56 = vperm.slane %v4826_v46, 0 }
 0x613   :  { %v6864_v60 = vrot.slane %v12099_v28, 9  ;;  %v3467_v34 = vrot.slane %v12097_v45, 4  ;;  %v3150_v31 = vadd.f32 %v11812_v48, %v12041_v15  ;;  %vm14751_vm0 = vcmask 1045509  }
 0x614   :  { %v5198_v1 = vsel %vm14751_vm0, %v5081_v0, %v5197_v58  ;;  %v3461_v17 = vrot.slane %v12099_v28, 4  ;;  %v4829_v16 = vmax.f32 %v4645_v42, %v4653_v57  ;;  %v6873_v9 = vrot.slane %v3466_v6, 9  ;;  %5525 = vrot.lane.b32.xlu0 %v12035_v36, %s7124_s22  ;;  %v12143_v57 = vpop.permute.xlu2 %5573  ;;  %vm14756_vm5 = vmmov %vm14751_vm0 }
 0x615   :  { %v14752_v30 = vmov %v14750_v12  ;;  %v4831_v62 = vmax.f32 %v4647_v18, %v4655_v51  ;;  %v4657_v26 = vmax.f32 %v12097_v45, %v6872_v20  ;;  %v12131_v14 = vmax.f32 %v3156_v7, 0.0 }
 0x616   :  { %v4644_v24 = vmax.f32 %v14752_v30, %v6859_v63  ;;  %v5083_v54 = vperm.slane %v4827_v40, 0  ;;  %v6865_v35 = vrot.slane %v3460_v13, 9  ;;  %v4656_v15 = vmax.f32 %v3465_v32, %v6871_v8  ;;  %v12141_v18 = vpop.f32.mrf.mxu3 }
 0x617   :  { %v5086_v11 = vperm.slane %v4830_v27, 0  ;;  %v5199_v29 = vsel %vm5149_vm6, %v5082_v56, %v5198_v1  ;;  %v3462_v46 = vrot.slane %v12099_v28, 6  ;;  %v4649_v21 = vmax.f32 %v12099_v28, %v6864_v60 }
 0x618   :  { %v6874_v42 = vrot.slane %v3467_v34, 9  ;;  %v12136_v0 = vmax.f32 %v3150_v31, 0.0  ;;  %v6866_v4 = vrot.slane %v3461_v17, 9  ;;  %v5085_v58 = vperm.slane %v4829_v16, 0  ;;  %5635 = vrot.lane.b32.xlu2 %v12070_v3, %s7127_s14  ;;  %5581 = vrot.lane.b32.xlu1 %v12067_v61, %s7125_s23 }
 0x619   :  { %v3468_v12 = vrot.slane %v12097_v45, 6  ;;  %v4658_v63 = vmax.f32 %v3466_v6, %v6873_v9  ;;  %v5087_v32 = vperm.slane %v4831_v62, 0  ;;  %v4833_v51 = vmax.f32 %v4649_v21, %v4657_v26 }
 0x61a   :  { %v3475_v20 = vrot.slane %v12131_v14, 2  ;;  %v5200_v28 = vsel %vm5151_vm4, %v5083_v54, %v5199_v29  ;;  %v4650_v7 = vmax.f32 %v3460_v13, %v6865_v35  ;;  %v4832_v40 = vmax.f32 %v12109_v22, %v4656_v15 }
 0x61b   :  { %v4828_v36 = vmax.f32 %v12091_v37, %v4644_v24  ;;  %v5201_v45 = vsel %vm5141_vm13, %v5086_v11, %v5085_v58  ;;  %v3490_v6 = vrot.slane %v12028_v55, 2  ;;  %v3491_v8 = vrot.slane %v12028_v55, 4 }
 0x61c   :  { %v3469_v27 = vrot.slane %v12136_v0, 2  ;;  %v4659_v56 = vmax.f32 %v3467_v34, %v6874_v42  ;;  %v3476_v13 = vrot.slane %v12131_v14, 4  ;;  %vm14753_vm3 = vcmask 1040384  }
 0x61d   :  { %v12159_v22 = vsel %vm14753_vm3, 0.0, %v5200_v28  ;;  %v4834_v3 = vmax.f32 %v4650_v7, %v4658_v63  ;;  %v6875_v60 = vrot.slane %v3468_v12, 9  ;;  %v6885_v37 = vrot.slane %v3475_v20, 9  ;;  %v12173_v63 = vpop.permute.xlu2 %5720  ;;  %vm14757_vm0 = vmmov %vm14753_vm3 }
 0x61e   :  { %v4651_v31 = vmax.f32 %v3461_v17, %v6866_v4  ;;  %v5089_v1 = vperm.slane %v4833_v51, 0  ;;  %v5202_v16 = vsel %vm5143_vm14, %v5087_v32, %v5201_v45  ;;  %v3470_v9 = vrot.slane %v12136_v0, 4  ;;  %v12169_v21 = vpop.f32.mrf.mxu3 }
 0x61f   :  { %v5084_v30 = vperm.slane %v4828_v36, 0  ;;  %v5088_v24 = vperm.slane %v4832_v40, 0  ;;  %v6867_v62 = vrot.slane %v3462_v46, 9  ;;  %v6877_v26 = vrot.slane %v3469_v27, 9 }
 0x620   :  { %v3153_v61 = vadd.f32 %v11812_v48, %v12074_v19  ;;  %v6884_v34 = vrot.slane %v12131_v14, 9  ;;  %v14754_v54 = vmov 0.0   ;;  %v4835_v35 = vmax.f32 %v4651_v31, %v4659_v56  ;;  %5773 = vrot.lane.b32.xlu2 %v14578_v10, %s7130_s17  ;;  %5728 = vrot.lane.b32.xlu1 %v14227_v33, %s7128_s15 }
 0x621   :  { %5683 = vrot.lane.b32.xlu0 %v14754_v54, %s7129_s16  ;;  %v6886_v15 = vrot.slane %v3476_v13, 9  ;;  %v5090_v17 = vperm.slane %v4834_v3, 0  ;;  %v5203_v11 = vsel %vm14755_vm12, %v5088_v24, %v5202_v16  ;;  %v4660_v29 = vmax.f32 %v3468_v12, %v6875_v60 }
 0x622   :  { %v6876_v42 = vrot.slane %v12136_v0, 9  ;;  %v3477_v4 = vrot.slane %v12131_v14, 6  ;;  %v4670_v58 = vmax.f32 %v3475_v20, %v6885_v37  ;;  %v5204_v19 = vsel %vm14756_vm5, %v5089_v1, %v5203_v11  ;;  %v5518_v11 = vpop.permute.xlu1 %5517  ;;  %vm14760_vm5 = vmmov %vm14757_vm0 }
 0x623   :  { %v3471_v32 = vrot.slane %v12136_v0, 6  ;;  %v6878_v51 = vrot.slane %v3470_v9, 9  ;;  %v5299_v28 = vsel %vm14757_vm0, %v5084_v30, 0.0  ;;  %v4652_v12 = vmax.f32 %v3462_v46, %v6867_v62  ;;  %v5471_v30 = vpop.permute.xlu0 %5470 }
 0x624   :  { %v4662_v7 = vmax.f32 %v3469_v27, %v6877_v26  ;;  %v12180_v40 = vmax.f32 %v3153_v61, 0.0  ;;  %v4669_v36 = vmax.f32 %v12131_v14, %v6884_v34  ;;  %v5091_v20 = vperm.slane %v4835_v35, 0 }
 0x625   :  { %v3492_v45 = vrot.slane %v12028_v55, 6  ;;  %v4671_v56 = vmax.f32 %v3476_v13, %v6886_v15  ;;  %v5205_v3 = vsel %vm5149_vm6, %v5090_v17, %v5204_v19  ;;  %v4836_v60 = vmax.f32 %v4652_v12, %v4660_v29 }
 0x626   :  { %v4661_v10 = vmax.f32 %v12136_v0, %v6876_v42  ;;  %v6887_v37 = vrot.slane %v3477_v4, 9  ;;  %v4838_v31 = vmax.f32 %v4662_v7, %v4670_v58  ;;  %v5443_v46 = vrot.slane %v12159_v22, 2  ;;  %v12206_v42 = vpop.permute.xlu2 %5472 }
 0x627   :  { %v3174_v27 = vadd.f32 %v11812_v48, %v12052_v2  ;;  %v4663_v14 = vmax.f32 %v3470_v9, %v6878_v51  ;;  %v5356_v1 = vrot.slane %v12159_v22, 1  ;;  %v5444_v33 = vrot.slane %v5299_v28, 2  ;;  %v12198_v9 = vpop.f32.mrf.mxu3 }
 0x628   :  { %v6879_v16 = vrot.slane %v3471_v32, 9  ;;  %v3472_v13 = vrot.slane %v12180_v40, 2  ;;  %v4837_v24 = vmax.f32 %v4661_v10, %v4669_v36  ;;  %v5206_v0 = vsel %vm5151_vm4, %v5091_v20, %v5205_v3 }
 0x629   :  { %5527 = vrot.lane.b32.xlu0 %v12159_v22, %s7124_s22  ;;  %v6880_v62 = vrot.slane %v12180_v40, 9  ;;  %v4839_v26 = vmax.f32 %v4663_v14, %v4671_v56  ;;  %v5357_v61 = vrot.slane %v5299_v28, 1  ;;  %v5092_v34 = vperm.slane %v4836_v60, 0 }
 0x62a   :  { %v6904_v2 = vrot.slane %v12028_v55, 9  ;;  %v4672_v54 = vmax.f32 %v3477_v4, %v6887_v37  ;;  %v5094_v35 = vperm.slane %v4838_v31, 0  ;;  %vm14758_vm3 = vcmask 1045504  }
 0x62b   :  { %v12201_v15 = vsel %vm14758_vm3, %v5443_v46, %v5444_v33  ;;  %v12203_v17 = vmax.f32 %v3174_v27, 0.0  ;;  %v3473_v29 = vrot.slane %v12180_v40, 4  ;;  %vm14759_vm12 = vcmask 1046528   ;;  %vm14762_vm3 = vmmov %vm14760_vm5 }
 0x62c   :  { %5637 = vrot.lane.b32.xlu2 %v12201_v15, %s7127_s14  ;;  %v5358_v58 = vsel %vm14759_vm12, %v5356_v1, %v5357_v61  ;;  %v12212_v19 = vsel %vm14760_vm5, 0.0, %v5206_v0  ;;  %vm14761_vm0 = vcmask 64512   ;;  %v4664_v51 = vmax.f32 %v3471_v32, %v6879_v16 }
 0x62d   :  { %v5807_v4 = vsel %vm14761_vm0, %v11103_v23, %v12102_v5  ;;  %v6881_v28 = vrot.slane %v3472_v13, 9  ;;  %v5093_v12 = vperm.slane %v4837_v24, 0  ;;  %5583 = vrot.lane.b32.xlu1 %v5358_v58, %s7125_s23  ;;  %v4665_v36 = vmax.f32 %v12180_v40, %v6880_v62 }
 0x62e   :  { %v5822_v7 = vsel %vm2481_vm7, %v5807_v4, %v5471_v30  ;;  %v5095_v20 = vperm.slane %v4839_v26, 0  ;;  %v5300_v56 = vsel %vm14762_vm3, %v5092_v34, 0.0  ;;  %v3474_v3 = vrot.slane %v12180_v40, 6  ;;  %v5676_v34 = vpop.permute.xlu1 %5675 }
 0x62f   :  { %v4840_v60 = vmax.f32 %v4664_v51, %v4672_v54  ;;  %v5446_v10 = vrot.slane %v12212_v19, 2  ;;  %v5207_v37 = vsel %vm5141_vm13, %v5094_v35, %v5093_v12  ;;  %v6905_v23 = vrot.slane %v3490_v6, 9  ;;  %v12240_v0 = vpop.f32.mrf.mxu3 }
 0x630   :  { %v12227_v5 = vmax.f32 %v12028_v55, %v6904_v2  ;;  %v6882_v32 = vrot.slane %v3473_v29, 9  ;;  %v5359_v31 = vrot.slane %v12212_v19, 1  ;;  %v3177_v46 = vadd.f32 %v11812_v48, %v12083_v47  ;;  %v5628_v47 = vpop.permute.xlu0 %5627 }
 0x631   :  { %v3180_v40 = vadd.f32 %v11812_v48, %v12113_v39  ;;  %v4666_v27 = vmax.f32 %v3472_v13, %v6881_v28  ;;  %5685 = vrot.lane.b32.xlu0 %v12212_v19, %s7129_s16  ;;  %v5447_v14 = vrot.slane %v5300_v56, 2  ;;  %v5837_v1 = vsel %vm2611_vm8, %v5822_v7, %v5518_v11  ;;  %v12264_v7 = vpop.permute.xlu2 %5629 }
 0x632   :  { %v4841_v33 = vmax.f32 %v4665_v36, %v11717_v50  ;;  %v5360_v16 = vrot.slane %v5300_v56, 1  ;;  %v5208_v30 = vsel %vm5143_vm14, %v5095_v20, %v5207_v37  ;;  %v3493_v24 = vrot.slane %v12203_v17, 2 }
 0x633   :  { %vm14763_vm12 = vcmask 1045504   ;;  %v5096_v39 = vperm.slane %v4840_v60, 0  ;;  %v6883_v13 = vrot.slane %v3474_v3, 9  ;;  %v3494_v26 = vrot.slane %v12203_v17, 4 }
 0x634   :  { %v12243_v62 = vsel %vm14763_vm12, %v5446_v10, %v5447_v14  ;;  %v3495_v61 = vrot.slane %v12203_v17, 6  ;;  %vm14764_vm5 = vcmask 1046528   ;;  %v4667_v2 = vmax.f32 %v3473_v29, %v6882_v32 }
 0x635   :  { %5775 = vrot.lane.b32.xlu2 %v12243_v62, %s7130_s17  ;;  %v12250_v50 = vsel %vm14764_vm5, %v5359_v31, %v5360_v16  ;;  %v12252_v54 = vmax.f32 %v3180_v40, 0.0  ;;  %v5853_v35 = vsel %vm2741_vm11, %v5837_v1, %v12143_v57  ;;  %v4842_v11 = vmax.f32 %v4666_v27, %v11721_v52 }
 0x636   :  { %5730 = vrot.lane.b32.xlu1 %v12250_v50, %s7128_s15  ;;  %vm14765_vm0 = vcmask 1044484   ;;  %v6908_v51 = vrot.slane %v12203_v17, 9  ;;  %v12261_v28 = vmax.f32 %v3177_v46, 0.0  ;;  %v5870_v12 = vsel %vm5866_vm9, %v5853_v35, %v5628_v47 }
 0x637   :  { %v5209_v4 = vsel %vm14765_vm0, %v5096_v39, %v5208_v30  ;;  %v5097_v29 = vperm.slane %v4841_v33, 0  ;;  %v6906_v36 = vrot.slane %v3491_v8, 9  ;;  %v6909_v57 = vrot.slane %v3493_v24, 9 }
 0x638   :  { %v5887_v20 = vsel %vm5883_vm10, %v5870_v12, %v5676_v34  ;;  %v4668_v56 = vmax.f32 %v3474_v3, %v6883_v13  ;;  %v6910_v60 = vrot.slane %v3494_v26, 9  ;;  %v6911_v52 = vrot.slane %v3495_v61, 9 }
 0x639   :  { %v4843_v10 = vmax.f32 %v4667_v2, %v11858_v38  ;;  %vm14766_vm3 = vcmask 1045509   ;;  %v12273_v32 = vmax.f32 %v3490_v6, %v6905_v23  ;;  %v4849_v31 = vmax.f32 %v11920_v59, %v12227_v5  ;;  %5393 = vrot.lane.b32.xlu0 %v5358_v58, %s7120_s11  ;;  %v12289_v59 = vpop.f32.mrf.mxu3  ;;  %v5766_v5 = vpop.permute.xlu0 %5765 }
 0x63a   :  { %v5210_v37 = vsel %vm14766_vm3, %v5097_v29, %v5209_v4  ;;  %v3499_v46 = vrot.slane %v12252_v54, 2  ;;  %v5098_v40 = vperm.slane %v4842_v11, 0  ;;  %v12280_v3 = vmax.f32 %v12203_v17, %v6908_v51 }
 0x63b   :  { %v3496_v27 = vrot.slane %v12261_v28, 2  ;;  %v13472_v38 = vrot.slane %v12261_v28, 4  ;;  %v5904_v14 = vsel %vm5900_vm2, %v5887_v20, %v12173_v63  ;;  %v12286_v6 = vmax.f32 %v3493_v24, %v6909_v57 }
 0x63c   :  { %v3500_v23 = vrot.slane %v12252_v54, 4  ;;  %v5211_v58 = vsel %vm5149_vm6, %v5098_v40, %v5210_v37  ;;  %v4844_v1 = vmax.f32 %v4668_v56, %v11982_v49  ;;  %v12293_v17 = vmax.f32 %v3494_v26, %v6910_v60 }
 0x63d   :  { %v12295_v33 = vmax.f32 %v3495_v61, %v6911_v52  ;;  %5529 = vrot.lane.b32.xlu2 %v12212_v19, %s7124_s22  ;;  %v5099_v63 = vperm.slane %v4843_v10, 0  ;;  %v3501_v30 = vrot.slane %v12252_v54, 6  ;;  %v6916_v24 = vrot.slane %v12252_v54, 9  ;;  %v12311_v61 = vpop.permute.xlu2 %5767 }
 0x63e   :  { %v6917_v47 = vrot.slane %v3499_v46, 9  ;;  %v5921_v39 = vsel %vm5917_vm15, %v5904_v14, %v5766_v5  ;;  %5480 = vrot.lane.b32.xlu1 %v12201_v15, %s7122_s0  ;;  %v6912_v49 = vrot.slane %v12261_v28, 9  ;;  %v6913_v13 = vrot.slane %v3496_v27, 9 }
 0x63f   :  { %v12308_v26 = vrot.slane %v13472_v38, 9  ;;  %6975 = vmatmul.msk.f32.gmra.mxu1 %vm5947_vm1, %v5921_v39  ;;  %v5212_v34 = vsel %vm5151_vm4, %v5099_v63, %v5211_v58  ;;  %v6918_v2 = vrot.slane %v3500_v23, 9  ;;  %v3183_v35 = vadd.f32 %v11812_v48, %v12141_v18  ;;  %v6013_v39 = vpop.f32.mrf.mxu1 }
 0x640   :  { %v5100_v11 = vperm.slane %v4844_v1, 0  ;;  %v5213_v15 = vsel %vm5141_vm13, %v12022_v41, %v12008_v25  ;;  %v14767_v4 = vrot.slane %v11860_v43, 4  ;;  %v4691_v12 = vmax.f32 %v3491_v8, %v6906_v36  ;;  %v14770_v8 = vld [vmem:[#allocation224_spill] sm:$0xff] }
 0x641   :  { %v4850_v29 = vmax.f32 %v11924_v53, %v12273_v32  ;;  %v6907_v57 = vrot.slane %v3492_v45, 9  ;;  %v6919_v20 = vrot.slane %v3501_v30, 9  ;;  %v4701_v18 = vmax.f32 %v12252_v54, %v6916_v24  ;;  %5585 = vrot.lane.b32.xlu0 %v12250_v50, %s7125_s23  ;;  %v12342_v54 = vpop.f32.mrf.mxu3  ;;  %v14773_v32 = vld [vmem:[#allocation96_spill] sm:$0xff] }
 0x642   :  { %v4683_v51 = vmax.f32 %v14767_v4, %v11917_v44  ;;  %v4702_v56 = vmax.f32 %v3499_v46, %v6917_v47  ;;  %vm14768_vm12 = vcmask 1040384   ;;  %v3186_v44 = vadd.f32 %v11812_v48, %v12169_v21  ;;  %v14774_v46 = vld [vmem:[#allocation92_spill] sm:$0xff] }
 0x643   :  { %v12332_v25 = vsel %vm14768_vm12, 0.0, %v5212_v34  ;;  %v5105_v41 = vperm.slane %v4849_v31, 0  ;;  %v5214_v53 = vsel %vm5143_vm14, %v14770_v8, %v5213_v15  ;;  %v14771_v36 = vrot.slane %v11860_v43, 6  ;;  %vm14772_vm5 = vmmov %vm14768_vm12  ;;  %v5386_v31 = vpop.permute.xlu1 %5385  ;;  %v12363_v1 = vld [vmem:[%s13103_s4] ss:$0 sm:$0xff] }
 0x644   :  { %14769 = vst [vmem:[#allocation285_spill] sm:$0xff] %v12332_v25  ;;  %v4703_v52 = vmax.f32 %v3500_v23, %v6918_v2  ;;  %v12340_v10 = vmax.f32 %v3183_v35, 0.0  ;;  %v5301_v37 = vsel %vm14772_vm5, %v5100_v11, 0.0  ;;  %v14775_v40 = vmax.f32 %v14773_v32, %v14774_v46 }
 0x645   :  { %v6899_v60 = vrot.slane %v14771_v36, 9  ;;  %v12349_v48 = vmax.f32 %v12261_v28, %v6912_v49  ;;  %v12351_v21 = vmax.f32 %v3496_v27, %v6913_v13  ;;  %5687 = vrot.lane.b32.xlu2 %v12332_v25, %s7129_s16  ;;  %v5362_v23 = vrot.slane %v12332_v25, 1  ;;  %v12370_v49 = vpop.permute.xlu2 %5521 }
 0x646   :  { %v5104_v14 = vperm.slane %v14775_v40, 0  ;;  %v4692_v5 = vmax.f32 %v3492_v45, %v6907_v57  ;;  %v12358_v58 = vmax.f32 %v3501_v30, %v6919_v20  ;;  %5639 = vrot.lane.b32.xlu1 %v12243_v62, %s7127_s14  ;;  %v4851_v27 = vmax.f32 %v4683_v51, %v4691_v12  ;;  %v14778_v20 = vld [vmem:[#allocation344_spill] sm:$0xff] }
 0x647   :  { %v5106_v63 = vperm.slane %v4850_v29, 0  ;;  %v12368_v47 = vmax.f32 %v3186_v44, 0.0  ;;  %v5363_v55 = vrot.slane %v5301_v37, 1  ;;  %v14776_v30 = vmov %v14771_v36 }
 0x648   :  { %v5215_v24 = vsel %vm14765_vm0, %v5104_v14, %v5214_v53  ;;  %v4684_v13 = vmax.f32 %v14776_v30, %v6899_v60  ;;  %v4853_v34 = vmax.f32 %v12280_v3, %v4701_v18  ;;  %v4854_v2 = vmax.f32 %v12286_v6, %v4702_v56  ;;  %v5520_v60 = vpop.permute.xlu0 %5519  ;;  %v12430_v30 = vld [vmem:[%s13101_s2] ss:$0 sm:$0xff] }
 0x649   :  { %v5216_v45 = vsel %vm14766_vm3, %v5105_v41, %v5215_v24  ;;  %v4855_v35 = vmax.f32 %v12293_v17, %v4703_v52  ;;  %v3502_v11 = vrot.slane %v12340_v10, 2  ;;  %v6920_v15 = vrot.slane %v12340_v10, 9  ;;  %v12398_v36 = vpop.f32.mrf.mxu3 }
 0x64a   :  { %vm14777_vm12 = vcmask 1046528   ;;  %v5449_v51 = vrot.slane %v12332_v25, 2  ;;  %v4852_v12 = vmax.f32 %v4684_v13, %v4692_v5  ;;  %v6014_v29 = vadd.f32 %v12363_v1, %v6013_v39 }
 0x64b   :  { %v12381_v4 = vsel %vm14777_vm12, %v5362_v23, %v5363_v55  ;;  %v5107_v3 = vperm.slane %v4851_v27, 0  ;;  %v5217_v6 = vsel %vm5149_vm6, %v5106_v63, %v5216_v45  ;;  %v3505_v17 = vrot.slane %v12368_v47, 2  ;;  %v5576_v24 = vpop.permute.xlu1 %5575 }
 0x64c   :  { %5732 = vrot.lane.b32.xlu0 %v12381_v4, %s7128_s15  ;;  %v3506_v57 = vrot.slane %v12368_v47, 4  ;;  %vm14779_vm5 = vcmask 64512   ;;  %v5450_v56 = vrot.slane %v5301_v37, 2  ;;  %v12394_v44 = vperm.slane %v4853_v34, 0 }
 0x64d   :  { %v5808_v18 = vsel %vm14779_vm5, %v14778_v20, %v5386_v31  ;;  %v3503_v41 = vrot.slane %v12340_v10, 4  ;;  %v6921_v8 = vrot.slane %v3502_v11, 9  ;;  %v3507_v53 = vrot.slane %v12368_v47, 6  ;;  %5395 = vrot.lane.b32.xlu2 %v12250_v50, %s7120_s11  ;;  %v12419_v39 = vpop.permute.xlu2 %5679 }
 0x64e   :  { %v12400_v52 = vperm.slane %v4854_v2, 0  ;;  %v12403_v32 = vmax.f32 %v12340_v10, %v6920_v15  ;;  %vm14780_vm0 = vcmask 1045504   ;;  %v5108_v46 = vperm.slane %v4852_v12, 0 }
 0x64f   :  { %v12408_v37 = vsel %vm14780_vm0, %v5449_v51, %v5450_v56  ;;  %v12410_v40 = vperm.slane %v4855_v35, 0  ;;  %v6061_v14 = vmax.f32 %v6014_v29, 0.0  ;;  %v5823_v31 = vsel %vm2481_vm7, %v5808_v18, %v12206_v42 }
 0x650   :  { %5777 = vrot.lane.b32.xlu1 %v12408_v37, %s7130_s17  ;;  %v5218_v23 = vsel %vm5151_vm4, %v5107_v3, %v5217_v6  ;;  %v6924_v27 = vrot.slane %v12368_v47, 9  ;;  %v6925_v50 = vrot.slane %v3505_v17, 9  ;;  %v6926_v63 = vrot.slane %v3506_v57, 9  ;;  %v6016_v3 = vpop.f32.mrf.mxu1 }
 0x651   :  { %v12423_v55 = vrot.slane %v3503_v41, 9  ;;  %v12425_v45 = vmax.f32 %v3502_v11, %v6921_v8  ;;  %v6927_v42 = vrot.slane %v3507_v53, 9  ;;  %v3189_v13 = vadd.f32 %v12430_v30, %v12198_v9 }
 0x652   :  { %v5838_v2 = vsel %vm2611_vm8, %v5823_v31, %v5520_v60  ;;  %vm14781_vm3 = vcmask 1040384   ;;  %v6093_v15 = vrot.slane %v6061_v14, 2  ;;  %v6094_v51 = vrot.slane %v6061_v14, 4 }
 0x653   :  { %v12438_v35 = vsel %vm14781_vm3, 0.0, %v5218_v23  ;;  %vm14782_vm12 = vmmov %vm14781_vm3  ;;  %v6095_v12 = vrot.slane %v6061_v14, 6  ;;  %v5854_v29 = vsel %vm2741_vm11, %v5838_v2, %v5576_v24  ;;  %v12447_v9 = vmax.f32 %v12368_v47, %v6924_v27 }
 0x654   :  { %v12441_v11 = vsel %vm14782_vm12, %v5108_v46, 0.0  ;;  %5482 = vrot.lane.b32.xlu0 %v12243_v62, %s7122_s0  ;;  %v12449_v6 = vmax.f32 %v3505_v17, %v6925_v50  ;;  %v12451_v20 = vmax.f32 %v3506_v57, %v6926_v63  ;;  %v6017_v18 = vadd.f32 %v12363_v1, %v6016_v3  ;;  %v12460_v46 = vpop.f32.mrf.mxu3  ;;  %v5678_v62 = vpop.permute.xlu0 %5677 }
 0x655   :  { %v12454_v56 = vmax.f32 %v3507_v53, %v6927_v42  ;;  %v12456_v8 = vmax.f32 %v3189_v13, 0.0  ;;  %v3192_v60 = vadd.f32 %v12430_v30, %v12240_v0  ;;  %v6988_v31 = vrot.slane %v6061_v14, 9  ;;  %5587 = vrot.lane.b32.xlu2 %v12381_v4, %s7125_s23  ;;  %v5723_v13 = vpop.permute.xlu1 %5722 }
 0x656   :  { %v6062_v23 = vmax.f32 %v6017_v18, 0.0  ;;  %v5871_v47 = vsel %vm5866_vm9, %v5854_v29, %v12264_v7  ;;  %v5365_v1 = vrot.slane %v12438_v35, 1  ;;  %v5366_v17 = vrot.slane %v12441_v11, 1  ;;  %v12471_v7 = vpop.permute.xlu2 %5389 }
 0x657   :  { %v6989_v57 = vrot.slane %v6093_v15, 9  ;;  %v6990_v53 = vrot.slane %v6094_v51, 9  ;;  %v6991_v27 = vrot.slane %v6095_v12, 9  ;;  %v5888_v0 = vsel %vm5883_vm10, %v5871_v47, %v5678_v62 }
 0x658   :  { %5531 = vrot.lane.b32.xlu1 %v12332_v25, %s7124_s22  ;;  %v6096_v50 = vrot.slane %v6062_v23, 2  ;;  %v6097_v63 = vrot.slane %v6062_v23, 4  ;;  %v6098_v24 = vrot.slane %v6062_v23, 6  ;;  %v6992_v42 = vrot.slane %v6062_v23, 9 }
 0x659   :  { %v12473_v2 = vmax.f32 %v3192_v60, 0.0  ;;  %v12475_v29 = vmax.f32 %v6061_v14, %v6988_v31  ;;  %v5905_v3 = vsel %vm5900_vm2, %v5888_v0, %v5723_v13  ;;  %v5452_v18 = vrot.slane %v12438_v35, 2 }
 0x65a   :  { %v6993_v16 = vrot.slane %v6096_v50, 9  ;;  %v6994_v62 = vrot.slane %v6097_v63, 9  ;;  %v6995_v47 = vrot.slane %v6098_v24, 9  ;;  %v12479_v43 = vmax.f32 %v6062_v23, %v6992_v42 }
 0x65b   :  { %v12481_v34 = vmax.f32 %v6093_v15, %v6989_v57  ;;  %v12483_v5 = vmax.f32 %v6094_v51, %v6990_v53  ;;  %v12485_v38 = vmax.f32 %v6095_v12, %v6991_v27  ;;  %v5922_v14 = vsel %vm5917_vm15, %v5905_v3, %v12311_v61 }
 0x65c   :  { %5641 = vrot.lane.b32.xlu0 %v12408_v37, %s7127_s14  ;;  %v12491_v60 = vmax.f32 %v6096_v50, %v6993_v16  ;;  %v12493_v31 = vmax.f32 %v6097_v63, %v6994_v62  ;;  %v12495_v0 = vmax.f32 %v6098_v24, %v6995_v47  ;;  %6976 = vmatmul.msk.f32.gmra.mxu1 %vm5947_vm1, %v5922_v14  ;;  %v3511_v51 = vrot.slane %v12473_v2, 2  ;;  %v5388_v57 = vpop.permute.xlu0 %5387  ;;  %v12521_v24 = vpop.f32.mrf.mxu3 }
 0x65d   :  { %v3512_v12 = vrot.slane %v12473_v2, 4  ;;  %v3513_v23 = vrot.slane %v12473_v2, 6  ;;  %vm14783_vm5 = vcmask 1046528   ;;  %v5219_v50 = vsel %vm5141_vm13, %v12400_v52, %v12394_v44  ;;  %v5475_v3 = vpop.permute.xlu1 %5474 }
 0x65e   :  { %v12504_v61 = vsel %vm14783_vm5, %v5365_v1, %v5366_v17  ;;  %v3508_v63 = vrot.slane %v12456_v8, 2  ;;  %v6932_v1 = vrot.slane %v12473_v2, 9  ;;  %v3195_v17 = vadd.f32 %v12430_v30, %v12289_v59  ;;  %v12528_v13 = vpop.permute.xlu2 %5579 }
 0x65f   :  { %5734 = vrot.lane.b32.xlu2 %v12504_v61, %s7128_s15  ;;  %v4707_v42 = vmax.f32 %v3503_v41, %v12423_v55  ;;  %v5453_v44 = vrot.slane %v12441_v11, 2  ;;  %v14784_v52 = vrot.slane %v12261_v28, 4  ;;  %v4858_v59 = vmax.f32 %v12351_v21, %v12425_v45 }
 0x660   :  { %5689 = vrot.lane.b32.xlu1 %v12438_v35, %s7129_s16  ;;  %v14785_v47 = vrot.slane %v12340_v10, 6  ;;  %v6933_v27 = vrot.slane %v3511_v51, 9  ;;  %v6934_v15 = vrot.slane %v3512_v12, 9  ;;  %v14786_v41 = vmax.f32 %v12349_v48, %v12403_v32 }
 0x661   :  { %v4699_v62 = vmax.f32 %v14784_v52, %v12308_v26  ;;  %v5220_v53 = vsel %vm5143_vm14, %v12410_v40, %v5219_v50  ;;  %v6935_v11 = vrot.slane %v3513_v23, 9  ;;  %v12544_v16 = vsel %vm14780_vm0, %v5452_v18, %v5453_v44 }
 0x662   :  { %v6923_v14 = vrot.slane %v14785_v47, 9  ;;  %v5113_v55 = vperm.slane %v14786_v41, 0  ;;  %v14787_v26 = vmax.f32 %v12295_v33, %v12358_v58  ;;  %v14788_v45 = vrot.slane %v12261_v28, 6 }
 0x663   :  { %v3509_v47 = vrot.slane %v12456_v8, 4  ;;  %v4717_v25 = vmax.f32 %v12473_v2, %v6932_v1  ;;  %v12553_v48 = vmax.f32 %v3195_v17, 0.0  ;;  %v4859_v32 = vmax.f32 %v4699_v62, %v4707_v42 }
 0x664   :  { %v5112_v21 = vperm.slane %v14787_v26, 0  ;;  %v6915_v52 = vrot.slane %v14788_v45, 9  ;;  %5779 = vrot.lane.b32.xlu0 %v12544_v16, %s7130_s17  ;;  %v3510_v40 = vrot.slane %v12456_v8, 6  ;;  %v5114_v18 = vperm.slane %v4858_v59, 0  ;;  %v5578_v2 = vpop.permute.xlu0 %5577 }
 0x665   :  { %vm14789_vm3 = vcmask 1044484   ;;  %v14790_v33 = vrot.slane %v12340_v10, 6  ;;  %v4718_v44 = vmax.f32 %v3511_v51, %v6933_v27  ;;  %v4719_v41 = vmax.f32 %v3512_v12, %v6934_v15  ;;  %v14793_v12 = vld [vmem:[#allocation408_spill] sm:$0xff] }
 0x666   :  { %v5221_v50 = vsel %vm14789_vm3, %v5112_v21, %v5220_v53  ;;  %v3198_v26 = vadd.f32 %v12430_v30, %v12342_v54  ;;  %vm14791_vm12 = vcmask 1045509   ;;  %v6928_v17 = vrot.slane %v12456_v8, 9  ;;  %v12579_v59 = vpop.permute.xlu2 %5726 }
 0x667   :  { %v4708_v58 = vmax.f32 %v14790_v33, %v6923_v14  ;;  %v5222_v1 = vsel %vm14791_vm12, %v5113_v55, %v5221_v50  ;;  %v6929_v45 = vrot.slane %v3508_v63, 9  ;;  %v12565_v42 = vmax.f32 %v3513_v23, %v6935_v11  ;;  %5484 = vrot.lane.b32.xlu2 %v12408_v37, %s7122_s0  ;;  %v5632_v37 = vpop.permute.xlu1 %5631 }
 0x668   :  { %v14792_v53 = vrot.slane %v12261_v28, 6  ;;  %v4861_v51 = vmax.f32 %v12447_v9, %v4717_v25  ;;  %v3514_v15 = vrot.slane %v12553_v48, 2  ;;  %vm14794_vm5 = vcmask 64512   ;;  %5397 = vrot.lane.b32.xlu1 %v12381_v4, %s7120_s11 }
 0x669   :  { %v5809_v54 = vsel %vm14794_vm5, %v14793_v12, %v5388_v57  ;;  %v5115_v27 = vperm.slane %v4859_v32, 0  ;;  %v6936_v23 = vrot.slane %v12553_v48, 9  ;;  %v5223_v28 = vsel %vm5149_vm6, %v5114_v18, %v5222_v1 }
 0x66a   :  { %v4700_v10 = vmax.f32 %v14792_v53, %v6915_v52  ;;  %v5824_v62 = vsel %vm2481_vm7, %v5809_v54, %v5475_v3  ;;  %v12584_v25 = vrot.slane %v3509_v47, 9  ;;  %v4862_v9 = vmax.f32 %v12449_v6, %v4718_v44  ;;  %v12597_v52 = vpop.f32.mrf.mxu3 }
 0x66b   :  { %v4863_v57 = vmax.f32 %v12451_v20, %v4719_v41  ;;  %v12588_v4 = vmax.f32 %v3198_v26, 0.0  ;;  %v4713_v55 = vmax.f32 %v12456_v8, %v6928_v17  ;;  %v12591_v11 = vmax.f32 %v3508_v63, %v6929_v45 }
 0x66c   :  { %v4860_v14 = vmax.f32 %v4700_v10, %v4708_v58  ;;  %v4864_v3 = vmax.f32 %v12454_v56, %v12565_v42  ;;  %v3204_v21 = vadd.f32 %v12430_v30, %v12460_v46  ;;  %v3515_v32 = vrot.slane %v12553_v48, 4  ;;  %5533 = vrot.lane.b32.xlu0 %v12438_v35, %s7124_s22  ;;  %v5725_v1 = vpop.permute.xlu0 %5724 }
 0x66d   :  { %v6937_v18 = vrot.slane %v3514_v15, 9  ;;  %v5839_v6 = vsel %vm2611_vm8, %v5824_v62, %v12370_v49  ;;  %v5224_v20 = vsel %vm5151_vm4, %v5115_v27, %v5223_v28  ;;  %v5117_v63 = vperm.slane %v4861_v51, 0 }
 0x66e   :  { %v4721_v50 = vmax.f32 %v12553_v48, %v6936_v23  ;;  %v5855_v33 = vsel %vm2741_vm11, %v5839_v6, %v5578_v2  ;;  %v5116_v58 = vperm.slane %v4860_v14, 0  ;;  %v5118_v46 = vperm.slane %v4862_v9, 0  ;;  %v12626_v62 = vpop.permute.xlu2 %5478 }
 0x66f   :  { %v5119_v44 = vperm.slane %v4863_v57, 0  ;;  %v3517_v41 = vrot.slane %v12588_v4, 2  ;;  %v5872_v26 = vsel %vm5866_vm9, %v5855_v33, %v5632_v37  ;;  %v3518_v49 = vrot.slane %v12588_v4, 4  ;;  %5643 = vrot.lane.b32.xlu2 %v12544_v16, %s7127_s14 }
 0x670   :  { %v3519_v17 = vrot.slane %v12588_v4, 6  ;;  %v12611_v45 = vmax.f32 %v3204_v21, 0.0  ;;  %vm14795_vm0 = vcmask 1040384   ;;  %v3516_v2 = vrot.slane %v12553_v48, 6  ;;  %5589 = vrot.lane.b32.xlu1 %v12504_v61, %s7125_s23 }
 0x671   :  { %v12616_v53 = vsel %vm14795_vm0, 0.0, %v5224_v20  ;;  %v6938_v10 = vrot.slane %v3515_v32, 9  ;;  %v4722_v51 = vmax.f32 %v3514_v15, %v6937_v18  ;;  %v6940_v12 = vrot.slane %v12588_v4, 9  ;;  %vm14796_vm3 = vmmov %vm14795_vm0  ;;  %v5770_v15 = vpop.permute.xlu1 %5769 }
 0x672   :  { %v4865_v54 = vmax.f32 %v4713_v55, %v4721_v50  ;;  %v3201_v27 = vadd.f32 %v12430_v30, %v12398_v36  ;;  %v5889_v23 = vsel %vm5883_vm10, %v5872_v26, %v12419_v39  ;;  %v5303_v37 = vsel %vm14796_vm3, %v5116_v58, 0.0  ;;  %v12646_v26 = vpop.f32.mrf.mxu3 }
 0x673   :  { %v6941_v28 = vrot.slane %v3517_v41, 9  ;;  %v5906_v48 = vsel %vm5900_vm2, %v5889_v23, %v5725_v1  ;;  %v5368_v14 = vrot.slane %v12616_v53, 1  ;;  %v5455_v9 = vrot.slane %v12616_v53, 2 }
 0x674   :  { %v6942_v57 = vrot.slane %v3518_v49, 9  ;;  %v6943_v55 = vrot.slane %v3519_v17, 9  ;;  %v3523_v21 = vrot.slane %v12611_v45, 2  ;;  %v5923_v36 = vsel %vm5917_vm15, %v5906_v48, %v5770_v15  ;;  %5691 = vrot.lane.b32.xlu0 %v12616_v53, %s7129_s16  ;;  %v5477_v1 = vpop.permute.xlu0 %5476 }
 0x675   :  { %v12635_v39 = vmax.f32 %v12588_v4, %v6940_v12  ;;  %6977 = vmatmul.msk.f32.gmra.mxu1 %vm5947_vm1, %v5923_v36  ;;  %v5369_v18 = vrot.slane %v5303_v37, 1  ;;  %v5456_v6 = vrot.slane %v5303_v37, 2  ;;  %v5225_v20 = vsel %vm5141_vm13, %v5118_v46, %v5117_v63 }
 0x676   :  { %v12641_v50 = vmax.f32 %v3201_v27, 0.0  ;;  %v3524_v33 = vrot.slane %v12611_v45, 4  ;;  %v3207_v58 = vadd.f32 %v12430_v30, %v12521_v24  ;;  %v4723_v4 = vmax.f32 %v3515_v32, %v6938_v10 }
 0x677   :  { %vm14797_vm12 = vcmask 1046528   ;;  %vm14798_vm5 = vcmask 1045504   ;;  %v4866_v37 = vmax.f32 %v12591_v11, %v4722_v51  ;;  %v6939_v63 = vrot.slane %v3516_v2, 9 }
 0x678   :  { %v12649_v12 = vsel %vm14797_vm12, %v5368_v14, %v5369_v18  ;;  %v12652_v23 = vsel %vm14798_vm5, %v5455_v9, %v5456_v6  ;;  %v6949_v46 = vrot.slane %v3523_v21, 9  ;;  %v4715_v24 = vmax.f32 %v3509_v47, %v12584_v25  ;;  %v12671_v47 = vpop.permute.xlu2 %5635 }
 0x679   :  { %5781 = vrot.lane.b32.xlu2 %v12652_v23, %s7130_s17  ;;  %v5121_v27 = vperm.slane %v4865_v54, 0  ;;  %v5226_v32 = vsel %vm5143_vm14, %v5119_v44, %v5225_v20  ;;  %v4726_v10 = vmax.f32 %v3517_v41, %v6941_v28  ;;  %v6948_v48 = vrot.slane %v12611_v45, 9  ;;  %5736 = vrot.lane.b32.xlu1 %v12649_v12, %s7128_s15  ;;  %v5524_v41 = vpop.permute.xlu1 %5523  ;;  %v14801_v20 = vld [vmem:[#allocation26_spill] sm:$0xff] }
 0x67a   :  { %v5120_v11 = vperm.slane %v4864_v3, 0  ;;  %v6931_v51 = vrot.slane %v3510_v40, 9  ;;  %v4727_v15 = vmax.f32 %v3518_v49, %v6942_v57  ;;  %v6950_v14 = vrot.slane %v3524_v33, 9 }
 0x67b   :  { %v12669_v9 = vmax.f32 %v3207_v58, 0.0  ;;  %v4867_v25 = vmax.f32 %v4715_v24, %v4723_v4  ;;  %v12673_v44 = vmax.f32 %v3519_v17, %v6943_v55  ;;  %v5122_v54 = vperm.slane %v4866_v37, 0 }
 0x67c   :  { %vm14799_vm0 = vcmask 1044484   ;;  %v4724_v36 = vmax.f32 %v3516_v2, %v6939_v63  ;;  %v3520_v56 = vrot.slane %v12641_v50, 2  ;;  %v3525_v42 = vrot.slane %v12611_v45, 6  ;;  %5399 = vrot.lane.b32.xlu0 %v12504_v61, %s7120_s11  ;;  %v5634_v63 = vpop.permute.xlu0 %5633 }
 0x67d   :  { %v5227_v28 = vsel %vm14799_vm0, %v5120_v11, %v5226_v32  ;;  %v4734_v3 = vmax.f32 %v3523_v21, %v6949_v46  ;;  %vm14800_vm3 = vcmask 1045509   ;;  %v3521_v57 = vrot.slane %v12641_v50, 4 }
 0x67e   :  { %v5228_v49 = vsel %vm14800_vm3, %v5121_v27, %v5227_v28  ;;  %v6944_v18 = vrot.slane %v12641_v50, 9  ;;  %v4733_v6 = vmax.f32 %v12611_v45, %v6948_v48  ;;  %v4716_v17 = vmax.f32 %v3510_v40, %v6931_v51  ;;  %v3215_v40 = vpop.f32.mrf.mxu3 }
 0x67f   :  { %v4735_v2 = vmax.f32 %v3524_v33, %v6950_v14  ;;  %v3526_v55 = vrot.slane %v12669_v9, 2  ;;  %vm14802_vm12 = vcmask 64512   ;;  %v5123_v58 = vperm.slane %v4867_v25, 0 }
 0x680   :  { %v5810_v21 = vsel %vm14802_vm12, %v14801_v20, %v12471_v7  ;;  %v6952_v4 = vrot.slane %v12669_v9, 9  ;;  %v5229_v45 = vsel %vm5149_vm6, %v5122_v54, %v5228_v49  ;;  %v4868_v46 = vmax.f32 %v4716_v17, %v4724_v36  ;;  %v12704_v51 = vpop.permute.xlu2 %5773 }
 0x681   :  { %v5825_v37 = vsel %vm2481_vm7, %v5810_v21, %v5477_v1  ;;  %v6945_v61 = vrot.slane %v3520_v56, 9  ;;  %v6951_v24 = vrot.slane %v3525_v42, 9  ;;  %v4870_v8 = vmax.f32 %v4726_v10, %v4734_v3  ;;  %5535 = vrot.lane.b32.xlu2 %v12616_v53, %s7124_s22  ;;  %5486 = vrot.lane.b32.xlu1 %v12544_v16, %s7122_s0  ;;  %v5682_v28 = vpop.permute.xlu1 %5681 }
 0x682   :  { %v5840_v33 = vsel %vm2611_vm8, %v5825_v37, %v5524_v41  ;;  %v3522_v7 = vrot.slane %v12641_v50, 6  ;;  %v6946_v27 = vrot.slane %v3521_v57, 9  ;;  %v4729_v1 = vmax.f32 %v12641_v50, %v6944_v18 }
 0x683   :  { %v3527_v32 = vrot.slane %v12669_v9, 4  ;;  %v4869_v10 = vmax.f32 %v12635_v39, %v4733_v6  ;;  %v4871_v48 = vmax.f32 %v4727_v15, %v4735_v2  ;;  %v6953_v11 = vrot.slane %v3526_v55, 9 }
 0x684   :  { %v5230_v14 = vsel %vm5151_vm4, %v5123_v58, %v5229_v45  ;;  %v4737_v25 = vmax.f32 %v12669_v9, %v6952_v4  ;;  %v3216_v41 = vadd.f32 %v12430_v30, %v3215_v40  ;;  %v5856_v54 = vsel %vm2741_vm11, %v5840_v33, %v12528_v13  ;;  %5591 = vrot.lane.b32.xlu0 %v12649_v12, %s7125_s23  ;;  %v5772_v58 = vpop.permute.xlu0 %5771 }
 0x685   :  { %v5124_v36 = vperm.slane %v4868_v46, 0  ;;  %v4730_v3 = vmax.f32 %v3520_v56, %v6945_v61  ;;  %v4736_v49 = vmax.f32 %v3525_v42, %v6951_v24  ;;  %v5126_v16 = vperm.slane %v4870_v8, 0 }
 0x686   :  { %v5873_v39 = vsel %vm5866_vm9, %v5856_v54, %v5634_v63  ;;  %v6954_v15 = vrot.slane %v3527_v32, 9  ;;  %v3210_v18 = vadd.f32 %v12430_v30, %v12597_v52  ;;  %vm14803_vm5 = vcmask 1040384   ;;  %v3218_v46 = vpop.f32.mrf.mxu3 }
 0x687   :  { %v5890_v6 = vsel %vm5883_vm10, %v5873_v39, %v5682_v28  ;;  %v12718_v17 = vsel %vm14803_vm5, 0.0, %v5230_v14  ;;  %v5125_v13 = vperm.slane %v4869_v10, 0  ;;  %v5127_v2 = vperm.slane %v4871_v48, 0  ;;  %vm14804_vm0 = vmmov %vm14803_vm5 }
 0x688   :  { %v3528_v56 = vrot.slane %v12669_v9, 6  ;;  %v4738_v42 = vmax.f32 %v3526_v55, %v6953_v11  ;;  %v4873_v20 = vmax.f32 %v4729_v1, %v4737_v25  ;;  %v12721_v21 = vmax.f32 %v3216_v41, 0.0  ;;  %v12737_v61 = vpop.permute.xlu2 %5637 }
 0x689   :  { %v5907_v52 = vsel %vm5900_vm2, %v5890_v6, %v12579_v59  ;;  %v5304_v4 = vsel %vm14804_vm0, %v5124_v36, 0.0  ;;  %v4872_v37 = vmax.f32 %v12673_v44, %v4736_v49  ;;  %5693 = vrot.lane.b32.xlu2 %v12718_v17, %s7129_s16  ;;  %v5371_v45 = vrot.slane %v12718_v17, 1  ;;  %5645 = vrot.lane.b32.xlu1 %v12652_v23, %s7127_s14  ;;  %v5392_v33 = vpop.permute.xlu1 %5391 }
 0x68a   :  { %v5924_v63 = vsel %vm5917_vm15, %v5907_v52, %v5772_v58  ;;  %v5231_v9 = vsel %vm5141_vm13, %v5126_v16, %v5125_v13  ;;  %v12732_v55 = vmax.f32 %v3210_v18, 0.0  ;;  %v4739_v59 = vmax.f32 %v3527_v32, %v6954_v15 }
 0x68b   :  { %6978 = vmatmul.msk.f32.gmra.mxu1 %vm5947_vm1, %v5924_v63  ;;  %v5372_v44 = vrot.slane %v5304_v4, 1  ;;  %v4874_v24 = vmax.f32 %v4730_v3, %v4738_v42  ;;  %v6955_v8 = vrot.slane %v3528_v56, 9  ;;  %v3535_v40 = vrot.slane %v12721_v21, 2 }
 0x68c   :  { %v4731_v1 = vmax.f32 %v3521_v57, %v6946_v27  ;;  %v5129_v10 = vperm.slane %v4873_v20, 0  ;;  %v5232_v48 = vsel %vm5143_vm14, %v5127_v2, %v5231_v9  ;;  %vm14805_vm3 = vcmask 1046528   ;;  %v5526_v15 = vpop.permute.xlu0 %5525 }
 0x68d   :  { %v12744_v11 = vsel %vm14805_vm3, %v5371_v45, %v5372_v44  ;;  %v5458_v32 = vrot.slane %v12718_v17, 2  ;;  %v5128_v14 = vperm.slane %v4872_v37, 0  ;;  %v6947_v25 = vrot.slane %v3522_v7, 9 }
 0x68e   :  { %v3529_v41 = vrot.slane %v12732_v55, 2  ;;  %v3536_v54 = vrot.slane %v12721_v21, 4  ;;  %v3219_v28 = vadd.f32 %v12430_v30, %v3218_v46  ;;  %5738 = vrot.lane.b32.xlu0 %v12744_v11, %s7128_s15  ;;  %v4875_v57 = vmax.f32 %v4731_v1, %v4739_v59 }
 0x68f   :  { %v5459_v27 = vrot.slane %v5304_v4, 2  ;;  %v5130_v36 = vperm.slane %v4874_v24, 0  ;;  %vm14806_vm12 = vcmask 1044484   ;;  %v4740_v49 = vmax.f32 %v3528_v56, %v6955_v8 }
 0x690   :  { %v5233_v3 = vsel %vm14806_vm12, %v5128_v14, %v5232_v48  ;;  %v3530_v16 = vrot.slane %v12732_v55, 4  ;;  %v3531_v39 = vrot.slane %v12732_v55, 6  ;;  %vm14807_vm5 = vcmask 1045509   ;;  %v12774_v37 = vpop.permute.xlu2 %5775 }
 0x691   :  { %v5234_v18 = vsel %vm14807_vm5, %v5129_v10, %v5233_v3  ;;  %v3213_v6 = vadd.f32 %v12430_v30, %v12646_v26  ;;  %v6965_v13 = vrot.slane %v3535_v40, 9  ;;  %vm14808_vm0 = vcmask 1045504   ;;  %5401 = vrot.lane.b32.xlu2 %v12649_v12, %s7120_s11  ;;  %v14809_v30 = vld [vmem:[#allocation227_spill] sm:$0xff]  ;;  %v5582_v45 = vpop.permute.xlu1 %5581 }
 0x692   :  { %v12761_v2 = vsel %vm14808_vm0, %v5458_v32, %v5459_v27  ;;  %v4732_v56 = vmax.f32 %v3522_v7, %v6947_v25  ;;  %v6957_v42 = vrot.slane %v3529_v41, 9  ;;  %v6964_v20 = vrot.slane %v12721_v21, 9 }
 0x693   :  { %v6966_v58 = vrot.slane %v3536_v54, 9  ;;  %5783 = vrot.lane.b32.xlu1 %v12761_v2, %s7130_s17  ;;  %v5131_v52 = vperm.slane %v4875_v57, 0  ;;  %v12770_v4 = vmax.f32 %v3219_v28, 0.0  ;;  %vm14810_vm3 = vcmask 64512  }
 0x694   :  { %v5811_v26 = vsel %vm14810_vm3, %v14809_v30, %v5392_v33  ;;  %v5235_v12 = vsel %vm5149_vm6, %v5130_v36, %v5234_v18  ;;  %v4876_v63 = vmax.f32 %v4732_v56, %v4740_v49  ;;  %v6956_v50 = vrot.slane %v12732_v55, 9  ;;  %v12792_v28 = vpop.permute.xlu0 %5683 }
 0x695   :  { %v6958_v7 = vrot.slane %v3530_v16, 9  ;;  %v6959_v9 = vrot.slane %v3531_v39, 9  ;;  %v12778_v59 = vmax.f32 %v3213_v6, 0.0  ;;  %v3537_v46 = vrot.slane %v12721_v21, 6 }
 0x696   :  { %v4750_v44 = vmax.f32 %v3535_v40, %v6965_v13  ;;  %v4742_v24 = vmax.f32 %v3529_v41, %v6957_v42  ;;  %v4749_v8 = vmax.f32 %v12721_v21, %v6964_v20  ;;  %v5826_v33 = vsel %vm2481_vm7, %v5811_v26, %v12626_v62  ;;  %5488 = vrot.lane.b32.xlu0 %v12652_v23, %s7122_s0 }
 0x697   :  { %v5236_v1 = vsel %vm5151_vm4, %v5131_v52, %v5235_v12  ;;  %v4751_v10 = vmax.f32 %v3536_v54, %v6966_v58  ;;  %v3538_v48 = vrot.slane %v12770_v4, 2  ;;  %v5841_v32 = vsel %vm2611_vm8, %v5826_v33, %v5526_v15 }
 0x698   :  { %v5132_v14 = vperm.slane %v4876_v63, 0  ;;  %v4741_v25 = vmax.f32 %v12732_v55, %v6956_v50  ;;  %v4743_v40 = vmax.f32 %v3530_v16, %v6958_v7  ;;  %v6968_v41 = vrot.slane %v12770_v4, 9  ;;  %v12806_v18 = vpop.permute.xlu2 %5529 }
 0x699   :  { %v5857_v21 = vsel %vm2741_vm11, %v5841_v32, %v5582_v45  ;;  %v3532_v62 = vrot.slane %v12778_v59, 2  ;;  %v6967_v23 = vrot.slane %v3537_v46, 9  ;;  %v4878_v57 = vmax.f32 %v4742_v24, %v4750_v44  ;;  %5593 = vrot.lane.b32.xlu2 %v12744_v11, %s7125_s23  ;;  %v12812_v56 = vpop.permute.xlu1 %5728 }
 0x69a   :  { %vm14811_vm12 = vcmask 1040384   ;;  %v4744_v27 = vmax.f32 %v3531_v39, %v6959_v9  ;;  %v6960_v55 = vrot.slane %v12778_v59, 9  ;;  %v4877_v36 = vmax.f32 %v4741_v25, %v4749_v8 }
 0x69b   :  { %v12798_v54 = vsel %vm14811_vm12, 0.0, %v5236_v1  ;;  %5537 = vrot.lane.b32.xlu1 %v12718_v17, %s7124_s22  ;;  %v3539_v3 = vrot.slane %v12770_v4, 4  ;;  %v4879_v49 = vmax.f32 %v4743_v40, %v4751_v10  ;;  %v6969_v16 = vrot.slane %v3538_v48, 9  ;;  %vm14812_vm5 = vmmov %vm14811_vm12 }
 0x69c   :  { %v5874_v15 = vsel %vm5866_vm9, %v5857_v21, %v12671_v47  ;;  %v5305_v6 = vsel %vm14812_vm5, %v5132_v14, 0.0  ;;  %v4753_v13 = vmax.f32 %v12770_v4, %v6968_v41  ;;  %v5374_v42 = vrot.slane %v12798_v54, 1  ;;  %v5528_v44 = vpop.permute.xlu0 %5527 }
 0x69d   :  { %v5891_v39 = vsel %vm5883_vm10, %v5874_v15, %v12792_v28  ;;  %v3533_v20 = vrot.slane %v12778_v59, 4  ;;  %v6961_v58 = vrot.slane %v3532_v62, 9  ;;  %v4752_v52 = vmax.f32 %v3537_v46, %v6967_v23 }
 0x69e   :  { %v5134_v30 = vperm.slane %v4878_v57, 0  ;;  %v5908_v47 = vsel %vm5900_vm2, %v5891_v39, %v12812_v56  ;;  %v4745_v26 = vmax.f32 %v12778_v59, %v6960_v55  ;;  %5647 = vrot.lane.b32.xlu0 %v12761_v2, %s7127_s14  ;;  %v5375_v63 = vrot.slane %v5305_v6, 1 }
 0x69f   :  { %v5925_v12 = vsel %vm5917_vm15, %v5908_v47, %v12704_v51  ;;  %v6970_v50 = vrot.slane %v3539_v3, 9  ;;  %v3534_v7 = vrot.slane %v12778_v59, 6  ;;  %v5133_v45 = vperm.slane %v4877_v36, 0 }
 0x6a0   :  { %v3540_v9 = vrot.slane %v12770_v4, 6  ;;  %6979 = vmatmul.msk.f32.gmra.mxu1 %vm5947_vm1, %v5925_v12  ;;  %v4754_v46 = vmax.f32 %v3538_v48, %v6969_v16  ;;  %vm14813_vm0 = vcmask 1046528   ;;  %v6962_v8 = vrot.slane %v3533_v20, 9  ;;  %v12835_v48 = vpop.permute.xlu2 %5687 }
 0x6a1   :  { %v12827_v24 = vsel %vm14813_vm0, %v5374_v42, %v5375_v63  ;;  %v4881_v33 = vmax.f32 %v4745_v26, %v4753_v13  ;;  %v5135_v1 = vperm.slane %v4879_v49, 0  ;;  %v5461_v10 = vrot.slane %v12798_v54, 2  ;;  %v5584_v21 = vpop.permute.xlu1 %5583 }
 0x6a2   :  { %5740 = vrot.lane.b32.xlu2 %v12827_v24, %s7128_s15  ;;  %v4746_v32 = vmax.f32 %v3532_v62, %v6961_v58  ;;  %v4880_v59 = vmax.f32 %v4744_v27, %v4752_v52  ;;  %v5237_v14 = vsel %vm5141_vm13, %v5134_v30, %v5133_v45  ;;  %v4755_v4 = vmax.f32 %v3539_v3, %v6970_v50  ;;  %v14815_v3 = vld [vmem:[#allocation170_spill] sm:$0xff] }
 0x6a3   :  { %5695 = vrot.lane.b32.xlu1 %v12798_v54, %s7129_s16  ;;  %v5462_v25 = vrot.slane %v5305_v6, 2  ;;  %v6971_v41 = vrot.slane %v3540_v9, 9  ;;  %v4747_v23 = vmax.f32 %v3533_v20, %v6962_v8  ;;  %v5137_v57 = vperm.slane %v4881_v33, 0 }
 0x6a4   :  { %v4882_v40 = vmax.f32 %v4746_v32, %v4754_v46  ;;  %v5238_v55 = vsel %vm5143_vm14, %v5135_v1, %v5237_v14  ;;  %vm14814_vm3 = vcmask 1045504   ;;  %v5136_v62 = vperm.slane %v4880_v59, 0  ;;  %v5686_v42 = vpop.permute.xlu0 %5685 }
 0x6a5   :  { %v12839_v36 = vsel %vm14814_vm3, %v5461_v10, %v5462_v25  ;;  %v6963_v27 = vrot.slane %v3534_v7, 9  ;;  %v4883_v49 = vmax.f32 %v4747_v23, %v4755_v4  ;;  %v5842_v16 = vsel %vm2611_vm8, %v14815_v3, %v5528_v44 }
 0x6a6   :  { %5785 = vrot.lane.b32.xlu0 %v12839_v36, %s7130_s17  ;;  %v5138_v15 = vperm.slane %v4882_v40, 0  ;;  %vm14816_vm12 = vcmask 1044484   ;;  %v4756_v13 = vmax.f32 %v3540_v9, %v6971_v41  ;;  %v5858_v39 = vsel %vm2741_vm11, %v5842_v16, %v5584_v21 }
 0x6a7   :  { %v5239_v6 = vsel %vm14816_vm12, %v5136_v62, %v5238_v55  ;;  %vm14817_vm5 = vcmask 1045509   ;;  %v4748_v58 = vmax.f32 %v3534_v7, %v6963_v27  ;;  %v5139_v52 = vperm.slane %v4883_v49, 0 }
 0x6a8   :  { %v5240_v20 = vsel %vm14817_vm5, %v5137_v57, %v5239_v6  ;;  %v5875_v30 = vsel %vm5866_vm9, %v5858_v39, %v12737_v61  ;;  %v5396_v47 = vpop.permute.xlu2 %5395  ;;  %v14818_v7 = vmax.f32 %v12481_v34, %v12491_v60  ;;  %v14819_v44 = vmax.f32 %v12483_v5, %v12493_v31 }
 0x6a9   :  { %v5241_v26 = vsel %vm5149_vm6, %v5138_v15, %v5240_v20  ;;  %v4884_v12 = vmax.f32 %v4748_v58, %v4756_v13  ;;  %v5892_v63 = vsel %vm5883_vm10, %v5875_v30, %v5686_v42  ;;  %v5731_v50 = vpop.permute.xlu1 %5730  ;;  %vm14820_vm0 = vcmask 1040384  }
 0x6aa   :  { %5490 = vrot.lane.b32.xlu2 %v12761_v2, %s7122_s0  ;;  %v5909_v45 = vsel %vm5900_vm2, %v5892_v63, %v5731_v50  ;;  %v6510_v9 = vperm.slane %v14818_v7, 0  ;;  %v6511_v8 = vperm.slane %v14819_v44, 0  ;;  %vm14822_vm3 = vmmov %vm14820_vm0  ;;  %vm6541_vm12 = vcmask 1041409  }
 0x6ab   :  { %5403 = vrot.lane.b32.xlu1 %v12744_v11, %s7120_s11  ;;  %v5926_v2 = vsel %vm5917_vm15, %v5909_v45, %v12774_v37  ;;  %v5242_v11 = vsel %vm5151_vm4, %v5139_v52, %v5241_v26  ;;  %v5140_v61 = vperm.slane %v4884_v12, 0  ;;  %v14821_v37 = vmax.f32 %v12475_v29, %v12479_v43  ;;  %v6019_v26 = vpop.f32.mrf.mxu1 }
 0x6ac   :  { %6980 = vmatmul.msk.f32.gmra.mxu1 %vm5947_vm1, %v5926_v2  ;;  %v5394_v46 = vpop.permute.xlu0 %5393  ;;  %v5290_v33 = vsel %vm14820_vm0, 0.0, %v5242_v11  ;;  %v14823_v60 = vmax.f32 %v12485_v38, %v12495_v0  ;;  %vm14824_vm5 = vcmask 1045504   ;;  %vm14825_vm0 = vcmask 1046528   ;;  %v14828_v11 = vld [vmem:[#allocation285_spill] sm:$0xff] }
 0x6ad   :  { %v6509_v1 = vperm.slane %v14821_v37, 0  ;;  %v5306_v34 = vsel %vm14822_vm3, %v5140_v61, 0.0  ;;  %v5618_v10 = vrot.slane %v5290_v33, 2  ;;  %v5564_v14 = vrot.slane %v5290_v33, 1 }
 0x6ae   :  { %5539 = vrot.lane.b32.xlu0 %v12798_v54, %s7124_s22  ;;  %v6512_v5 = vperm.slane %v14823_v60, 0  ;;  %v5619_v43 = vrot.slane %v5306_v34, 2  ;;  %v5565_v25 = vrot.slane %v5306_v34, 1  ;;  %vm14826_vm3 = vcmask 64512  }
 0x6af   :  { %v6542_v32 = vsel %vm6541_vm12, %v6510_v9, %v6509_v1  ;;  %v5812_v0 = vsel %vm14826_vm3, %v12159_v22, %v5394_v46  ;;  %v12928_v1 = vld [vmem:[%s13103_s4] ss:$0 sm:$0xff] }
 0x6b0   :  { %v5588_v59 = vpop.permute.xlu2 %5587  ;;  %v6543_v4 = vsel %vm5141_vm13, %v6511_v8, %v6542_v32  ;;  %v5620_v41 = vsel %vm14824_vm5, %v5618_v10, %v5619_v43  ;;  %v5566_v38 = vsel %vm14825_vm0, %v5564_v14, %v5565_v25  ;;  %vm14827_vm5 = vmmov %vm14826_vm3 }
 0x6b1   :  { %v5481_v31 = vpop.permute.xlu1 %5480  ;;  %v12885_v29 = vsel %vm5143_vm14, %v6512_v5, %v6543_v4  ;;  %vm14829_vm0 = vmmov %vm14826_vm3 }
 0x6b2   :  { %5649 = vrot.lane.b32.xlu2 %v12839_v36, %s7127_s14  ;;  %v5827_v21 = vsel %vm2481_vm7, %v5812_v0, %v5481_v31  ;;  %vm14830_vm3 = vmmov %vm14829_vm0 }
 0x6b3   :  { %5595 = vrot.lane.b32.xlu1 %v12827_v24, %s7125_s23  ;;  %v5843_v57 = vsel %vm2611_vm8, %v5827_v21, %v12806_v18 }
 0x6b4   :  { %v5586_v40 = vpop.permute.xlu0 %5585 }
 0x6b5   :  { %v5859_v62 = vsel %vm2741_vm11, %v5843_v57, %v5586_v40 }
 0x6b6   :  { %5697 = vrot.lane.b32.xlu0 %v5290_v33, %s7129_s16 }
 0x6b9   :  { %v5640_v23 = vpop.permute.xlu1 %5639  ;;  %v5735_v55 = vpop.permute.xlu2 %5734 }
 0x6ba   :  { %5787 = vrot.lane.b32.xlu2 %v5620_v41, %s7130_s17  ;;  %v5876_v49 = vsel %vm5866_vm9, %v5859_v62, %v5640_v23 }
 0x6bb   :  { %5742 = vrot.lane.b32.xlu1 %v5566_v38, %s7128_s15  ;;  %v5893_v22 = vsel %vm5883_vm10, %v5876_v49, %v12835_v48  ;;  %s7132_s15 = smov [#allocation2]  }
 0x6bc   :  { %v6022_v45 = vpop.f32.mrf.mxu1  ;;  %s6640_s16 = sshll.u32 %s7132_s15, 4  ;;  %s6641_s16 = int_to_ptr.vmem [resolvable:$true] %s6640_s16 }
 0x6be   :  { %5405 = vrot.lane.b32.xlu0 %v12827_v24, %s7120_s11  ;;  %v5733_v27 = vpop.permute.xlu0 %5732 }
 0x6bf   :  { %v5910_v24 = vsel %vm5900_vm2, %v5893_v22, %v5733_v27 }
 0x6c1   :  { %v5485_v15 = vpop.permute.xlu2 %5484 }
 0x6c2   :  { %5541 = vrot.lane.b32.xlu2 %v5290_v33, %s7124_s22  ;;  %v5778_v3 = vpop.permute.xlu1 %5777 }
 0x6c3   :  { %5492 = vrot.lane.b32.xlu1 %v12839_v36, %s7122_s0  ;;  %v5927_v16 = vsel %vm5917_vm15, %v5910_v24, %v5778_v3  ;;  %v5813_v36 = vsel %vm14827_vm5, %v12212_v19, %v5396_v47  ;;  %vm14831_vm5 = vmmov %vm14829_vm0 }
 0x6c4   :  { %6981 = vmatmul.msk.f32.gmra.mxu1 %vm5947_vm1, %v5927_v16  ;;  %v6020_v16 = vadd.f32 %v12928_v1, %v6019_v26 }
 0x6c6   :  { %5597 = vrot.lane.b32.xlu0 %v5566_v38, %s7125_s23  ;;  %v5483_v18 = vpop.permute.xlu0 %5482 }
 0x6c7   :  { %v5828_v13 = vsel %vm2481_vm7, %v5813_v36, %v5483_v18  ;;  %v6023_v18 = vadd.f32 %v12928_v1, %v6022_v45 }
 0x6c9   :  { %v5644_v42 = vpop.permute.xlu2 %5643 }
 0x6ca   :  { %v5532_v6 = vpop.permute.xlu1 %5531 }
 0x6cb   :  { %5651 = vrot.lane.b32.xlu1 %v5620_v41, %s7127_s14  ;;  %v5844_v48 = vsel %vm2611_vm8, %v5828_v13, %v5532_v6 }
 0x6cc   :  { %v5860_v20 = vsel %vm2741_vm11, %v5844_v48, %v5588_v59 }
 0x6ce   :  { %v5642_v39 = vpop.permute.xlu0 %5641 }
 0x6cf   :  { %v5877_v58 = vsel %vm5866_vm9, %v5860_v20, %v5642_v39 }
 0x6d2   :  { %v5690_v52 = vpop.permute.xlu1 %5689 }
 0x6d3   :  { %v5894_v30 = vsel %vm5883_vm10, %v5877_v58, %v5690_v52  ;;  %v5782_v47 = vpop.permute.xlu2 %5781 }
 0x6d4   :  { %v5911_v63 = vsel %vm5900_vm2, %v5894_v30, %v5735_v55 }
 0x6d6   :  { %v5780_v12 = vpop.permute.xlu0 %5779 }
 0x6d7   :  { %v5928_v50 = vsel %vm5917_vm15, %v5911_v63, %v5780_v12 }
 0x6d8   :  { %6982 = vmatmul.msk.f32.gmra.mxu1 %vm5947_vm1, %v5928_v50 }
 0x6d9   :  { %v6025_v8 = vpop.f32.mrf.mxu1 }
 0x6da   :  { %v5398_v19 = vpop.permute.xlu1 %5397  ;;  %v6026_v34 = vadd.f32 %v12928_v1, %v6025_v8 }
 0x6db   :  { %v5814_v61 = vsel %vm14829_vm0, %v14828_v11, %v5398_v19  ;;  %v5536_v46 = vpop.permute.xlu2 %5535  ;;  %v6064_v19 = vmax.f32 %v6023_v18, 0.0  ;;  %vm14832_vm0 = vcmask 1044484  }
 0x6dc   :  { %v5829_v9 = vsel %vm2481_vm7, %v5814_v61, %v5485_v15  ;;  %v6065_v59 = vmax.f32 %v6026_v34, 0.0 }
 0x6dd   :  { %v6102_v8 = vrot.slane %v6064_v19, 2 }
 0x6de   :  { %v5534_v2 = vpop.permute.xlu0 %5533  ;;  %v6105_v43 = vrot.slane %v6065_v59, 2  ;;  %v6106_v25 = vrot.slane %v6065_v59, 4  ;;  %v6107_v40 = vrot.slane %v6065_v59, 6  ;;  %v7004_v21 = vrot.slane %v6065_v59, 9 }
 0x6df   :  { %v5845_v44 = vsel %vm2611_vm8, %v5829_v9, %v5534_v2 }
 0x6e0   :  { %v7005_v57 = vrot.slane %v6105_v43, 9  ;;  %v7006_v55 = vrot.slane %v6106_v25, 9  ;;  %v7007_v62 = vrot.slane %v6107_v40, 9  ;;  %v12939_v15 = vmax.f32 %v6065_v59, %v7004_v21 }
 0x6e2   :  { %v5590_v7 = vpop.permute.xlu1 %5589  ;;  %v12947_v20 = vmax.f32 %v6106_v25, %v7006_v55  ;;  %v12949_v58 = vmax.f32 %v6107_v40, %v7007_v62 }
 0x6e3   :  { %v5861_v33 = vsel %vm2741_vm11, %v5845_v44, %v5590_v7  ;;  %v5694_v4 = vpop.permute.xlu2 %5693  ;;  %v6063_v7 = vmax.f32 %v6020_v16, 0.0 }
 0x6e4   :  { %v5878_v60 = vsel %vm5866_vm9, %v5861_v33, %v5644_v42  ;;  %v12945_v42 = vmax.f32 %v6105_v43, %v7005_v57  ;;  %v6103_v33 = vrot.slane %v6064_v19, 4  ;;  %v7001_v43 = vrot.slane %v6102_v8, 9 }
 0x6e5   :  { %v6099_v34 = vrot.slane %v6063_v7, 2  ;;  %v6101_v40 = vrot.slane %v6063_v7, 6 }
 0x6e6   :  { %v5692_v37 = vpop.permute.xlu0 %5691  ;;  %v7002_v25 = vrot.slane %v6103_v33, 9  ;;  %v6394_v57 = vmax.f32 %v6102_v8, %v7001_v43 }
 0x6e7   :  { %v5895_v5 = vsel %vm5883_vm10, %v5878_v60, %v5692_v37  ;;  %v7000_v60 = vrot.slane %v6064_v19, 9  ;;  %v6999_v62 = vrot.slane %v6101_v40, 9 }
 0x6e8   :  { %v6395_v55 = vmax.f32 %v6103_v33, %v7002_v25 }
 0x6eb   :  { %v5737_v31 = vpop.permute.xlu1 %5736  ;;  %v5402_v52 = vpop.permute.xlu2 %5401 }
 0x6ec   :  { %v5912_v10 = vsel %vm5900_vm2, %v5895_v5, %v5737_v31  ;;  %v5816_v18 = vsel %vm14831_vm5, %v12616_v53, %v5402_v52 }
 0x6ed   :  { %v5929_v32 = vsel %vm5917_vm15, %v5912_v10, %v5782_v47  ;;  %v6100_v10 = vrot.slane %v6063_v7, 4 }
 0x6ee   :  { %6983 = vmatmul.msk.f32.gmra.mxu1 %vm5947_vm1, %v5929_v32  ;;  %v5400_v14 = vpop.permute.xlu0 %5399 }
 0x6ef   :  { %v5815_v6 = vsel %vm14830_vm3, %v12438_v35, %v5400_v14  ;;  %v6104_v14 = vrot.slane %v6064_v19, 6  ;;  %vm14833_vm3 = vcmask 1045509  }
 0x6f2   :  { %v6028_v41 = vpop.f32.mrf.mxu1 }
 0x6f3   :  { %v6029_v38 = vadd.f32 %v12928_v1, %v6028_v41  ;;  %v5487_v0 = vpop.permute.xlu1 %5486  ;;  %v5594_v32 = vpop.permute.xlu2 %5593  ;;  %v6997_v41 = vrot.slane %v6099_v34, 9 }
 0x6f4   :  { %v5830_v30 = vsel %vm2481_vm7, %v5815_v6, %v5487_v0 }
 0x6f5   :  { %v6066_v23 = vmax.f32 %v6029_v38, 0.0  ;;  %v5846_v11 = vsel %vm2611_vm8, %v5830_v30, %v5536_v46  ;;  %v6996_v46 = vrot.slane %v6063_v7, 9  ;;  %v6393_v38 = vmax.f32 %v6064_v19, %v7000_v60 }
 0x6f6   :  { %v5592_v24 = vpop.permute.xlu0 %5591 }
 0x6f7   :  { %v6108_v27 = vrot.slane %v6066_v23, 2  ;;  %v6109_v49 = vrot.slane %v6066_v23, 4  ;;  %v6110_v22 = vrot.slane %v6066_v23, 6  ;;  %v7008_v3 = vrot.slane %v6066_v23, 9 }
 0x6f8   :  { %v5862_v61 = vsel %vm2741_vm11, %v5846_v11, %v5592_v24  ;;  %v6389_v21 = vmax.f32 %v6063_v7, %v6996_v46 }
 0x6f9   :  { %v7009_v36 = vrot.slane %v6108_v27, 9  ;;  %v7010_v13 = vrot.slane %v6109_v49, 9  ;;  %v7011_v48 = vrot.slane %v6110_v22, 9  ;;  %v12943_v39 = vmax.f32 %v6066_v23, %v7008_v3 }
 0x6fa   :  { %v7003_v23 = vrot.slane %v6104_v14, 9 }
 0x6fb   :  { %v12952_v26 = vmax.f32 %v6108_v27, %v7009_v36  ;;  %v12954_v12 = vmax.f32 %v6109_v49, %v7010_v13  ;;  %v12956_v63 = vmax.f32 %v6110_v22, %v7011_v48  ;;  %v6453_v35 = vmax.f32 %v12939_v15, %v12943_v39  ;;  %v5646_v50 = vpop.permute.xlu1 %5645 }
 0x6fc   :  { %v5879_v9 = vsel %vm5866_vm9, %v5862_v61, %v5646_v50  ;;  %v6390_v27 = vmax.f32 %v6099_v34, %v6997_v41  ;;  %v6449_v49 = vmax.f32 %v6389_v21, %v6393_v38  ;;  %v6396_v24 = vmax.f32 %v6104_v14, %v7003_v23  ;;  %v5741_v36 = vpop.permute.xlu2 %5740 }
 0x6fd   :  { %v6454_v47 = vmax.f32 %v12945_v42, %v12952_v26  ;;  %v6455_v45 = vmax.f32 %v12947_v20, %v12954_v12  ;;  %v6456_v2 = vmax.f32 %v12949_v58, %v12956_v63  ;;  %v5896_v37 = vsel %vm5883_vm10, %v5879_v9, %v5694_v4  ;;  %v6601_v42 = vld [vmem:[%s13104_s5] sm:$0xff] }
 0x6fe   :  { %v6998_v4 = vrot.slane %v6100_v10, 9  ;;  %v6450_v16 = vmax.f32 %v6390_v27, %v6394_v57  ;;  %v6392_v48 = vmax.f32 %v6101_v40, %v6999_v62  ;;  %v6513_v30 = vperm.slane %v6449_v49, 0 }
 0x700   :  { %v5739_v44 = vpop.permute.xlu0 %5738  ;;  %v6391_v3 = vmax.f32 %v6100_v10, %v6998_v4  ;;  %v6452_v61 = vmax.f32 %v6392_v48, %v6396_v24  ;;  %v6514_v7 = vperm.slane %v6450_v16, 0  ;;  %v6545_v52 = vsel %vm14832_vm0, %v6513_v30, %v12885_v29  ;;  %vm14834_vm0 = vmmov %vm14831_vm5 }
 0x701   :  { %v5913_v5 = vsel %vm5900_vm2, %v5896_v37, %v5739_v44 }
 0x702   :  { %v6451_v6 = vmax.f32 %v6391_v3, %v6395_v55  ;;  %v6516_v34 = vperm.slane %v6452_v61, 0  ;;  %v6546_v60 = vsel %vm14833_vm3, %v6514_v7, %v6545_v52 }
 0x704   :  { %v6515_v9 = vperm.slane %v6451_v6, 0  ;;  %v5491_v46 = vpop.permute.xlu2 %5490 }
 0x705   :  { %v5784_v31 = vpop.permute.xlu1 %5783 }
 0x706   :  { %v5930_v59 = vsel %vm5917_vm15, %v5913_v5, %v5784_v31  ;;  %v6547_v5 = vsel %vm5149_vm6, %v6515_v9, %v6546_v60 }
 0x707   :  { %6984 = vmatmul.msk.f32.gmra.mxu1 %vm5947_vm1, %v5930_v59 }
 0x708   :  { %v5489_v0 = vpop.permute.xlu0 %5488  ;;  %v6031_v11 = vpop.f32.mrf.mxu1 }
 0x709   :  { %v5831_v13 = vsel %vm2481_vm7, %v5816_v18, %v5489_v0  ;;  %v6032_v8 = vadd.f32 %v12928_v1, %v6031_v11 }
 0x70b   :  { %v6067_v31 = vmax.f32 %v6032_v8, 0.0 }
 0x70c   :  { %v5650_v16 = vpop.permute.xlu2 %5649 }
 0x70d   :  { %v5538_v22 = vpop.permute.xlu1 %5537  ;;  %v6111_v29 = vrot.slane %v6067_v31, 2  ;;  %v6112_v43 = vrot.slane %v6067_v31, 4  ;;  %v6113_v25 = vrot.slane %v6067_v31, 6  ;;  %v7012_v0 = vrot.slane %v6067_v31, 9 }
 0x70e   :  { %v5847_v50 = vsel %vm2611_vm8, %v5831_v13, %v5538_v22 }
 0x70f   :  { %v5863_v44 = vsel %vm2741_vm11, %v5847_v50, %v5594_v32  ;;  %v12987_v32 = vsel %vm5151_vm4, %v6516_v34, %v6547_v5  ;;  %v7013_v21 = vrot.slane %v6111_v29, 9  ;;  %v7014_v23 = vrot.slane %v6112_v43, 9 }
 0x710   :  { %v5648_v19 = vpop.permute.xlu0 %5647  ;;  %v7015_v57 = vrot.slane %v6113_v25, 9  ;;  %v6405_v3 = vmax.f32 %v6067_v31, %v7012_v0 }
 0x711   :  { %v5880_v33 = vsel %vm5866_vm9, %v5863_v44, %v5648_v19  ;;  %v6406_v48 = vmax.f32 %v6111_v29, %v7013_v21  ;;  %v6407_v30 = vmax.f32 %v6112_v43, %v7014_v23 }
 0x712   :  { %v6408_v50 = vmax.f32 %v6113_v25, %v7015_v57 }
 0x714   :  { %v5788_v31 = vpop.permute.xlu2 %5787 }
 0x715   :  { %v5696_v53 = vpop.permute.xlu1 %5695 }
 0x716   :  { %v5897_v37 = vsel %vm5883_vm10, %v5880_v33, %v5696_v53 }
 0x717   :  { %v5914_v59 = vsel %vm5900_vm2, %v5897_v37, %v5741_v36 }
 0x718   :  { %v5786_v10 = vpop.permute.xlu0 %5785 }
 0x719   :  { %v5931_v14 = vsel %vm5917_vm15, %v5914_v59, %v5786_v10 }
 0x71a   :  { %6985 = vmatmul.msk.f32.gmra.mxu1 %vm5947_vm1, %v5931_v14  ;;  %v6602_v14 = vld [vmem:[%s13104_s5 + $0x8] sm:$0xff] }
 0x71b   :  { %6627 = vmatpush.msrb.mxu2 %v6602_v14 }
 0x71d   :  { %v5404_v40 = vpop.permute.xlu1 %5403  ;;  %v6034_v41 = vpop.f32.mrf.mxu1  ;;  %6628 = vmatpush.msrb.mxu2 %v6601_v42 }
 0x71e   :  { %v6035_v38 = vadd.f32 %v12928_v1, %v6034_v41  ;;  %v5817_v24 = vsel %vm14831_vm5, %v12718_v17, %v5404_v40  ;;  %v5542_v41 = vpop.permute.xlu2 %5541 }
 0x71f   :  { %v5832_v44 = vsel %vm2481_vm7, %v5817_v24, %v5491_v46 }
 0x720   :  { %v6068_v4 = vmax.f32 %v6035_v38, 0.0  ;;  %v5540_v55 = vpop.permute.xlu0 %5539 }
 0x721   :  { %v5848_v17 = vsel %vm2611_vm8, %v5832_v44, %v5540_v55  ;;  %v6518_v55 = vperm.slane %v6454_v47, 0 }
 0x722   :  { %v6114_v62 = vrot.slane %v6068_v4, 2  ;;  %v6115_v27 = vrot.slane %v6068_v4, 4  ;;  %v6116_v49 = vrot.slane %v6068_v4, 6  ;;  %v7016_v22 = vrot.slane %v6068_v4, 9 }
 0x724   :  { %v7017_v18 = vrot.slane %v6114_v62, 9  ;;  %v7018_v6 = vrot.slane %v6115_v27, 9  ;;  %v7019_v36 = vrot.slane %v6116_v49, 9  ;;  %v6409_v13 = vmax.f32 %v6068_v4, %v7016_v22 }
 0x725   :  { %v5596_v19 = vpop.permute.xlu1 %5595 }
 0x726   :  { %v6410_v11 = vmax.f32 %v6114_v62, %v7017_v18  ;;  %v6411_v61 = vmax.f32 %v6115_v27, %v7018_v6  ;;  %v6412_v7 = vmax.f32 %v6116_v49, %v7019_v36  ;;  %v6457_v9 = vmax.f32 %v6405_v3, %v6409_v13 }
 0x727   :  { %v5864_v52 = vsel %vm2741_vm11, %v5848_v17, %v5596_v19  ;;  %v6519_v62 = vperm.slane %v6455_v45, 0  ;;  %v6574_v45 = vsel %vm2481_vm7, %v12987_v32, 0.0 }
 0x728   :  { %v6458_v8 = vmax.f32 %v6406_v48, %v6410_v11  ;;  %v6459_v33 = vmax.f32 %v6407_v30, %v6411_v61  ;;  %v6460_v53 = vmax.f32 %v6408_v50, %v6412_v7  ;;  %v5698_v37 = vpop.permute.xlu0 %5697  ;;  %v5881_v34 = vsel %vm5866_vm9, %v5864_v52, %v5650_v16 }
 0x729   :  { %v5898_v60 = vsel %vm5883_vm10, %v5881_v34, %v5698_v37  ;;  %v6521_v20 = vperm.slane %v6457_v9, 0  ;;  %v6037_v63 = vpop.f32.mrf.mxu1 }
 0x72a   :  { %v6522_v26 = vperm.slane %v6458_v8, 0  ;;  %v6523_v12 = vperm.slane %v6459_v33, 0  ;;  %v6524_v39 = vperm.slane %v6460_v53, 0  ;;  %v6038_v36 = vadd.f32 %v12928_v1, %v6037_v63 }
 0x72c   :  { %v6069_v48 = vmax.f32 %v6038_v36, 0.0 }
 0x72d   :  { %v5743_v5 = vpop.permute.xlu1 %5742 }
 0x72e   :  { %v5915_v10 = vsel %vm5900_vm2, %v5898_v60, %v5743_v5  ;;  %v6117_v19 = vrot.slane %v6069_v48, 2  ;;  %v6118_v32 = vrot.slane %v6069_v48, 4  ;;  %v6119_v7 = vrot.slane %v6069_v48, 6 }
 0x72f   :  { %v5932_v59 = vsel %vm5917_vm15, %v5915_v10, %v5788_v31  ;;  %v7020_v53 = vrot.slane %v6069_v48, 9 }
 0x730   :  { %6986 = vmatmul.msk.f32.gmra.mxu1 %vm5947_vm1, %v5932_v59  ;;  %v5406_v46 = vpop.permute.xlu0 %5405  ;;  %v7021_v52 = vrot.slane %v6117_v19, 9  ;;  %v7022_v5 = vrot.slane %v6118_v32, 9  ;;  %v7023_v31 = vrot.slane %v6119_v7, 9 }
 0x731   :  { %v5818_v43 = vsel %vm14834_vm0, %v12798_v54, %v5406_v46 }
 0x735   :  { %v5493_v29 = vpop.permute.xlu1 %5492 }
 0x736   :  { %v5833_v25 = vsel %vm2481_vm7, %v5818_v43, %v5493_v29  ;;  %v6413_v29 = vmax.f32 %v6069_v48, %v7020_v53 }
 0x737   :  { %v5849_v38 = vsel %vm2611_vm8, %v5833_v25, %v5542_v41  ;;  %vm14835_vm8 = vcmask 1044484   ;;  %v6414_v25 = vmax.f32 %v6117_v19, %v7021_v52 }
 0x738   :  { %v5598_v40 = vpop.permute.xlu0 %5597 }
 0x739   :  { %v5865_v0 = vsel %vm2741_vm11, %v5849_v38, %v5598_v40  ;;  %vm14836_vm11 = vmmov %vm14833_vm3 }
 0x73d   :  { %v5652_v4 = vpop.permute.xlu1 %5651 }
 0x73e   :  { %v5882_v21 = vsel %vm5866_vm9, %v5865_v0, %v5652_v4  ;;  %v6415_v0 = vmax.f32 %v6118_v32, %v7022_v5  ;;  %v6416_v4 = vmax.f32 %v6119_v7, %v7023_v31  ;;  %vm14837_vm9 = vmmov %vm14835_vm8 }
 0x73f   :  { %v5899_v23 = vsel %vm5883_vm10, %v5882_v21, %v12792_v28  ;;  %v6517_v28 = vperm.slane %v6453_v35, 0  ;;  %vm14838_vm10 = vmmov %vm14833_vm3 }
 0x740   :  { %v5916_v57 = vsel %vm5900_vm2, %v5899_v23, %v12812_v56  ;;  %v6520_v56 = vperm.slane %v6456_v2, 0  ;;  %vm14840_vm2 = vmmov %vm14833_vm3 }
 0x741   :  { %v5933_v54 = vsel %vm5917_vm15, %v5916_v57, %v12704_v51  ;;  %v6549_v51 = vsel %vm6541_vm12, %v6518_v55, %v6517_v28  ;;  %v6040_v3 = vpop.f32.mrf.mxu1 }
 0x742   :  { %6987 = vmatmul.msk.f32.gmra.mxu1 %vm5947_vm1, %v5933_v54  ;;  %v6550_v27 = vsel %vm5141_vm13, %v6519_v62, %v6549_v51  ;;  %v6041_v18 = vadd.f32 %v12928_v1, %v6040_v3 }
 0x743   :  { %v6551_v49 = vsel %vm5143_vm14, %v6520_v56, %v6550_v27 }
 0x744   :  { %v6552_v15 = vsel %vm14835_vm8, %v6521_v20, %v6551_v49  ;;  %v6070_v13 = vmax.f32 %v6041_v18, 0.0 }
 0x745   :  { %v6553_v58 = vsel %vm14836_vm11, %v6522_v26, %v6552_v15 }
 0x746   :  { %v6554_v35 = vsel %vm5149_vm6, %v6523_v12, %v6553_v58  ;;  %v6120_v30 = vrot.slane %v6070_v13, 2  ;;  %v6121_v11 = vrot.slane %v6070_v13, 4  ;;  %v6122_v61 = vrot.slane %v6070_v13, 6 }
 0x747   :  { %v6555_v47 = vsel %vm5151_vm4, %v6524_v39, %v6554_v35  ;;  %v7024_v9 = vrot.slane %v6070_v13, 9 }
 0x748   :  { %v6575_v2 = vsel %vm2481_vm7, %v6555_v47, 0.0  ;;  %v7025_v44 = vrot.slane %v6120_v30, 9  ;;  %v7026_v37 = vrot.slane %v6121_v11, 9  ;;  %v7027_v34 = vrot.slane %v6122_v61, 9 }
 0x749   :  { %v13043_v22 = vadd.f32 %v6575_v2, %v6574_v45  ;;  %v6417_v10 = vmax.f32 %v6070_v13, %v7024_v9 }
 0x74a   :  { %v6418_v59 = vmax.f32 %v6120_v30, %v7025_v44  ;;  %v6419_v40 = vmax.f32 %v6121_v11, %v7026_v37  ;;  %v6420_v41 = vmax.f32 %v6122_v61, %v7027_v34 }
 0x74b   :  { %v6461_v21 = vmax.f32 %v6413_v29, %v6417_v10 }
 0x74c   :  { %v6462_v23 = vmax.f32 %v6414_v25, %v6418_v59  ;;  %v6463_v56 = vmax.f32 %v6415_v0, %v6419_v40  ;;  %v6464_v51 = vmax.f32 %v6416_v4, %v6420_v41 }
 0x74d   :  { %v6525_v15 = vperm.slane %v6461_v21, 0 }
 0x74e   :  { %v6526_v39 = vperm.slane %v6462_v23, 0  ;;  %v6528_v25 = vperm.slane %v6464_v51, 0 }
 0x750   :  { %v6556_v59 = vsel %vm6541_vm12, %v6526_v39, %v6525_v15 }
 0x755   :  { %v6043_v24 = vpop.f32.mrf.mxu1 }
 0x756   :  { %v6044_v8 = vadd.f32 %v12928_v1, %v6043_v24  ;;  %v6527_v24 = vperm.slane %v6463_v56, 0 }
 0x758   :  { %v6071_v46 = vmax.f32 %v6044_v8, 0.0  ;;  %v6557_v23 = vsel %vm5141_vm13, %v6527_v24, %v6556_v59 }
 0x75a   :  { %v6123_v57 = vrot.slane %v6071_v46, 2  ;;  %v6124_v55 = vrot.slane %v6071_v46, 4  ;;  %v6125_v42 = vrot.slane %v6071_v46, 6  ;;  %v7028_v20 = vrot.slane %v6071_v46, 9 }
 0x75c   :  { %v7029_v58 = vrot.slane %v6123_v57, 9  ;;  %v7030_v35 = vrot.slane %v6124_v55, 9  ;;  %v7031_v36 = vrot.slane %v6125_v42, 9  ;;  %v6421_v13 = vmax.f32 %v6071_v46, %v7028_v20 }
 0x75d   :  { %v6558_v20 = vsel %vm5143_vm14, %v6528_v25, %v6557_v23 }
 0x75e   :  { %v6423_v32 = vmax.f32 %v6124_v55, %v7030_v35  ;;  %v13066_v52 = vmax.f32 %v6125_v42, %v7031_v36 }
 0x76b   :  { %v6046_v16 = vpop.f32.mrf.mxu1 }
 0x76c   :  { %v6047_v17 = vadd.f32 %v12928_v1, %v6046_v16 }
 0x76e   :  { %v6072_v43 = vmax.f32 %v6047_v17, 0.0 }
 0x770   :  { %v6126_v62 = vrot.slane %v6072_v43, 2  ;;  %v6127_v28 = vrot.slane %v6072_v43, 4  ;;  %v6128_v27 = vrot.slane %v6072_v43, 6  ;;  %v7032_v26 = vrot.slane %v6072_v43, 9 }
 0x772   :  { %v7033_v47 = vrot.slane %v6126_v62, 9  ;;  %v7034_v45 = vrot.slane %v6127_v28, 9  ;;  %v7035_v16 = vrot.slane %v6128_v27, 9  ;;  %v6425_v48 = vmax.f32 %v6072_v43, %v7032_v26 }
 0x774   :  { %v6426_v7 = vmax.f32 %v6126_v62, %v7033_v47  ;;  %v6427_v9 = vmax.f32 %v6127_v28, %v7034_v45  ;;  %v13062_v8 = vmax.f32 %v6128_v27, %v7035_v16  ;;  %v6465_v37 = vmax.f32 %v6421_v13, %v6425_v48 }
 0x776   :  { %v6467_v29 = vmax.f32 %v6423_v32, %v6427_v9  ;;  %v6468_v40 = vmax.f32 %v13066_v52, %v13062_v8  ;;  %v6529_v0 = vperm.slane %v6465_v37, 0 }
 0x778   :  { %v6531_v56 = vperm.slane %v6467_v29, 0  ;;  %v6559_v39 = vsel %vm14837_vm9, %v6529_v0, %v6558_v20 }
 0x784   :  { %v6049_v6 = vpop.f32.mrf.mxu1 }
 0x785   :  { %v6050_v60 = vadd.f32 %v12928_v1, %v6049_v6 }
 0x787   :  { %v13053_v38 = vmax.f32 %v6050_v60, 0.0 }
 0x789   :  { %v6129_v49 = vrot.slane %v13053_v38, 2  ;;  %v6130_v2 = vrot.slane %v13053_v38, 4  ;;  %v7036_v19 = vrot.slane %v13053_v38, 9  ;;  %v6131_v34 = vrot.slane %v13053_v38, 6 }
 0x78b   :  { %v7037_v18 = vrot.slane %v6129_v49, 9  ;;  %v7038_v44 = vrot.slane %v6130_v2, 9  ;;  %v6429_v5 = vmax.f32 %v13053_v38, %v7036_v19  ;;  %v7039_v4 = vrot.slane %v6131_v34, 9 }
 0x78d   :  { %v6431_v43 = vmax.f32 %v6130_v2, %v7038_v44  ;;  %v6432_v26 = vmax.f32 %v6131_v34, %v7039_v4 }
 0x797   :  { %v6052_v50 = vpop.f32.mrf.mxu1 }
 0x798   :  { %v6053_v33 = vadd.f32 %v12928_v1, %v6052_v50  ;;  %v6422_v50 = vmax.f32 %v6123_v57, %v7029_v58 }
 0x79a   :  { %v13051_v14 = vmax.f32 %v6053_v33, 0.0  ;;  %v6430_v33 = vmax.f32 %v6129_v49, %v7037_v18  ;;  %v6466_v46 = vmax.f32 %v6422_v50, %v6426_v7 }
 0x79c   :  { %v6132_v54 = vrot.slane %v13051_v14, 2  ;;  %v6133_v12 = vrot.slane %v13051_v14, 4  ;;  %v7040_v6 = vrot.slane %v13051_v14, 9  ;;  %v6134_v53 = vrot.slane %v13051_v14, 6 }
 0x79d   :  { %v6530_v28 = vperm.slane %v6466_v46, 0 }
 0x79e   :  { %v7041_v63 = vrot.slane %v6132_v54, 9  ;;  %v7042_v30 = vrot.slane %v6133_v12, 9  ;;  %v6433_v17 = vmax.f32 %v13051_v14, %v7040_v6  ;;  %v7043_v14 = vrot.slane %v6134_v53, 9 }
 0x79f   :  { %v6560_v18 = vsel %vm14838_vm10, %v6530_v28, %v6559_v39  ;;  %v7131_v6 = vmov 16.0  }
 0x7a0   :  { %v6434_v11 = vmax.f32 %v6132_v54, %v7041_v63  ;;  %v6435_v60 = vmax.f32 %v6133_v12, %v7042_v30  ;;  %v6469_v41 = vmax.f32 %v6429_v5, %v6433_v17  ;;  %v6436_v51 = vmax.f32 %v6134_v53, %v7043_v14 }
 0x7a1   :  { %7086 = vrcp.f32 %v7131_v6 }
 0x7a2   :  { %v6470_v31 = vmax.f32 %v6430_v33, %v6434_v11  ;;  %v6471_v21 = vmax.f32 %v6431_v43, %v6435_v60  ;;  %v6533_v49 = vperm.slane %v6469_v41, 0  ;;  %v6577_v33 = vrot.slane %v13043_v22, 4 }
 0x7a3   :  { %v6561_v60 = vsel %vm5149_vm6, %v6531_v56, %v6560_v18 }
 0x7a4   :  { %v6534_v57 = vperm.slane %v6470_v31, 0  ;;  %v6535_v12 = vperm.slane %v6471_v21, 0  ;;  %v6532_v31 = vperm.slane %v6468_v40, 0  ;;  %v6578_v14 = vadd.f32 %v6577_v33, %v13043_v22 }
 0x7a6   :  { %v6563_v47 = vsel %vm6541_vm12, %v6534_v57, %v6533_v49  ;;  %v6562_v43 = vsel %vm5151_vm4, %v6532_v31, %v6561_v60  ;;  %v6579_v23 = vrot.slane %v6578_v14, 2 }
 0x7a7   :  { %v7087_v34 = vpop.eup %7086  ;;  %v6583_v21 = vsel %vm2481_vm7, %v6562_v43, 0.0 }
 0x7a8   :  { %v6593_v0 = vmul.f32 16.0, %v7087_v34 }
 0x7ad   :  { %v6055_v3 = vpop.f32.mrf.mxu1 }
 0x7ae   :  { %v6056_v61 = vadd.f32 %v12928_v1, %v6055_v3 }
 0x7b0   :  { %v6075_v10 = vmax.f32 %v6056_v61, 0.0  ;;  %v6564_v61 = vsel %vm5141_vm13, %v6535_v12, %v6563_v47  ;;  %vm14839_vm13 = vmmov %vm14835_vm8 }
 0x7b2   :  { %v6135_v38 = vrot.slane %v6075_v10, 2  ;;  %v6136_v54 = vrot.slane %v6075_v10, 4  ;;  %v6137_v55 = vrot.slane %v6075_v10, 6  ;;  %v7044_v42 = vrot.slane %v6075_v10, 9 }
 0x7b4   :  { %v7045_v58 = vrot.slane %v6135_v38, 9  ;;  %v7046_v63 = vrot.slane %v6136_v54, 9  ;;  %v7047_v35 = vrot.slane %v6137_v55, 9  ;;  %v6437_v16 = vmax.f32 %v6075_v10, %v7044_v42 }
 0x7b6   :  { %v6438_v50 = vmax.f32 %v6135_v38, %v7045_v58  ;;  %v6439_v19 = vmax.f32 %v6136_v54, %v7046_v63  ;;  %v6440_v11 = vmax.f32 %v6137_v55, %v7047_v35  ;;  %v6594_v38 = vsub.f32 1.0, %v6593_v0  ;;  %v7085_v63 = vld [vmem:[%s13105_s6] ss:$0 sm:$0xff] }
 0x7b7   :  { %v6580_v55 = vadd.f32 %v6579_v23, %v6578_v14 }
 0x7b8   :  { %v6595_v28 = vmul.f32 %v7087_v34, %v6594_v38 }
 0x7ba   :  { %v6596_v22 = vadd.f32 %v7087_v34, %v6595_v28 }
 0x7bf   :  { %v6058_v62 = vpop.f32.mrf.mxu1 }
 0x7c0   :  { %v6059_v27 = vadd.f32 %v12928_v1, %v6058_v62  ;;  %v6472_v1 = vmax.f32 %v6432_v26, %v6436_v51 }
 0x7c2   :  { %v6076_v15 = vmax.f32 %v6059_v27, 0.0  ;;  %v6536_v8 = vperm.slane %v6472_v1, 0  ;;  %v6581_v27 = vrot.slane %v6580_v55, 1 }
 0x7c4   :  { %v6138_v45 = vrot.slane %v6076_v15, 2  ;;  %v6139_v2 = vrot.slane %v6076_v15, 4  ;;  %v6140_v3 = vrot.slane %v6076_v15, 6  ;;  %v7048_v24 = vrot.slane %v6076_v15, 9 }
 0x7c5   :  { %v6565_v5 = vsel %vm5143_vm14, %v6536_v8, %v6564_v61  ;;  %v6582_v42 = vadd.f32 %v6581_v27, %v6580_v55 }
 0x7c6   :  { %v7049_v36 = vrot.slane %v6138_v45, 9  ;;  %v7050_v13 = vrot.slane %v6139_v2, 9  ;;  %v7051_v48 = vrot.slane %v6140_v3, 9  ;;  %v6441_v30 = vmax.f32 %v6076_v15, %v7048_v24 }
 0x7c8   :  { %v6442_v32 = vmax.f32 %v6138_v45, %v7049_v36  ;;  %v6443_v7 = vmax.f32 %v6139_v2, %v7050_v13  ;;  %v6444_v9 = vmax.f32 %v6140_v3, %v7051_v48  ;;  %v6473_v44 = vmax.f32 %v6437_v16, %v6441_v30 }
 0x7ca   :  { %v6474_v53 = vmax.f32 %v6438_v50, %v6442_v32  ;;  %v6475_v17 = vmax.f32 %v6439_v19, %v6443_v7  ;;  %v6476_v52 = vmax.f32 %v6440_v11, %v6444_v9  ;;  %v6537_v37 = vperm.slane %v6473_v44, 0 }
 0x7cc   :  { %v6538_v10 = vperm.slane %v6474_v53, 0  ;;  %v6539_v59 = vperm.slane %v6475_v17, 0  ;;  %v6566_v46 = vsel %vm14839_vm13, %v6537_v37, %v6565_v5  ;;  %v6540_v29 = vperm.slane %v6476_v52, 0 }
 0x7ce   :  { %v6567_v25 = vsel %vm14840_vm2, %v6538_v10, %v6566_v46 }
 0x7cf   :  { %v6568_v41 = vsel %vm5149_vm6, %v6539_v59, %v6567_v25  ;;  %vm6597_vm6 = vweird.f32 %v7087_v34 }
 0x7d0   :  { %v6569_v4 = vsel %vm5151_vm4, %v6540_v29, %v6568_v41  ;;  %v6598_v26 = vsel %vm6597_vm6, %v7087_v34, %v6596_v22  ;;  %vm6633_vm4 = vcmask 74752  }
 0x7d1   :  { %v6584_v40 = vsel %vm2481_vm7, %v6569_v4, 0.0  ;;  %v6599_v15 = vmul.f32 %v6598_v26, %v6582_v42 }
 0x7d2   :  { %v6585_v57 = vadd.f32 %v6584_v40, %v6583_v21 }
 0x7d4   :  { %v6586_v54 = vrot.slane %v6585_v57, 4 }
 0x7d6   :  { %v6587_v62 = vadd.f32 %v6586_v54, %v6585_v57 }
 0x7d8   :  { %v6588_v56 = vrot.slane %v6587_v62, 2 }
 0x7da   :  { %v6589_v51 = vadd.f32 %v6588_v56, %v6587_v62 }
 0x7dc   :  { %v6590_v49 = vrot.slane %v6589_v51, 1 }
 0x7de   :  { %v6591_v20 = vadd.f32 %v6590_v49, %v6589_v51 }
 0x7e0   :  { %v6600_v12 = vmul.f32 %v6598_v26, %v6591_v20 }
 0x7e2   :  { %v6609_v39 = vrot.slane %v6600_v12, 7 }
 0x7e4   :  { %v6610_v58 = vsel %vm6541_vm12, %v6609_v39, %v6599_v15 }
 0x7e5   :  { %7052 = vmatmul.msk.f32.vlgmr.msrb.gmra.mxu2 %vm2481_vm7, %v6610_v58 }
 0x868   :  { %v6630_v35 = vpop.f32.mrf.mxu2 }
 0x869   :  { %v6631_v47 = vadd.f32 %v7085_v63, %v6630_v35 }
 0x86b   :  { %6634 = vst.msk [vmem:[#allocation2] sm:$0x3] %vm6633_vm4, %v6631_v47 }
 0x86c   :  { %6645 = dma.vmem_to_hbm [thread:$0]  %s6641_s16, 32, %s6643_s29, [#allocation3]  }
 0x86d   :  { %7116 = dma.done.wait [#allocation3], 32  }
 0x86e   :  { %7117 = vsyncadd [#allocation3], 4294967264 }
 0x86f   :  { %6650 = vsyncpa [#allocation3], 1 }

</bundles_post_ra>
